<compile_context>
chip_gen: v7x
topology: tpu7x:2x2x1
jax: 0.10.0
libtpu: 0.0.40
codegen_flags: <defaults>
</compile_context>

<pallas_src>
import functools
import math

import jax
import jax.numpy as jnp
from jax.experimental import pallas as pl
from jax.experimental.pallas import tpu as pltpu


# ---------------------------------------------------------------------------
# Hardware query helpers
# ---------------------------------------------------------------------------
def _tpu_vmem_capacity_bytes():
    try:
        return int(pltpu.get_tpu_info().vmem_capacity_bytes)
    except Exception:
        return 128 << 20  # conservative v5e/v6e default


def _fallback_tiles(vmem_capacity):
    if vmem_capacity <= (64 << 20):
        # v7x: 64 MiB physical VMEM per TensorCore.
        return dict(tm=128, tn=512, tk=4096, vmem_limit_bytes=40 << 20)
    # v5e / v6e: 128 MiB physical VMEM (explicit limit raised past scoped default).
    return dict(tm=128, tn=512, tk=8192, vmem_limit_bytes=64 << 20)


# ---------------------------------------------------------------------------
# Fused whole-MLP kernel (primary path): one pallas_call, weights in VMEM.
# ---------------------------------------------------------------------------
def _fused_mlp_kernel(*refs, n_layers):
    """refs = (x_ref, w_0, ..., w_{L-1}, b_packed_ref, o_ref)."""
    x_ref = refs[0]
    w_refs = refs[1:1 + n_layers]
    b_ref = refs[1 + n_layers]          # (1, sum_i N_i) f32, all biases packed
    o_ref = refs[2 + n_layers]

    h = x_ref[...]                      # (M, K0) f32
    off = 0
    for i in range(n_layers):           # static unroll over the L layers
        w = w_refs[i][...]              # (K_i, N_i) bf16
        n_i = w.shape[1]
        b = b_ref[0:1, off:off + n_i]   # (1, N_i) f32, broadcast over rows
        off += n_i
        h = jnp.dot(h.astype(jnp.bfloat16), w,
                    preferred_element_type=jnp.float32) + b
        if i < n_layers - 1:
            h = jnp.maximum(h, 0.0)     # ReLU on all but the last layer
    o_ref[...] = h.astype(o_ref.dtype)


def fused_mlp_forward(x, weights, b_packed, *, vmem_limit_bytes):
    """Single-kernel forward of the whole MLP. x: (M, D_in) f32, weights bf16."""
    M = x.shape[0]
    n_layers = len(weights)
    out_dim = int(weights[-1].shape[1])
    flat_inputs = [x] + list(weights) + [b_packed]

    flops = 2 * M * sum(int(w.shape[0]) * int(w.shape[1]) for w in weights)
    bytes_accessed = (sum(int(a.size) * a.dtype.itemsize for a in flat_inputs)
                      + M * out_dim * x.dtype.itemsize)
    kernel = functools.partial(_fused_mlp_kernel, n_layers=n_layers)

    def build_and_call(single_buffer):
        def full_spec(arr):
            if single_buffer:
                # grid=(1,) -> nothing to pipeline; keep a single VMEM copy.
                return pl.BlockSpec(arr.shape, lambda i: (0, 0),
                                    pipeline_mode=pl.Buffered(1))
            return pl.BlockSpec(arr.shape, lambda i: (0, 0))

        return pl.pallas_call(
            kernel,
            out_shape=jax.ShapeDtypeStruct((M, out_dim), x.dtype),
            grid_spec=pltpu.PrefetchScalarGridSpec(
                num_scalar_prefetch=0,
                grid=(1,),                              # one block: no step overhead
                in_specs=[full_spec(a) for a in flat_inputs],
                out_specs=pl.BlockSpec((M, out_dim), lambda i: (0, 0)),
            ),
            compiler_params=pltpu.CompilerParams(
                dimension_semantics=("arbitrary",),
                vmem_limit_bytes=int(vmem_limit_bytes),
            ),
            cost_estimate=pl.CostEstimate(flops=int(flops), transcendentals=0,
                                          bytes_accessed=int(bytes_accessed)),
        )(*flat_inputs)

    try:
        return build_and_call(single_buffer=True)
    except Exception:
        # TODO(synk): this jax/Mosaic build rejected pl.Buffered(1); default
        # double-buffering only costs VMEM footprint here, not wall-clock.
        return build_and_call(single_buffer=False)


# ---------------------------------------------------------------------------
# Tiled per-layer fallback (only used when weights do not fit in VMEM).
# ---------------------------------------------------------------------------
def _linear_kernel(x_ref, w_ref, b_ref, o_ref, acc_ref, *, apply_relu, tk):
    k = pl.program_id(2)

    @pl.when(k == 0)
    def _():
        acc_ref[...] = jnp.zeros_like(acc_ref)

    k_off = pl.multiple_of(k * tk, tk)
    x_blk = x_ref[:, pl.ds(k_off, tk)]          # slice of the VMEM-resident x row-block
    acc_ref[...] += jnp.dot(x_blk.astype(jnp.bfloat16), w_ref[...],
                            preferred_element_type=jnp.float32)

    @pl.when(k == pl.num_programs(2) - 1)
    def _():
        y = acc_ref[...] + b_ref[...]
        if apply_relu:
            y = jnp.maximum(y, 0.0)
        o_ref[...] = y.astype(o_ref.dtype)


def pallas_linear(x, w, b, *, apply_relu, tm=128, tn=512, tk=8192,
                  vmem_limit_bytes=64 << 20):
    """y = x @ w + b (optionally ReLU). x: (M, K) f32, w: (K, N) bf16, b: (N,) f32."""
    M, K = x.shape
    K2, N = w.shape
    assert K == K2 and b.shape == (N,)
    tm = min(tm, M)
    tn = min(tn, N)
    tk = min(tk, K)
    if K % tk:
        # TODO(synk): masked partial-K blocks; the module's default dims never hit this.
        tk = K

    b2d = b.reshape(1, N)
    grid = (pl.cdiv(M, tm), pl.cdiv(N, tn), K // tk)   # reduction (K) axis last
    kernel = functools.partial(_linear_kernel, apply_relu=apply_relu, tk=tk)

    # Explicit VMEM limit sized from the actual buffers (+ headroom).
    need = (tm * K * x.dtype.itemsize              # resident x row-block
            + 2 * tk * tn * w.dtype.itemsize       # double-buffered bf16 weight stream
            + 2 * tn * b2d.dtype.itemsize          # bias block
            + tm * tn * 4                          # f32 accumulator scratch
            + 2 * tm * tn * x.dtype.itemsize)      # double-buffered output block
    vmem_limit = max(int(vmem_limit_bytes), int(need) + (4 << 20))

    flops = 2 * M * K * N
    bytes_accessed = (M * K * x.dtype.itemsize + K * N * w.dtype.itemsize
                      + N * b2d.dtype.itemsize + M * N * x.dtype.itemsize)

    return pl.pallas_call(
        kernel,
        out_shape=jax.ShapeDtypeStruct((M, N), x.dtype),
        grid_spec=pltpu.PrefetchScalarGridSpec(
            num_scalar_prefetch=0,
            grid=grid,
            in_specs=[
                # x hoisted fully along K; block index constant across (n, k) so it is
                # DMA'd once per M row-block and reused (no per-step re-fetch).
                pl.BlockSpec((tm, K), lambda m, n, k: (m, 0)),
                # TODO(synk): if a trace shows exposed weight DMA, deepen with
                # pipeline_mode=pl.Buffered(3) on this spec.
                pl.BlockSpec((tk, tn), lambda m, n, k: (k, n)),
                pl.BlockSpec((1, tn), lambda m, n, k: (0, n)),
            ],
            out_specs=pl.BlockSpec((tm, tn), lambda m, n, k: (m, n)),
            scratch_shapes=[pltpu.VMEM((tm, tn), jnp.float32)],
        ),
        compiler_params=pltpu.CompilerParams(
            dimension_semantics=("parallel", "parallel", "arbitrary"),
            vmem_limit_bytes=int(vmem_limit),
        ),
        cost_estimate=pl.CostEstimate(flops=int(flops), transcendentals=0,
                                      bytes_accessed=int(bytes_accessed)),
    )(x, w, b2d)


# ---------------------------------------------------------------------------
# Model glue
# ---------------------------------------------------------------------------
def init_linear_params(key, in_dim, out_dim):
    """Deterministic init mimicking nn.Linear default (uniform +/- 1/sqrt(fan_in))."""
    kw, kb = jax.random.split(key)
    bound = 1.0 / math.sqrt(in_dim)
    # Stored already transposed: (in_dim, out_dim) == PyTorch weight.T.
    # Weights shipped as bf16 (HBM-bandwidth bound); accumulation stays f32 in-kernel.
    w = jax.random.uniform(kw, (in_dim, out_dim), jnp.float32, -bound, bound)
    b = jax.random.uniform(kb, (out_dim,), jnp.float32, -bound, bound)
    return w.astype(jnp.bfloat16), b


def make_linear_model_params(key, input_dim, hidden_dims, output_dim):
    dims = [input_dim] + list(hidden_dims) + [output_dim]
    params = []
    for i in range(len(dims) - 1):
        key, sub = jax.random.split(key)
        params.append(init_linear_params(sub, dims[i], dims[i + 1]))
    return params


def linear_model_forward(x, params, *, force_fallback=False):
    """Forward pass matching LinearModel: Linear+ReLU x (L-1), plain Linear last."""
    weights = [w for (w, _) in params]
    biases = [b for (_, b) in params]
    n_layers = len(params)
    M = x.shape[0]

    cap = _tpu_vmem_capacity_bytes()
    fused_budget = min(int(0.75 * cap), 100 << 20)   # ~48 MiB v7x, ~96 MiB v5e/v6e

    w_bytes = sum(int(w.size) * w.dtype.itemsize for w in weights)
    b_bytes = sum(int(b.size) * b.dtype.itemsize for b in biases)
    x_bytes = int(x.size) * x.dtype.itemsize
    max_width = max([x.shape[1]] + [int(w.shape[1]) for w in weights])
    act_bytes = 2 * M * max_width * 4                      # two live f32 activations
    out_bytes = M * int(weights[-1].shape[1]) * 4
    needed = x_bytes + w_bytes + b_bytes + act_bytes + out_bytes

    if (not force_fallback) and needed <= fused_budget:
        # All weights resident in VMEM -> single fused kernel (fast path).
        b_packed = jnp.concatenate([b.reshape(1, -1) for b in biases], axis=1)
        vmem_limit = min(int(0.85 * cap),
                         max(32 << 20,
                             2 * (w_bytes + b_bytes) + x_bytes + act_bytes
                             + 2 * out_bytes + (8 << 20)))
        return fused_mlp_forward(x, weights, b_packed, vmem_limit_bytes=vmem_limit)

    # Fallback for very wide configs (e.g. hidden_dims=[16384]*6): layer-by-layer
    # tiled kernels with generation-aware tiles.
    tiles = _fallback_tiles(cap)
    h = x
    for i, (w, b) in enumerate(params):
        h = pallas_linear(h, w, b, apply_relu=(i < n_layers - 1), **tiles)
    return h


if __name__ == "__main__":
    # Small shapes consistent with the module structure (7 Linear layers total).
    batch = 2
    input_dim = 256
    hidden_dims = [512] * 6
    output_dim = 256

    key = jax.random.PRNGKey(0)
    key, xkey = jax.random.split(key)
    x = jax.random.normal(xkey, (batch, input_dim), dtype=jnp.float32)

    params = make_linear_model_params(key, input_dim, hidden_dims, output_dim)

    # Fused fast path (the path real small-M inference takes).
    out_fused = jax.block_until_ready(linear_model_forward(x, params))

    # Also exercise the tiled fallback path (used when weights exceed VMEM).
    out_tiled = jax.block_until_ready(
        linear_model_forward(x, params, force_fallback=True))

    # Reference in plain JAX (same bf16-weight / f32-accumulate math as the kernels).
    ref = x
    for i, (w, b) in enumerate(params):
        ref = jnp.dot(ref.astype(jnp.bfloat16), w,
                      preferred_element_type=jnp.float32) + b
        if i < len(params) - 1:
            ref = jnp.maximum(ref, 0.0)

    assert out_fused.shape == (batch, output_dim)
    assert out_tiled.shape == (batch, output_dim)
    assert jnp.allclose(out_fused, ref, atol=1e-2, rtol=1e-2)
    assert jnp.allclose(out_tiled, ref, atol=1e-2, rtol=1e-2)

    print("KERNEL_OK")
</pallas_src>

<mosaic_0001>
module attributes {stable_mosaic.version = 11 : i64} {
  func.func @_fused_mlp_kernel(%arg0: i32, %arg1: memref<2x256xf32, #tpu.memory_space<vmem>>, %arg2: memref<256x512xbf16, #tpu.memory_space<vmem>>, %arg3: memref<512x512xbf16, #tpu.memory_space<vmem>>, %arg4: memref<512x512xbf16, #tpu.memory_space<vmem>>, %arg5: memref<512x512xbf16, #tpu.memory_space<vmem>>, %arg6: memref<512x512xbf16, #tpu.memory_space<vmem>>, %arg7: memref<512x512xbf16, #tpu.memory_space<vmem>>, %arg8: memref<512x256xbf16, #tpu.memory_space<vmem>>, %arg9: memref<1x3328xf32, #tpu.memory_space<vmem>>, %arg10: memref<2x256xf32, #tpu.memory_space<vmem>>) attributes {dimension_semantics = [#tpu.dimension_semantics<arbitrary>], iteration_bounds = array<i64: 1>, scalar_prefetch = 0 : i64, scratch_operands = 0 : i64, tpu.core_type = #tpu.core_type<tc>, window_params = [{pipeline_mode = #tpu.pipeline_mode<synchronous>, transform_indices = @transform_0, window_bounds = array<i64: 2, 256>}, {pipeline_mode = #tpu.pipeline_mode<synchronous>, transform_indices = @transform_1, window_bounds = array<i64: 256, 512>}, {pipeline_mode = #tpu.pipeline_mode<synchronous>, transform_indices = @transform_2, window_bounds = array<i64: 512, 512>}, {pipeline_mode = #tpu.pipeline_mode<synchronous>, transform_indices = @transform_3, window_bounds = array<i64: 512, 512>}, {pipeline_mode = #tpu.pipeline_mode<synchronous>, transform_indices = @transform_4, window_bounds = array<i64: 512, 512>}, {pipeline_mode = #tpu.pipeline_mode<synchronous>, transform_indices = @transform_5, window_bounds = array<i64: 512, 512>}, {pipeline_mode = #tpu.pipeline_mode<synchronous>, transform_indices = @transform_6, window_bounds = array<i64: 512, 512>}, {pipeline_mode = #tpu.pipeline_mode<synchronous>, transform_indices = @transform_7, window_bounds = array<i64: 512, 256>}, {pipeline_mode = #tpu.pipeline_mode<synchronous>, transform_indices = @transform_8, window_bounds = array<i64: 1, 3328>}, {pipeline_mode = #tpu.pipeline_mode<synchronous>, transform_indices = @transform_9, window_bounds = array<i64: 2, 256>}]} {
    %c0 = arith.constant 0 : index
    %c0_0 = arith.constant 0 : index
    %0 = vector.load %arg1[%c0, %c0_0] : memref<2x256xf32, #tpu.memory_space<vmem>>, vector<2x256xf32>
    %c0_1 = arith.constant 0 : index
    %c0_2 = arith.constant 0 : index
    %1 = vector.load %arg2[%c0_1, %c0_2] : memref<256x512xbf16, #tpu.memory_space<vmem>>, vector<256x512xbf16>
    %c0_3 = arith.constant 0 : index
    %c0_4 = arith.constant 0 : index
    %2 = vector.load %arg9[%c0_3, %c0_4] : memref<1x3328xf32, #tpu.memory_space<vmem>>, vector<1x512xf32>
    %3 = arith.truncf %0 : vector<2x256xf32> to vector<2x256xbf16>
    %cst = arith.constant dense<0.000000e+00> : vector<2x512xf32>
    %4 = tpu.matmul %3, %1, %cst {dimension_numbers = #tpu.dot_dimension_numbers<[1], [0], [0], [1], [0, 0, 1, 1], [], []>} : vector<2x256xbf16>, vector<256x512xbf16>, vector<2x512xf32> -> vector<2x512xf32>
    %5 = vector.broadcast %2 : vector<1x512xf32> to vector<2x512xf32>
    %6 = arith.addf %4, %5 : vector<2x512xf32>
    %cst_5 = arith.constant 0.000000e+00 : f32
    %7 = vector.broadcast %cst_5 : f32 to vector<2x512xf32>
    %8 = arith.maximumf %6, %7 : vector<2x512xf32>
    %c0_6 = arith.constant 0 : index
    %c0_7 = arith.constant 0 : index
    %9 = vector.load %arg3[%c0_6, %c0_7] : memref<512x512xbf16, #tpu.memory_space<vmem>>, vector<512x512xbf16>
    %c0_8 = arith.constant 0 : index
    %c512 = arith.constant 512 : index
    %10 = vector.load %arg9[%c0_8, %c512] : memref<1x3328xf32, #tpu.memory_space<vmem>>, vector<1x512xf32>
    %11 = arith.truncf %8 : vector<2x512xf32> to vector<2x512xbf16>
    %cst_9 = arith.constant dense<0.000000e+00> : vector<2x512xf32>
    %12 = tpu.matmul %11, %9, %cst_9 {dimension_numbers = #tpu.dot_dimension_numbers<[1], [0], [0], [1], [0, 0, 1, 1], [], []>} : vector<2x512xbf16>, vector<512x512xbf16>, vector<2x512xf32> -> vector<2x512xf32>
    %13 = vector.broadcast %10 : vector<1x512xf32> to vector<2x512xf32>
    %14 = arith.addf %12, %13 : vector<2x512xf32>
    %cst_10 = arith.constant 0.000000e+00 : f32
    %15 = vector.broadcast %cst_10 : f32 to vector<2x512xf32>
    %16 = arith.maximumf %14, %15 : vector<2x512xf32>
    %c0_11 = arith.constant 0 : index
    %c0_12 = arith.constant 0 : index
    %17 = vector.load %arg4[%c0_11, %c0_12] : memref<512x512xbf16, #tpu.memory_space<vmem>>, vector<512x512xbf16>
    %c0_13 = arith.constant 0 : index
    %c1024 = arith.constant 1024 : index
    %18 = vector.load %arg9[%c0_13, %c1024] : memref<1x3328xf32, #tpu.memory_space<vmem>>, vector<1x512xf32>
    %19 = arith.truncf %16 : vector<2x512xf32> to vector<2x512xbf16>
    %cst_14 = arith.constant dense<0.000000e+00> : vector<2x512xf32>
    %20 = tpu.matmul %19, %17, %cst_14 {dimension_numbers = #tpu.dot_dimension_numbers<[1], [0], [0], [1], [0, 0, 1, 1], [], []>} : vector<2x512xbf16>, vector<512x512xbf16>, vector<2x512xf32> -> vector<2x512xf32>
    %21 = vector.broadcast %18 : vector<1x512xf32> to vector<2x512xf32>
    %22 = arith.addf %20, %21 : vector<2x512xf32>
    %cst_15 = arith.constant 0.000000e+00 : f32
    %23 = vector.broadcast %cst_15 : f32 to vector<2x512xf32>
    %24 = arith.maximumf %22, %23 : vector<2x512xf32>
    %c0_16 = arith.constant 0 : index
    %c0_17 = arith.constant 0 : index
    %25 = vector.load %arg5[%c0_16, %c0_17] : memref<512x512xbf16, #tpu.memory_space<vmem>>, vector<512x512xbf16>
    %c0_18 = arith.constant 0 : index
    %c1536 = arith.constant 1536 : index
    %26 = vector.load %arg9[%c0_18, %c1536] : memref<1x3328xf32, #tpu.memory_space<vmem>>, vector<1x512xf32>
    %27 = arith.truncf %24 : vector<2x512xf32> to vector<2x512xbf16>
    %cst_19 = arith.constant dense<0.000000e+00> : vector<2x512xf32>
    %28 = tpu.matmul %27, %25, %cst_19 {dimension_numbers = #tpu.dot_dimension_numbers<[1], [0], [0], [1], [0, 0, 1, 1], [], []>} : vector<2x512xbf16>, vector<512x512xbf16>, vector<2x512xf32> -> vector<2x512xf32>
    %29 = vector.broadcast %26 : vector<1x512xf32> to vector<2x512xf32>
    %30 = arith.addf %28, %29 : vector<2x512xf32>
    %cst_20 = arith.constant 0.000000e+00 : f32
    %31 = vector.broadcast %cst_20 : f32 to vector<2x512xf32>
    %32 = arith.maximumf %30, %31 : vector<2x512xf32>
    %c0_21 = arith.constant 0 : index
    %c0_22 = arith.constant 0 : index
    %33 = vector.load %arg6[%c0_21, %c0_22] : memref<512x512xbf16, #tpu.memory_space<vmem>>, vector<512x512xbf16>
    %c0_23 = arith.constant 0 : index
    %c2048 = arith.constant 2048 : index
    %34 = vector.load %arg9[%c0_23, %c2048] : memref<1x3328xf32, #tpu.memory_space<vmem>>, vector<1x512xf32>
    %35 = arith.truncf %32 : vector<2x512xf32> to vector<2x512xbf16>
    %cst_24 = arith.constant dense<0.000000e+00> : vector<2x512xf32>
    %36 = tpu.matmul %35, %33, %cst_24 {dimension_numbers = #tpu.dot_dimension_numbers<[1], [0], [0], [1], [0, 0, 1, 1], [], []>} : vector<2x512xbf16>, vector<512x512xbf16>, vector<2x512xf32> -> vector<2x512xf32>
    %37 = vector.broadcast %34 : vector<1x512xf32> to vector<2x512xf32>
    %38 = arith.addf %36, %37 : vector<2x512xf32>
    %cst_25 = arith.constant 0.000000e+00 : f32
    %39 = vector.broadcast %cst_25 : f32 to vector<2x512xf32>
    %40 = arith.maximumf %38, %39 : vector<2x512xf32>
    %c0_26 = arith.constant 0 : index
    %c0_27 = arith.constant 0 : index
    %41 = vector.load %arg7[%c0_26, %c0_27] : memref<512x512xbf16, #tpu.memory_space<vmem>>, vector<512x512xbf16>
    %c0_28 = arith.constant 0 : index
    %c2560 = arith.constant 2560 : index
    %42 = vector.load %arg9[%c0_28, %c2560] : memref<1x3328xf32, #tpu.memory_space<vmem>>, vector<1x512xf32>
    %43 = arith.truncf %40 : vector<2x512xf32> to vector<2x512xbf16>
    %cst_29 = arith.constant dense<0.000000e+00> : vector<2x512xf32>
    %44 = tpu.matmul %43, %41, %cst_29 {dimension_numbers = #tpu.dot_dimension_numbers<[1], [0], [0], [1], [0, 0, 1, 1], [], []>} : vector<2x512xbf16>, vector<512x512xbf16>, vector<2x512xf32> -> vector<2x512xf32>
    %45 = vector.broadcast %42 : vector<1x512xf32> to vector<2x512xf32>
    %46 = arith.addf %44, %45 : vector<2x512xf32>
    %cst_30 = arith.constant 0.000000e+00 : f32
    %47 = vector.broadcast %cst_30 : f32 to vector<2x512xf32>
    %48 = arith.maximumf %46, %47 : vector<2x512xf32>
    %c0_31 = arith.constant 0 : index
    %c0_32 = arith.constant 0 : index
    %49 = vector.load %arg8[%c0_31, %c0_32] : memref<512x256xbf16, #tpu.memory_space<vmem>>, vector<512x256xbf16>
    %c0_33 = arith.constant 0 : index
    %c3072 = arith.constant 3072 : index
    %50 = vector.load %arg9[%c0_33, %c3072] : memref<1x3328xf32, #tpu.memory_space<vmem>>, vector<1x256xf32>
    %51 = arith.truncf %48 : vector<2x512xf32> to vector<2x512xbf16>
    %cst_34 = arith.constant dense<0.000000e+00> : vector<2x256xf32>
    %52 = tpu.matmul %51, %49, %cst_34 {dimension_numbers = #tpu.dot_dimension_numbers<[1], [0], [0], [1], [0, 0, 1, 1], [], []>} : vector<2x512xbf16>, vector<512x256xbf16>, vector<2x256xf32> -> vector<2x256xf32>
    %53 = vector.broadcast %50 : vector<1x256xf32> to vector<2x256xf32>
    %54 = arith.addf %52, %53 : vector<2x256xf32>
    %c0_35 = arith.constant 0 : index
    %c0_36 = arith.constant 0 : index
    %55 = vector.load %arg10[%c0_35, %c0_36] : memref<2x256xf32, #tpu.memory_space<vmem>>, vector<2x256xf32>
    tpu.vector_store %arg10[%c0_35, %c0_36], %54 {strides = array<i32>} : memref<2x256xf32, #tpu.memory_space<vmem>>, vector<2x256xf32>,
    return
  }
  func.func @transform_0(%arg0: i32) -> (i32, i32) {
    %c0_i32 = arith.constant 0 : i32
    %c0_i32_0 = arith.constant 0 : i32
    %c0_i32_1 = arith.constant 0 : i32
    return %c0_i32, %c0_i32_0 : i32, i32
  }
  func.func @transform_1(%arg0: i32) -> (i32, i32) {
    %c0_i32 = arith.constant 0 : i32
    %c0_i32_0 = arith.constant 0 : i32
    %c0_i32_1 = arith.constant 0 : i32
    return %c0_i32, %c0_i32_0 : i32, i32
  }
  func.func @transform_2(%arg0: i32) -> (i32, i32) {
    %c0_i32 = arith.constant 0 : i32
    %c0_i32_0 = arith.constant 0 : i32
    %c0_i32_1 = arith.constant 0 : i32
    return %c0_i32, %c0_i32_0 : i32, i32
  }
  func.func @transform_3(%arg0: i32) -> (i32, i32) {
    %c0_i32 = arith.constant 0 : i32
    %c0_i32_0 = arith.constant 0 : i32
    %c0_i32_1 = arith.constant 0 : i32
    return %c0_i32, %c0_i32_0 : i32, i32
  }
  func.func @transform_4(%arg0: i32) -> (i32, i32) {
    %c0_i32 = arith.constant 0 : i32
    %c0_i32_0 = arith.constant 0 : i32
    %c0_i32_1 = arith.constant 0 : i32
    return %c0_i32, %c0_i32_0 : i32, i32
  }
  func.func @transform_5(%arg0: i32) -> (i32, i32) {
    %c0_i32 = arith.constant 0 : i32
    %c0_i32_0 = arith.constant 0 : i32
    %c0_i32_1 = arith.constant 0 : i32
    return %c0_i32, %c0_i32_0 : i32, i32
  }
  func.func @transform_6(%arg0: i32) -> (i32, i32) {
    %c0_i32 = arith.constant 0 : i32
    %c0_i32_0 = arith.constant 0 : i32
    %c0_i32_1 = arith.constant 0 : i32
    return %c0_i32, %c0_i32_0 : i32, i32
  }
  func.func @transform_7(%arg0: i32) -> (i32, i32) {
    %c0_i32 = arith.constant 0 : i32
    %c0_i32_0 = arith.constant 0 : i32
    %c0_i32_1 = arith.constant 0 : i32
    return %c0_i32, %c0_i32_0 : i32, i32
  }
  func.func @transform_8(%arg0: i32) -> (i32, i32) {
    %c0_i32 = arith.constant 0 : i32
    %c0_i32_0 = arith.constant 0 : i32
    %c0_i32_1 = arith.constant 0 : i32
    return %c0_i32, %c0_i32_0 : i32, i32
  }
  func.func @transform_9(%arg0: i32) -> (i32, i32) {
    %c0_i32 = arith.constant 0 : i32
    %c0_i32_0 = arith.constant 0 : i32
    %c0_i32_1 = arith.constant 0 : i32
    return %c0_i32, %c0_i32_0 : i32, i32
  }
}

module attributes {stable_mosaic.version = 11 : i64} {
  func.func @_fused_mlp_kernel(%arg0: i32, %arg1: memref<2x256xf32, #tpu.memory_space<vmem>>, %arg2: memref<256x512xbf16, #tpu.memory_space<vmem>>, %arg3: memref<512x512xbf16, #tpu.memory_space<vmem>>, %arg4: memref<512x512xbf16, #tpu.memory_space<vmem>>, %arg5: memref<512x512xbf16, #tpu.memory_space<vmem>>, %arg6: memref<512x512xbf16, #tpu.memory_space<vmem>>, %arg7: memref<512x512xbf16, #tpu.memory_space<vmem>>, %arg8: memref<512x256xbf16, #tpu.memory_space<vmem>>, %arg9: memref<1x3328xf32, #tpu.memory_space<vmem>>, %arg10: memref<2x256xf32, #tpu.memory_space<vmem>>) attributes {dimension_semantics = [#tpu.dimension_semantics<arbitrary>], iteration_bounds = array<i64: 1>, scalar_prefetch = 0 : i64, scratch_operands = 0 : i64, tpu.core_type = #tpu.core_type<tc>, window_params = [{pipeline_mode = #tpu.pipeline_mode<synchronous>, transform_indices = @transform_0, window_bounds = array<i64: 2, 256>}, {pipeline_mode = #tpu.pipeline_mode<synchronous>, transform_indices = @transform_1, window_bounds = array<i64: 256, 512>}, {pipeline_mode = #tpu.pipeline_mode<synchronous>, transform_indices = @transform_2, window_bounds = array<i64: 512, 512>}, {pipeline_mode = #tpu.pipeline_mode<synchronous>, transform_indices = @transform_3, window_bounds = array<i64: 512, 512>}, {pipeline_mode = #tpu.pipeline_mode<synchronous>, transform_indices = @transform_4, window_bounds = array<i64: 512, 512>}, {pipeline_mode = #tpu.pipeline_mode<synchronous>, transform_indices = @transform_5, window_bounds = array<i64: 512, 512>}, {pipeline_mode = #tpu.pipeline_mode<synchronous>, transform_indices = @transform_6, window_bounds = array<i64: 512, 512>}, {pipeline_mode = #tpu.pipeline_mode<synchronous>, transform_indices = @transform_7, window_bounds = array<i64: 512, 256>}, {pipeline_mode = #tpu.pipeline_mode<synchronous>, transform_indices = @transform_8, window_bounds = array<i64: 1, 3328>}, {pipeline_mode = #tpu.pipeline_mode<synchronous>, transform_indices = @transform_9, window_bounds = array<i64: 2, 256>}]} {
    %c0 = arith.constant 0 : index
    %c0_0 = arith.constant 0 : index
    %0 = vector.load %arg1[%c0, %c0_0] : memref<2x256xf32, #tpu.memory_space<vmem>>, vector<2x256xf32>
    %c0_1 = arith.constant 0 : index
    %c0_2 = arith.constant 0 : index
    %1 = vector.load %arg2[%c0_1, %c0_2] : memref<256x512xbf16, #tpu.memory_space<vmem>>, vector<256x512xbf16>
    %c0_3 = arith.constant 0 : index
    %c0_4 = arith.constant 0 : index
    %2 = vector.load %arg9[%c0_3, %c0_4] : memref<1x3328xf32, #tpu.memory_space<vmem>>, vector<1x512xf32>
    %3 = arith.truncf %0 : vector<2x256xf32> to vector<2x256xbf16>
    %cst = arith.constant dense<0.000000e+00> : vector<2x512xf32>
    %4 = tpu.matmul %3, %1, %cst {dimension_numbers = #tpu.dot_dimension_numbers<[1], [0], [0], [1], [0, 0, 1, 1], [], []>} : vector<2x256xbf16>, vector<256x512xbf16>, vector<2x512xf32> -> vector<2x512xf32>
    %5 = vector.broadcast %2 : vector<1x512xf32> to vector<2x512xf32>
    %6 = arith.addf %4, %5 : vector<2x512xf32>
    %cst_5 = arith.constant 0.000000e+00 : f32
    %7 = vector.broadcast %cst_5 : f32 to vector<2x512xf32>
    %8 = arith.maximumf %6, %7 : vector<2x512xf32>
    %c0_6 = arith.constant 0 : index
    %c0_7 = arith.constant 0 : index
    %9 = vector.load %arg3[%c0_6, %c0_7] : memref<512x512xbf16, #tpu.memory_space<vmem>>, vector<512x512xbf16>
    %c0_8 = arith.constant 0 : index
    %c512 = arith.constant 512 : index
    %10 = vector.load %arg9[%c0_8, %c512] : memref<1x3328xf32, #tpu.memory_space<vmem>>, vector<1x512xf32>
    %11 = arith.truncf %8 : vector<2x512xf32> to vector<2x512xbf16>
    %cst_9 = arith.constant dense<0.000000e+00> : vector<2x512xf32>
    %12 = tpu.matmul %11, %9, %cst_9 {dimension_numbers = #tpu.dot_dimension_numbers<[1], [0], [0], [1], [0, 0, 1, 1], [], []>} : vector<2x512xbf16>, vector<512x512xbf16>, vector<2x512xf32> -> vector<2x512xf32>
    %13 = vector.broadcast %10 : vector<1x512xf32> to vector<2x512xf32>
    %14 = arith.addf %12, %13 : vector<2x512xf32>
    %cst_10 = arith.constant 0.000000e+00 : f32
    %15 = vector.broadcast %cst_10 : f32 to vector<2x512xf32>
    %16 = arith.maximumf %14, %15 : vector<2x512xf32>
    %c0_11 = arith.constant 0 : index
    %c0_12 = arith.constant 0 : index
    %17 = vector.load %arg4[%c0_11, %c0_12] : memref<512x512xbf16, #tpu.memory_space<vmem>>, vector<512x512xbf16>
    %c0_13 = arith.constant 0 : index
    %c1024 = arith.constant 1024 : index
    %18 = vector.load %arg9[%c0_13, %c1024] : memref<1x3328xf32, #tpu.memory_space<vmem>>, vector<1x512xf32>
    %19 = arith.truncf %16 : vector<2x512xf32> to vector<2x512xbf16>
    %cst_14 = arith.constant dense<0.000000e+00> : vector<2x512xf32>
    %20 = tpu.matmul %19, %17, %cst_14 {dimension_numbers = #tpu.dot_dimension_numbers<[1], [0], [0], [1], [0, 0, 1, 1], [], []>} : vector<2x512xbf16>, vector<512x512xbf16>, vector<2x512xf32> -> vector<2x512xf32>
    %21 = vector.broadcast %18 : vector<1x512xf32> to vector<2x512xf32>
    %22 = arith.addf %20, %21 : vector<2x512xf32>
    %cst_15 = arith.constant 0.000000e+00 : f32
    %23 = vector.broadcast %cst_15 : f32 to vector<2x512xf32>
    %24 = arith.maximumf %22, %23 : vector<2x512xf32>
    %c0_16 = arith.constant 0 : index
    %c0_17 = arith.constant 0 : index
    %25 = vector.load %arg5[%c0_16, %c0_17] : memref<512x512xbf16, #tpu.memory_space<vmem>>, vector<512x512xbf16>
    %c0_18 = arith.constant 0 : index
    %c1536 = arith.constant 1536 : index
    %26 = vector.load %arg9[%c0_18, %c1536] : memref<1x3328xf32, #tpu.memory_space<vmem>>, vector<1x512xf32>
    %27 = arith.truncf %24 : vector<2x512xf32> to vector<2x512xbf16>
    %cst_19 = arith.constant dense<0.000000e+00> : vector<2x512xf32>
    %28 = tpu.matmul %27, %25, %cst_19 {dimension_numbers = #tpu.dot_dimension_numbers<[1], [0], [0], [1], [0, 0, 1, 1], [], []>} : vector<2x512xbf16>, vector<512x512xbf16>, vector<2x512xf32> -> vector<2x512xf32>
    %29 = vector.broadcast %26 : vector<1x512xf32> to vector<2x512xf32>
    %30 = arith.addf %28, %29 : vector<2x512xf32>
    %cst_20 = arith.constant 0.000000e+00 : f32
    %31 = vector.broadcast %cst_20 : f32 to vector<2x512xf32>
    %32 = arith.maximumf %30, %31 : vector<2x512xf32>
    %c0_21 = arith.constant 0 : index
    %c0_22 = arith.constant 0 : index
    %33 = vector.load %arg6[%c0_21, %c0_22] : memref<512x512xbf16, #tpu.memory_space<vmem>>, vector<512x512xbf16>
    %c0_23 = arith.constant 0 : index
    %c2048 = arith.constant 2048 : index
    %34 = vector.load %arg9[%c0_23, %c2048] : memref<1x3328xf32, #tpu.memory_space<vmem>>, vector<1x512xf32>
    %35 = arith.truncf %32 : vector<2x512xf32> to vector<2x512xbf16>
    %cst_24 = arith.constant dense<0.000000e+00> : vector<2x512xf32>
    %36 = tpu.matmul %35, %33, %cst_24 {dimension_numbers = #tpu.dot_dimension_numbers<[1], [0], [0], [1], [0, 0, 1, 1], [], []>} : vector<2x512xbf16>, vector<512x512xbf16>, vector<2x512xf32> -> vector<2x512xf32>
    %37 = vector.broadcast %34 : vector<1x512xf32> to vector<2x512xf32>
    %38 = arith.addf %36, %37 : vector<2x512xf32>
    %cst_25 = arith.constant 0.000000e+00 : f32
    %39 = vector.broadcast %cst_25 : f32 to vector<2x512xf32>
    %40 = arith.maximumf %38, %39 : vector<2x512xf32>
    %c0_26 = arith.constant 0 : index
    %c0_27 = arith.constant 0 : index
    %41 = vector.load %arg7[%c0_26, %c0_27] : memref<512x512xbf16, #tpu.memory_space<vmem>>, vector<512x512xbf16>
    %c0_28 = arith.constant 0 : index
    %c2560 = arith.constant 2560 : index
    %42 = vector.load %arg9[%c0_28, %c2560] : memref<1x3328xf32, #tpu.memory_space<vmem>>, vector<1x512xf32>
    %43 = arith.truncf %40 : vector<2x512xf32> to vector<2x512xbf16>
    %cst_29 = arith.constant dense<0.000000e+00> : vector<2x512xf32>
    %44 = tpu.matmul %43, %41, %cst_29 {dimension_numbers = #tpu.dot_dimension_numbers<[1], [0], [0], [1], [0, 0, 1, 1], [], []>} : vector<2x512xbf16>, vector<512x512xbf16>, vector<2x512xf32> -> vector<2x512xf32>
    %45 = vector.broadcast %42 : vector<1x512xf32> to vector<2x512xf32>
    %46 = arith.addf %44, %45 : vector<2x512xf32>
    %cst_30 = arith.constant 0.000000e+00 : f32
    %47 = vector.broadcast %cst_30 : f32 to vector<2x512xf32>
    %48 = arith.maximumf %46, %47 : vector<2x512xf32>
    %c0_31 = arith.constant 0 : index
    %c0_32 = arith.constant 0 : index
    %49 = vector.load %arg8[%c0_31, %c0_32] : memref<512x256xbf16, #tpu.memory_space<vmem>>, vector<512x256xbf16>
    %c0_33 = arith.constant 0 : index
    %c3072 = arith.constant 3072 : index
    %50 = vector.load %arg9[%c0_33, %c3072] : memref<1x3328xf32, #tpu.memory_space<vmem>>, vector<1x256xf32>
    %51 = arith.truncf %48 : vector<2x512xf32> to vector<2x512xbf16>
    %cst_34 = arith.constant dense<0.000000e+00> : vector<2x256xf32>
    %52 = tpu.matmul %51, %49, %cst_34 {dimension_numbers = #tpu.dot_dimension_numbers<[1], [0], [0], [1], [0, 0, 1, 1], [], []>} : vector<2x512xbf16>, vector<512x256xbf16>, vector<2x256xf32> -> vector<2x256xf32>
    %53 = vector.broadcast %50 : vector<1x256xf32> to vector<2x256xf32>
    %54 = arith.addf %52, %53 : vector<2x256xf32>
    %c0_35 = arith.constant 0 : index
    %c0_36 = arith.constant 0 : index
    %55 = vector.load %arg10[%c0_35, %c0_36] : memref<2x256xf32, #tpu.memory_space<vmem>>, vector<2x256xf32>
    tpu.vector_store %arg10[%c0_35, %c0_36], %54 {strides = array<i32>} : memref<2x256xf32, #tpu.memory_space<vmem>>, vector<2x256xf32>,
    return
  }
  func.func @transform_0(%arg0: i32) -> (i32, i32) {
    %c0_i32 = arith.constant 0 : i32
    %c0_i32_0 = arith.constant 0 : i32
    %c0_i32_1 = arith.constant 0 : i32
    return %c0_i32, %c0_i32_0 : i32, i32
  }
  func.func @transform_1(%arg0: i32) -> (i32, i32) {
    %c0_i32 = arith.constant 0 : i32
    %c0_i32_0 = arith.constant 0 : i32
    %c0_i32_1 = arith.constant 0 : i32
    return %c0_i32, %c0_i32_0 : i32, i32
  }
  func.func @transform_2(%arg0: i32) -> (i32, i32) {
    %c0_i32 = arith.constant 0 : i32
    %c0_i32_0 = arith.constant 0 : i32
    %c0_i32_1 = arith.constant 0 : i32
    return %c0_i32, %c0_i32_0 : i32, i32
  }
  func.func @transform_3(%arg0: i32) -> (i32, i32) {
    %c0_i32 = arith.constant 0 : i32
    %c0_i32_0 = arith.constant 0 : i32
    %c0_i32_1 = arith.constant 0 : i32
    return %c0_i32, %c0_i32_0 : i32, i32
  }
  func.func @transform_4(%arg0: i32) -> (i32, i32) {
    %c0_i32 = arith.constant 0 : i32
    %c0_i32_0 = arith.constant 0 : i32
    %c0_i32_1 = arith.constant 0 : i32
    return %c0_i32, %c0_i32_0 : i32, i32
  }
  func.func @transform_5(%arg0: i32) -> (i32, i32) {
    %c0_i32 = arith.constant 0 : i32
    %c0_i32_0 = arith.constant 0 : i32
    %c0_i32_1 = arith.constant 0 : i32
    return %c0_i32, %c0_i32_0 : i32, i32
  }
  func.func @transform_6(%arg0: i32) -> (i32, i32) {
    %c0_i32 = arith.constant 0 : i32
    %c0_i32_0 = arith.constant 0 : i32
    %c0_i32_1 = arith.constant 0 : i32
    return %c0_i32, %c0_i32_0 : i32, i32
  }
  func.func @transform_7(%arg0: i32) -> (i32, i32) {
    %c0_i32 = arith.constant 0 : i32
    %c0_i32_0 = arith.constant 0 : i32
    %c0_i32_1 = arith.constant 0 : i32
    return %c0_i32, %c0_i32_0 : i32, i32
  }
  func.func @transform_8(%arg0: i32) -> (i32, i32) {
    %c0_i32 = arith.constant 0 : i32
    %c0_i32_0 = arith.constant 0 : i32
    %c0_i32_1 = arith.constant 0 : i32
    return %c0_i32, %c0_i32_0 : i32, i32
  }
  func.func @transform_9(%arg0: i32) -> (i32, i32) {
    %c0_i32 = arith.constant 0 : i32
    %c0_i32_0 = arith.constant 0 : i32
    %c0_i32_1 = arith.constant 0 : i32
    return %c0_i32, %c0_i32_0 : i32, i32
  }
}

</mosaic_0001>

<bundles_post_ra>
// kernel: tpu_custom_call.1
= control target key start
LH: loop header
LB: loop body
LE: loop exit
PB: predicated region body
PF: predicated region fallthrough
CT: control target
= control target key end

     0   :  { %14 = vsyncpa [#allocation3], 0  ;;  %s8495_s0 = inlined_call_operand.hbm [shape: f32[2,256], index: 0, kind: input, shape index: {}]   ;;  %s8496_s1 = inlined_call_operand.hbm [shape: bf16[256,512], index: 1, kind: input, shape index: {}]   ;;  %s8497_s2 = inlined_call_operand.hbm [shape: bf16[512,512], index: 2, kind: input, shape index: {}]   ;;  %s8498_s3 = inlined_call_operand.hbm [shape: bf16[512,512], index: 3, kind: input, shape index: {}]   ;;  %s8499_s4 = inlined_call_operand.hbm [shape: bf16[512,512], index: 4, kind: input, shape index: {}]   ;;  %s8500_s5 = inlined_call_operand.hbm [shape: bf16[512,512], index: 5, kind: input, shape index: {}]   ;;  %s8501_s6 = inlined_call_operand.hbm [shape: bf16[512,512], index: 6, kind: input, shape index: {}]   ;;  %s8502_s7 = inlined_call_operand.hbm [shape: bf16[512,256], index: 7, kind: input, shape index: {}]   ;;  %s8503_s8 = inlined_call_operand.vmem [shape: f32[1,3328], index: 8, kind: input, shape index: {}]   ;;  %s8504_s9 = inlined_call_operand.hbm [shape: f32[2,256], index: 9, kind: output, shape index: {}]  }
   0x1   :  { %15 = vsyncpa [#allocation6], 0 }
   0x2   :  { %16 = vsyncpa [#allocation9], 0 }
   0x3   :  { %17 = vsyncpa [#allocation12], 0 }
   0x4   :  { %18 = vsyncpa [#allocation15], 0 }
   0x5   :  { %19 = vsyncpa [#allocation4], 0  ;;  %s8180_s30 = smov [#allocation5]   ;;  %s7970_s13 = scalar_lea.hbm %s8496_s1, 8192 }
   0x6   :  { %s35_s10 = sshll.u32 %s8180_s30, 4  ;;  %p7971_p0 = scmp.ne.s32.totalorder %s8496_s1, %s7970_s13  ;;  %s36_s10 = int_to_ptr.vmem [resolvable:$true] %s35_s10 }
   0x7   :  { %p7974_p1 = scmp.lt.u32.totalorder %s7970_s13, %s8496_s1 }
   0x9   :  { %p7976_p2 = pnand %p7974_p1, %p7971_p0 }
   0xb   :  { %7979 = shalt.err (!%p7976_p2)
}
   0xc   :  { %s7980_s18 = scalar_lea.vmem %s36_s10, 8192  ;;  %p7985_p4 = scmp.lt.s32.totalorder %s36_s10, %s36_s10 }
   0xd   :  { %p7981_p3 = scmp.ne.s32.totalorder %s36_s10, %s7980_s18  ;;  %p7986_p5 = scmp.lt.s32.totalorder %s7980_s18, %s7980_s18 }
   0xf   :  { %p7987_p6 = por %p7986_p5, %p7985_p4 }
  0x11   :  { %p7988_p7 = pnand %p7987_p6, %p7981_p3 }
  0x13   :  { %7991 = shalt.err (!%p7988_p7)
}
  0x14   :  { %s8181_s19 = smov 256   ;;  %s8182_s20 = smov 16  }
  0x15   :  { %41 = dma.hbm_to_vmem [thread:$0]  %s8496_s1, 8192, %s36_s10, [#allocation6], %s8181_s19, %s8181_s19, %s8182_s20  }
  0x16   :  { %s8183_s23 = smov [#allocation8]   ;;  %s8184_s25 = smov [#allocation11]  }
  0x17   :  { %s59_s24 = sshll.u32 %s8183_s23, 4  ;;  %s83_s26 = sshll.u32 %s8184_s25, 4  ;;  %s60_s24 = int_to_ptr.vmem [resolvable:$true] %s59_s24  ;;  %s84_s26 = int_to_ptr.vmem [resolvable:$true] %s83_s26 }
  0x18   :  { %s7992_s29 = scalar_lea.hbm %s8498_s3, 16384 }
  0x19   :  { %p7993_p8 = scmp.ne.s32.totalorder %s8498_s3, %s7992_s29  ;;  %p7996_p9 = scmp.lt.u32.totalorder %s7992_s29, %s8498_s3 }
  0x1b   :  { %p7998_p10 = pnand %p7996_p9, %p7993_p8 }
  0x1d   :  { %8001 = shalt.err (!%p7998_p10)
}
  0x1e   :  { %s8002_s1 = scalar_lea.vmem %s60_s24, 16384  ;;  %p8007_p12 = scmp.lt.s32.totalorder %s60_s24, %s60_s24 }
  0x1f   :  { %p8003_p11 = scmp.ne.s32.totalorder %s60_s24, %s8002_s1  ;;  %p8008_p13 = scmp.lt.s32.totalorder %s8002_s1, %s8002_s1 }
  0x21   :  { %p8009_p0 = por %p8008_p13, %p8007_p12 }
  0x23   :  { %p8010_p1 = pnand %p8009_p0, %p8003_p11 }
  0x25   :  { %8013 = shalt.err (!%p8010_p1)
}
  0x26   :  { %65 = dma.hbm_to_vmem [thread:$0]  %s8498_s3, 16384, %s60_s24, [#allocation9], %s8181_s19, %s8181_s19, %s8182_s20  }
  0x27   :  { %s8014_s17 = scalar_lea.hbm %s8500_s5, 16384 }
  0x28   :  { %p8015_p2 = scmp.ne.s32.totalorder %s8500_s5, %s8014_s17  ;;  %p8018_p3 = scmp.lt.u32.totalorder %s8014_s17, %s8500_s5 }
  0x2a   :  { %p8020_p4 = pnand %p8018_p3, %p8015_p2 }
  0x2c   :  { %8023 = shalt.err (!%p8020_p4)
}
  0x2d   :  { %s8024_s25 = scalar_lea.vmem %s84_s26, 16384  ;;  %p8029_p6 = scmp.lt.s32.totalorder %s84_s26, %s84_s26 }
  0x2e   :  { %p8025_p5 = scmp.ne.s32.totalorder %s84_s26, %s8024_s25  ;;  %p8030_p7 = scmp.lt.s32.totalorder %s8024_s25, %s8024_s25 }
  0x30   :  { %p8031_p8 = por %p8030_p7, %p8029_p6 }
  0x32   :  { %p8032_p9 = pnand %p8031_p8, %p8025_p5 }
  0x34   :  { %8035 = shalt.err (!%p8032_p9)
}
  0x35   :  { %89 = dma.hbm_to_vmem [thread:$0]  %s8500_s5, 16384, %s84_s26, [#allocation12], %s8181_s19, %s8181_s19, %s8182_s20  }
  0x36   :  { %s8185_s27 = smov [#allocation2]   ;;  %s8186_s29 = smov [#allocation7]  }
  0x37   :  { %s26_s28 = sshll.u32 %s8185_s27, 4  ;;  %s47_s30 = sshll.u32 %s8186_s29, 4  ;;  %s27_s28 = int_to_ptr.vmem [resolvable:$true] %s26_s28  ;;  %s48_s30 = int_to_ptr.vmem [resolvable:$true] %s47_s30 }
  0x38   :  { %s8036_s13 = scalar_lea.hbm %s8495_s0, 64 }
  0x39   :  { %p8037_p10 = scmp.ne.s32.totalorder %s8495_s0, %s8036_s13  ;;  %p8040_p11 = scmp.lt.u32.totalorder %s8036_s13, %s8495_s0 }
  0x3b   :  { %p8042_p12 = pnand %p8040_p11, %p8037_p10 }
  0x3d   :  { %8045 = shalt.err (!%p8042_p12)
}
  0x3e   :  { %s8046_s5 = scalar_lea.vmem %s27_s28, 64  ;;  %p8051_p0 = scmp.lt.s32.totalorder %s27_s28, %s27_s28 }
  0x3f   :  { %p8047_p13 = scmp.ne.s32.totalorder %s27_s28, %s8046_s5  ;;  %p8052_p1 = scmp.lt.s32.totalorder %s8046_s5, %s8046_s5 }
  0x41   :  { %p8053_p2 = por %p8052_p1, %p8051_p0 }
  0x43   :  { %p8054_p3 = pnand %p8053_p2, %p8047_p13 }
  0x45   :  { %8057 = shalt.err (!%p8054_p3)
}
  0x46   :  { %29 = dma.hbm_to_vmem [thread:$0]  %s8495_s0, 64, %s27_s28, [#allocation3]  }
  0x47   :  { %s8058_s21 = scalar_lea.hbm %s8497_s2, 16384 }
  0x48   :  { %p8059_p4 = scmp.ne.s32.totalorder %s8497_s2, %s8058_s21  ;;  %p8062_p5 = scmp.lt.u32.totalorder %s8058_s21, %s8497_s2 }
  0x4a   :  { %p8064_p6 = pnand %p8062_p5, %p8059_p4 }
  0x4c   :  { %8067 = shalt.err (!%p8064_p6)
}
  0x4d   :  { %s8068_s24 = scalar_lea.vmem %s48_s30, 16384  ;;  %p8073_p8 = scmp.lt.s32.totalorder %s48_s30, %s48_s30 }
  0x4e   :  { %p8069_p7 = scmp.ne.s32.totalorder %s48_s30, %s8068_s24  ;;  %p8074_p9 = scmp.lt.s32.totalorder %s8068_s24, %s8068_s24 }
  0x50   :  { %p8075_p10 = por %p8074_p9, %p8073_p8 }
  0x52   :  { %p8076_p11 = pnand %p8075_p10, %p8069_p7 }
  0x54   :  { %8079 = shalt.err (!%p8076_p11)
}
  0x55   :  { %53 = dma.hbm_to_vmem [thread:$0]  %s8497_s2, 16384, %s48_s30, [#allocation6], %s8181_s19, %s8181_s19, %s8182_s20  }
  0x56   :  { %s8187_s28 = smov [#allocation10]   ;;  %s8188_s11 = smov [#allocation13]  }
  0x57   :  { %s71_s29 = sshll.u32 %s8187_s28, 4  ;;  %s95_s12 = sshll.u32 %s8188_s11, 4  ;;  %s72_s29 = int_to_ptr.vmem [resolvable:$true] %s71_s29  ;;  %s96_s12 = int_to_ptr.vmem [resolvable:$true] %s95_s12 }
  0x58   :  { %s8080_s10 = scalar_lea.hbm %s8499_s4, 16384 }
  0x59   :  { %p8081_p12 = scmp.ne.s32.totalorder %s8499_s4, %s8080_s10  ;;  %p8084_p13 = scmp.lt.u32.totalorder %s8080_s10, %s8499_s4 }
  0x5b   :  { %p8086_p0 = pnand %p8084_p13, %p8081_p12 }
  0x5d   :  { %8089 = shalt.err (!%p8086_p0)
}
  0x5e   :  { %s8090_s2 = scalar_lea.vmem %s72_s29, 16384  ;;  %p8095_p2 = scmp.lt.s32.totalorder %s72_s29, %s72_s29 }
  0x5f   :  { %p8091_p1 = scmp.ne.s32.totalorder %s72_s29, %s8090_s2  ;;  %p8096_p3 = scmp.lt.s32.totalorder %s8090_s2, %s8090_s2 }
  0x61   :  { %p8097_p4 = por %p8096_p3, %p8095_p2 }
  0x63   :  { %p8098_p5 = pnand %p8097_p4, %p8091_p1 }
  0x65   :  { %8101 = shalt.err (!%p8098_p5)
}
  0x66   :  { %77 = dma.hbm_to_vmem [thread:$0]  %s8499_s4, 16384, %s72_s29, [#allocation9], %s8181_s19, %s8181_s19, %s8182_s20  }
  0x67   :  { %s8102_s21 = scalar_lea.hbm %s8501_s6, 16384 }
  0x68   :  { %p8103_p6 = scmp.ne.s32.totalorder %s8501_s6, %s8102_s21  ;;  %p8106_p7 = scmp.lt.u32.totalorder %s8102_s21, %s8501_s6 }
  0x6a   :  { %p8108_p8 = pnand %p8106_p7, %p8103_p6 }
  0x6c   :  { %8111 = shalt.err (!%p8108_p8)
}
  0x6d   :  { %s8112_s24 = scalar_lea.vmem %s96_s12, 16384  ;;  %p8117_p10 = scmp.lt.s32.totalorder %s96_s12, %s96_s12 }
  0x6e   :  { %p8113_p9 = scmp.ne.s32.totalorder %s96_s12, %s8112_s24  ;;  %p8118_p11 = scmp.lt.s32.totalorder %s8112_s24, %s8112_s24 }
  0x70   :  { %p8119_p12 = por %p8118_p11, %p8117_p10 }
  0x72   :  { %p8120_p13 = pnand %p8119_p12, %p8113_p9 }
  0x74   :  { %8123 = shalt.err (!%p8120_p13)
}
  0x75   :  { %101 = dma.hbm_to_vmem [thread:$0]  %s8501_s6, 16384, %s96_s12, [#allocation12], %s8181_s19, %s8181_s19, %s8182_s20  }
  0x76   :  { %s8189_s27 = smov [#allocation14]   ;;  %s8124_s13 = scalar_lea.hbm %s8502_s7, 8192 }
  0x77   :  { %s107_s28 = sshll.u32 %s8189_s27, 4  ;;  %p8125_p0 = scmp.ne.s32.totalorder %s8502_s7, %s8124_s13  ;;  %s108_s28 = int_to_ptr.vmem [resolvable:$true] %s107_s28 }
  0x78   :  { %p8128_p1 = scmp.lt.u32.totalorder %s8124_s13, %s8502_s7 }
  0x7a   :  { %p8130_p2 = pnand %p8128_p1, %p8125_p0 }
  0x7c   :  { %8133 = shalt.err (!%p8130_p2)
}
  0x7d   :  { %s8134_s5 = scalar_lea.vmem %s108_s28, 8192  ;;  %p8139_p4 = scmp.lt.s32.totalorder %s108_s28, %s108_s28 }
  0x7e   :  { %p8135_p3 = scmp.ne.s32.totalorder %s108_s28, %s8134_s5  ;;  %p8140_p5 = scmp.lt.s32.totalorder %s8134_s5, %s8134_s5 }
  0x80   :  { %p8141_p6 = por %p8140_p5, %p8139_p4 }
  0x82   :  { %p8142_p7 = pnand %p8141_p6, %p8135_p3 }
  0x84   :  { %8145 = shalt.err (!%p8142_p7)
}
  0x85   :  { %s8190_s6 = smov 128   ;;  %s8191_s19 = smov 8  }
  0x86   :  { %113 = dma.hbm_to_vmem [thread:$0]  %s8502_s7, 8192, %s108_s28, [#allocation15], %s8190_s6, %s8190_s6, %s8191_s19  }
  0x87   :  { %8168 = dma.done.wait [#allocation3], 64  }
  0x88   :  { %8169 = vsyncadd [#allocation3], 4294967232 }
  0x89   :  { %8170 = dma.done.wait [#allocation6], 24576  }
  0x8a   :  { %8171 = vsyncadd [#allocation6], 4294942720 }
  0x8b   :  { %8172 = dma.done.wait [#allocation9], 32768  }
  0x8c   :  { %8173 = vsyncadd [#allocation9], 4294934528 }
  0x8d   :  { %8174 = dma.done.wait [#allocation12], 32768  }
  0x8e   :  { %8175 = vsyncadd [#allocation12], 4294934528 }
  0x8f   :  { %8176 = dma.done.wait [#allocation15], 8192  }
  0x90   :  { %8177 = vsyncadd [#allocation15], 4294959104  ;;  %v6818_v0 = vld [vmem:[#allocation5 + $0x4] ss:$16 sps:$4 sm:$0xff]   ;;  %v6820_v1 = vld [vmem:[#allocation5] ss:$16 sps:$4 sm:$0xff]  }
  0x91   :  { %560 = vmatprep.subr.bf16.mxu1 %v6818_v0  ;;  %v6821_v2 = vld [vmem:[#allocation5 + $0x24] ss:$16 sps:$4 sm:$0xff]   ;;  %v6823_v3 = vld [vmem:[#allocation5 + $0x20] ss:$16 sps:$4 sm:$0xff]   ;;  %v6868_v44 = vld [vmem:[#allocation5 + $0xc] ss:$16 sps:$4 sm:$0xff]  }
  0x92   :  { %561 = vmatpush1.bf16.msra.mxu1 %v6820_v1  ;;  %v6824_v4 = vld [vmem:[#allocation5 + $0x44] ss:$16 sps:$4 sm:$0xff]   ;;  %v6826_v5 = vld [vmem:[#allocation5 + $0x40] ss:$16 sps:$4 sm:$0xff]   ;;  %v6866_v48 = vld [vmem:[#allocation5 + $0x8] ss:$16 sps:$4 sm:$0xff]  }
  0x93   :  { %562 = vmatprep.subr.bf16.mxu1 %v6821_v2  ;;  %v6827_v6 = vld [vmem:[#allocation5 + $0x64] ss:$16 sps:$4 sm:$0xff]   ;;  %v6829_v7 = vld [vmem:[#allocation5 + $0x60] ss:$16 sps:$4 sm:$0xff]   ;;  %v6871_v49 = vld [vmem:[#allocation5 + $0x2c] ss:$16 sps:$4 sm:$0xff]  }
  0x94   :  { %v6830_v8 = vld [vmem:[#allocation5 + $0x84] ss:$16 sps:$4 sm:$0xff]   ;;  %v6832_v9 = vld [vmem:[#allocation5 + $0x80] ss:$16 sps:$4 sm:$0xff]   ;;  %v6869_v52 = vld [vmem:[#allocation5 + $0x28] ss:$16 sps:$4 sm:$0xff]  }
  0x95   :  { %v6833_v10 = vld [vmem:[#allocation5 + $0xa4] ss:$16 sps:$4 sm:$0xff]   ;;  %v6835_v11 = vld [vmem:[#allocation5 + $0xa0] ss:$16 sps:$4 sm:$0xff]   ;;  %v6874_v53 = vld [vmem:[#allocation5 + $0x4c] ss:$16 sps:$4 sm:$0xff]  }
  0x96   :  { %563 = vmatpush1.bf16.msra.mxu1 %v6823_v3  ;;  %v6836_v12 = vld [vmem:[#allocation5 + $0xc4] ss:$16 sps:$4 sm:$0xff]   ;;  %v8357_v13 = vld.sshfl [vmem:[#allocation2] sm:$0x33 pattern:$0x76325410] }
  0x97   :  { %564 = vmatprep.subr.bf16.mxu1 %v6824_v4  ;;  %v214_v14 = vcombine.high %v8357_v13, %v8357_v13  ;;  %v6838_v15 = vld [vmem:[#allocation5 + $0xc0] ss:$16 sps:$4 sm:$0xff]   ;;  %v6839_v16 = vld [vmem:[#allocation5 + $0xe4] ss:$16 sps:$4 sm:$0xff]   ;;  %v8366_v47 = vpack.c.bf16 %v8357_v13, %v8357_v13  ;;  %v6872_v56 = vld [vmem:[#allocation5 + $0x48] ss:$16 sps:$4 sm:$0xff]  }
  0x98   :  { %v6841_v18 = vld [vmem:[#allocation5 + $0xe0] ss:$16 sps:$4 sm:$0xff]   ;;  %v6842_v19 = vld [vmem:[#allocation5 + $0x104] ss:$16 sps:$4 sm:$0xff]   ;;  %v6877_v57 = vld [vmem:[#allocation5 + $0x6c] ss:$16 sps:$4 sm:$0xff]  }
  0x99   :  { %v8361_v17 = vpack.c.bf16 %v214_v14, %v214_v14  ;;  %v6844_v20 = vld [vmem:[#allocation5 + $0x100] ss:$16 sps:$4 sm:$0xff]   ;;  %v6845_v21 = vld [vmem:[#allocation5 + $0x124] ss:$16 sps:$4 sm:$0xff]   ;;  %v6875_v60 = vld [vmem:[#allocation5 + $0x68] ss:$16 sps:$4 sm:$0xff]  }
  0x9a   :  { %565 = vmatpush1.bf16.msra.mxu1 %v6826_v5  ;;  %v6847_v22 = vld [vmem:[#allocation5 + $0x120] ss:$16 sps:$4 sm:$0xff]   ;;  %v6848_v23 = vld [vmem:[#allocation5 + $0x144] ss:$16 sps:$4 sm:$0xff]   ;;  %v6880_v61 = vld [vmem:[#allocation5 + $0x8c] ss:$16 sps:$4 sm:$0xff]  }
  0x9b   :  { %566 = vmatprep.subr.bf16.mxu1 %v6827_v6  ;;  %592 = vmatprep.mubr.bf16.mxu1 %v8361_v17  ;;  %v6850_v24 = vld [vmem:[#allocation5 + $0x140] ss:$16 sps:$4 sm:$0xff]   ;;  %v6851_v25 = vld [vmem:[#allocation5 + $0x164] ss:$16 sps:$4 sm:$0xff]   ;;  %v6878_v0 = vld [vmem:[#allocation5 + $0x88] ss:$16 sps:$4 sm:$0xff]  }
  0x9c   :  { %v6853_v26 = vld [vmem:[#allocation5 + $0x160] ss:$16 sps:$4 sm:$0xff]   ;;  %v6854_v27 = vld [vmem:[#allocation5 + $0x184] ss:$16 sps:$4 sm:$0xff]   ;;  %v6883_v1 = vld [vmem:[#allocation5 + $0xac] ss:$16 sps:$4 sm:$0xff]  }
  0x9d   :  { %v6914_v28 = vld [vmem:[#allocation7 + $0x4] ss:$16 sps:$4 sm:$0xff]   ;;  %v6919_v29 = vld [vmem:[#allocation7] ss:$16 sps:$4 sm:$0xff]   ;;  %v6881_v4 = vld [vmem:[#allocation5 + $0xa8] ss:$16 sps:$4 sm:$0xff]  }
  0x9e   :  { %567 = vmatpush1.bf16.msra.mxu1 %v6829_v7  ;;  %1440 = vmatprep.subr.bf16.mxu0 %v6914_v28  ;;  %v6920_v30 = vld [vmem:[#allocation7 + $0x24] ss:$16 sps:$4 sm:$0xff]   ;;  %v6856_v31 = vld [vmem:[#allocation5 + $0x180] ss:$16 sps:$4 sm:$0xff]   ;;  %v6886_v5 = vld [vmem:[#allocation5 + $0xcc] ss:$16 sps:$4 sm:$0xff]  }
  0x9f   :  { %568 = vmatprep.subr.bf16.mxu1 %v6830_v8  ;;  %1441 = vmatpush1.bf16.msra.mxu0 %v6919_v29  ;;  %v6857_v32 = vld [vmem:[#allocation5 + $0x1a4] ss:$16 sps:$4 sm:$0xff]   ;;  %v6925_v33 = vld [vmem:[#allocation7 + $0x20] ss:$16 sps:$4 sm:$0xff]   ;;  %v6884_v8 = vld [vmem:[#allocation5 + $0xc8] ss:$16 sps:$4 sm:$0xff]  }
  0xa0   :  { %1442 = vmatprep.subr.bf16.mxu0 %v6920_v30  ;;  %v6926_v34 = vld [vmem:[#allocation7 + $0x44] ss:$16 sps:$4 sm:$0xff]   ;;  %v6859_v35 = vld [vmem:[#allocation5 + $0x1a0] ss:$16 sps:$4 sm:$0xff]   ;;  %v6892_v13 = vld [vmem:[#allocation5 + $0x10c] ss:$16 sps:$4 sm:$0xff]  }
  0xa1   :  { %v6860_v36 = vld [vmem:[#allocation5 + $0x1c4] ss:$16 sps:$4 sm:$0xff]   ;;  %v6931_v37 = vld [vmem:[#allocation7 + $0x40] ss:$16 sps:$4 sm:$0xff]   ;;  %v6910_v28 = vld [vmem:[#allocation5 + $0x1cc] ss:$16 sps:$4 sm:$0xff]  }
  0xa2   :  { %569 = vmatpush1.bf16.msra.mxu1 %v6832_v9  ;;  %v6932_v38 = vld [vmem:[#allocation7 + $0x64] ss:$16 sps:$4 sm:$0xff]   ;;  %v6862_v39 = vld [vmem:[#allocation5 + $0x1c0] ss:$16 sps:$4 sm:$0xff]   ;;  %v6889_v9 = vld [vmem:[#allocation5 + $0xec] ss:$16 sps:$4 sm:$0xff]  }
  0xa3   :  { %570 = vmatprep.subr.bf16.mxu1 %v6833_v10  ;;  %1443 = vmatpush1.bf16.msra.mxu0 %v6925_v33  ;;  %v6937_v40 = vld [vmem:[#allocation7 + $0x60] ss:$16 sps:$4 sm:$0xff]   ;;  %v6863_v41 = vld [vmem:[#allocation5 + $0x1e4] ss:$16 sps:$4 sm:$0xff]   ;;  %v6908_v29 = vld [vmem:[#allocation5 + $0x1c8] ss:$16 sps:$4 sm:$0xff]  }
  0xa4   :  { %1444 = vmatprep.subr.bf16.mxu0 %v6926_v34  ;;  %v6938_v42 = vld [vmem:[#allocation7 + $0x84] ss:$16 sps:$4 sm:$0xff]   ;;  %v6865_v43 = vld [vmem:[#allocation5 + $0x1e0] ss:$16 sps:$4 sm:$0xff]   ;;  %v6913_v30 = vld [vmem:[#allocation5 + $0x1ec] ss:$16 sps:$4 sm:$0xff]  }
  0xa5   :  { %v6943_v45 = vld [vmem:[#allocation7 + $0x80] ss:$16 sps:$4 sm:$0xff]   ;;  %v6944_v46 = vld [vmem:[#allocation7 + $0xa4] ss:$16 sps:$4 sm:$0xff]   ;;  %v6916_v33 = vld [vmem:[#allocation7 + $0x8] ss:$16 sps:$4 sm:$0xff]  }
  0xa6   :  { %571 = vmatpush1.bf16.msra.mxu1 %v6835_v11  ;;  %v6949_v50 = vld [vmem:[#allocation7 + $0xa0] ss:$16 sps:$4 sm:$0xff]   ;;  %v6950_v51 = vld [vmem:[#allocation7 + $0xc4] ss:$16 sps:$4 sm:$0xff]   ;;  %v6924_v34 = vld [vmem:[#allocation7 + $0x2c] ss:$16 sps:$4 sm:$0xff]  }
  0xa7   :  { %572 = vmatprep.subr.bf16.mxu1 %v6836_v12  ;;  %1445 = vmatpush1.bf16.msra.mxu0 %v6931_v37  ;;  %v6955_v54 = vld [vmem:[#allocation7 + $0xc0] ss:$16 sps:$4 sm:$0xff]   ;;  %v6956_v55 = vld [vmem:[#allocation7 + $0xe4] ss:$16 sps:$4 sm:$0xff]   ;;  %v6887_v12 = vld [vmem:[#allocation5 + $0xe8] ss:$16 sps:$4 sm:$0xff]  }
  0xa8   :  { %1446 = vmatprep.subr.bf16.mxu0 %v6932_v38  ;;  %v6961_v58 = vld [vmem:[#allocation7 + $0xe0] ss:$16 sps:$4 sm:$0xff]   ;;  %v6962_v59 = vld [vmem:[#allocation7 + $0x104] ss:$16 sps:$4 sm:$0xff]   ;;  %v6928_v37 = vld [vmem:[#allocation7 + $0x48] ss:$16 sps:$4 sm:$0xff]  }
  0xa9   :  { %v6967_v62 = vld [vmem:[#allocation7 + $0x100] ss:$16 sps:$4 sm:$0xff]   ;;  %v6968_v63 = vld [vmem:[#allocation7 + $0x124] ss:$16 sps:$4 sm:$0xff]   ;;  %v6936_v38 = vld [vmem:[#allocation7 + $0x6c] ss:$16 sps:$4 sm:$0xff]  }
  0xaa   :  { %573 = vmatpush1.bf16.msra.mxu1 %v6838_v15  ;;  %v6973_v2 = vld [vmem:[#allocation7 + $0x120] ss:$16 sps:$4 sm:$0xff]   ;;  %v6974_v3 = vld [vmem:[#allocation7 + $0x144] ss:$16 sps:$4 sm:$0xff]   ;;  %s8192_s0 = smov [#allocation16]  }
  0xab   :  { %574 = vmatprep.subr.bf16.mxu1 %v6839_v16  ;;  %1447 = vmatpush1.bf16.msra.mxu0 %v6937_v40  ;;  %v6979_v6 = vld [vmem:[#allocation7 + $0x140] ss:$16 sps:$4 sm:$0xff]   ;;  %v6980_v7 = vld [vmem:[#allocation7 + $0x164] ss:$16 sps:$4 sm:$0xff]   ;;  %v6890_v16 = vld [vmem:[#allocation5 + $0x108] ss:$16 sps:$4 sm:$0xff]  }
  0xac   :  { %1448 = vmatprep.subr.bf16.mxu0 %v6938_v42  ;;  %v6985_v10 = vld [vmem:[#allocation7 + $0x160] ss:$16 sps:$4 sm:$0xff]   ;;  %v6986_v11 = vld [vmem:[#allocation7 + $0x184] ss:$16 sps:$4 sm:$0xff]   ;;  %v6942_v40 = vld [vmem:[#allocation7 + $0x8c] ss:$16 sps:$4 sm:$0xff]  }
  0xad   :  { %v6991_v14 = vld [vmem:[#allocation7 + $0x180] ss:$16 sps:$4 sm:$0xff]   ;;  %v6992_v15 = vld [vmem:[#allocation7 + $0x1a4] ss:$16 sps:$4 sm:$0xff]   ;;  %v6948_v42 = vld [vmem:[#allocation7 + $0xac] ss:$16 sps:$4 sm:$0xff]  }
  0xae   :  { %575 = vmatpush1.bf16.msra.mxu1 %v6841_v18  ;;  %v6997_v18 = vld [vmem:[#allocation7 + $0x1a0] ss:$16 sps:$4 sm:$0xff]   ;;  %s5956_s27 = sshll.u32 %s8192_s0, 4  ;;  %s5957_s27 = int_to_ptr.vmem [resolvable:$true] %s5956_s27 }
  0xaf   :  { %576 = vmatprep.subr.bf16.mxu1 %v6842_v19  ;;  %1449 = vmatpush1.bf16.msra.mxu0 %v6943_v45  ;;  %v6893_v19 = vld [vmem:[#allocation5 + $0x128] ss:$16 sps:$4 sm:$0xff]   ;;  %v6998_v45 = vld [vmem:[#allocation7 + $0x1c4] ss:$16 sps:$4 sm:$0xff]   ;;  %s8146_s28 = scalar_lea.vmem %s5957_s27, 64  ;;  %p8151_p9 = scmp.lt.s32.totalorder %s5957_s27, %s5957_s27 }
  0xb0   :  { %1450 = vmatprep.subr.bf16.mxu0 %v6944_v46  ;;  %v6952_v46 = vld [vmem:[#allocation7 + $0xc8] ss:$16 sps:$4 sm:$0xff]   ;;  %p8147_p8 = scmp.ne.s32.totalorder %s5957_s27, %s8146_s28  ;;  %p8152_p10 = scmp.lt.s32.totalorder %s8146_s28, %s8146_s28 }
  0xb2   :  { %577 = vmatpush1.bf16.msra.mxu1 %v6844_v20  ;;  %v6898_v20 = vld [vmem:[#allocation5 + $0x14c] ss:$16 sps:$4 sm:$0xff]   ;;  %p8153_p11 = por %p8152_p10, %p8151_p9 }
  0xb3   :  { %578 = vmatprep.subr.bf16.mxu1 %v6845_v21  ;;  %1451 = vmatpush1.bf16.msra.mxu0 %v6949_v50  ;;  %v6896_v21 = vld [vmem:[#allocation5 + $0x148] ss:$16 sps:$4 sm:$0xff]  }
  0xb4   :  { %1452 = vmatprep.subr.bf16.mxu0 %v6950_v51  ;;  %v6958_v50 = vld [vmem:[#allocation7 + $0xe8] ss:$16 sps:$4 sm:$0xff]   ;;  %v7009_v51 = vld [vmem:[#allocation7 + $0x1e0] ss:$16 sps:$4 sm:$0xff]   ;;  %p8154_p12 = pnand %p8153_p11, %p8147_p8 }
  0xb6   :  { %579 = vmatpush1.bf16.msra.mxu1 %v6847_v22  ;;  %v6901_v22 = vld [vmem:[#allocation5 + $0x16c] ss:$16 sps:$4 sm:$0xff]  }
  0xb7   :  { %580 = vmatprep.subr.bf16.mxu1 %v6848_v23  ;;  %1453 = vmatpush1.bf16.msra.mxu0 %v6955_v54  ;;  %v6899_v23 = vld [vmem:[#allocation5 + $0x168] ss:$16 sps:$4 sm:$0xff]  }
  0xb8   :  { %1454 = vmatprep.subr.bf16.mxu0 %v6956_v55  ;;  %v6964_v54 = vld [vmem:[#allocation7 + $0x108] ss:$16 sps:$4 sm:$0xff]   ;;  %v6972_v55 = vld [vmem:[#allocation7 + $0x12c] ss:$16 sps:$4 sm:$0xff]  }
  0xba   :  { %581 = vmatpush1.bf16.msra.mxu1 %v6850_v24  ;;  %v6904_v24 = vld [vmem:[#allocation5 + $0x18c] ss:$16 sps:$4 sm:$0xff]  }
  0xbb   :  { %582 = vmatprep.subr.bf16.mxu1 %v6851_v25  ;;  %1455 = vmatpush1.bf16.msra.mxu0 %v6961_v58  ;;  %v6902_v25 = vld [vmem:[#allocation5 + $0x188] ss:$16 sps:$4 sm:$0xff]  }
  0xbc   :  { %1456 = vmatprep.subr.bf16.mxu0 %v6962_v59  ;;  %v6976_v58 = vld [vmem:[#allocation7 + $0x148] ss:$16 sps:$4 sm:$0xff]   ;;  %v6984_v59 = vld [vmem:[#allocation7 + $0x16c] ss:$16 sps:$4 sm:$0xff]  }
  0xbe   :  { %583 = vmatpush1.bf16.msra.mxu1 %v6853_v26  ;;  %v6907_v26 = vld [vmem:[#allocation5 + $0x1ac] ss:$16 sps:$4 sm:$0xff]  }
  0xbf   :  { %584 = vmatprep.subr.bf16.mxu1 %v6854_v27  ;;  %1457 = vmatpush1.bf16.msra.mxu0 %v6967_v62  ;;  %v6905_v27 = vld [vmem:[#allocation5 + $0x1a8] ss:$16 sps:$4 sm:$0xff]  }
  0xc0   :  { %1458 = vmatprep.subr.bf16.mxu0 %v6968_v63  ;;  %v6988_v62 = vld [vmem:[#allocation7 + $0x188] ss:$16 sps:$4 sm:$0xff]   ;;  %v6996_v63 = vld [vmem:[#allocation7 + $0x1ac] ss:$16 sps:$4 sm:$0xff]  }
  0xc2   :  { %585 = vmatpush1.bf16.msra.mxu1 %v6856_v31  ;;  %v6911_v31 = vld [vmem:[#allocation5 + $0x1e8] ss:$16 sps:$4 sm:$0xff]  }
  0xc3   :  { %586 = vmatprep.subr.bf16.mxu1 %v6857_v32  ;;  %1459 = vmatpush1.bf16.msra.mxu0 %v6973_v2  ;;  %v6918_v32 = vld [vmem:[#allocation7 + $0xc] ss:$16 sps:$4 sm:$0xff]   ;;  %v7000_v2 = vld [vmem:[#allocation7 + $0x1c8] ss:$16 sps:$4 sm:$0xff]  }
  0xc4   :  { %1460 = vmatprep.subr.bf16.mxu0 %v6974_v3  ;;  %v7008_v3 = vld [vmem:[#allocation7 + $0x1ec] ss:$16 sps:$4 sm:$0xff]  }
  0xc6   :  { %587 = vmatpush1.bf16.msra.mxu1 %v6859_v35  ;;  %v6922_v35 = vld [vmem:[#allocation7 + $0x28] ss:$16 sps:$4 sm:$0xff]  }
  0xc7   :  { %588 = vmatprep.subr.bf16.mxu1 %v6860_v36  ;;  %1461 = vmatpush1.bf16.msra.mxu0 %v6979_v6  ;;  %v6930_v36 = vld [vmem:[#allocation7 + $0x4c] ss:$16 sps:$4 sm:$0xff]   ;;  %v220_v6 = vlaneseq }
  0xc8   :  { %1462 = vmatprep.subr.bf16.mxu0 %v6980_v7 }
  0xc9   :  { %v8371_v7 = vshrl.u32 %v220_v6, 7  ;;  %v7087_v6 = vld [vmem:[#allocation7 + $0x38c] ss:$16 sps:$4 sm:$0xff]  }
  0xca   :  { %589 = vmatpush1.bf16.msra.mxu1 %v6862_v39  ;;  %v6934_v39 = vld [vmem:[#allocation7 + $0x68] ss:$16 sps:$4 sm:$0xff]  }
  0xcb   :  { %590 = vmatprep.subr.bf16.mxu1 %v6863_v41  ;;  %1463 = vmatpush1.bf16.msra.mxu0 %v6985_v10  ;;  %v6940_v41 = vld [vmem:[#allocation7 + $0x88] ss:$16 sps:$4 sm:$0xff]   ;;  %v8382_v10 = vsub.s32 1, %v8371_v7 }
  0xcc   :  { %1464 = vmatprep.subr.bf16.mxu0 %v6986_v11 }
  0xce   :  { %591 = vmatpush1.bf16.msra.mxu1 %v6865_v43  ;;  %v6946_v43 = vld [vmem:[#allocation7 + $0xa8] ss:$16 sps:$4 sm:$0xff]  }
  0xcf   :  { %601 = vmatprep.subr.bf16.mxu1 %v6868_v44  ;;  %1465 = vmatpush1.bf16.msra.mxu0 %v6991_v14  ;;  %v6954_v44 = vld [vmem:[#allocation7 + $0xcc] ss:$16 sps:$4 sm:$0xff]  }
  0xd0   :  { %1466 = vmatprep.subr.bf16.mxu0 %v6992_v15 }
  0xd1   :  { %593 = vmatmul.mubr.bf16.vlgmr.msra.gmra.mrb[0].mxu1 %v8366_v47 }
  0xd2   :  { %602 = vmatpush1.bf16.msra.mxu1 %v6866_v48  ;;  %633 = vmatprep.mubr.bf16.mxu1 %v8361_v17  ;;  %v6895_v17 = vld [vmem:[#allocation5 + $0x12c] ss:$16 sps:$4 sm:$0xff]  }
  0xd3   :  { %603 = vmatprep.subr.bf16.mxu1 %v6871_v49  ;;  %1467 = vmatpush1.bf16.msra.mxu0 %v6997_v18  ;;  %v6960_v48 = vld [vmem:[#allocation7 + $0xec] ss:$16 sps:$4 sm:$0xff]   ;;  %v7004_v49 = vld [vmem:[#allocation7 + $0x1e4] ss:$16 sps:$4 sm:$0xff]  }
  0xd4   :  { %1468 = vmatprep.subr.bf16.mxu0 %v6998_v45  ;;  %v7048_v45 = vld [vmem:[#allocation7 + $0x2c4] ss:$16 sps:$4 sm:$0xff]  }
  0xd6   :  { %604 = vmatpush1.bf16.msra.mxu1 %v6869_v52  ;;  %v6966_v52 = vld [vmem:[#allocation7 + $0x10c] ss:$16 sps:$4 sm:$0xff]  }
  0xd7   :  { %605 = vmatprep.subr.bf16.mxu1 %v6874_v53  ;;  %v7012_v53 = vld [vmem:[#allocation7 + $0x204] ss:$16 sps:$4 sm:$0xff]  }
  0xda   :  { %606 = vmatpush1.bf16.msra.mxu1 %v6872_v56  ;;  %v6970_v56 = vld [vmem:[#allocation7 + $0x128] ss:$16 sps:$4 sm:$0xff]  }
  0xdb   :  { %607 = vmatprep.subr.bf16.mxu1 %v6877_v57  ;;  %v6978_v57 = vld [vmem:[#allocation7 + $0x14c] ss:$16 sps:$4 sm:$0xff]  }
  0xde   :  { %608 = vmatpush1.bf16.msra.mxu1 %v6875_v60  ;;  %v6982_v60 = vld [vmem:[#allocation7 + $0x168] ss:$16 sps:$4 sm:$0xff]  }
  0xdf   :  { %609 = vmatprep.subr.bf16.mxu1 %v6880_v61  ;;  %v6990_v61 = vld [vmem:[#allocation7 + $0x18c] ss:$16 sps:$4 sm:$0xff]  }
  0xe2   :  { %610 = vmatpush1.bf16.msra.mxu1 %v6878_v0  ;;  %v6994_v0 = vld [vmem:[#allocation7 + $0x1a8] ss:$16 sps:$4 sm:$0xff]  }
  0xe3   :  { %611 = vmatprep.subr.bf16.mxu1 %v6883_v1  ;;  %v7002_v1 = vld [vmem:[#allocation7 + $0x1cc] ss:$16 sps:$4 sm:$0xff]  }
  0xe6   :  { %612 = vmatpush1.bf16.msra.mxu1 %v6881_v4  ;;  %v7006_v4 = vld [vmem:[#allocation7 + $0x1e8] ss:$16 sps:$4 sm:$0xff]  }
  0xe7   :  { %613 = vmatprep.subr.bf16.mxu1 %v6886_v5  ;;  %v7015_v5 = vld [vmem:[#allocation7 + $0x20c] ss:$16 sps:$4 sm:$0xff]  }
  0xea   :  { %614 = vmatpush1.bf16.msra.mxu1 %v6884_v8  ;;  %v8374_v8 = vsub.s32 0, %v8371_v7 }
  0xeb   :  { %615 = vmatprep.subr.bf16.mxu1 %v6889_v9  ;;  %v8379_v9 = vld [vmem:[%s8503_s8] sm:$0xf] }
  0xec   :  { %v223_v11 = vrot.slane %v8379_v9, %v8374_v8 }
  0xee   :  { %616 = vmatpush1.bf16.msra.mxu1 %v6887_v12  ;;  %v227_v12 = vrot.slane %v8379_v9, %v8382_v10 }
  0xef   :  { %617 = vmatprep.subr.bf16.mxu1 %v6892_v13 }
  0xf2   :  { %618 = vmatpush1.bf16.msra.mxu1 %v6890_v16 }
  0xf3   :  { %619 = vmatprep.subr.bf16.mxu1 %v6895_v17 }
  0xf6   :  { %620 = vmatpush1.bf16.msra.mxu1 %v6893_v19 }
  0xf7   :  { %621 = vmatprep.subr.bf16.mxu1 %v6898_v20 }
  0xfa   :  { %622 = vmatpush1.bf16.msra.mxu1 %v6896_v21  ;;  %v7010_v21 = vld [vmem:[#allocation7 + $0x200] ss:$16 sps:$4 sm:$0xff]  }
  0xfb   :  { %623 = vmatprep.subr.bf16.mxu1 %v6901_v22  ;;  %v7013_v22 = vld [vmem:[#allocation7 + $0x208] ss:$16 sps:$4 sm:$0xff]  }
  0xfe   :  { %624 = vmatpush1.bf16.msra.mxu1 %v6899_v23 }
  0xff   :  { %625 = vmatprep.subr.bf16.mxu1 %v6904_v24  ;;  %v7018_v24 = vld [vmem:[#allocation7 + $0x224] ss:$16 sps:$4 sm:$0xff]  }
 0x102   :  { %626 = vmatpush1.bf16.msra.mxu1 %v6902_v25  ;;  %v7021_v25 = vld [vmem:[#allocation7 + $0x22c] ss:$16 sps:$4 sm:$0xff]  }
 0x103   :  { %627 = vmatprep.subr.bf16.mxu1 %v6907_v26 }
 0x106   :  { %628 = vmatpush1.bf16.msra.mxu1 %v6905_v27  ;;  %v7016_v27 = vld [vmem:[#allocation7 + $0x220] ss:$16 sps:$4 sm:$0xff]  }
 0x107   :  { %629 = vmatprep.subr.bf16.mxu1 %v6910_v28  ;;  %v7019_v28 = vld [vmem:[#allocation7 + $0x228] ss:$16 sps:$4 sm:$0xff]  }
 0x10a   :  { %630 = vmatpush1.bf16.msra.mxu1 %v6908_v29  ;;  %v7024_v29 = vld [vmem:[#allocation7 + $0x244] ss:$16 sps:$4 sm:$0xff]  }
 0x10b   :  { %631 = vmatprep.subr.bf16.mxu1 %v6913_v30  ;;  %v7027_v30 = vld [vmem:[#allocation7 + $0x24c] ss:$16 sps:$4 sm:$0xff]  }
 0x10e   :  { %632 = vmatpush1.bf16.msra.mxu1 %v6911_v31  ;;  %v7022_v31 = vld [vmem:[#allocation7 + $0x240] ss:$16 sps:$4 sm:$0xff]  }
 0x10f   :  { %1522 = vmatprep.subr.bf16.mxu1 %v6918_v32  ;;  %v7025_v32 = vld [vmem:[#allocation7 + $0x248] ss:$16 sps:$4 sm:$0xff]  }
 0x111   :  { %634 = vmatmul.mubr.bf16.vlgmr.msra.gmra.mrb[4].mxu1 %v8366_v47  ;;  %v7003_v47 = vld [vmem:[#allocation7 + $0x1c0] ss:$16 sps:$4 sm:$0xff]  }
 0x112   :  { %1523 = vmatpush1.bf16.msra.mxu1 %v6916_v33  ;;  %1469 = vmatpush1.bf16.msra.mxu0 %v7003_v47  ;;  %v7030_v33 = vld [vmem:[#allocation7 + $0x264] ss:$16 sps:$4 sm:$0xff]   ;;  %v7046_v47 = vld [vmem:[#allocation7 + $0x2c0] ss:$16 sps:$4 sm:$0xff]  }
 0x113   :  { %1524 = vmatprep.subr.bf16.mxu1 %v6924_v34  ;;  %1470 = vmatprep.subr.bf16.mxu0 %v7004_v49  ;;  %v7033_v34 = vld [vmem:[#allocation7 + $0x26c] ss:$16 sps:$4 sm:$0xff]   ;;  %v7054_v49 = vld [vmem:[#allocation7 + $0x2e4] ss:$16 sps:$4 sm:$0xff]  }
 0x116   :  { %1525 = vmatpush1.bf16.msra.mxu1 %v6922_v35  ;;  %1471 = vmatpush1.bf16.msra.mxu0 %v7009_v51  ;;  %v7028_v35 = vld [vmem:[#allocation7 + $0x260] ss:$16 sps:$4 sm:$0xff]  }
 0x117   :  { %1526 = vmatprep.subr.bf16.mxu1 %v6930_v36  ;;  %1481 = vmatprep.subr.bf16.mxu0 %v7012_v53  ;;  %v7031_v36 = vld [vmem:[#allocation7 + $0x268] ss:$16 sps:$4 sm:$0xff]   ;;  %v7052_v51 = vld [vmem:[#allocation7 + $0x2e0] ss:$16 sps:$4 sm:$0xff]   ;;  %v7060_v53 = vld [vmem:[#allocation7 + $0x304] ss:$16 sps:$4 sm:$0xff]  }
 0x11a   :  { %1527 = vmatpush1.bf16.msra.mxu1 %v6928_v37  ;;  %v7036_v37 = vld [vmem:[#allocation7 + $0x284] ss:$16 sps:$4 sm:$0xff]  }
 0x11b   :  { %1528 = vmatprep.subr.bf16.mxu1 %v6936_v38  ;;  %v7039_v38 = vld [vmem:[#allocation7 + $0x28c] ss:$16 sps:$4 sm:$0xff]  }
 0x11e   :  { %1529 = vmatpush1.bf16.msra.mxu1 %v6934_v39  ;;  %v7034_v39 = vld [vmem:[#allocation7 + $0x280] ss:$16 sps:$4 sm:$0xff]  }
 0x11f   :  { %1530 = vmatprep.subr.bf16.mxu1 %v6942_v40  ;;  %v7037_v40 = vld [vmem:[#allocation7 + $0x288] ss:$16 sps:$4 sm:$0xff]  }
 0x122   :  { %1531 = vmatpush1.bf16.msra.mxu1 %v6940_v41  ;;  %v7042_v41 = vld [vmem:[#allocation7 + $0x2a4] ss:$16 sps:$4 sm:$0xff]  }
 0x123   :  { %1532 = vmatprep.subr.bf16.mxu1 %v6948_v42  ;;  %v7045_v42 = vld [vmem:[#allocation7 + $0x2ac] ss:$16 sps:$4 sm:$0xff]  }
 0x126   :  { %1533 = vmatpush1.bf16.msra.mxu1 %v6946_v43  ;;  %v7040_v43 = vld [vmem:[#allocation7 + $0x2a0] ss:$16 sps:$4 sm:$0xff]  }
 0x127   :  { %1534 = vmatprep.subr.bf16.mxu1 %v6954_v44  ;;  %v7043_v44 = vld [vmem:[#allocation7 + $0x2a8] ss:$16 sps:$4 sm:$0xff]  }
 0x12a   :  { %1535 = vmatpush1.bf16.msra.mxu1 %v6952_v46  ;;  %v7051_v46 = vld [vmem:[#allocation7 + $0x2cc] ss:$16 sps:$4 sm:$0xff]  }
 0x12b   :  { %1536 = vmatprep.subr.bf16.mxu1 %v6960_v48  ;;  %v7049_v48 = vld [vmem:[#allocation7 + $0x2c8] ss:$16 sps:$4 sm:$0xff]  }
 0x12e   :  { %1537 = vmatpush1.bf16.msra.mxu1 %v6958_v50  ;;  %v7057_v50 = vld [vmem:[#allocation7 + $0x2ec] ss:$16 sps:$4 sm:$0xff]  }
 0x12f   :  { %1538 = vmatprep.subr.bf16.mxu1 %v6966_v52  ;;  %v7055_v52 = vld [vmem:[#allocation7 + $0x2e8] ss:$16 sps:$4 sm:$0xff]  }
 0x132   :  { %1539 = vmatpush1.bf16.msra.mxu1 %v6964_v54  ;;  %v7063_v54 = vld [vmem:[#allocation7 + $0x30c] ss:$16 sps:$4 sm:$0xff]  }
 0x133   :  { %1540 = vmatprep.subr.bf16.mxu1 %v6972_v55  ;;  %v7058_v55 = vld [vmem:[#allocation7 + $0x300] ss:$16 sps:$4 sm:$0xff]  }
 0x136   :  { %1541 = vmatpush1.bf16.msra.mxu1 %v6970_v56  ;;  %v7061_v56 = vld [vmem:[#allocation7 + $0x308] ss:$16 sps:$4 sm:$0xff]  }
 0x137   :  { %1542 = vmatprep.subr.bf16.mxu1 %v6978_v57  ;;  %v7066_v57 = vld [vmem:[#allocation7 + $0x324] ss:$16 sps:$4 sm:$0xff]  }
 0x13a   :  { %1543 = vmatpush1.bf16.msra.mxu1 %v6976_v58  ;;  %v7069_v58 = vld [vmem:[#allocation7 + $0x32c] ss:$16 sps:$4 sm:$0xff]  }
 0x13b   :  { %1544 = vmatprep.subr.bf16.mxu1 %v6984_v59  ;;  %v7064_v59 = vld [vmem:[#allocation7 + $0x320] ss:$16 sps:$4 sm:$0xff]  }
 0x13e   :  { %1545 = vmatpush1.bf16.msra.mxu1 %v6982_v60  ;;  %v7067_v60 = vld [vmem:[#allocation7 + $0x328] ss:$16 sps:$4 sm:$0xff]  }
 0x13f   :  { %1546 = vmatprep.subr.bf16.mxu1 %v6990_v61  ;;  %v7072_v61 = vld [vmem:[#allocation7 + $0x344] ss:$16 sps:$4 sm:$0xff]  }
 0x142   :  { %1547 = vmatpush1.bf16.msra.mxu1 %v6988_v62  ;;  %v7075_v62 = vld [vmem:[#allocation7 + $0x34c] ss:$16 sps:$4 sm:$0xff]  }
 0x143   :  { %1548 = vmatprep.subr.bf16.mxu1 %v6996_v63  ;;  %v7070_v63 = vld [vmem:[#allocation7 + $0x340] ss:$16 sps:$4 sm:$0xff]  }
 0x146   :  { %1549 = vmatpush1.bf16.msra.mxu1 %v6994_v0  ;;  %v7073_v0 = vld [vmem:[#allocation7 + $0x348] ss:$16 sps:$4 sm:$0xff]  }
 0x147   :  { %1550 = vmatprep.subr.bf16.mxu1 %v7002_v1  ;;  %v7078_v1 = vld [vmem:[#allocation7 + $0x364] ss:$16 sps:$4 sm:$0xff]  }
 0x14a   :  { %1551 = vmatpush1.bf16.msra.mxu1 %v7000_v2  ;;  %v7081_v2 = vld [vmem:[#allocation7 + $0x36c] ss:$16 sps:$4 sm:$0xff]  }
 0x14b   :  { %1552 = vmatprep.subr.bf16.mxu1 %v7008_v3  ;;  %v7076_v3 = vld [vmem:[#allocation7 + $0x360] ss:$16 sps:$4 sm:$0xff]  }
 0x14e   :  { %1553 = vmatpush1.bf16.msra.mxu1 %v7006_v4  ;;  %v7079_v4 = vld [vmem:[#allocation7 + $0x368] ss:$16 sps:$4 sm:$0xff]  }
 0x14f   :  { %1563 = vmatprep.subr.bf16.mxu1 %v7015_v5  ;;  %v7084_v5 = vld [vmem:[#allocation7 + $0x384] ss:$16 sps:$4 sm:$0xff]  }
 0x1a4   :  { %v594_v13 = vpop.f32.mrb[0].mxu1 }
 0x1a5   :  { %v595_v14 = vadd.f32 %v594_v13, %v223_v11  ;;  %v596_v15 = vpop.f32.mrb[1].mxu1  ;;  %v7082_v11 = vld [vmem:[#allocation7 + $0x380] ss:$16 sps:$4 sm:$0xff]   ;;  %v7090_v13 = vld [vmem:[#allocation7 + $0x3a4] ss:$16 sps:$4 sm:$0xff]  }
 0x1a6   :  { %v597_v16 = vadd.f32 %v596_v15, %v227_v12  ;;  %v598_v17 = vpop.f32.mrb[2].mxu1  ;;  %v7085_v12 = vld [vmem:[#allocation7 + $0x388] ss:$16 sps:$4 sm:$0xff]   ;;  %v7088_v15 = vld [vmem:[#allocation7 + $0x3a0] ss:$16 sps:$4 sm:$0xff]  }
 0x1a7   :  { %v642_v18 = vmax.f32 %v595_v14, 0.0  ;;  %v599_v19 = vpop.f32.mrb[3].mxu1  ;;  %v7093_v14 = vld [vmem:[#allocation7 + $0x3ac] ss:$16 sps:$4 sm:$0xff]   ;;  %v8389_v17 = vsub.s32 2, %v8371_v7 }
 0x1a8   :  { %v643_v20 = vmax.f32 %v597_v16, 0.0  ;;  %v7091_v16 = vld [vmem:[#allocation7 + $0x3a8] ss:$16 sps:$4 sm:$0xff]   ;;  %v7099_v19 = vld [vmem:[#allocation7 + $0x3cc] ss:$16 sps:$4 sm:$0xff]  }
 0x1a9   :  { %v775_v23 = vpack.c.bf16 %v642_v18, %v642_v18  ;;  %v7096_v18 = vld [vmem:[#allocation7 + $0x3c4] ss:$16 sps:$4 sm:$0xff]  }
 0x1aa   :  { %v776_v26 = vpack.c.bf16 %v643_v20, %v643_v20  ;;  %v8392_v20 = vsub.s32 3, %v8371_v7 }
 0x1ac   :  { %1472 = vmatprep.mubr.bf16.mxu0 %v776_v26  ;;  %1554 = vmatprep.mubr.bf16.mxu1 %v776_v26  ;;  %v7105_v26 = vld [vmem:[#allocation7 + $0x3ec] ss:$16 sps:$4 sm:$0xff]  }
 0x1ad   :  { %1473 = vmatmul.mubr.bf16.vlgmr.msra.gmra.mrb[0].mxu0 %v775_v23  ;;  %1555 = vmatmul.mubr.bf16.vlgmr.msra.gmra.mrb[8].mxu1 %v775_v23  ;;  %v231_v23 = vrot.slane %v8379_v9, %v8389_v17 }
 0x1ae   :  { %1482 = vmatpush1.bf16.msra.mxu0 %v7010_v21  ;;  %1564 = vmatpush1.bf16.msra.mxu1 %v7013_v22  ;;  %v7094_v21 = vld [vmem:[#allocation7 + $0x3c0] ss:$16 sps:$4 sm:$0xff]   ;;  %v7097_v22 = vld [vmem:[#allocation7 + $0x3c8] ss:$16 sps:$4 sm:$0xff]  }
 0x1af   :  { %1483 = vmatprep.subr.bf16.mxu0 %v7018_v24  ;;  %1565 = vmatprep.subr.bf16.mxu1 %v7021_v25  ;;  %v235_v24 = vrot.slane %v8379_v9, %v8392_v20  ;;  %v7102_v25 = vld [vmem:[#allocation7 + $0x3e4] ss:$16 sps:$4 sm:$0xff]  }
 0x1b2   :  { %1484 = vmatpush1.bf16.msra.mxu0 %v7016_v27  ;;  %1566 = vmatpush1.bf16.msra.mxu1 %v7019_v28 }
 0x1b3   :  { %1485 = vmatprep.subr.bf16.mxu0 %v7024_v29  ;;  %1567 = vmatprep.subr.bf16.mxu1 %v7027_v30 }
 0x1b6   :  { %1486 = vmatpush1.bf16.msra.mxu0 %v7022_v31  ;;  %1568 = vmatpush1.bf16.msra.mxu1 %v7025_v32  ;;  %v7100_v31 = vld [vmem:[#allocation7 + $0x3e0] ss:$16 sps:$4 sm:$0xff]   ;;  %v7103_v32 = vld [vmem:[#allocation7 + $0x3e8] ss:$16 sps:$4 sm:$0xff]  }
 0x1b7   :  { %1487 = vmatprep.subr.bf16.mxu0 %v7030_v33  ;;  %1569 = vmatprep.subr.bf16.mxu1 %v7033_v34 }
 0x1ba   :  { %1488 = vmatpush1.bf16.msra.mxu0 %v7028_v35  ;;  %1570 = vmatpush1.bf16.msra.mxu1 %v7031_v36  ;;  %v7108_v35 = vld [vmem:[#allocation8 + $0x4] ss:$16 sps:$4 sm:$0xff]   ;;  %v7111_v36 = vld [vmem:[#allocation8 + $0xc] ss:$16 sps:$4 sm:$0xff]  }
 0x1bb   :  { %1489 = vmatprep.subr.bf16.mxu0 %v7036_v37  ;;  %1571 = vmatprep.subr.bf16.mxu1 %v7039_v38  ;;  %v7106_v38 = vld [vmem:[#allocation8] ss:$16 sps:$4 sm:$0xff]  }
 0x1be   :  { %1490 = vmatpush1.bf16.msra.mxu0 %v7034_v39  ;;  %1572 = vmatpush1.bf16.msra.mxu1 %v7037_v40  ;;  %v7109_v39 = vld [vmem:[#allocation8 + $0x8] ss:$16 sps:$4 sm:$0xff]  }
 0x1bf   :  { %1491 = vmatprep.subr.bf16.mxu0 %v7042_v41  ;;  %1573 = vmatprep.subr.bf16.mxu1 %v7045_v42  ;;  %v7114_v41 = vld [vmem:[#allocation8 + $0x24] ss:$16 sps:$4 sm:$0xff]   ;;  %v7117_v42 = vld [vmem:[#allocation8 + $0x2c] ss:$16 sps:$4 sm:$0xff]  }
 0x1c2   :  { %1492 = vmatpush1.bf16.msra.mxu0 %v7040_v43  ;;  %1574 = vmatpush1.bf16.msra.mxu1 %v7043_v44  ;;  %v7112_v43 = vld [vmem:[#allocation8 + $0x20] ss:$16 sps:$4 sm:$0xff]   ;;  %v7115_v44 = vld [vmem:[#allocation8 + $0x28] ss:$16 sps:$4 sm:$0xff]  }
 0x1c3   :  { %1493 = vmatprep.subr.bf16.mxu0 %v7048_v45  ;;  %1575 = vmatprep.subr.bf16.mxu1 %v7051_v46  ;;  %v7120_v45 = vld [vmem:[#allocation8 + $0x44] ss:$16 sps:$4 sm:$0xff]   ;;  %v7123_v46 = vld [vmem:[#allocation8 + $0x4c] ss:$16 sps:$4 sm:$0xff]  }
 0x1c6   :  { %1494 = vmatpush1.bf16.msra.mxu0 %v7046_v47  ;;  %1576 = vmatpush1.bf16.msra.mxu1 %v7049_v48  ;;  %v7118_v47 = vld [vmem:[#allocation8 + $0x40] ss:$16 sps:$4 sm:$0xff]   ;;  %v7121_v48 = vld [vmem:[#allocation8 + $0x48] ss:$16 sps:$4 sm:$0xff]  }
 0x1c7   :  { %1495 = vmatprep.subr.bf16.mxu0 %v7054_v49  ;;  %1577 = vmatprep.subr.bf16.mxu1 %v7057_v50  ;;  %v7126_v49 = vld [vmem:[#allocation8 + $0x64] ss:$16 sps:$4 sm:$0xff]   ;;  %v7129_v50 = vld [vmem:[#allocation8 + $0x6c] ss:$16 sps:$4 sm:$0xff]  }
 0x1ca   :  { %1496 = vmatpush1.bf16.msra.mxu0 %v7052_v51  ;;  %1578 = vmatpush1.bf16.msra.mxu1 %v7055_v52  ;;  %v7124_v51 = vld [vmem:[#allocation8 + $0x60] ss:$16 sps:$4 sm:$0xff]   ;;  %v7127_v52 = vld [vmem:[#allocation8 + $0x68] ss:$16 sps:$4 sm:$0xff]  }
 0x1cb   :  { %1497 = vmatprep.subr.bf16.mxu0 %v7060_v53  ;;  %1579 = vmatprep.subr.bf16.mxu1 %v7063_v54  ;;  %v7132_v53 = vld [vmem:[#allocation8 + $0x84] ss:$16 sps:$4 sm:$0xff]   ;;  %v7135_v54 = vld [vmem:[#allocation8 + $0x8c] ss:$16 sps:$4 sm:$0xff]  }
 0x1ce   :  { %1498 = vmatpush1.bf16.msra.mxu0 %v7058_v55  ;;  %1580 = vmatpush1.bf16.msra.mxu1 %v7061_v56  ;;  %v7130_v55 = vld [vmem:[#allocation8 + $0x80] ss:$16 sps:$4 sm:$0xff]   ;;  %v7133_v56 = vld [vmem:[#allocation8 + $0x88] ss:$16 sps:$4 sm:$0xff]  }
 0x1cf   :  { %1499 = vmatprep.subr.bf16.mxu0 %v7066_v57  ;;  %1581 = vmatprep.subr.bf16.mxu1 %v7069_v58  ;;  %v7138_v57 = vld [vmem:[#allocation8 + $0xa4] ss:$16 sps:$4 sm:$0xff]   ;;  %v7141_v58 = vld [vmem:[#allocation8 + $0xac] ss:$16 sps:$4 sm:$0xff]  }
 0x1d2   :  { %1500 = vmatpush1.bf16.msra.mxu0 %v7064_v59  ;;  %1582 = vmatpush1.bf16.msra.mxu1 %v7067_v60  ;;  %v7136_v59 = vld [vmem:[#allocation8 + $0xa0] ss:$16 sps:$4 sm:$0xff]   ;;  %v7139_v60 = vld [vmem:[#allocation8 + $0xa8] ss:$16 sps:$4 sm:$0xff]  }
 0x1d3   :  { %1501 = vmatprep.subr.bf16.mxu0 %v7072_v61  ;;  %1583 = vmatprep.subr.bf16.mxu1 %v7075_v62  ;;  %v7144_v61 = vld [vmem:[#allocation8 + $0xc4] ss:$16 sps:$4 sm:$0xff]   ;;  %v7147_v62 = vld [vmem:[#allocation8 + $0xcc] ss:$16 sps:$4 sm:$0xff]  }
 0x1d6   :  { %1502 = vmatpush1.bf16.msra.mxu0 %v7070_v63  ;;  %1584 = vmatpush1.bf16.msra.mxu1 %v7073_v0  ;;  %v7142_v63 = vld [vmem:[#allocation8 + $0xc0] ss:$16 sps:$4 sm:$0xff]   ;;  %v7145_v0 = vld [vmem:[#allocation8 + $0xc8] ss:$16 sps:$4 sm:$0xff]  }
 0x1d7   :  { %1503 = vmatprep.subr.bf16.mxu0 %v7078_v1  ;;  %1585 = vmatprep.subr.bf16.mxu1 %v7081_v2  ;;  %v7150_v1 = vld [vmem:[#allocation8 + $0xe4] ss:$16 sps:$4 sm:$0xff]   ;;  %v7153_v2 = vld [vmem:[#allocation8 + $0xec] ss:$16 sps:$4 sm:$0xff]  }
 0x1da   :  { %1504 = vmatpush1.bf16.msra.mxu0 %v7076_v3  ;;  %1586 = vmatpush1.bf16.msra.mxu1 %v7079_v4  ;;  %v7148_v3 = vld [vmem:[#allocation8 + $0xe0] ss:$16 sps:$4 sm:$0xff]   ;;  %v7151_v4 = vld [vmem:[#allocation8 + $0xe8] ss:$16 sps:$4 sm:$0xff]  }
 0x1db   :  { %1505 = vmatprep.subr.bf16.mxu0 %v7084_v5  ;;  %1587 = vmatprep.subr.bf16.mxu1 %v7087_v6  ;;  %v7156_v5 = vld [vmem:[#allocation8 + $0x104] ss:$16 sps:$4 sm:$0xff]   ;;  %v7159_v6 = vld [vmem:[#allocation8 + $0x10c] ss:$16 sps:$4 sm:$0xff]  }
 0x1de   :  { %1506 = vmatpush1.bf16.msra.mxu0 %v7082_v11  ;;  %1588 = vmatpush1.bf16.msra.mxu1 %v7085_v12  ;;  %v7154_v11 = vld [vmem:[#allocation8 + $0x100] ss:$16 sps:$4 sm:$0xff]   ;;  %v7157_v12 = vld [vmem:[#allocation8 + $0x108] ss:$16 sps:$4 sm:$0xff]  }
 0x1df   :  { %1507 = vmatprep.subr.bf16.mxu0 %v7090_v13  ;;  %1589 = vmatprep.subr.bf16.mxu1 %v7093_v14  ;;  %v7162_v13 = vld [vmem:[#allocation8 + $0x124] ss:$16 sps:$4 sm:$0xff]   ;;  %v7165_v14 = vld [vmem:[#allocation8 + $0x12c] ss:$16 sps:$4 sm:$0xff]  }
 0x1e2   :  { %1508 = vmatpush1.bf16.msra.mxu0 %v7088_v15  ;;  %1590 = vmatpush1.bf16.msra.mxu1 %v7091_v16  ;;  %v7160_v15 = vld [vmem:[#allocation8 + $0x120] ss:$16 sps:$4 sm:$0xff]   ;;  %v7163_v16 = vld [vmem:[#allocation8 + $0x128] ss:$16 sps:$4 sm:$0xff]  }
 0x1e3   :  { %1509 = vmatprep.subr.bf16.mxu0 %v7096_v18  ;;  %1591 = vmatprep.subr.bf16.mxu1 %v7099_v19  ;;  %v7168_v18 = vld [vmem:[#allocation8 + $0x144] ss:$16 sps:$4 sm:$0xff]   ;;  %v7171_v19 = vld [vmem:[#allocation8 + $0x14c] ss:$16 sps:$4 sm:$0xff]  }
 0x1e4   :  { %v635_v27 = vpop.f32.mrb[4].mxu1 }
 0x1e5   :  { %v636_v28 = vadd.f32 %v635_v27, %v231_v23  ;;  %v637_v7 = vpop.f32.mrb[5].mxu1  ;;  %v7174_v23 = vld [vmem:[#allocation8 + $0x164] ss:$16 sps:$4 sm:$0xff]  }
 0x1e6   :  { %v638_v29 = vadd.f32 %v637_v7, %v235_v24  ;;  %v639_v30 = vpop.f32.mrb[6].mxu1  ;;  %1510 = vmatpush1.bf16.msra.mxu0 %v7094_v21  ;;  %1592 = vmatpush1.bf16.msra.mxu1 %v7097_v22  ;;  %v7166_v21 = vld [vmem:[#allocation8 + $0x140] ss:$16 sps:$4 sm:$0xff]   ;;  %v7169_v22 = vld [vmem:[#allocation8 + $0x148] ss:$16 sps:$4 sm:$0xff]  }
 0x1e7   :  { %v644_v33 = vmax.f32 %v636_v28, 0.0  ;;  %v640_v34 = vpop.f32.mrb[7].mxu1  ;;  %1511 = vmatprep.subr.bf16.mxu0 %v7102_v25  ;;  %1593 = vmatprep.subr.bf16.mxu1 %v7105_v26  ;;  %v7177_v24 = vld [vmem:[#allocation8 + $0x16c] ss:$16 sps:$4 sm:$0xff]   ;;  %v7172_v25 = vld [vmem:[#allocation8 + $0x160] ss:$16 sps:$4 sm:$0xff]  }
 0x1e8   :  { %v645_v9 = vmax.f32 %v638_v29, 0.0  ;;  %v7175_v26 = vld [vmem:[#allocation8 + $0x168] ss:$16 sps:$4 sm:$0xff]   ;;  %v7180_v27 = vld [vmem:[#allocation8 + $0x184] ss:$16 sps:$4 sm:$0xff]  }
 0x1e9   :  { %v777_v40 = vpack.c.bf16 %v644_v33, %v644_v33  ;;  %v7183_v28 = vld [vmem:[#allocation8 + $0x18c] ss:$16 sps:$4 sm:$0xff]   ;;  %v7178_v7 = vld [vmem:[#allocation8 + $0x180] ss:$16 sps:$4 sm:$0xff]   ;;  %v7181_v29 = vld [vmem:[#allocation8 + $0x188] ss:$16 sps:$4 sm:$0xff]  }
 0x1ea   :  { %v778_v37 = vpack.c.bf16 %v645_v9, %v645_v9  ;;  %1512 = vmatpush1.bf16.msra.mxu0 %v7100_v31  ;;  %1594 = vmatpush1.bf16.msra.mxu1 %v7103_v32  ;;  %v7186_v30 = vld [vmem:[#allocation8 + $0x1a4] ss:$16 sps:$4 sm:$0xff]   ;;  %v7189_v31 = vld [vmem:[#allocation8 + $0x1ac] ss:$16 sps:$4 sm:$0xff]   ;;  %v7184_v32 = vld [vmem:[#allocation8 + $0x1a0] ss:$16 sps:$4 sm:$0xff]  }
 0x1eb   :  { %2402 = vmatprep.subr.bf16.mxu0 %v7108_v35  ;;  %2484 = vmatprep.subr.bf16.mxu1 %v7111_v36  ;;  %v7187_v33 = vld [vmem:[#allocation8 + $0x1a8] ss:$16 sps:$4 sm:$0xff]   ;;  %v7192_v34 = vld [vmem:[#allocation8 + $0x1c4] ss:$16 sps:$4 sm:$0xff]   ;;  %v7195_v35 = vld [vmem:[#allocation8 + $0x1cc] ss:$16 sps:$4 sm:$0xff]  }
 0x1ec   :  { %1513 = vmatprep.mubr.bf16.mxu0 %v778_v37  ;;  %1595 = vmatprep.mubr.bf16.mxu1 %v778_v37  ;;  %v7190_v36 = vld [vmem:[#allocation8 + $0x1c0] ss:$16 sps:$4 sm:$0xff]   ;;  %v7193_v9 = vld [vmem:[#allocation8 + $0x1c8] ss:$16 sps:$4 sm:$0xff]   ;;  %v7198_v37 = vld [vmem:[#allocation8 + $0x1e4] ss:$16 sps:$4 sm:$0xff]  }
 0x1ed   :  { %1514 = vmatmul.mubr.bf16.vlgmr.msra.gmra.mrb[0].mxu0 %v777_v40  ;;  %1596 = vmatmul.mubr.bf16.vlgmr.msra.gmra.mrb[8].mxu1 %v777_v40  ;;  %v7199_v40 = vld [vmem:[#allocation8 + $0x1e8] ss:$16 sps:$4 sm:$0xff]  }
 0x1ee   :  { %2403 = vmatpush1.bf16.msra.mxu0 %v7106_v38  ;;  %2485 = vmatpush1.bf16.msra.mxu1 %v7109_v39  ;;  %v7201_v38 = vld [vmem:[#allocation8 + $0x1ec] ss:$16 sps:$4 sm:$0xff]   ;;  %v7196_v39 = vld [vmem:[#allocation8 + $0x1e0] ss:$16 sps:$4 sm:$0xff]  }
 0x1ef   :  { %2404 = vmatprep.subr.bf16.mxu0 %v7114_v41  ;;  %2486 = vmatprep.subr.bf16.mxu1 %v7117_v42  ;;  %v7204_v41 = vld [vmem:[#allocation8 + $0x204] ss:$16 sps:$4 sm:$0xff]   ;;  %v7207_v42 = vld [vmem:[#allocation8 + $0x20c] ss:$16 sps:$4 sm:$0xff]  }
 0x1f2   :  { %2405 = vmatpush1.bf16.msra.mxu0 %v7112_v43  ;;  %2487 = vmatpush1.bf16.msra.mxu1 %v7115_v44  ;;  %v8401_v43 = vld [vmem:[%s8503_s8 + $0x4] sm:$0xf] }
 0x1f3   :  { %2406 = vmatprep.subr.bf16.mxu0 %v7120_v45  ;;  %2488 = vmatprep.subr.bf16.mxu1 %v7123_v46  ;;  %v783_v44 = vrot.slane %v8401_v43, %v8374_v8  ;;  %v787_v45 = vrot.slane %v8401_v43, %v8382_v10  ;;  %v795_v46 = vrot.slane %v8401_v43, %v8392_v20 }
 0x1f6   :  { %2407 = vmatpush1.bf16.msra.mxu0 %v7118_v47  ;;  %2489 = vmatpush1.bf16.msra.mxu1 %v7121_v48 }
 0x1f7   :  { %2408 = vmatprep.subr.bf16.mxu0 %v7126_v49  ;;  %2490 = vmatprep.subr.bf16.mxu1 %v7129_v50 }
 0x1fa   :  { %2409 = vmatpush1.bf16.msra.mxu0 %v7124_v51  ;;  %2491 = vmatpush1.bf16.msra.mxu1 %v7127_v52 }
 0x1fb   :  { %2410 = vmatprep.subr.bf16.mxu0 %v7132_v53  ;;  %2492 = vmatprep.subr.bf16.mxu1 %v7135_v54 }
 0x1fe   :  { %2411 = vmatpush1.bf16.msra.mxu0 %v7130_v55  ;;  %2493 = vmatpush1.bf16.msra.mxu1 %v7133_v56 }
 0x1ff   :  { %2412 = vmatprep.subr.bf16.mxu0 %v7138_v57  ;;  %2494 = vmatprep.subr.bf16.mxu1 %v7141_v58 }
 0x202   :  { %2413 = vmatpush1.bf16.msra.mxu0 %v7136_v59  ;;  %2495 = vmatpush1.bf16.msra.mxu1 %v7139_v60 }
 0x203   :  { %2414 = vmatprep.subr.bf16.mxu0 %v7144_v61  ;;  %2496 = vmatprep.subr.bf16.mxu1 %v7147_v62  ;;  %v7202_v62 = vld [vmem:[#allocation8 + $0x200] ss:$16 sps:$4 sm:$0xff]  }
 0x206   :  { %2415 = vmatpush1.bf16.msra.mxu0 %v7142_v63  ;;  %2497 = vmatpush1.bf16.msra.mxu1 %v7145_v0  ;;  %v7205_v63 = vld [vmem:[#allocation8 + $0x208] ss:$16 sps:$4 sm:$0xff]  }
 0x207   :  { %2416 = vmatprep.subr.bf16.mxu0 %v7150_v1  ;;  %2498 = vmatprep.subr.bf16.mxu1 %v7153_v2  ;;  %v7210_v1 = vld [vmem:[#allocation8 + $0x224] ss:$16 sps:$4 sm:$0xff]   ;;  %v7213_v2 = vld [vmem:[#allocation8 + $0x22c] ss:$16 sps:$4 sm:$0xff]  }
 0x20a   :  { %2417 = vmatpush1.bf16.msra.mxu0 %v7148_v3  ;;  %2499 = vmatpush1.bf16.msra.mxu1 %v7151_v4  ;;  %v7208_v4 = vld [vmem:[#allocation8 + $0x220] ss:$16 sps:$4 sm:$0xff]  }
 0x20b   :  { %2418 = vmatprep.subr.bf16.mxu0 %v7156_v5  ;;  %2500 = vmatprep.subr.bf16.mxu1 %v7159_v6  ;;  %v7211_v5 = vld [vmem:[#allocation8 + $0x228] ss:$16 sps:$4 sm:$0xff]   ;;  %v7216_v6 = vld [vmem:[#allocation8 + $0x244] ss:$16 sps:$4 sm:$0xff]  }
 0x20e   :  { %2419 = vmatpush1.bf16.msra.mxu0 %v7154_v11  ;;  %2501 = vmatpush1.bf16.msra.mxu1 %v7157_v12  ;;  %v7219_v11 = vld [vmem:[#allocation8 + $0x24c] ss:$16 sps:$4 sm:$0xff]   ;;  %v7214_v12 = vld [vmem:[#allocation8 + $0x240] ss:$16 sps:$4 sm:$0xff]  }
 0x20f   :  { %2420 = vmatprep.subr.bf16.mxu0 %v7162_v13  ;;  %2502 = vmatprep.subr.bf16.mxu1 %v7165_v14  ;;  %v7217_v13 = vld [vmem:[#allocation8 + $0x248] ss:$16 sps:$4 sm:$0xff]   ;;  %v7222_v14 = vld [vmem:[#allocation8 + $0x264] ss:$16 sps:$4 sm:$0xff]  }
 0x212   :  { %2421 = vmatpush1.bf16.msra.mxu0 %v7160_v15  ;;  %2503 = vmatpush1.bf16.msra.mxu1 %v7163_v16  ;;  %v7225_v15 = vld [vmem:[#allocation8 + $0x26c] ss:$16 sps:$4 sm:$0xff]   ;;  %v7220_v16 = vld [vmem:[#allocation8 + $0x260] ss:$16 sps:$4 sm:$0xff]  }
 0x213   :  { %2422 = vmatprep.subr.bf16.mxu0 %v7168_v18  ;;  %2504 = vmatprep.subr.bf16.mxu1 %v7171_v19  ;;  %v7223_v18 = vld [vmem:[#allocation8 + $0x268] ss:$16 sps:$4 sm:$0xff]   ;;  %v7228_v19 = vld [vmem:[#allocation8 + $0x284] ss:$16 sps:$4 sm:$0xff]  }
 0x216   :  { %2423 = vmatpush1.bf16.msra.mxu0 %v7166_v21  ;;  %2505 = vmatpush1.bf16.msra.mxu1 %v7169_v22  ;;  %v7231_v21 = vld [vmem:[#allocation8 + $0x28c] ss:$16 sps:$4 sm:$0xff]   ;;  %v7226_v22 = vld [vmem:[#allocation8 + $0x280] ss:$16 sps:$4 sm:$0xff]  }
 0x217   :  { %2424 = vmatprep.subr.bf16.mxu0 %v7174_v23  ;;  %2506 = vmatprep.subr.bf16.mxu1 %v7177_v24  ;;  %v7229_v23 = vld [vmem:[#allocation8 + $0x288] ss:$16 sps:$4 sm:$0xff]   ;;  %v7234_v24 = vld [vmem:[#allocation8 + $0x2a4] ss:$16 sps:$4 sm:$0xff]  }
 0x21a   :  { %2425 = vmatpush1.bf16.msra.mxu0 %v7172_v25  ;;  %2507 = vmatpush1.bf16.msra.mxu1 %v7175_v26  ;;  %v7237_v25 = vld [vmem:[#allocation8 + $0x2ac] ss:$16 sps:$4 sm:$0xff]   ;;  %v7232_v26 = vld [vmem:[#allocation8 + $0x2a0] ss:$16 sps:$4 sm:$0xff]  }
 0x21b   :  { %2426 = vmatprep.subr.bf16.mxu0 %v7180_v27  ;;  %2508 = vmatprep.subr.bf16.mxu1 %v7183_v28  ;;  %v7235_v27 = vld [vmem:[#allocation8 + $0x2a8] ss:$16 sps:$4 sm:$0xff]   ;;  %v7240_v28 = vld [vmem:[#allocation8 + $0x2c4] ss:$16 sps:$4 sm:$0xff]  }
 0x21e   :  { %2427 = vmatpush1.bf16.msra.mxu0 %v7178_v7  ;;  %2509 = vmatpush1.bf16.msra.mxu1 %v7181_v29  ;;  %v7243_v7 = vld [vmem:[#allocation8 + $0x2cc] ss:$16 sps:$4 sm:$0xff]   ;;  %v7238_v29 = vld [vmem:[#allocation8 + $0x2c0] ss:$16 sps:$4 sm:$0xff]  }
 0x21f   :  { %2428 = vmatprep.subr.bf16.mxu0 %v7186_v30  ;;  %2510 = vmatprep.subr.bf16.mxu1 %v7189_v31  ;;  %v7241_v30 = vld [vmem:[#allocation8 + $0x2c8] ss:$16 sps:$4 sm:$0xff]   ;;  %v7246_v31 = vld [vmem:[#allocation8 + $0x2e4] ss:$16 sps:$4 sm:$0xff]  }
 0x222   :  { %2429 = vmatpush1.bf16.msra.mxu0 %v7184_v32  ;;  %2511 = vmatpush1.bf16.msra.mxu1 %v7187_v33  ;;  %v7249_v32 = vld [vmem:[#allocation8 + $0x2ec] ss:$16 sps:$4 sm:$0xff]   ;;  %v7244_v33 = vld [vmem:[#allocation8 + $0x2e0] ss:$16 sps:$4 sm:$0xff]  }
 0x223   :  { %2430 = vmatprep.subr.bf16.mxu0 %v7192_v34  ;;  %2512 = vmatprep.subr.bf16.mxu1 %v7195_v35  ;;  %v7247_v34 = vld [vmem:[#allocation8 + $0x2e8] ss:$16 sps:$4 sm:$0xff]   ;;  %v7252_v35 = vld [vmem:[#allocation8 + $0x304] ss:$16 sps:$4 sm:$0xff]  }
 0x226   :  { %2431 = vmatpush1.bf16.msra.mxu0 %v7190_v36  ;;  %2513 = vmatpush1.bf16.msra.mxu1 %v7193_v9  ;;  %v7255_v36 = vld [vmem:[#allocation8 + $0x30c] ss:$16 sps:$4 sm:$0xff]   ;;  %v7250_v9 = vld [vmem:[#allocation8 + $0x300] ss:$16 sps:$4 sm:$0xff]  }
 0x227   :  { %2432 = vmatprep.subr.bf16.mxu0 %v7198_v37  ;;  %2514 = vmatprep.subr.bf16.mxu1 %v7201_v38  ;;  %v7253_v37 = vld [vmem:[#allocation8 + $0x308] ss:$16 sps:$4 sm:$0xff]   ;;  %v7258_v38 = vld [vmem:[#allocation8 + $0x324] ss:$16 sps:$4 sm:$0xff]  }
 0x22a   :  { %2433 = vmatpush1.bf16.msra.mxu0 %v7196_v39  ;;  %2515 = vmatpush1.bf16.msra.mxu1 %v7199_v40  ;;  %v7261_v39 = vld [vmem:[#allocation8 + $0x32c] ss:$16 sps:$4 sm:$0xff]   ;;  %v7256_v40 = vld [vmem:[#allocation8 + $0x320] ss:$16 sps:$4 sm:$0xff]  }
 0x22b   :  { %2443 = vmatprep.subr.bf16.mxu0 %v7204_v41  ;;  %2525 = vmatprep.subr.bf16.mxu1 %v7207_v42  ;;  %v7259_v41 = vld [vmem:[#allocation8 + $0x328] ss:$16 sps:$4 sm:$0xff]   ;;  %v7264_v42 = vld [vmem:[#allocation8 + $0x344] ss:$16 sps:$4 sm:$0xff]  }
 0x2c0   :  { %v1515_v47 = vpop.f32.mrb[0].mxu0  ;;  %v8409_v48 = vpop.f32.mrb[8].mxu1 }
 0x2c1   :  { %v6739_v49 = vadd.f32 %v1515_v47, %v783_v44  ;;  %v1517_v50 = vpop.f32.mrb[1].mxu0  ;;  %v1599_v51 = vpop.f32.mrb[9].mxu1  ;;  %v7267_v44 = vld [vmem:[#allocation8 + $0x34c] ss:$16 sps:$4 sm:$0xff]   ;;  %v7270_v47 = vld [vmem:[#allocation8 + $0x364] ss:$16 sps:$4 sm:$0xff]  }
 0x2c2   :  { %v6740_v52 = vadd.f32 %v1517_v50, %v787_v45  ;;  %v6742_v53 = vadd.f32 %v1599_v51, %v795_v46  ;;  %v1519_v54 = vpop.f32.mrb[2].mxu0  ;;  %v1601_v55 = vpop.f32.mrb[10].mxu1  ;;  %v7262_v45 = vld [vmem:[#allocation8 + $0x340] ss:$16 sps:$4 sm:$0xff]   ;;  %v7265_v46 = vld [vmem:[#allocation8 + $0x348] ss:$16 sps:$4 sm:$0xff]  }
 0x2c3   :  { %v1604_v56 = vmax.f32 %v6739_v49, 0.0  ;;  %v1520_v57 = vpop.f32.mrb[3].mxu0  ;;  %v1602_v58 = vpop.f32.mrb[11].mxu1  ;;  %v7273_v49 = vld [vmem:[#allocation8 + $0x36c] ss:$16 sps:$4 sm:$0xff]  }
 0x2c4   :  { %v1605_v59 = vmax.f32 %v6740_v52, 0.0  ;;  %v1607_v60 = vmax.f32 %v6742_v53, 0.0  ;;  %v7268_v50 = vld [vmem:[#allocation8 + $0x360] ss:$16 sps:$4 sm:$0xff]   ;;  %v7271_v51 = vld [vmem:[#allocation8 + $0x368] ss:$16 sps:$4 sm:$0xff]  }
 0x2c5   :  { %v1737_v0 = vpack.c.bf16 %v1604_v56, %v1604_v56  ;;  %v7276_v52 = vld [vmem:[#allocation8 + $0x384] ss:$16 sps:$4 sm:$0xff]   ;;  %v7279_v53 = vld [vmem:[#allocation8 + $0x38c] ss:$16 sps:$4 sm:$0xff]   ;;  %v7274_v54 = vld [vmem:[#allocation8 + $0x380] ss:$16 sps:$4 sm:$0xff]  }
 0x2c6   :  { %v1738_v61 = vpack.c.bf16 %v1605_v59, %v1605_v59  ;;  %v1740_v3 = vpack.c.bf16 %v1607_v60, %v1607_v60  ;;  %v7277_v55 = vld [vmem:[#allocation8 + $0x388] ss:$16 sps:$4 sm:$0xff]   ;;  %v7282_v56 = vld [vmem:[#allocation8 + $0x3a4] ss:$16 sps:$4 sm:$0xff]   ;;  %v7285_v57 = vld [vmem:[#allocation8 + $0x3ac] ss:$16 sps:$4 sm:$0xff]   ;;  %v791_v60 = vrot.slane %v8401_v43, %v8389_v17 }
 0x2c7   :  { %v7280_v58 = vld [vmem:[#allocation8 + $0x3a0] ss:$16 sps:$4 sm:$0xff]   ;;  %v7283_v59 = vld [vmem:[#allocation8 + $0x3a8] ss:$16 sps:$4 sm:$0xff]   ;;  %v7300_v43 = vld [vmem:[#allocation10 + $0x4] ss:$16 sps:$4 sm:$0xff]  }
 0x2c8   :  { %2434 = vmatprep.mubr.bf16.mxu0 %v1738_v61  ;;  %2516 = vmatprep.mubr.bf16.mxu1 %v1738_v61  ;;  %v7288_v61 = vld [vmem:[#allocation8 + $0x3c4] ss:$16 sps:$4 sm:$0xff]  }
 0x2c9   :  { %2435 = vmatmul.mubr.bf16.vlgmr.msra.gmra.mrb[4].mxu0 %v1737_v0  ;;  %2517 = vmatmul.mubr.bf16.vlgmr.msra.gmra.mrb[12].mxu1 %v1737_v0  ;;  %v7289_v0 = vld [vmem:[#allocation8 + $0x3c8] ss:$16 sps:$4 sm:$0xff]  }
 0x2ca   :  { %2444 = vmatpush1.bf16.msra.mxu0 %v7202_v62  ;;  %2526 = vmatpush1.bf16.msra.mxu1 %v7205_v63  ;;  %v7291_v62 = vld [vmem:[#allocation8 + $0x3cc] ss:$16 sps:$4 sm:$0xff]   ;;  %v7286_v63 = vld [vmem:[#allocation8 + $0x3c0] ss:$16 sps:$4 sm:$0xff]  }
 0x2cb   :  { %2475 = vmatprep.mubr.bf16.mxu0 %v1740_v3  ;;  %2557 = vmatprep.mubr.bf16.mxu1 %v1740_v3  ;;  %v7297_v3 = vld [vmem:[#allocation8 + $0x3ec] ss:$16 sps:$4 sm:$0xff]  }
 0x2cc   :  { %2445 = vmatprep.subr.bf16.mxu0 %v7210_v1  ;;  %2527 = vmatprep.subr.bf16.mxu1 %v7213_v2  ;;  %v6741_v1 = vadd.f32 %v8409_v48, %v791_v60  ;;  %v7294_v2 = vld [vmem:[#allocation8 + $0x3e4] ss:$16 sps:$4 sm:$0xff]  }
 0x2cd   :  { %v7306_v48 = vld [vmem:[#allocation10 + $0x24] ss:$16 sps:$4 sm:$0xff]  }
 0x2ce   :  { %2446 = vmatpush1.bf16.msra.mxu0 %v7208_v4  ;;  %2528 = vmatpush1.bf16.msra.mxu1 %v7211_v5  ;;  %v7292_v4 = vld [vmem:[#allocation8 + $0x3e0] ss:$16 sps:$4 sm:$0xff]   ;;  %v7295_v5 = vld [vmem:[#allocation8 + $0x3e8] ss:$16 sps:$4 sm:$0xff]   ;;  %v7372_v60 = vld [vmem:[#allocation10 + $0x184] ss:$16 sps:$4 sm:$0xff]  }
 0x2cf   :  { %2447 = vmatprep.subr.bf16.mxu0 %v7216_v6  ;;  %2529 = vmatprep.subr.bf16.mxu1 %v7219_v11  ;;  %v1606_v6 = vmax.f32 %v6741_v1, 0.0  ;;  %v7303_v11 = vld [vmem:[#allocation10 + $0xc] ss:$16 sps:$4 sm:$0xff]  }
 0x2d0   :  { %v7381_v1 = vld [vmem:[#allocation10 + $0x1ac] ss:$16 sps:$4 sm:$0xff]  }
 0x2d2   :  { %2448 = vmatpush1.bf16.msra.mxu0 %v7214_v12  ;;  %2530 = vmatpush1.bf16.msra.mxu1 %v7217_v13  ;;  %v7298_v12 = vld [vmem:[#allocation10] ss:$16 sps:$4 sm:$0xff]   ;;  %v7301_v13 = vld [vmem:[#allocation10 + $0x8] ss:$16 sps:$4 sm:$0xff]  }
 0x2d3   :  { %2449 = vmatprep.subr.bf16.mxu0 %v7222_v14  ;;  %2531 = vmatprep.subr.bf16.mxu1 %v7225_v15  ;;  %v1739_v14 = vpack.c.bf16 %v1606_v6, %v1606_v6  ;;  %v7309_v15 = vld [vmem:[#allocation10 + $0x2c] ss:$16 sps:$4 sm:$0xff]   ;;  %v7382_v6 = vld [vmem:[#allocation10 + $0x1c0] ss:$16 sps:$4 sm:$0xff]  }
 0x2d6   :  { %2450 = vmatpush1.bf16.msra.mxu0 %v7220_v16  ;;  %2532 = vmatpush1.bf16.msra.mxu1 %v7223_v18  ;;  %v7304_v16 = vld [vmem:[#allocation10 + $0x20] ss:$16 sps:$4 sm:$0xff]   ;;  %v7307_v18 = vld [vmem:[#allocation10 + $0x28] ss:$16 sps:$4 sm:$0xff]  }
 0x2d7   :  { %2451 = vmatprep.subr.bf16.mxu0 %v7228_v19  ;;  %2533 = vmatprep.subr.bf16.mxu1 %v7231_v21  ;;  %v7312_v19 = vld [vmem:[#allocation10 + $0x44] ss:$16 sps:$4 sm:$0xff]   ;;  %v7315_v21 = vld [vmem:[#allocation10 + $0x4c] ss:$16 sps:$4 sm:$0xff]  }
 0x2da   :  { %2452 = vmatpush1.bf16.msra.mxu0 %v7226_v22  ;;  %2534 = vmatpush1.bf16.msra.mxu1 %v7229_v23  ;;  %v7310_v22 = vld [vmem:[#allocation10 + $0x40] ss:$16 sps:$4 sm:$0xff]   ;;  %v7313_v23 = vld [vmem:[#allocation10 + $0x48] ss:$16 sps:$4 sm:$0xff]  }
 0x2db   :  { %2453 = vmatprep.subr.bf16.mxu0 %v7234_v24  ;;  %2535 = vmatprep.subr.bf16.mxu1 %v7237_v25  ;;  %v7318_v24 = vld [vmem:[#allocation10 + $0x64] ss:$16 sps:$4 sm:$0xff]   ;;  %v7321_v25 = vld [vmem:[#allocation10 + $0x6c] ss:$16 sps:$4 sm:$0xff]  }
 0x2de   :  { %2454 = vmatpush1.bf16.msra.mxu0 %v7232_v26  ;;  %2536 = vmatpush1.bf16.msra.mxu1 %v7235_v27  ;;  %v7316_v26 = vld [vmem:[#allocation10 + $0x60] ss:$16 sps:$4 sm:$0xff]   ;;  %v7319_v27 = vld [vmem:[#allocation10 + $0x68] ss:$16 sps:$4 sm:$0xff]  }
 0x2df   :  { %2455 = vmatprep.subr.bf16.mxu0 %v7240_v28  ;;  %2537 = vmatprep.subr.bf16.mxu1 %v7243_v7  ;;  %v7324_v28 = vld [vmem:[#allocation10 + $0x84] ss:$16 sps:$4 sm:$0xff]   ;;  %v7327_v7 = vld [vmem:[#allocation10 + $0x8c] ss:$16 sps:$4 sm:$0xff]  }
 0x2e2   :  { %2456 = vmatpush1.bf16.msra.mxu0 %v7238_v29  ;;  %2538 = vmatpush1.bf16.msra.mxu1 %v7241_v30  ;;  %v7322_v29 = vld [vmem:[#allocation10 + $0x80] ss:$16 sps:$4 sm:$0xff]   ;;  %v7325_v30 = vld [vmem:[#allocation10 + $0x88] ss:$16 sps:$4 sm:$0xff]  }
 0x2e3   :  { %2457 = vmatprep.subr.bf16.mxu0 %v7246_v31  ;;  %2539 = vmatprep.subr.bf16.mxu1 %v7249_v32  ;;  %v7330_v31 = vld [vmem:[#allocation10 + $0xa4] ss:$16 sps:$4 sm:$0xff]   ;;  %v7333_v32 = vld [vmem:[#allocation10 + $0xac] ss:$16 sps:$4 sm:$0xff]  }
 0x2e6   :  { %2458 = vmatpush1.bf16.msra.mxu0 %v7244_v33  ;;  %2540 = vmatpush1.bf16.msra.mxu1 %v7247_v34  ;;  %v7328_v33 = vld [vmem:[#allocation10 + $0xa0] ss:$16 sps:$4 sm:$0xff]   ;;  %v7331_v34 = vld [vmem:[#allocation10 + $0xa8] ss:$16 sps:$4 sm:$0xff]  }
 0x2e7   :  { %2459 = vmatprep.subr.bf16.mxu0 %v7252_v35  ;;  %2541 = vmatprep.subr.bf16.mxu1 %v7255_v36  ;;  %v7336_v35 = vld [vmem:[#allocation10 + $0xc4] ss:$16 sps:$4 sm:$0xff]   ;;  %v7339_v36 = vld [vmem:[#allocation10 + $0xcc] ss:$16 sps:$4 sm:$0xff]  }
 0x2ea   :  { %2460 = vmatpush1.bf16.msra.mxu0 %v7250_v9  ;;  %2542 = vmatpush1.bf16.msra.mxu1 %v7253_v37  ;;  %v7334_v9 = vld [vmem:[#allocation10 + $0xc0] ss:$16 sps:$4 sm:$0xff]   ;;  %v7337_v37 = vld [vmem:[#allocation10 + $0xc8] ss:$16 sps:$4 sm:$0xff]  }
 0x2eb   :  { %2461 = vmatprep.subr.bf16.mxu0 %v7258_v38  ;;  %2543 = vmatprep.subr.bf16.mxu1 %v7261_v39  ;;  %v7342_v38 = vld [vmem:[#allocation10 + $0xe4] ss:$16 sps:$4 sm:$0xff]   ;;  %v7345_v39 = vld [vmem:[#allocation10 + $0xec] ss:$16 sps:$4 sm:$0xff]  }
 0x2ee   :  { %2462 = vmatpush1.bf16.msra.mxu0 %v7256_v40  ;;  %2544 = vmatpush1.bf16.msra.mxu1 %v7259_v41  ;;  %v7340_v40 = vld [vmem:[#allocation10 + $0xe0] ss:$16 sps:$4 sm:$0xff]   ;;  %v7343_v41 = vld [vmem:[#allocation10 + $0xe8] ss:$16 sps:$4 sm:$0xff]  }
 0x2ef   :  { %2463 = vmatprep.subr.bf16.mxu0 %v7264_v42  ;;  %2545 = vmatprep.subr.bf16.mxu1 %v7267_v44  ;;  %v7348_v42 = vld [vmem:[#allocation10 + $0x104] ss:$16 sps:$4 sm:$0xff]   ;;  %v7351_v44 = vld [vmem:[#allocation10 + $0x10c] ss:$16 sps:$4 sm:$0xff]  }
 0x2f2   :  { %2464 = vmatpush1.bf16.msra.mxu0 %v7262_v45  ;;  %2546 = vmatpush1.bf16.msra.mxu1 %v7265_v46  ;;  %v7346_v45 = vld [vmem:[#allocation10 + $0x100] ss:$16 sps:$4 sm:$0xff]   ;;  %v7349_v46 = vld [vmem:[#allocation10 + $0x108] ss:$16 sps:$4 sm:$0xff]  }
 0x2f3   :  { %2465 = vmatprep.subr.bf16.mxu0 %v7270_v47  ;;  %2547 = vmatprep.subr.bf16.mxu1 %v7273_v49  ;;  %v7354_v47 = vld [vmem:[#allocation10 + $0x124] ss:$16 sps:$4 sm:$0xff]   ;;  %v7357_v49 = vld [vmem:[#allocation10 + $0x12c] ss:$16 sps:$4 sm:$0xff]  }
 0x2f6   :  { %2466 = vmatpush1.bf16.msra.mxu0 %v7268_v50  ;;  %2548 = vmatpush1.bf16.msra.mxu1 %v7271_v51  ;;  %v7352_v50 = vld [vmem:[#allocation10 + $0x120] ss:$16 sps:$4 sm:$0xff]   ;;  %v7355_v51 = vld [vmem:[#allocation10 + $0x128] ss:$16 sps:$4 sm:$0xff]  }
 0x2f7   :  { %2467 = vmatprep.subr.bf16.mxu0 %v7276_v52  ;;  %2549 = vmatprep.subr.bf16.mxu1 %v7279_v53  ;;  %v7360_v52 = vld [vmem:[#allocation10 + $0x144] ss:$16 sps:$4 sm:$0xff]   ;;  %v7363_v53 = vld [vmem:[#allocation10 + $0x14c] ss:$16 sps:$4 sm:$0xff]  }
 0x2fa   :  { %2468 = vmatpush1.bf16.msra.mxu0 %v7274_v54  ;;  %2550 = vmatpush1.bf16.msra.mxu1 %v7277_v55  ;;  %v7358_v54 = vld [vmem:[#allocation10 + $0x140] ss:$16 sps:$4 sm:$0xff]   ;;  %v7361_v55 = vld [vmem:[#allocation10 + $0x148] ss:$16 sps:$4 sm:$0xff]  }
 0x2fb   :  { %2469 = vmatprep.subr.bf16.mxu0 %v7282_v56  ;;  %2551 = vmatprep.subr.bf16.mxu1 %v7285_v57  ;;  %v7366_v56 = vld [vmem:[#allocation10 + $0x164] ss:$16 sps:$4 sm:$0xff]   ;;  %v7369_v57 = vld [vmem:[#allocation10 + $0x16c] ss:$16 sps:$4 sm:$0xff]  }
 0x2fe   :  { %2470 = vmatpush1.bf16.msra.mxu0 %v7280_v58  ;;  %2552 = vmatpush1.bf16.msra.mxu1 %v7283_v59  ;;  %v7364_v58 = vld [vmem:[#allocation10 + $0x160] ss:$16 sps:$4 sm:$0xff]   ;;  %v7367_v59 = vld [vmem:[#allocation10 + $0x168] ss:$16 sps:$4 sm:$0xff]  }
 0x2ff   :  { %2471 = vmatprep.subr.bf16.mxu0 %v7288_v61  ;;  %2553 = vmatprep.subr.bf16.mxu1 %v7291_v62  ;;  %v7375_v61 = vld [vmem:[#allocation10 + $0x18c] ss:$16 sps:$4 sm:$0xff]   ;;  %v7370_v62 = vld [vmem:[#allocation10 + $0x180] ss:$16 sps:$4 sm:$0xff]  }
 0x302   :  { %2472 = vmatpush1.bf16.msra.mxu0 %v7286_v63  ;;  %2554 = vmatpush1.bf16.msra.mxu1 %v7289_v0  ;;  %v7373_v63 = vld [vmem:[#allocation10 + $0x188] ss:$16 sps:$4 sm:$0xff]   ;;  %v7378_v0 = vld [vmem:[#allocation10 + $0x1a4] ss:$16 sps:$4 sm:$0xff]  }
 0x303   :  { %2473 = vmatprep.subr.bf16.mxu0 %v7294_v2  ;;  %2555 = vmatprep.subr.bf16.mxu1 %v7297_v3  ;;  %v7376_v2 = vld [vmem:[#allocation10 + $0x1a0] ss:$16 sps:$4 sm:$0xff]   ;;  %v7379_v3 = vld [vmem:[#allocation10 + $0x1a8] ss:$16 sps:$4 sm:$0xff]  }
 0x306   :  { %2474 = vmatpush1.bf16.msra.mxu0 %v7292_v4  ;;  %2556 = vmatpush1.bf16.msra.mxu1 %v7295_v5  ;;  %v7384_v4 = vld [vmem:[#allocation10 + $0x1c4] ss:$16 sps:$4 sm:$0xff]   ;;  %v7387_v5 = vld [vmem:[#allocation10 + $0x1cc] ss:$16 sps:$4 sm:$0xff]  }
 0x307   :  { %3364 = vmatprep.subr.bf16.mxu0 %v7300_v43  ;;  %3446 = vmatprep.subr.bf16.mxu1 %v7303_v11  ;;  %v7385_v43 = vld [vmem:[#allocation10 + $0x1c8] ss:$16 sps:$4 sm:$0xff]   ;;  %v7390_v11 = vld [vmem:[#allocation10 + $0x1e4] ss:$16 sps:$4 sm:$0xff]  }
 0x309   :  { %2476 = vmatmul.mubr.bf16.vlgmr.msra.gmra.mrb[4].mxu0 %v1739_v14  ;;  %2558 = vmatmul.mubr.bf16.vlgmr.msra.gmra.mrb[12].mxu1 %v1739_v14  ;;  %v7391_v14 = vld [vmem:[#allocation10 + $0x1e8] ss:$16 sps:$4 sm:$0xff]  }
 0x30a   :  { %3365 = vmatpush1.bf16.msra.mxu0 %v7298_v12  ;;  %3447 = vmatpush1.bf16.msra.mxu1 %v7301_v13  ;;  %v7393_v12 = vld [vmem:[#allocation10 + $0x1ec] ss:$16 sps:$4 sm:$0xff]   ;;  %v7388_v13 = vld [vmem:[#allocation10 + $0x1e0] ss:$16 sps:$4 sm:$0xff]  }
 0x30b   :  { %3366 = vmatprep.subr.bf16.mxu0 %v7306_v48  ;;  %3448 = vmatprep.subr.bf16.mxu1 %v7309_v15  ;;  %v7396_v48 = vld [vmem:[#allocation10 + $0x204] ss:$16 sps:$4 sm:$0xff]   ;;  %v7399_v15 = vld [vmem:[#allocation10 + $0x20c] ss:$16 sps:$4 sm:$0xff]  }
 0x30e   :  { %3367 = vmatpush1.bf16.msra.mxu0 %v7304_v16  ;;  %3449 = vmatpush1.bf16.msra.mxu1 %v7307_v18  ;;  %v8417_v16 = vld [vmem:[%s8503_s8 + $0x8] sm:$0xf] }
 0x30f   :  { %3368 = vmatprep.subr.bf16.mxu0 %v7312_v19  ;;  %3450 = vmatprep.subr.bf16.mxu1 %v7315_v21  ;;  %v1745_v18 = vrot.slane %v8417_v16, %v8374_v8  ;;  %v1749_v19 = vrot.slane %v8417_v16, %v8382_v10  ;;  %v1757_v21 = vrot.slane %v8417_v16, %v8392_v20 }
 0x312   :  { %3369 = vmatpush1.bf16.msra.mxu0 %v7310_v22  ;;  %3451 = vmatpush1.bf16.msra.mxu1 %v7313_v23 }
 0x313   :  { %3370 = vmatprep.subr.bf16.mxu0 %v7318_v24  ;;  %3452 = vmatprep.subr.bf16.mxu1 %v7321_v25 }
 0x316   :  { %3371 = vmatpush1.bf16.msra.mxu0 %v7316_v26  ;;  %3453 = vmatpush1.bf16.msra.mxu1 %v7319_v27 }
 0x317   :  { %3372 = vmatprep.subr.bf16.mxu0 %v7324_v28  ;;  %3454 = vmatprep.subr.bf16.mxu1 %v7327_v7 }
 0x31a   :  { %3373 = vmatpush1.bf16.msra.mxu0 %v7322_v29  ;;  %3455 = vmatpush1.bf16.msra.mxu1 %v7325_v30 }
 0x31b   :  { %3374 = vmatprep.subr.bf16.mxu0 %v7330_v31  ;;  %3456 = vmatprep.subr.bf16.mxu1 %v7333_v32 }
 0x31e   :  { %3375 = vmatpush1.bf16.msra.mxu0 %v7328_v33  ;;  %3457 = vmatpush1.bf16.msra.mxu1 %v7331_v34 }
 0x31f   :  { %3376 = vmatprep.subr.bf16.mxu0 %v7336_v35  ;;  %3458 = vmatprep.subr.bf16.mxu1 %v7339_v36  ;;  %v7394_v36 = vld [vmem:[#allocation10 + $0x200] ss:$16 sps:$4 sm:$0xff]  }
 0x322   :  { %3377 = vmatpush1.bf16.msra.mxu0 %v7334_v9  ;;  %3459 = vmatpush1.bf16.msra.mxu1 %v7337_v37  ;;  %v7397_v9 = vld [vmem:[#allocation10 + $0x208] ss:$16 sps:$4 sm:$0xff]  }
 0x323   :  { %3378 = vmatprep.subr.bf16.mxu0 %v7342_v38  ;;  %3460 = vmatprep.subr.bf16.mxu1 %v7345_v39  ;;  %v7402_v38 = vld [vmem:[#allocation10 + $0x224] ss:$16 sps:$4 sm:$0xff]   ;;  %v7405_v39 = vld [vmem:[#allocation10 + $0x22c] ss:$16 sps:$4 sm:$0xff]  }
 0x326   :  { %3379 = vmatpush1.bf16.msra.mxu0 %v7340_v40  ;;  %3461 = vmatpush1.bf16.msra.mxu1 %v7343_v41  ;;  %v7400_v41 = vld [vmem:[#allocation10 + $0x220] ss:$16 sps:$4 sm:$0xff]  }
 0x327   :  { %3380 = vmatprep.subr.bf16.mxu0 %v7348_v42  ;;  %3462 = vmatprep.subr.bf16.mxu1 %v7351_v44  ;;  %v7403_v42 = vld [vmem:[#allocation10 + $0x228] ss:$16 sps:$4 sm:$0xff]   ;;  %v7408_v44 = vld [vmem:[#allocation10 + $0x244] ss:$16 sps:$4 sm:$0xff]  }
 0x32a   :  { %3381 = vmatpush1.bf16.msra.mxu0 %v7346_v45  ;;  %3463 = vmatpush1.bf16.msra.mxu1 %v7349_v46  ;;  %v7411_v45 = vld [vmem:[#allocation10 + $0x24c] ss:$16 sps:$4 sm:$0xff]   ;;  %v7406_v46 = vld [vmem:[#allocation10 + $0x240] ss:$16 sps:$4 sm:$0xff]  }
 0x32b   :  { %3382 = vmatprep.subr.bf16.mxu0 %v7354_v47  ;;  %3464 = vmatprep.subr.bf16.mxu1 %v7357_v49  ;;  %v7409_v47 = vld [vmem:[#allocation10 + $0x248] ss:$16 sps:$4 sm:$0xff]   ;;  %v7414_v49 = vld [vmem:[#allocation10 + $0x264] ss:$16 sps:$4 sm:$0xff]  }
 0x32e   :  { %3383 = vmatpush1.bf16.msra.mxu0 %v7352_v50  ;;  %3465 = vmatpush1.bf16.msra.mxu1 %v7355_v51  ;;  %v7417_v50 = vld [vmem:[#allocation10 + $0x26c] ss:$16 sps:$4 sm:$0xff]   ;;  %v7412_v51 = vld [vmem:[#allocation10 + $0x260] ss:$16 sps:$4 sm:$0xff]  }
 0x32f   :  { %3384 = vmatprep.subr.bf16.mxu0 %v7360_v52  ;;  %3466 = vmatprep.subr.bf16.mxu1 %v7363_v53  ;;  %v7415_v52 = vld [vmem:[#allocation10 + $0x268] ss:$16 sps:$4 sm:$0xff]   ;;  %v7420_v53 = vld [vmem:[#allocation10 + $0x284] ss:$16 sps:$4 sm:$0xff]  }
 0x332   :  { %3385 = vmatpush1.bf16.msra.mxu0 %v7358_v54  ;;  %3467 = vmatpush1.bf16.msra.mxu1 %v7361_v55  ;;  %v7423_v54 = vld [vmem:[#allocation10 + $0x28c] ss:$16 sps:$4 sm:$0xff]   ;;  %v7418_v55 = vld [vmem:[#allocation10 + $0x280] ss:$16 sps:$4 sm:$0xff]  }
 0x333   :  { %3386 = vmatprep.subr.bf16.mxu0 %v7366_v56  ;;  %3468 = vmatprep.subr.bf16.mxu1 %v7369_v57  ;;  %v7421_v56 = vld [vmem:[#allocation10 + $0x288] ss:$16 sps:$4 sm:$0xff]   ;;  %v7426_v57 = vld [vmem:[#allocation10 + $0x2a4] ss:$16 sps:$4 sm:$0xff]  }
 0x336   :  { %3387 = vmatpush1.bf16.msra.mxu0 %v7364_v58  ;;  %3469 = vmatpush1.bf16.msra.mxu1 %v7367_v59  ;;  %v7429_v58 = vld [vmem:[#allocation10 + $0x2ac] ss:$16 sps:$4 sm:$0xff]   ;;  %v7424_v59 = vld [vmem:[#allocation10 + $0x2a0] ss:$16 sps:$4 sm:$0xff]  }
 0x337   :  { %3388 = vmatprep.subr.bf16.mxu0 %v7372_v60  ;;  %3470 = vmatprep.subr.bf16.mxu1 %v7375_v61  ;;  %v7427_v60 = vld [vmem:[#allocation10 + $0x2a8] ss:$16 sps:$4 sm:$0xff]   ;;  %v7432_v61 = vld [vmem:[#allocation10 + $0x2c4] ss:$16 sps:$4 sm:$0xff]  }
 0x33a   :  { %3389 = vmatpush1.bf16.msra.mxu0 %v7370_v62  ;;  %3471 = vmatpush1.bf16.msra.mxu1 %v7373_v63  ;;  %v7435_v62 = vld [vmem:[#allocation10 + $0x2cc] ss:$16 sps:$4 sm:$0xff]   ;;  %v7430_v63 = vld [vmem:[#allocation10 + $0x2c0] ss:$16 sps:$4 sm:$0xff]  }
 0x33b   :  { %3390 = vmatprep.subr.bf16.mxu0 %v7378_v0  ;;  %3472 = vmatprep.subr.bf16.mxu1 %v7381_v1  ;;  %v7433_v0 = vld [vmem:[#allocation10 + $0x2c8] ss:$16 sps:$4 sm:$0xff]   ;;  %v7438_v1 = vld [vmem:[#allocation10 + $0x2e4] ss:$16 sps:$4 sm:$0xff]  }
 0x33e   :  { %3391 = vmatpush1.bf16.msra.mxu0 %v7376_v2  ;;  %3473 = vmatpush1.bf16.msra.mxu1 %v7379_v3  ;;  %v7441_v2 = vld [vmem:[#allocation10 + $0x2ec] ss:$16 sps:$4 sm:$0xff]   ;;  %v7436_v3 = vld [vmem:[#allocation10 + $0x2e0] ss:$16 sps:$4 sm:$0xff]  }
 0x33f   :  { %3392 = vmatprep.subr.bf16.mxu0 %v7384_v4  ;;  %3474 = vmatprep.subr.bf16.mxu1 %v7387_v5  ;;  %v7439_v4 = vld [vmem:[#allocation10 + $0x2e8] ss:$16 sps:$4 sm:$0xff]   ;;  %v7444_v5 = vld [vmem:[#allocation10 + $0x304] ss:$16 sps:$4 sm:$0xff]  }
 0x342   :  { %3393 = vmatpush1.bf16.msra.mxu0 %v7382_v6  ;;  %3475 = vmatpush1.bf16.msra.mxu1 %v7385_v43  ;;  %v7447_v6 = vld [vmem:[#allocation10 + $0x30c] ss:$16 sps:$4 sm:$0xff]   ;;  %v7442_v43 = vld [vmem:[#allocation10 + $0x300] ss:$16 sps:$4 sm:$0xff]  }
 0x343   :  { %3394 = vmatprep.subr.bf16.mxu0 %v7390_v11  ;;  %3476 = vmatprep.subr.bf16.mxu1 %v7393_v12  ;;  %v7445_v11 = vld [vmem:[#allocation10 + $0x308] ss:$16 sps:$4 sm:$0xff]   ;;  %v7450_v12 = vld [vmem:[#allocation10 + $0x324] ss:$16 sps:$4 sm:$0xff]  }
 0x346   :  { %3395 = vmatpush1.bf16.msra.mxu0 %v7388_v13  ;;  %3477 = vmatpush1.bf16.msra.mxu1 %v7391_v14  ;;  %v7453_v13 = vld [vmem:[#allocation10 + $0x32c] ss:$16 sps:$4 sm:$0xff]   ;;  %v7448_v14 = vld [vmem:[#allocation10 + $0x320] ss:$16 sps:$4 sm:$0xff]  }
 0x347   :  { %3405 = vmatprep.subr.bf16.mxu0 %v7396_v48  ;;  %3487 = vmatprep.subr.bf16.mxu1 %v7399_v15  ;;  %v7451_v48 = vld [vmem:[#allocation10 + $0x328] ss:$16 sps:$4 sm:$0xff]   ;;  %v7456_v15 = vld [vmem:[#allocation10 + $0x344] ss:$16 sps:$4 sm:$0xff]  }
 0x3dc   :  { %v2477_v22 = vpop.f32.mrb[4].mxu0  ;;  %v8425_v23 = vpop.f32.mrb[12].mxu1 }
 0x3dd   :  { %v6743_v24 = vadd.f32 %v2477_v22, %v1745_v18  ;;  %v2479_v25 = vpop.f32.mrb[5].mxu0  ;;  %v2561_v26 = vpop.f32.mrb[13].mxu1  ;;  %v7459_v18 = vld [vmem:[#allocation10 + $0x34c] ss:$16 sps:$4 sm:$0xff]   ;;  %v7462_v22 = vld [vmem:[#allocation10 + $0x364] ss:$16 sps:$4 sm:$0xff]  }
 0x3de   :  { %v6744_v27 = vadd.f32 %v2479_v25, %v1749_v19  ;;  %v6746_v28 = vadd.f32 %v2561_v26, %v1757_v21  ;;  %v2481_v7 = vpop.f32.mrb[6].mxu0  ;;  %v2563_v29 = vpop.f32.mrb[14].mxu1  ;;  %v7454_v19 = vld [vmem:[#allocation10 + $0x340] ss:$16 sps:$4 sm:$0xff]   ;;  %v7457_v21 = vld [vmem:[#allocation10 + $0x348] ss:$16 sps:$4 sm:$0xff]  }
 0x3df   :  { %v2566_v30 = vmax.f32 %v6743_v24, 0.0  ;;  %v2482_v31 = vpop.f32.mrb[7].mxu0  ;;  %v2564_v32 = vpop.f32.mrb[15].mxu1  ;;  %v7465_v24 = vld [vmem:[#allocation10 + $0x36c] ss:$16 sps:$4 sm:$0xff]  }
 0x3e0   :  { %v2567_v33 = vmax.f32 %v6744_v27, 0.0  ;;  %v2569_v34 = vmax.f32 %v6746_v28, 0.0  ;;  %v7460_v25 = vld [vmem:[#allocation10 + $0x360] ss:$16 sps:$4 sm:$0xff]   ;;  %v7463_v26 = vld [vmem:[#allocation10 + $0x368] ss:$16 sps:$4 sm:$0xff]  }
 0x3e1   :  { %v2699_v37 = vpack.c.bf16 %v2566_v30, %v2566_v30  ;;  %v7468_v27 = vld [vmem:[#allocation10 + $0x384] ss:$16 sps:$4 sm:$0xff]   ;;  %v7471_v28 = vld [vmem:[#allocation10 + $0x38c] ss:$16 sps:$4 sm:$0xff]   ;;  %v7466_v7 = vld [vmem:[#allocation10 + $0x380] ss:$16 sps:$4 sm:$0xff]  }
 0x3e2   :  { %v2700_v35 = vpack.c.bf16 %v2567_v33, %v2567_v33  ;;  %v2702_v40 = vpack.c.bf16 %v2569_v34, %v2569_v34  ;;  %v7469_v29 = vld [vmem:[#allocation10 + $0x388] ss:$16 sps:$4 sm:$0xff]   ;;  %v7474_v30 = vld [vmem:[#allocation10 + $0x3a4] ss:$16 sps:$4 sm:$0xff]   ;;  %v7477_v31 = vld [vmem:[#allocation10 + $0x3ac] ss:$16 sps:$4 sm:$0xff]   ;;  %v1753_v34 = vrot.slane %v8417_v16, %v8389_v17 }
 0x3e3   :  { %v7472_v32 = vld [vmem:[#allocation10 + $0x3a0] ss:$16 sps:$4 sm:$0xff]   ;;  %v7475_v33 = vld [vmem:[#allocation10 + $0x3a8] ss:$16 sps:$4 sm:$0xff]   ;;  %v7492_v16 = vld [vmem:[#allocation11 + $0x4] ss:$16 sps:$4 sm:$0xff]  }
 0x3e4   :  { %3396 = vmatprep.mubr.bf16.mxu0 %v2700_v35  ;;  %3478 = vmatprep.mubr.bf16.mxu1 %v2700_v35  ;;  %v7480_v35 = vld [vmem:[#allocation10 + $0x3c4] ss:$16 sps:$4 sm:$0xff]  }
 0x3e5   :  { %3397 = vmatmul.mubr.bf16.vlgmr.msra.gmra.mrb[8].mxu0 %v2699_v37  ;;  %3479 = vmatmul.mubr.bf16.vlgmr.msra.gmra.mrb[16].mxu1 %v2699_v37  ;;  %v7481_v37 = vld [vmem:[#allocation10 + $0x3c8] ss:$16 sps:$4 sm:$0xff]  }
 0x3e6   :  { %3406 = vmatpush1.bf16.msra.mxu0 %v7394_v36  ;;  %3488 = vmatpush1.bf16.msra.mxu1 %v7397_v9  ;;  %v7483_v36 = vld [vmem:[#allocation10 + $0x3cc] ss:$16 sps:$4 sm:$0xff]   ;;  %v7478_v9 = vld [vmem:[#allocation10 + $0x3c0] ss:$16 sps:$4 sm:$0xff]  }
 0x3e7   :  { %3437 = vmatprep.mubr.bf16.mxu0 %v2702_v40  ;;  %3519 = vmatprep.mubr.bf16.mxu1 %v2702_v40  ;;  %v7489_v40 = vld [vmem:[#allocation10 + $0x3ec] ss:$16 sps:$4 sm:$0xff]  }
 0x3e8   :  { %3407 = vmatprep.subr.bf16.mxu0 %v7402_v38  ;;  %3489 = vmatprep.subr.bf16.mxu1 %v7405_v39  ;;  %v6745_v38 = vadd.f32 %v8425_v23, %v1753_v34  ;;  %v7486_v39 = vld [vmem:[#allocation10 + $0x3e4] ss:$16 sps:$4 sm:$0xff]  }
 0x3e9   :  { %v7498_v23 = vld [vmem:[#allocation11 + $0x24] ss:$16 sps:$4 sm:$0xff]  }
 0x3ea   :  { %3408 = vmatpush1.bf16.msra.mxu0 %v7400_v41  ;;  %3490 = vmatpush1.bf16.msra.mxu1 %v7403_v42  ;;  %v7484_v41 = vld [vmem:[#allocation10 + $0x3e0] ss:$16 sps:$4 sm:$0xff]   ;;  %v7487_v42 = vld [vmem:[#allocation10 + $0x3e8] ss:$16 sps:$4 sm:$0xff]   ;;  %v7564_v34 = vld [vmem:[#allocation11 + $0x184] ss:$16 sps:$4 sm:$0xff]  }
 0x3eb   :  { %3409 = vmatprep.subr.bf16.mxu0 %v7408_v44  ;;  %3491 = vmatprep.subr.bf16.mxu1 %v7411_v45  ;;  %v2568_v44 = vmax.f32 %v6745_v38, 0.0  ;;  %v7495_v45 = vld [vmem:[#allocation11 + $0xc] ss:$16 sps:$4 sm:$0xff]  }
 0x3ec   :  { %v7573_v38 = vld [vmem:[#allocation11 + $0x1ac] ss:$16 sps:$4 sm:$0xff]  }
 0x3ee   :  { %3410 = vmatpush1.bf16.msra.mxu0 %v7406_v46  ;;  %3492 = vmatpush1.bf16.msra.mxu1 %v7409_v47  ;;  %v7490_v46 = vld [vmem:[#allocation11] ss:$16 sps:$4 sm:$0xff]   ;;  %v7493_v47 = vld [vmem:[#allocation11 + $0x8] ss:$16 sps:$4 sm:$0xff]  }
 0x3ef   :  { %3411 = vmatprep.subr.bf16.mxu0 %v7414_v49  ;;  %3493 = vmatprep.subr.bf16.mxu1 %v7417_v50  ;;  %v2701_v49 = vpack.c.bf16 %v2568_v44, %v2568_v44  ;;  %v7501_v50 = vld [vmem:[#allocation11 + $0x2c] ss:$16 sps:$4 sm:$0xff]   ;;  %v7574_v44 = vld [vmem:[#allocation11 + $0x1c0] ss:$16 sps:$4 sm:$0xff]  }
 0x3f2   :  { %3412 = vmatpush1.bf16.msra.mxu0 %v7412_v51  ;;  %3494 = vmatpush1.bf16.msra.mxu1 %v7415_v52  ;;  %v7496_v51 = vld [vmem:[#allocation11 + $0x20] ss:$16 sps:$4 sm:$0xff]   ;;  %v7499_v52 = vld [vmem:[#allocation11 + $0x28] ss:$16 sps:$4 sm:$0xff]  }
 0x3f3   :  { %3413 = vmatprep.subr.bf16.mxu0 %v7420_v53  ;;  %3495 = vmatprep.subr.bf16.mxu1 %v7423_v54  ;;  %v7504_v53 = vld [vmem:[#allocation11 + $0x44] ss:$16 sps:$4 sm:$0xff]   ;;  %v7507_v54 = vld [vmem:[#allocation11 + $0x4c] ss:$16 sps:$4 sm:$0xff]  }
 0x3f6   :  { %3414 = vmatpush1.bf16.msra.mxu0 %v7418_v55  ;;  %3496 = vmatpush1.bf16.msra.mxu1 %v7421_v56  ;;  %v7502_v55 = vld [vmem:[#allocation11 + $0x40] ss:$16 sps:$4 sm:$0xff]   ;;  %v7505_v56 = vld [vmem:[#allocation11 + $0x48] ss:$16 sps:$4 sm:$0xff]  }
 0x3f7   :  { %3415 = vmatprep.subr.bf16.mxu0 %v7426_v57  ;;  %3497 = vmatprep.subr.bf16.mxu1 %v7429_v58  ;;  %v7510_v57 = vld [vmem:[#allocation11 + $0x64] ss:$16 sps:$4 sm:$0xff]   ;;  %v7513_v58 = vld [vmem:[#allocation11 + $0x6c] ss:$16 sps:$4 sm:$0xff]  }
 0x3fa   :  { %3416 = vmatpush1.bf16.msra.mxu0 %v7424_v59  ;;  %3498 = vmatpush1.bf16.msra.mxu1 %v7427_v60  ;;  %v7508_v59 = vld [vmem:[#allocation11 + $0x60] ss:$16 sps:$4 sm:$0xff]   ;;  %v7511_v60 = vld [vmem:[#allocation11 + $0x68] ss:$16 sps:$4 sm:$0xff]  }
 0x3fb   :  { %3417 = vmatprep.subr.bf16.mxu0 %v7432_v61  ;;  %3499 = vmatprep.subr.bf16.mxu1 %v7435_v62  ;;  %v7516_v61 = vld [vmem:[#allocation11 + $0x84] ss:$16 sps:$4 sm:$0xff]   ;;  %v7519_v62 = vld [vmem:[#allocation11 + $0x8c] ss:$16 sps:$4 sm:$0xff]  }
 0x3fe   :  { %3418 = vmatpush1.bf16.msra.mxu0 %v7430_v63  ;;  %3500 = vmatpush1.bf16.msra.mxu1 %v7433_v0  ;;  %v7514_v63 = vld [vmem:[#allocation11 + $0x80] ss:$16 sps:$4 sm:$0xff]   ;;  %v7517_v0 = vld [vmem:[#allocation11 + $0x88] ss:$16 sps:$4 sm:$0xff]  }
 0x3ff   :  { %3419 = vmatprep.subr.bf16.mxu0 %v7438_v1  ;;  %3501 = vmatprep.subr.bf16.mxu1 %v7441_v2  ;;  %v7522_v1 = vld [vmem:[#allocation11 + $0xa4] ss:$16 sps:$4 sm:$0xff]   ;;  %v7525_v2 = vld [vmem:[#allocation11 + $0xac] ss:$16 sps:$4 sm:$0xff]  }
 0x402   :  { %3420 = vmatpush1.bf16.msra.mxu0 %v7436_v3  ;;  %3502 = vmatpush1.bf16.msra.mxu1 %v7439_v4  ;;  %v7520_v3 = vld [vmem:[#allocation11 + $0xa0] ss:$16 sps:$4 sm:$0xff]   ;;  %v7523_v4 = vld [vmem:[#allocation11 + $0xa8] ss:$16 sps:$4 sm:$0xff]  }
 0x403   :  { %3421 = vmatprep.subr.bf16.mxu0 %v7444_v5  ;;  %3503 = vmatprep.subr.bf16.mxu1 %v7447_v6  ;;  %v7528_v5 = vld [vmem:[#allocation11 + $0xc4] ss:$16 sps:$4 sm:$0xff]   ;;  %v7531_v6 = vld [vmem:[#allocation11 + $0xcc] ss:$16 sps:$4 sm:$0xff]  }
 0x406   :  { %3422 = vmatpush1.bf16.msra.mxu0 %v7442_v43  ;;  %3504 = vmatpush1.bf16.msra.mxu1 %v7445_v11  ;;  %v7526_v43 = vld [vmem:[#allocation11 + $0xc0] ss:$16 sps:$4 sm:$0xff]   ;;  %v7529_v11 = vld [vmem:[#allocation11 + $0xc8] ss:$16 sps:$4 sm:$0xff]  }
 0x407   :  { %3423 = vmatprep.subr.bf16.mxu0 %v7450_v12  ;;  %3505 = vmatprep.subr.bf16.mxu1 %v7453_v13  ;;  %v7534_v12 = vld [vmem:[#allocation11 + $0xe4] ss:$16 sps:$4 sm:$0xff]   ;;  %v7537_v13 = vld [vmem:[#allocation11 + $0xec] ss:$16 sps:$4 sm:$0xff]  }
 0x40a   :  { %3424 = vmatpush1.bf16.msra.mxu0 %v7448_v14  ;;  %3506 = vmatpush1.bf16.msra.mxu1 %v7451_v48  ;;  %v7532_v14 = vld [vmem:[#allocation11 + $0xe0] ss:$16 sps:$4 sm:$0xff]   ;;  %v7535_v48 = vld [vmem:[#allocation11 + $0xe8] ss:$16 sps:$4 sm:$0xff]  }
 0x40b   :  { %3425 = vmatprep.subr.bf16.mxu0 %v7456_v15  ;;  %3507 = vmatprep.subr.bf16.mxu1 %v7459_v18  ;;  %v7540_v15 = vld [vmem:[#allocation11 + $0x104] ss:$16 sps:$4 sm:$0xff]   ;;  %v7543_v18 = vld [vmem:[#allocation11 + $0x10c] ss:$16 sps:$4 sm:$0xff]  }
 0x40e   :  { %3426 = vmatpush1.bf16.msra.mxu0 %v7454_v19  ;;  %3508 = vmatpush1.bf16.msra.mxu1 %v7457_v21  ;;  %v7538_v19 = vld [vmem:[#allocation11 + $0x100] ss:$16 sps:$4 sm:$0xff]   ;;  %v7541_v21 = vld [vmem:[#allocation11 + $0x108] ss:$16 sps:$4 sm:$0xff]  }
 0x40f   :  { %3427 = vmatprep.subr.bf16.mxu0 %v7462_v22  ;;  %3509 = vmatprep.subr.bf16.mxu1 %v7465_v24  ;;  %v7546_v22 = vld [vmem:[#allocation11 + $0x124] ss:$16 sps:$4 sm:$0xff]   ;;  %v7549_v24 = vld [vmem:[#allocation11 + $0x12c] ss:$16 sps:$4 sm:$0xff]  }
 0x412   :  { %3428 = vmatpush1.bf16.msra.mxu0 %v7460_v25  ;;  %3510 = vmatpush1.bf16.msra.mxu1 %v7463_v26  ;;  %v7544_v25 = vld [vmem:[#allocation11 + $0x120] ss:$16 sps:$4 sm:$0xff]   ;;  %v7547_v26 = vld [vmem:[#allocation11 + $0x128] ss:$16 sps:$4 sm:$0xff]  }
 0x413   :  { %3429 = vmatprep.subr.bf16.mxu0 %v7468_v27  ;;  %3511 = vmatprep.subr.bf16.mxu1 %v7471_v28  ;;  %v7552_v27 = vld [vmem:[#allocation11 + $0x144] ss:$16 sps:$4 sm:$0xff]   ;;  %v7555_v28 = vld [vmem:[#allocation11 + $0x14c] ss:$16 sps:$4 sm:$0xff]  }
 0x416   :  { %3430 = vmatpush1.bf16.msra.mxu0 %v7466_v7  ;;  %3512 = vmatpush1.bf16.msra.mxu1 %v7469_v29  ;;  %v7550_v7 = vld [vmem:[#allocation11 + $0x140] ss:$16 sps:$4 sm:$0xff]   ;;  %v7553_v29 = vld [vmem:[#allocation11 + $0x148] ss:$16 sps:$4 sm:$0xff]  }
 0x417   :  { %3431 = vmatprep.subr.bf16.mxu0 %v7474_v30  ;;  %3513 = vmatprep.subr.bf16.mxu1 %v7477_v31  ;;  %v7558_v30 = vld [vmem:[#allocation11 + $0x164] ss:$16 sps:$4 sm:$0xff]   ;;  %v7561_v31 = vld [vmem:[#allocation11 + $0x16c] ss:$16 sps:$4 sm:$0xff]  }
 0x41a   :  { %3432 = vmatpush1.bf16.msra.mxu0 %v7472_v32  ;;  %3514 = vmatpush1.bf16.msra.mxu1 %v7475_v33  ;;  %v7556_v32 = vld [vmem:[#allocation11 + $0x160] ss:$16 sps:$4 sm:$0xff]   ;;  %v7559_v33 = vld [vmem:[#allocation11 + $0x168] ss:$16 sps:$4 sm:$0xff]  }
 0x41b   :  { %3433 = vmatprep.subr.bf16.mxu0 %v7480_v35  ;;  %3515 = vmatprep.subr.bf16.mxu1 %v7483_v36  ;;  %v7567_v35 = vld [vmem:[#allocation11 + $0x18c] ss:$16 sps:$4 sm:$0xff]   ;;  %v7562_v36 = vld [vmem:[#allocation11 + $0x180] ss:$16 sps:$4 sm:$0xff]  }
 0x41e   :  { %3434 = vmatpush1.bf16.msra.mxu0 %v7478_v9  ;;  %3516 = vmatpush1.bf16.msra.mxu1 %v7481_v37  ;;  %v7565_v9 = vld [vmem:[#allocation11 + $0x188] ss:$16 sps:$4 sm:$0xff]   ;;  %v7570_v37 = vld [vmem:[#allocation11 + $0x1a4] ss:$16 sps:$4 sm:$0xff]  }
 0x41f   :  { %3435 = vmatprep.subr.bf16.mxu0 %v7486_v39  ;;  %3517 = vmatprep.subr.bf16.mxu1 %v7489_v40  ;;  %v7568_v39 = vld [vmem:[#allocation11 + $0x1a0] ss:$16 sps:$4 sm:$0xff]   ;;  %v7571_v40 = vld [vmem:[#allocation11 + $0x1a8] ss:$16 sps:$4 sm:$0xff]  }
 0x422   :  { %3436 = vmatpush1.bf16.msra.mxu0 %v7484_v41  ;;  %3518 = vmatpush1.bf16.msra.mxu1 %v7487_v42  ;;  %v7576_v41 = vld [vmem:[#allocation11 + $0x1c4] ss:$16 sps:$4 sm:$0xff]   ;;  %v7579_v42 = vld [vmem:[#allocation11 + $0x1cc] ss:$16 sps:$4 sm:$0xff]  }
 0x423   :  { %4326 = vmatprep.subr.bf16.mxu0 %v7492_v16  ;;  %4408 = vmatprep.subr.bf16.mxu1 %v7495_v45  ;;  %v7577_v16 = vld [vmem:[#allocation11 + $0x1c8] ss:$16 sps:$4 sm:$0xff]   ;;  %v7582_v45 = vld [vmem:[#allocation11 + $0x1e4] ss:$16 sps:$4 sm:$0xff]  }
 0x425   :  { %3438 = vmatmul.mubr.bf16.vlgmr.msra.gmra.mrb[8].mxu0 %v2701_v49  ;;  %3520 = vmatmul.mubr.bf16.vlgmr.msra.gmra.mrb[16].mxu1 %v2701_v49  ;;  %v7583_v49 = vld [vmem:[#allocation11 + $0x1e8] ss:$16 sps:$4 sm:$0xff]  }
 0x426   :  { %4327 = vmatpush1.bf16.msra.mxu0 %v7490_v46  ;;  %4409 = vmatpush1.bf16.msra.mxu1 %v7493_v47  ;;  %v7585_v46 = vld [vmem:[#allocation11 + $0x1ec] ss:$16 sps:$4 sm:$0xff]   ;;  %v7580_v47 = vld [vmem:[#allocation11 + $0x1e0] ss:$16 sps:$4 sm:$0xff]  }
 0x427   :  { %4328 = vmatprep.subr.bf16.mxu0 %v7498_v23  ;;  %4410 = vmatprep.subr.bf16.mxu1 %v7501_v50  ;;  %v7588_v23 = vld [vmem:[#allocation11 + $0x204] ss:$16 sps:$4 sm:$0xff]   ;;  %v7591_v50 = vld [vmem:[#allocation11 + $0x20c] ss:$16 sps:$4 sm:$0xff]  }
 0x42a   :  { %4329 = vmatpush1.bf16.msra.mxu0 %v7496_v51  ;;  %4411 = vmatpush1.bf16.msra.mxu1 %v7499_v52  ;;  %v8433_v51 = vld [vmem:[%s8503_s8 + $0xc] sm:$0xf] }
 0x42b   :  { %4330 = vmatprep.subr.bf16.mxu0 %v7504_v53  ;;  %4412 = vmatprep.subr.bf16.mxu1 %v7507_v54  ;;  %v2707_v52 = vrot.slane %v8433_v51, %v8374_v8  ;;  %v2711_v53 = vrot.slane %v8433_v51, %v8382_v10  ;;  %v2719_v54 = vrot.slane %v8433_v51, %v8392_v20 }
 0x42e   :  { %4331 = vmatpush1.bf16.msra.mxu0 %v7502_v55  ;;  %4413 = vmatpush1.bf16.msra.mxu1 %v7505_v56 }
 0x42f   :  { %4332 = vmatprep.subr.bf16.mxu0 %v7510_v57  ;;  %4414 = vmatprep.subr.bf16.mxu1 %v7513_v58 }
 0x432   :  { %4333 = vmatpush1.bf16.msra.mxu0 %v7508_v59  ;;  %4415 = vmatpush1.bf16.msra.mxu1 %v7511_v60 }
 0x433   :  { %4334 = vmatprep.subr.bf16.mxu0 %v7516_v61  ;;  %4416 = vmatprep.subr.bf16.mxu1 %v7519_v62 }
 0x436   :  { %4335 = vmatpush1.bf16.msra.mxu0 %v7514_v63  ;;  %4417 = vmatpush1.bf16.msra.mxu1 %v7517_v0 }
 0x437   :  { %4336 = vmatprep.subr.bf16.mxu0 %v7522_v1  ;;  %4418 = vmatprep.subr.bf16.mxu1 %v7525_v2 }
 0x43a   :  { %4337 = vmatpush1.bf16.msra.mxu0 %v7520_v3  ;;  %4419 = vmatpush1.bf16.msra.mxu1 %v7523_v4 }
 0x43b   :  { %4338 = vmatprep.subr.bf16.mxu0 %v7528_v5  ;;  %4420 = vmatprep.subr.bf16.mxu1 %v7531_v6  ;;  %v7586_v6 = vld [vmem:[#allocation11 + $0x200] ss:$16 sps:$4 sm:$0xff]  }
 0x43e   :  { %4339 = vmatpush1.bf16.msra.mxu0 %v7526_v43  ;;  %4421 = vmatpush1.bf16.msra.mxu1 %v7529_v11  ;;  %v7589_v43 = vld [vmem:[#allocation11 + $0x208] ss:$16 sps:$4 sm:$0xff]  }
 0x43f   :  { %4340 = vmatprep.subr.bf16.mxu0 %v7534_v12  ;;  %4422 = vmatprep.subr.bf16.mxu1 %v7537_v13  ;;  %v7594_v12 = vld [vmem:[#allocation11 + $0x224] ss:$16 sps:$4 sm:$0xff]   ;;  %v7597_v13 = vld [vmem:[#allocation11 + $0x22c] ss:$16 sps:$4 sm:$0xff]  }
 0x442   :  { %4341 = vmatpush1.bf16.msra.mxu0 %v7532_v14  ;;  %4423 = vmatpush1.bf16.msra.mxu1 %v7535_v48  ;;  %v7592_v48 = vld [vmem:[#allocation11 + $0x220] ss:$16 sps:$4 sm:$0xff]  }
 0x443   :  { %4342 = vmatprep.subr.bf16.mxu0 %v7540_v15  ;;  %4424 = vmatprep.subr.bf16.mxu1 %v7543_v18  ;;  %v7595_v15 = vld [vmem:[#allocation11 + $0x228] ss:$16 sps:$4 sm:$0xff]   ;;  %v7600_v18 = vld [vmem:[#allocation11 + $0x244] ss:$16 sps:$4 sm:$0xff]  }
 0x446   :  { %4343 = vmatpush1.bf16.msra.mxu0 %v7538_v19  ;;  %4425 = vmatpush1.bf16.msra.mxu1 %v7541_v21  ;;  %v7603_v19 = vld [vmem:[#allocation11 + $0x24c] ss:$16 sps:$4 sm:$0xff]   ;;  %v7598_v21 = vld [vmem:[#allocation11 + $0x240] ss:$16 sps:$4 sm:$0xff]  }
 0x447   :  { %4344 = vmatprep.subr.bf16.mxu0 %v7546_v22  ;;  %4426 = vmatprep.subr.bf16.mxu1 %v7549_v24  ;;  %v7601_v22 = vld [vmem:[#allocation11 + $0x248] ss:$16 sps:$4 sm:$0xff]   ;;  %v7606_v24 = vld [vmem:[#allocation11 + $0x264] ss:$16 sps:$4 sm:$0xff]  }
 0x44a   :  { %4345 = vmatpush1.bf16.msra.mxu0 %v7544_v25  ;;  %4427 = vmatpush1.bf16.msra.mxu1 %v7547_v26  ;;  %v7609_v25 = vld [vmem:[#allocation11 + $0x26c] ss:$16 sps:$4 sm:$0xff]   ;;  %v7604_v26 = vld [vmem:[#allocation11 + $0x260] ss:$16 sps:$4 sm:$0xff]  }
 0x44b   :  { %4346 = vmatprep.subr.bf16.mxu0 %v7552_v27  ;;  %4428 = vmatprep.subr.bf16.mxu1 %v7555_v28  ;;  %v7607_v27 = vld [vmem:[#allocation11 + $0x268] ss:$16 sps:$4 sm:$0xff]   ;;  %v7612_v28 = vld [vmem:[#allocation11 + $0x284] ss:$16 sps:$4 sm:$0xff]  }
 0x44e   :  { %4347 = vmatpush1.bf16.msra.mxu0 %v7550_v7  ;;  %4429 = vmatpush1.bf16.msra.mxu1 %v7553_v29  ;;  %v7615_v7 = vld [vmem:[#allocation11 + $0x28c] ss:$16 sps:$4 sm:$0xff]   ;;  %v7610_v29 = vld [vmem:[#allocation11 + $0x280] ss:$16 sps:$4 sm:$0xff]  }
 0x44f   :  { %4348 = vmatprep.subr.bf16.mxu0 %v7558_v30  ;;  %4430 = vmatprep.subr.bf16.mxu1 %v7561_v31  ;;  %v7613_v30 = vld [vmem:[#allocation11 + $0x288] ss:$16 sps:$4 sm:$0xff]   ;;  %v7618_v31 = vld [vmem:[#allocation11 + $0x2a4] ss:$16 sps:$4 sm:$0xff]  }
 0x452   :  { %4349 = vmatpush1.bf16.msra.mxu0 %v7556_v32  ;;  %4431 = vmatpush1.bf16.msra.mxu1 %v7559_v33  ;;  %v7621_v32 = vld [vmem:[#allocation11 + $0x2ac] ss:$16 sps:$4 sm:$0xff]   ;;  %v7616_v33 = vld [vmem:[#allocation11 + $0x2a0] ss:$16 sps:$4 sm:$0xff]  }
 0x453   :  { %4350 = vmatprep.subr.bf16.mxu0 %v7564_v34  ;;  %4432 = vmatprep.subr.bf16.mxu1 %v7567_v35  ;;  %v7619_v34 = vld [vmem:[#allocation11 + $0x2a8] ss:$16 sps:$4 sm:$0xff]   ;;  %v7624_v35 = vld [vmem:[#allocation11 + $0x2c4] ss:$16 sps:$4 sm:$0xff]  }
 0x456   :  { %4351 = vmatpush1.bf16.msra.mxu0 %v7562_v36  ;;  %4433 = vmatpush1.bf16.msra.mxu1 %v7565_v9  ;;  %v7627_v36 = vld [vmem:[#allocation11 + $0x2cc] ss:$16 sps:$4 sm:$0xff]   ;;  %v7622_v9 = vld [vmem:[#allocation11 + $0x2c0] ss:$16 sps:$4 sm:$0xff]  }
 0x457   :  { %4352 = vmatprep.subr.bf16.mxu0 %v7570_v37  ;;  %4434 = vmatprep.subr.bf16.mxu1 %v7573_v38  ;;  %v7625_v37 = vld [vmem:[#allocation11 + $0x2c8] ss:$16 sps:$4 sm:$0xff]   ;;  %v7630_v38 = vld [vmem:[#allocation11 + $0x2e4] ss:$16 sps:$4 sm:$0xff]  }
 0x45a   :  { %4353 = vmatpush1.bf16.msra.mxu0 %v7568_v39  ;;  %4435 = vmatpush1.bf16.msra.mxu1 %v7571_v40  ;;  %v7633_v39 = vld [vmem:[#allocation11 + $0x2ec] ss:$16 sps:$4 sm:$0xff]   ;;  %v7628_v40 = vld [vmem:[#allocation11 + $0x2e0] ss:$16 sps:$4 sm:$0xff]  }
 0x45b   :  { %4354 = vmatprep.subr.bf16.mxu0 %v7576_v41  ;;  %4436 = vmatprep.subr.bf16.mxu1 %v7579_v42  ;;  %v7631_v41 = vld [vmem:[#allocation11 + $0x2e8] ss:$16 sps:$4 sm:$0xff]   ;;  %v7636_v42 = vld [vmem:[#allocation11 + $0x304] ss:$16 sps:$4 sm:$0xff]  }
 0x45e   :  { %4355 = vmatpush1.bf16.msra.mxu0 %v7574_v44  ;;  %4437 = vmatpush1.bf16.msra.mxu1 %v7577_v16  ;;  %v7639_v44 = vld [vmem:[#allocation11 + $0x30c] ss:$16 sps:$4 sm:$0xff]   ;;  %v7634_v16 = vld [vmem:[#allocation11 + $0x300] ss:$16 sps:$4 sm:$0xff]  }
 0x45f   :  { %4356 = vmatprep.subr.bf16.mxu0 %v7582_v45  ;;  %4438 = vmatprep.subr.bf16.mxu1 %v7585_v46  ;;  %v7637_v45 = vld [vmem:[#allocation11 + $0x308] ss:$16 sps:$4 sm:$0xff]   ;;  %v7642_v46 = vld [vmem:[#allocation11 + $0x324] ss:$16 sps:$4 sm:$0xff]  }
 0x462   :  { %4357 = vmatpush1.bf16.msra.mxu0 %v7580_v47  ;;  %4439 = vmatpush1.bf16.msra.mxu1 %v7583_v49  ;;  %v7645_v47 = vld [vmem:[#allocation11 + $0x32c] ss:$16 sps:$4 sm:$0xff]   ;;  %v7640_v49 = vld [vmem:[#allocation11 + $0x320] ss:$16 sps:$4 sm:$0xff]  }
 0x463   :  { %4367 = vmatprep.subr.bf16.mxu0 %v7588_v23  ;;  %4449 = vmatprep.subr.bf16.mxu1 %v7591_v50  ;;  %v7643_v23 = vld [vmem:[#allocation11 + $0x328] ss:$16 sps:$4 sm:$0xff]   ;;  %v7648_v50 = vld [vmem:[#allocation11 + $0x344] ss:$16 sps:$4 sm:$0xff]  }
 0x4f8   :  { %v3439_v55 = vpop.f32.mrb[8].mxu0  ;;  %v8441_v56 = vpop.f32.mrb[16].mxu1 }
 0x4f9   :  { %v6747_v57 = vadd.f32 %v3439_v55, %v2707_v52  ;;  %v3441_v58 = vpop.f32.mrb[9].mxu0  ;;  %v3523_v59 = vpop.f32.mrb[17].mxu1  ;;  %v7651_v52 = vld [vmem:[#allocation11 + $0x34c] ss:$16 sps:$4 sm:$0xff]   ;;  %v7654_v55 = vld [vmem:[#allocation11 + $0x364] ss:$16 sps:$4 sm:$0xff]  }
 0x4fa   :  { %v6748_v60 = vadd.f32 %v3441_v58, %v2711_v53  ;;  %v6750_v61 = vadd.f32 %v3523_v59, %v2719_v54  ;;  %v3443_v62 = vpop.f32.mrb[10].mxu0  ;;  %v3525_v63 = vpop.f32.mrb[18].mxu1  ;;  %v7646_v53 = vld [vmem:[#allocation11 + $0x340] ss:$16 sps:$4 sm:$0xff]   ;;  %v7649_v54 = vld [vmem:[#allocation11 + $0x348] ss:$16 sps:$4 sm:$0xff]  }
 0x4fb   :  { %v3528_v0 = vmax.f32 %v6747_v57, 0.0  ;;  %v3444_v1 = vpop.f32.mrb[11].mxu0  ;;  %v3526_v2 = vpop.f32.mrb[19].mxu1  ;;  %v7657_v57 = vld [vmem:[#allocation11 + $0x36c] ss:$16 sps:$4 sm:$0xff]  }
 0x4fc   :  { %v3529_v3 = vmax.f32 %v6748_v60, 0.0  ;;  %v3531_v4 = vmax.f32 %v6750_v61, 0.0  ;;  %v7652_v58 = vld [vmem:[#allocation11 + $0x360] ss:$16 sps:$4 sm:$0xff]   ;;  %v7655_v59 = vld [vmem:[#allocation11 + $0x368] ss:$16 sps:$4 sm:$0xff]  }
 0x4fd   :  { %v3661_v11 = vpack.c.bf16 %v3528_v0, %v3528_v0  ;;  %v7660_v60 = vld [vmem:[#allocation11 + $0x384] ss:$16 sps:$4 sm:$0xff]   ;;  %v7663_v61 = vld [vmem:[#allocation11 + $0x38c] ss:$16 sps:$4 sm:$0xff]   ;;  %v7658_v62 = vld [vmem:[#allocation11 + $0x380] ss:$16 sps:$4 sm:$0xff]  }
 0x4fe   :  { %v3662_v5 = vpack.c.bf16 %v3529_v3, %v3529_v3  ;;  %v3664_v14 = vpack.c.bf16 %v3531_v4, %v3531_v4  ;;  %v7661_v63 = vld [vmem:[#allocation11 + $0x388] ss:$16 sps:$4 sm:$0xff]   ;;  %v7666_v0 = vld [vmem:[#allocation11 + $0x3a4] ss:$16 sps:$4 sm:$0xff]   ;;  %v7669_v1 = vld [vmem:[#allocation11 + $0x3ac] ss:$16 sps:$4 sm:$0xff]   ;;  %v2715_v4 = vrot.slane %v8433_v51, %v8389_v17 }
 0x4ff   :  { %v7664_v2 = vld [vmem:[#allocation11 + $0x3a0] ss:$16 sps:$4 sm:$0xff]   ;;  %v7667_v3 = vld [vmem:[#allocation11 + $0x3a8] ss:$16 sps:$4 sm:$0xff]   ;;  %v7684_v51 = vld [vmem:[#allocation13 + $0x4] ss:$16 sps:$4 sm:$0xff]  }
 0x500   :  { %4358 = vmatprep.mubr.bf16.mxu0 %v3662_v5  ;;  %4440 = vmatprep.mubr.bf16.mxu1 %v3662_v5  ;;  %v7672_v5 = vld [vmem:[#allocation11 + $0x3c4] ss:$16 sps:$4 sm:$0xff]  }
 0x501   :  { %4359 = vmatmul.mubr.bf16.vlgmr.msra.gmra.mrb[12].mxu0 %v3661_v11  ;;  %4441 = vmatmul.mubr.bf16.vlgmr.msra.gmra.mrb[20].mxu1 %v3661_v11  ;;  %v7673_v11 = vld [vmem:[#allocation11 + $0x3c8] ss:$16 sps:$4 sm:$0xff]  }
 0x502   :  { %4368 = vmatpush1.bf16.msra.mxu0 %v7586_v6  ;;  %4450 = vmatpush1.bf16.msra.mxu1 %v7589_v43  ;;  %v7675_v6 = vld [vmem:[#allocation11 + $0x3cc] ss:$16 sps:$4 sm:$0xff]   ;;  %v7670_v43 = vld [vmem:[#allocation11 + $0x3c0] ss:$16 sps:$4 sm:$0xff]  }
 0x503   :  { %4399 = vmatprep.mubr.bf16.mxu0 %v3664_v14  ;;  %4481 = vmatprep.mubr.bf16.mxu1 %v3664_v14  ;;  %v7681_v14 = vld [vmem:[#allocation11 + $0x3ec] ss:$16 sps:$4 sm:$0xff]  }
 0x504   :  { %4369 = vmatprep.subr.bf16.mxu0 %v7594_v12  ;;  %4451 = vmatprep.subr.bf16.mxu1 %v7597_v13  ;;  %v6749_v12 = vadd.f32 %v8441_v56, %v2715_v4  ;;  %v7678_v13 = vld [vmem:[#allocation11 + $0x3e4] ss:$16 sps:$4 sm:$0xff]  }
 0x505   :  { %v7690_v56 = vld [vmem:[#allocation13 + $0x24] ss:$16 sps:$4 sm:$0xff]  }
 0x506   :  { %4370 = vmatpush1.bf16.msra.mxu0 %v7592_v48  ;;  %4452 = vmatpush1.bf16.msra.mxu1 %v7595_v15  ;;  %v7676_v48 = vld [vmem:[#allocation11 + $0x3e0] ss:$16 sps:$4 sm:$0xff]   ;;  %v7679_v15 = vld [vmem:[#allocation11 + $0x3e8] ss:$16 sps:$4 sm:$0xff]   ;;  %v7756_v4 = vld [vmem:[#allocation13 + $0x184] ss:$16 sps:$4 sm:$0xff]  }
 0x507   :  { %4371 = vmatprep.subr.bf16.mxu0 %v7600_v18  ;;  %4453 = vmatprep.subr.bf16.mxu1 %v7603_v19  ;;  %v3530_v18 = vmax.f32 %v6749_v12, 0.0  ;;  %v7687_v19 = vld [vmem:[#allocation13 + $0xc] ss:$16 sps:$4 sm:$0xff]  }
 0x508   :  { %v7765_v12 = vld [vmem:[#allocation13 + $0x1ac] ss:$16 sps:$4 sm:$0xff]  }
 0x50a   :  { %4372 = vmatpush1.bf16.msra.mxu0 %v7598_v21  ;;  %4454 = vmatpush1.bf16.msra.mxu1 %v7601_v22  ;;  %v7682_v21 = vld [vmem:[#allocation13] ss:$16 sps:$4 sm:$0xff]   ;;  %v7685_v22 = vld [vmem:[#allocation13 + $0x8] ss:$16 sps:$4 sm:$0xff]  }
 0x50b   :  { %4373 = vmatprep.subr.bf16.mxu0 %v7606_v24  ;;  %4455 = vmatprep.subr.bf16.mxu1 %v7609_v25  ;;  %v3663_v24 = vpack.c.bf16 %v3530_v18, %v3530_v18  ;;  %v7693_v25 = vld [vmem:[#allocation13 + $0x2c] ss:$16 sps:$4 sm:$0xff]   ;;  %v7766_v18 = vld [vmem:[#allocation13 + $0x1c0] ss:$16 sps:$4 sm:$0xff]  }
 0x50e   :  { %4374 = vmatpush1.bf16.msra.mxu0 %v7604_v26  ;;  %4456 = vmatpush1.bf16.msra.mxu1 %v7607_v27  ;;  %v7688_v26 = vld [vmem:[#allocation13 + $0x20] ss:$16 sps:$4 sm:$0xff]   ;;  %v7691_v27 = vld [vmem:[#allocation13 + $0x28] ss:$16 sps:$4 sm:$0xff]  }
 0x50f   :  { %4375 = vmatprep.subr.bf16.mxu0 %v7612_v28  ;;  %4457 = vmatprep.subr.bf16.mxu1 %v7615_v7  ;;  %v7696_v28 = vld [vmem:[#allocation13 + $0x44] ss:$16 sps:$4 sm:$0xff]   ;;  %v7699_v7 = vld [vmem:[#allocation13 + $0x4c] ss:$16 sps:$4 sm:$0xff]  }
 0x512   :  { %4376 = vmatpush1.bf16.msra.mxu0 %v7610_v29  ;;  %4458 = vmatpush1.bf16.msra.mxu1 %v7613_v30  ;;  %v7694_v29 = vld [vmem:[#allocation13 + $0x40] ss:$16 sps:$4 sm:$0xff]   ;;  %v7697_v30 = vld [vmem:[#allocation13 + $0x48] ss:$16 sps:$4 sm:$0xff]  }
 0x513   :  { %4377 = vmatprep.subr.bf16.mxu0 %v7618_v31  ;;  %4459 = vmatprep.subr.bf16.mxu1 %v7621_v32  ;;  %v7702_v31 = vld [vmem:[#allocation13 + $0x64] ss:$16 sps:$4 sm:$0xff]   ;;  %v7705_v32 = vld [vmem:[#allocation13 + $0x6c] ss:$16 sps:$4 sm:$0xff]  }
 0x516   :  { %4378 = vmatpush1.bf16.msra.mxu0 %v7616_v33  ;;  %4460 = vmatpush1.bf16.msra.mxu1 %v7619_v34  ;;  %v7700_v33 = vld [vmem:[#allocation13 + $0x60] ss:$16 sps:$4 sm:$0xff]   ;;  %v7703_v34 = vld [vmem:[#allocation13 + $0x68] ss:$16 sps:$4 sm:$0xff]  }
 0x517   :  { %4379 = vmatprep.subr.bf16.mxu0 %v7624_v35  ;;  %4461 = vmatprep.subr.bf16.mxu1 %v7627_v36  ;;  %v7708_v35 = vld [vmem:[#allocation13 + $0x84] ss:$16 sps:$4 sm:$0xff]   ;;  %v7711_v36 = vld [vmem:[#allocation13 + $0x8c] ss:$16 sps:$4 sm:$0xff]  }
 0x51a   :  { %4380 = vmatpush1.bf16.msra.mxu0 %v7622_v9  ;;  %4462 = vmatpush1.bf16.msra.mxu1 %v7625_v37  ;;  %v7706_v9 = vld [vmem:[#allocation13 + $0x80] ss:$16 sps:$4 sm:$0xff]   ;;  %v7709_v37 = vld [vmem:[#allocation13 + $0x88] ss:$16 sps:$4 sm:$0xff]  }
 0x51b   :  { %4381 = vmatprep.subr.bf16.mxu0 %v7630_v38  ;;  %4463 = vmatprep.subr.bf16.mxu1 %v7633_v39  ;;  %v7714_v38 = vld [vmem:[#allocation13 + $0xa4] ss:$16 sps:$4 sm:$0xff]   ;;  %v7717_v39 = vld [vmem:[#allocation13 + $0xac] ss:$16 sps:$4 sm:$0xff]  }
 0x51e   :  { %4382 = vmatpush1.bf16.msra.mxu0 %v7628_v40  ;;  %4464 = vmatpush1.bf16.msra.mxu1 %v7631_v41  ;;  %v7712_v40 = vld [vmem:[#allocation13 + $0xa0] ss:$16 sps:$4 sm:$0xff]   ;;  %v7715_v41 = vld [vmem:[#allocation13 + $0xa8] ss:$16 sps:$4 sm:$0xff]  }
 0x51f   :  { %4383 = vmatprep.subr.bf16.mxu0 %v7636_v42  ;;  %4465 = vmatprep.subr.bf16.mxu1 %v7639_v44  ;;  %v7720_v42 = vld [vmem:[#allocation13 + $0xc4] ss:$16 sps:$4 sm:$0xff]   ;;  %v7723_v44 = vld [vmem:[#allocation13 + $0xcc] ss:$16 sps:$4 sm:$0xff]  }
 0x522   :  { %4384 = vmatpush1.bf16.msra.mxu0 %v7634_v16  ;;  %4466 = vmatpush1.bf16.msra.mxu1 %v7637_v45  ;;  %v7718_v16 = vld [vmem:[#allocation13 + $0xc0] ss:$16 sps:$4 sm:$0xff]   ;;  %v7721_v45 = vld [vmem:[#allocation13 + $0xc8] ss:$16 sps:$4 sm:$0xff]  }
 0x523   :  { %4385 = vmatprep.subr.bf16.mxu0 %v7642_v46  ;;  %4467 = vmatprep.subr.bf16.mxu1 %v7645_v47  ;;  %v7726_v46 = vld [vmem:[#allocation13 + $0xe4] ss:$16 sps:$4 sm:$0xff]   ;;  %v7729_v47 = vld [vmem:[#allocation13 + $0xec] ss:$16 sps:$4 sm:$0xff]  }
 0x526   :  { %4386 = vmatpush1.bf16.msra.mxu0 %v7640_v49  ;;  %4468 = vmatpush1.bf16.msra.mxu1 %v7643_v23  ;;  %v7724_v49 = vld [vmem:[#allocation13 + $0xe0] ss:$16 sps:$4 sm:$0xff]   ;;  %v7727_v23 = vld [vmem:[#allocation13 + $0xe8] ss:$16 sps:$4 sm:$0xff]  }
 0x527   :  { %4387 = vmatprep.subr.bf16.mxu0 %v7648_v50  ;;  %4469 = vmatprep.subr.bf16.mxu1 %v7651_v52  ;;  %v7732_v50 = vld [vmem:[#allocation13 + $0x104] ss:$16 sps:$4 sm:$0xff]   ;;  %v7735_v52 = vld [vmem:[#allocation13 + $0x10c] ss:$16 sps:$4 sm:$0xff]  }
 0x52a   :  { %4388 = vmatpush1.bf16.msra.mxu0 %v7646_v53  ;;  %4470 = vmatpush1.bf16.msra.mxu1 %v7649_v54  ;;  %v7730_v53 = vld [vmem:[#allocation13 + $0x100] ss:$16 sps:$4 sm:$0xff]   ;;  %v7733_v54 = vld [vmem:[#allocation13 + $0x108] ss:$16 sps:$4 sm:$0xff]  }
 0x52b   :  { %4389 = vmatprep.subr.bf16.mxu0 %v7654_v55  ;;  %4471 = vmatprep.subr.bf16.mxu1 %v7657_v57  ;;  %v7738_v55 = vld [vmem:[#allocation13 + $0x124] ss:$16 sps:$4 sm:$0xff]   ;;  %v7741_v57 = vld [vmem:[#allocation13 + $0x12c] ss:$16 sps:$4 sm:$0xff]  }
 0x52e   :  { %4390 = vmatpush1.bf16.msra.mxu0 %v7652_v58  ;;  %4472 = vmatpush1.bf16.msra.mxu1 %v7655_v59  ;;  %v7736_v58 = vld [vmem:[#allocation13 + $0x120] ss:$16 sps:$4 sm:$0xff]   ;;  %v7739_v59 = vld [vmem:[#allocation13 + $0x128] ss:$16 sps:$4 sm:$0xff]  }
 0x52f   :  { %4391 = vmatprep.subr.bf16.mxu0 %v7660_v60  ;;  %4473 = vmatprep.subr.bf16.mxu1 %v7663_v61  ;;  %v7744_v60 = vld [vmem:[#allocation13 + $0x144] ss:$16 sps:$4 sm:$0xff]   ;;  %v7747_v61 = vld [vmem:[#allocation13 + $0x14c] ss:$16 sps:$4 sm:$0xff]  }
 0x532   :  { %4392 = vmatpush1.bf16.msra.mxu0 %v7658_v62  ;;  %4474 = vmatpush1.bf16.msra.mxu1 %v7661_v63  ;;  %v7742_v62 = vld [vmem:[#allocation13 + $0x140] ss:$16 sps:$4 sm:$0xff]   ;;  %v7745_v63 = vld [vmem:[#allocation13 + $0x148] ss:$16 sps:$4 sm:$0xff]  }
 0x533   :  { %4393 = vmatprep.subr.bf16.mxu0 %v7666_v0  ;;  %4475 = vmatprep.subr.bf16.mxu1 %v7669_v1  ;;  %v7750_v0 = vld [vmem:[#allocation13 + $0x164] ss:$16 sps:$4 sm:$0xff]   ;;  %v7753_v1 = vld [vmem:[#allocation13 + $0x16c] ss:$16 sps:$4 sm:$0xff]  }
 0x536   :  { %4394 = vmatpush1.bf16.msra.mxu0 %v7664_v2  ;;  %4476 = vmatpush1.bf16.msra.mxu1 %v7667_v3  ;;  %v7748_v2 = vld [vmem:[#allocation13 + $0x160] ss:$16 sps:$4 sm:$0xff]   ;;  %v7751_v3 = vld [vmem:[#allocation13 + $0x168] ss:$16 sps:$4 sm:$0xff]  }
 0x537   :  { %4395 = vmatprep.subr.bf16.mxu0 %v7672_v5  ;;  %4477 = vmatprep.subr.bf16.mxu1 %v7675_v6  ;;  %v7759_v5 = vld [vmem:[#allocation13 + $0x18c] ss:$16 sps:$4 sm:$0xff]   ;;  %v7754_v6 = vld [vmem:[#allocation13 + $0x180] ss:$16 sps:$4 sm:$0xff]  }
 0x53a   :  { %4396 = vmatpush1.bf16.msra.mxu0 %v7670_v43  ;;  %4478 = vmatpush1.bf16.msra.mxu1 %v7673_v11  ;;  %v7757_v43 = vld [vmem:[#allocation13 + $0x188] ss:$16 sps:$4 sm:$0xff]   ;;  %v7762_v11 = vld [vmem:[#allocation13 + $0x1a4] ss:$16 sps:$4 sm:$0xff]  }
 0x53b   :  { %4397 = vmatprep.subr.bf16.mxu0 %v7678_v13  ;;  %4479 = vmatprep.subr.bf16.mxu1 %v7681_v14  ;;  %v7760_v13 = vld [vmem:[#allocation13 + $0x1a0] ss:$16 sps:$4 sm:$0xff]   ;;  %v7763_v14 = vld [vmem:[#allocation13 + $0x1a8] ss:$16 sps:$4 sm:$0xff]  }
 0x53e   :  { %4398 = vmatpush1.bf16.msra.mxu0 %v7676_v48  ;;  %4480 = vmatpush1.bf16.msra.mxu1 %v7679_v15  ;;  %v7768_v48 = vld [vmem:[#allocation13 + $0x1c4] ss:$16 sps:$4 sm:$0xff]   ;;  %v7771_v15 = vld [vmem:[#allocation13 + $0x1cc] ss:$16 sps:$4 sm:$0xff]  }
 0x53f   :  { %5288 = vmatprep.subr.bf16.mxu0 %v7684_v51  ;;  %5370 = vmatprep.subr.bf16.mxu1 %v7687_v19  ;;  %v7769_v51 = vld [vmem:[#allocation13 + $0x1c8] ss:$16 sps:$4 sm:$0xff]   ;;  %v7774_v19 = vld [vmem:[#allocation13 + $0x1e4] ss:$16 sps:$4 sm:$0xff]  }
 0x541   :  { %4400 = vmatmul.mubr.bf16.vlgmr.msra.gmra.mrb[12].mxu0 %v3663_v24  ;;  %4482 = vmatmul.mubr.bf16.vlgmr.msra.gmra.mrb[20].mxu1 %v3663_v24  ;;  %v7775_v24 = vld [vmem:[#allocation13 + $0x1e8] ss:$16 sps:$4 sm:$0xff]  }
 0x542   :  { %5289 = vmatpush1.bf16.msra.mxu0 %v7682_v21  ;;  %5371 = vmatpush1.bf16.msra.mxu1 %v7685_v22  ;;  %v7777_v21 = vld [vmem:[#allocation13 + $0x1ec] ss:$16 sps:$4 sm:$0xff]   ;;  %v7772_v22 = vld [vmem:[#allocation13 + $0x1e0] ss:$16 sps:$4 sm:$0xff]  }
 0x543   :  { %5290 = vmatprep.subr.bf16.mxu0 %v7690_v56  ;;  %5372 = vmatprep.subr.bf16.mxu1 %v7693_v25  ;;  %v7780_v56 = vld [vmem:[#allocation13 + $0x204] ss:$16 sps:$4 sm:$0xff]   ;;  %v7783_v25 = vld [vmem:[#allocation13 + $0x20c] ss:$16 sps:$4 sm:$0xff]  }
 0x546   :  { %5291 = vmatpush1.bf16.msra.mxu0 %v7688_v26  ;;  %5373 = vmatpush1.bf16.msra.mxu1 %v7691_v27  ;;  %v8449_v26 = vld [vmem:[%s8503_s8 + $0x10] sm:$0xf] }
 0x547   :  { %5292 = vmatprep.subr.bf16.mxu0 %v7696_v28  ;;  %5374 = vmatprep.subr.bf16.mxu1 %v7699_v7  ;;  %v3669_v27 = vrot.slane %v8449_v26, %v8374_v8  ;;  %v3673_v28 = vrot.slane %v8449_v26, %v8382_v10  ;;  %v3681_v7 = vrot.slane %v8449_v26, %v8392_v20 }
 0x54a   :  { %5293 = vmatpush1.bf16.msra.mxu0 %v7694_v29  ;;  %5375 = vmatpush1.bf16.msra.mxu1 %v7697_v30 }
 0x54b   :  { %5294 = vmatprep.subr.bf16.mxu0 %v7702_v31  ;;  %5376 = vmatprep.subr.bf16.mxu1 %v7705_v32 }
 0x54e   :  { %5295 = vmatpush1.bf16.msra.mxu0 %v7700_v33  ;;  %5377 = vmatpush1.bf16.msra.mxu1 %v7703_v34 }
 0x54f   :  { %5296 = vmatprep.subr.bf16.mxu0 %v7708_v35  ;;  %5378 = vmatprep.subr.bf16.mxu1 %v7711_v36 }
 0x552   :  { %5297 = vmatpush1.bf16.msra.mxu0 %v7706_v9  ;;  %5379 = vmatpush1.bf16.msra.mxu1 %v7709_v37 }
 0x553   :  { %5298 = vmatprep.subr.bf16.mxu0 %v7714_v38  ;;  %5380 = vmatprep.subr.bf16.mxu1 %v7717_v39 }
 0x556   :  { %5299 = vmatpush1.bf16.msra.mxu0 %v7712_v40  ;;  %5381 = vmatpush1.bf16.msra.mxu1 %v7715_v41 }
 0x557   :  { %5300 = vmatprep.subr.bf16.mxu0 %v7720_v42  ;;  %5382 = vmatprep.subr.bf16.mxu1 %v7723_v44  ;;  %v7778_v44 = vld [vmem:[#allocation13 + $0x200] ss:$16 sps:$4 sm:$0xff]  }
 0x55a   :  { %5301 = vmatpush1.bf16.msra.mxu0 %v7718_v16  ;;  %5383 = vmatpush1.bf16.msra.mxu1 %v7721_v45  ;;  %v7781_v16 = vld [vmem:[#allocation13 + $0x208] ss:$16 sps:$4 sm:$0xff]  }
 0x55b   :  { %5302 = vmatprep.subr.bf16.mxu0 %v7726_v46  ;;  %5384 = vmatprep.subr.bf16.mxu1 %v7729_v47  ;;  %v7786_v46 = vld [vmem:[#allocation13 + $0x224] ss:$16 sps:$4 sm:$0xff]   ;;  %v7789_v47 = vld [vmem:[#allocation13 + $0x22c] ss:$16 sps:$4 sm:$0xff]  }
 0x55e   :  { %5303 = vmatpush1.bf16.msra.mxu0 %v7724_v49  ;;  %5385 = vmatpush1.bf16.msra.mxu1 %v7727_v23  ;;  %v7784_v23 = vld [vmem:[#allocation13 + $0x220] ss:$16 sps:$4 sm:$0xff]  }
 0x55f   :  { %5304 = vmatprep.subr.bf16.mxu0 %v7732_v50  ;;  %5386 = vmatprep.subr.bf16.mxu1 %v7735_v52  ;;  %v7787_v50 = vld [vmem:[#allocation13 + $0x228] ss:$16 sps:$4 sm:$0xff]   ;;  %v7792_v52 = vld [vmem:[#allocation13 + $0x244] ss:$16 sps:$4 sm:$0xff]  }
 0x562   :  { %5305 = vmatpush1.bf16.msra.mxu0 %v7730_v53  ;;  %5387 = vmatpush1.bf16.msra.mxu1 %v7733_v54  ;;  %v7795_v53 = vld [vmem:[#allocation13 + $0x24c] ss:$16 sps:$4 sm:$0xff]   ;;  %v7790_v54 = vld [vmem:[#allocation13 + $0x240] ss:$16 sps:$4 sm:$0xff]  }
 0x563   :  { %5306 = vmatprep.subr.bf16.mxu0 %v7738_v55  ;;  %5388 = vmatprep.subr.bf16.mxu1 %v7741_v57  ;;  %v7793_v55 = vld [vmem:[#allocation13 + $0x248] ss:$16 sps:$4 sm:$0xff]   ;;  %v7798_v57 = vld [vmem:[#allocation13 + $0x264] ss:$16 sps:$4 sm:$0xff]  }
 0x566   :  { %5307 = vmatpush1.bf16.msra.mxu0 %v7736_v58  ;;  %5389 = vmatpush1.bf16.msra.mxu1 %v7739_v59  ;;  %v7801_v58 = vld [vmem:[#allocation13 + $0x26c] ss:$16 sps:$4 sm:$0xff]   ;;  %v7796_v59 = vld [vmem:[#allocation13 + $0x260] ss:$16 sps:$4 sm:$0xff]  }
 0x567   :  { %5308 = vmatprep.subr.bf16.mxu0 %v7744_v60  ;;  %5390 = vmatprep.subr.bf16.mxu1 %v7747_v61  ;;  %v7799_v60 = vld [vmem:[#allocation13 + $0x268] ss:$16 sps:$4 sm:$0xff]   ;;  %v7804_v61 = vld [vmem:[#allocation13 + $0x284] ss:$16 sps:$4 sm:$0xff]  }
 0x56a   :  { %5309 = vmatpush1.bf16.msra.mxu0 %v7742_v62  ;;  %5391 = vmatpush1.bf16.msra.mxu1 %v7745_v63  ;;  %v7807_v62 = vld [vmem:[#allocation13 + $0x28c] ss:$16 sps:$4 sm:$0xff]   ;;  %v7802_v63 = vld [vmem:[#allocation13 + $0x280] ss:$16 sps:$4 sm:$0xff]  }
 0x56b   :  { %5310 = vmatprep.subr.bf16.mxu0 %v7750_v0  ;;  %5392 = vmatprep.subr.bf16.mxu1 %v7753_v1  ;;  %v7805_v0 = vld [vmem:[#allocation13 + $0x288] ss:$16 sps:$4 sm:$0xff]   ;;  %v7810_v1 = vld [vmem:[#allocation13 + $0x2a4] ss:$16 sps:$4 sm:$0xff]  }
 0x56e   :  { %5311 = vmatpush1.bf16.msra.mxu0 %v7748_v2  ;;  %5393 = vmatpush1.bf16.msra.mxu1 %v7751_v3  ;;  %v7813_v2 = vld [vmem:[#allocation13 + $0x2ac] ss:$16 sps:$4 sm:$0xff]   ;;  %v7808_v3 = vld [vmem:[#allocation13 + $0x2a0] ss:$16 sps:$4 sm:$0xff]  }
 0x56f   :  { %5312 = vmatprep.subr.bf16.mxu0 %v7756_v4  ;;  %5394 = vmatprep.subr.bf16.mxu1 %v7759_v5  ;;  %v7811_v4 = vld [vmem:[#allocation13 + $0x2a8] ss:$16 sps:$4 sm:$0xff]   ;;  %v7816_v5 = vld [vmem:[#allocation13 + $0x2c4] ss:$16 sps:$4 sm:$0xff]  }
 0x572   :  { %5313 = vmatpush1.bf16.msra.mxu0 %v7754_v6  ;;  %5395 = vmatpush1.bf16.msra.mxu1 %v7757_v43  ;;  %v7819_v6 = vld [vmem:[#allocation13 + $0x2cc] ss:$16 sps:$4 sm:$0xff]   ;;  %v7814_v43 = vld [vmem:[#allocation13 + $0x2c0] ss:$16 sps:$4 sm:$0xff]  }
 0x573   :  { %5314 = vmatprep.subr.bf16.mxu0 %v7762_v11  ;;  %5396 = vmatprep.subr.bf16.mxu1 %v7765_v12  ;;  %v7817_v11 = vld [vmem:[#allocation13 + $0x2c8] ss:$16 sps:$4 sm:$0xff]   ;;  %v7822_v12 = vld [vmem:[#allocation13 + $0x2e4] ss:$16 sps:$4 sm:$0xff]  }
 0x576   :  { %5315 = vmatpush1.bf16.msra.mxu0 %v7760_v13  ;;  %5397 = vmatpush1.bf16.msra.mxu1 %v7763_v14  ;;  %v7825_v13 = vld [vmem:[#allocation13 + $0x2ec] ss:$16 sps:$4 sm:$0xff]   ;;  %v7820_v14 = vld [vmem:[#allocation13 + $0x2e0] ss:$16 sps:$4 sm:$0xff]  }
 0x577   :  { %5316 = vmatprep.subr.bf16.mxu0 %v7768_v48  ;;  %5398 = vmatprep.subr.bf16.mxu1 %v7771_v15  ;;  %v7823_v48 = vld [vmem:[#allocation13 + $0x2e8] ss:$16 sps:$4 sm:$0xff]   ;;  %v7828_v15 = vld [vmem:[#allocation13 + $0x304] ss:$16 sps:$4 sm:$0xff]  }
 0x57a   :  { %5317 = vmatpush1.bf16.msra.mxu0 %v7766_v18  ;;  %5399 = vmatpush1.bf16.msra.mxu1 %v7769_v51  ;;  %v7831_v18 = vld [vmem:[#allocation13 + $0x30c] ss:$16 sps:$4 sm:$0xff]   ;;  %v7826_v51 = vld [vmem:[#allocation13 + $0x300] ss:$16 sps:$4 sm:$0xff]  }
 0x57b   :  { %5318 = vmatprep.subr.bf16.mxu0 %v7774_v19  ;;  %5400 = vmatprep.subr.bf16.mxu1 %v7777_v21  ;;  %v7829_v19 = vld [vmem:[#allocation13 + $0x308] ss:$16 sps:$4 sm:$0xff]   ;;  %v7834_v21 = vld [vmem:[#allocation13 + $0x324] ss:$16 sps:$4 sm:$0xff]  }
 0x57e   :  { %5319 = vmatpush1.bf16.msra.mxu0 %v7772_v22  ;;  %5401 = vmatpush1.bf16.msra.mxu1 %v7775_v24  ;;  %v7837_v22 = vld [vmem:[#allocation13 + $0x32c] ss:$16 sps:$4 sm:$0xff]   ;;  %v7832_v24 = vld [vmem:[#allocation13 + $0x320] ss:$16 sps:$4 sm:$0xff]  }
 0x57f   :  { %5329 = vmatprep.subr.bf16.mxu0 %v7780_v56  ;;  %5411 = vmatprep.subr.bf16.mxu1 %v7783_v25  ;;  %v7835_v56 = vld [vmem:[#allocation13 + $0x328] ss:$16 sps:$4 sm:$0xff]   ;;  %v7840_v25 = vld [vmem:[#allocation13 + $0x344] ss:$16 sps:$4 sm:$0xff]  }
 0x614   :  { %v4401_v29 = vpop.f32.mrb[12].mxu0  ;;  %v8457_v30 = vpop.f32.mrb[20].mxu1 }
 0x615   :  { %v6751_v31 = vadd.f32 %v4401_v29, %v3669_v27  ;;  %v4403_v32 = vpop.f32.mrb[13].mxu0  ;;  %v4485_v33 = vpop.f32.mrb[21].mxu1  ;;  %v7843_v27 = vld [vmem:[#allocation13 + $0x34c] ss:$16 sps:$4 sm:$0xff]   ;;  %v7846_v29 = vld [vmem:[#allocation13 + $0x364] ss:$16 sps:$4 sm:$0xff]  }
 0x616   :  { %v6752_v34 = vadd.f32 %v4403_v32, %v3673_v28  ;;  %v6754_v35 = vadd.f32 %v4485_v33, %v3681_v7  ;;  %v4405_v36 = vpop.f32.mrb[14].mxu0  ;;  %v4487_v9 = vpop.f32.mrb[22].mxu1  ;;  %v7838_v28 = vld [vmem:[#allocation13 + $0x340] ss:$16 sps:$4 sm:$0xff]   ;;  %v7841_v7 = vld [vmem:[#allocation13 + $0x348] ss:$16 sps:$4 sm:$0xff]  }
 0x617   :  { %v4490_v37 = vmax.f32 %v6751_v31, 0.0  ;;  %v4406_v38 = vpop.f32.mrb[15].mxu0  ;;  %v4488_v39 = vpop.f32.mrb[23].mxu1  ;;  %v7849_v31 = vld [vmem:[#allocation13 + $0x36c] ss:$16 sps:$4 sm:$0xff]  }
 0x618   :  { %v4491_v40 = vmax.f32 %v6752_v34, 0.0  ;;  %v4493_v41 = vmax.f32 %v6754_v35, 0.0  ;;  %v7844_v32 = vld [vmem:[#allocation13 + $0x360] ss:$16 sps:$4 sm:$0xff]   ;;  %v7847_v33 = vld [vmem:[#allocation13 + $0x368] ss:$16 sps:$4 sm:$0xff]  }
 0x619   :  { %v4623_v45 = vpack.c.bf16 %v4490_v37, %v4490_v37  ;;  %v7852_v34 = vld [vmem:[#allocation13 + $0x384] ss:$16 sps:$4 sm:$0xff]   ;;  %v7855_v35 = vld [vmem:[#allocation13 + $0x38c] ss:$16 sps:$4 sm:$0xff]   ;;  %v7850_v36 = vld [vmem:[#allocation13 + $0x380] ss:$16 sps:$4 sm:$0xff]  }
 0x61a   :  { %v4624_v42 = vpack.c.bf16 %v4491_v40, %v4491_v40  ;;  %v4626_v49 = vpack.c.bf16 %v4493_v41, %v4493_v41  ;;  %v7853_v9 = vld [vmem:[#allocation13 + $0x388] ss:$16 sps:$4 sm:$0xff]   ;;  %v7858_v37 = vld [vmem:[#allocation13 + $0x3a4] ss:$16 sps:$4 sm:$0xff]   ;;  %v7861_v38 = vld [vmem:[#allocation13 + $0x3ac] ss:$16 sps:$4 sm:$0xff]   ;;  %v3677_v41 = vrot.slane %v8449_v26, %v8389_v17 }
 0x61b   :  { %v7856_v39 = vld [vmem:[#allocation13 + $0x3a0] ss:$16 sps:$4 sm:$0xff]   ;;  %v7859_v40 = vld [vmem:[#allocation13 + $0x3a8] ss:$16 sps:$4 sm:$0xff]   ;;  %v7876_v26 = vld [vmem:[#allocation14 + $0x4] ss:$8 sps:$4 sm:$0xff]  }
 0x61c   :  { %5320 = vmatprep.mubr.bf16.mxu0 %v4624_v42  ;;  %5402 = vmatprep.mubr.bf16.mxu1 %v4624_v42  ;;  %v7864_v42 = vld [vmem:[#allocation13 + $0x3c4] ss:$16 sps:$4 sm:$0xff]  }
 0x61d   :  { %5321 = vmatmul.mubr.bf16.vlgmr.msra.gmra.mrb[16].mxu0 %v4623_v45  ;;  %5403 = vmatmul.mubr.bf16.vlgmr.msra.gmra.mrb[24].mxu1 %v4623_v45  ;;  %v7865_v45 = vld [vmem:[#allocation13 + $0x3c8] ss:$16 sps:$4 sm:$0xff]  }
 0x61e   :  { %5330 = vmatpush1.bf16.msra.mxu0 %v7778_v44  ;;  %5412 = vmatpush1.bf16.msra.mxu1 %v7781_v16  ;;  %v7867_v44 = vld [vmem:[#allocation13 + $0x3cc] ss:$16 sps:$4 sm:$0xff]   ;;  %v7862_v16 = vld [vmem:[#allocation13 + $0x3c0] ss:$16 sps:$4 sm:$0xff]  }
 0x61f   :  { %5361 = vmatprep.mubr.bf16.mxu0 %v4626_v49  ;;  %5443 = vmatprep.mubr.bf16.mxu1 %v4626_v49  ;;  %v7873_v49 = vld [vmem:[#allocation13 + $0x3ec] ss:$16 sps:$4 sm:$0xff]  }
 0x620   :  { %5331 = vmatprep.subr.bf16.mxu0 %v7786_v46  ;;  %5413 = vmatprep.subr.bf16.mxu1 %v7789_v47  ;;  %v6753_v46 = vadd.f32 %v8457_v30, %v3677_v41  ;;  %v7870_v47 = vld [vmem:[#allocation13 + $0x3e4] ss:$16 sps:$4 sm:$0xff]   ;;  %v7877_v30 = vld [vmem:[#allocation14 + $0x10] ss:$8 sps:$4 sm:$0xff]  }
 0x622   :  { %5332 = vmatpush1.bf16.msra.mxu0 %v7784_v23  ;;  %5414 = vmatpush1.bf16.msra.mxu1 %v7787_v50  ;;  %v7868_v23 = vld [vmem:[#allocation13 + $0x3e0] ss:$16 sps:$4 sm:$0xff]   ;;  %v7871_v50 = vld [vmem:[#allocation13 + $0x3e8] ss:$16 sps:$4 sm:$0xff]  }
 0x623   :  { %5333 = vmatprep.subr.bf16.mxu0 %v7792_v52  ;;  %5415 = vmatprep.subr.bf16.mxu1 %v7795_v53  ;;  %v4492_v52 = vmax.f32 %v6753_v46, 0.0  ;;  %v7874_v53 = vld [vmem:[#allocation14] ss:$8 sps:$4 sm:$0xff]  }
 0x626   :  { %5334 = vmatpush1.bf16.msra.mxu0 %v7790_v54  ;;  %5416 = vmatpush1.bf16.msra.mxu1 %v7793_v55  ;;  %v4625_v54 = vpack.c.bf16 %v4492_v52, %v4492_v52  ;;  %v7879_v55 = vld [vmem:[#allocation14 + $0x14] ss:$8 sps:$4 sm:$0xff]  }
 0x627   :  { %5335 = vmatprep.subr.bf16.mxu0 %v7798_v57  ;;  %5417 = vmatprep.subr.bf16.mxu1 %v7801_v58  ;;  %v7882_v57 = vld [vmem:[#allocation14 + $0x24] ss:$8 sps:$4 sm:$0xff]   ;;  %v7880_v58 = vld [vmem:[#allocation14 + $0x20] ss:$8 sps:$4 sm:$0xff]   ;;  %v7933_v52 = vld [vmem:[#allocation14 + $0x134] ss:$8 sps:$4 sm:$0xff]  }
 0x62a   :  { %5336 = vmatpush1.bf16.msra.mxu0 %v7796_v59  ;;  %5418 = vmatpush1.bf16.msra.mxu1 %v7799_v60  ;;  %v7885_v59 = vld [vmem:[#allocation14 + $0x34] ss:$8 sps:$4 sm:$0xff]   ;;  %v7883_v60 = vld [vmem:[#allocation14 + $0x30] ss:$8 sps:$4 sm:$0xff]  }
 0x62b   :  { %5337 = vmatprep.subr.bf16.mxu0 %v7804_v61  ;;  %5419 = vmatprep.subr.bf16.mxu1 %v7807_v62  ;;  %v7888_v61 = vld [vmem:[#allocation14 + $0x44] ss:$8 sps:$4 sm:$0xff]   ;;  %v7886_v62 = vld [vmem:[#allocation14 + $0x40] ss:$8 sps:$4 sm:$0xff]  }
 0x62e   :  { %5338 = vmatpush1.bf16.msra.mxu0 %v7802_v63  ;;  %5420 = vmatpush1.bf16.msra.mxu1 %v7805_v0  ;;  %v7891_v63 = vld [vmem:[#allocation14 + $0x54] ss:$8 sps:$4 sm:$0xff]   ;;  %v7889_v0 = vld [vmem:[#allocation14 + $0x50] ss:$8 sps:$4 sm:$0xff]  }
 0x62f   :  { %5339 = vmatprep.subr.bf16.mxu0 %v7810_v1  ;;  %5421 = vmatprep.subr.bf16.mxu1 %v7813_v2  ;;  %v7894_v1 = vld [vmem:[#allocation14 + $0x64] ss:$8 sps:$4 sm:$0xff]   ;;  %v7892_v2 = vld [vmem:[#allocation14 + $0x60] ss:$8 sps:$4 sm:$0xff]  }
 0x632   :  { %5340 = vmatpush1.bf16.msra.mxu0 %v7808_v3  ;;  %5422 = vmatpush1.bf16.msra.mxu1 %v7811_v4  ;;  %v7897_v3 = vld [vmem:[#allocation14 + $0x74] ss:$8 sps:$4 sm:$0xff]   ;;  %v7895_v4 = vld [vmem:[#allocation14 + $0x70] ss:$8 sps:$4 sm:$0xff]  }
 0x633   :  { %5341 = vmatprep.subr.bf16.mxu0 %v7816_v5  ;;  %5423 = vmatprep.subr.bf16.mxu1 %v7819_v6  ;;  %v7900_v5 = vld [vmem:[#allocation14 + $0x84] ss:$8 sps:$4 sm:$0xff]   ;;  %v7898_v6 = vld [vmem:[#allocation14 + $0x80] ss:$8 sps:$4 sm:$0xff]  }
 0x636   :  { %5342 = vmatpush1.bf16.msra.mxu0 %v7814_v43  ;;  %5424 = vmatpush1.bf16.msra.mxu1 %v7817_v11  ;;  %v7903_v43 = vld [vmem:[#allocation14 + $0x94] ss:$8 sps:$4 sm:$0xff]   ;;  %v7901_v11 = vld [vmem:[#allocation14 + $0x90] ss:$8 sps:$4 sm:$0xff]  }
 0x637   :  { %5343 = vmatprep.subr.bf16.mxu0 %v7822_v12  ;;  %5425 = vmatprep.subr.bf16.mxu1 %v7825_v13  ;;  %v7906_v12 = vld [vmem:[#allocation14 + $0xa4] ss:$8 sps:$4 sm:$0xff]   ;;  %v7904_v13 = vld [vmem:[#allocation14 + $0xa0] ss:$8 sps:$4 sm:$0xff]  }
 0x63a   :  { %5344 = vmatpush1.bf16.msra.mxu0 %v7820_v14  ;;  %5426 = vmatpush1.bf16.msra.mxu1 %v7823_v48  ;;  %v7909_v14 = vld [vmem:[#allocation14 + $0xb4] ss:$8 sps:$4 sm:$0xff]   ;;  %v7907_v48 = vld [vmem:[#allocation14 + $0xb0] ss:$8 sps:$4 sm:$0xff]  }
 0x63b   :  { %5345 = vmatprep.subr.bf16.mxu0 %v7828_v15  ;;  %5427 = vmatprep.subr.bf16.mxu1 %v7831_v18  ;;  %v7912_v15 = vld [vmem:[#allocation14 + $0xc4] ss:$8 sps:$4 sm:$0xff]   ;;  %v7910_v18 = vld [vmem:[#allocation14 + $0xc0] ss:$8 sps:$4 sm:$0xff]  }
 0x63e   :  { %5346 = vmatpush1.bf16.msra.mxu0 %v7826_v51  ;;  %5428 = vmatpush1.bf16.msra.mxu1 %v7829_v19  ;;  %v7915_v51 = vld [vmem:[#allocation14 + $0xd4] ss:$8 sps:$4 sm:$0xff]   ;;  %v7913_v19 = vld [vmem:[#allocation14 + $0xd0] ss:$8 sps:$4 sm:$0xff]  }
 0x63f   :  { %5347 = vmatprep.subr.bf16.mxu0 %v7834_v21  ;;  %5429 = vmatprep.subr.bf16.mxu1 %v7837_v22  ;;  %v7918_v21 = vld [vmem:[#allocation14 + $0xe4] ss:$8 sps:$4 sm:$0xff]   ;;  %v7916_v22 = vld [vmem:[#allocation14 + $0xe0] ss:$8 sps:$4 sm:$0xff]  }
 0x642   :  { %5348 = vmatpush1.bf16.msra.mxu0 %v7832_v24  ;;  %5430 = vmatpush1.bf16.msra.mxu1 %v7835_v56  ;;  %v7921_v24 = vld [vmem:[#allocation14 + $0xf4] ss:$8 sps:$4 sm:$0xff]   ;;  %v7919_v56 = vld [vmem:[#allocation14 + $0xf0] ss:$8 sps:$4 sm:$0xff]  }
 0x643   :  { %5349 = vmatprep.subr.bf16.mxu0 %v7840_v25  ;;  %5431 = vmatprep.subr.bf16.mxu1 %v7843_v27  ;;  %v7924_v25 = vld [vmem:[#allocation14 + $0x104] ss:$8 sps:$4 sm:$0xff]   ;;  %v8465_v27 = vld [vmem:[%s8503_s8 + $0x14] sm:$0xf] }
 0x646   :  { %5350 = vmatpush1.bf16.msra.mxu0 %v7838_v28  ;;  %5432 = vmatpush1.bf16.msra.mxu1 %v7841_v7  ;;  %v4631_v28 = vrot.slane %v8465_v27, %v8374_v8  ;;  %v4635_v7 = vrot.slane %v8465_v27, %v8382_v10 }
 0x647   :  { %5351 = vmatprep.subr.bf16.mxu0 %v7846_v29  ;;  %5433 = vmatprep.subr.bf16.mxu1 %v7849_v31  ;;  %v4643_v29 = vrot.slane %v8465_v27, %v8392_v20 }
 0x64a   :  { %5352 = vmatpush1.bf16.msra.mxu0 %v7844_v32  ;;  %5434 = vmatpush1.bf16.msra.mxu1 %v7847_v33 }
 0x64b   :  { %5353 = vmatprep.subr.bf16.mxu0 %v7852_v34  ;;  %5435 = vmatprep.subr.bf16.mxu1 %v7855_v35 }
 0x64e   :  { %5354 = vmatpush1.bf16.msra.mxu0 %v7850_v36  ;;  %5436 = vmatpush1.bf16.msra.mxu1 %v7853_v9 }
 0x64f   :  { %5355 = vmatprep.subr.bf16.mxu0 %v7858_v37  ;;  %5437 = vmatprep.subr.bf16.mxu1 %v7861_v38 }
 0x652   :  { %5356 = vmatpush1.bf16.msra.mxu0 %v7856_v39  ;;  %5438 = vmatpush1.bf16.msra.mxu1 %v7859_v40 }
 0x653   :  { %5357 = vmatprep.subr.bf16.mxu0 %v7864_v42  ;;  %5439 = vmatprep.subr.bf16.mxu1 %v7867_v44 }
 0x656   :  { %5358 = vmatpush1.bf16.msra.mxu0 %v7862_v16  ;;  %5440 = vmatpush1.bf16.msra.mxu1 %v7865_v45  ;;  %v7922_v45 = vld [vmem:[#allocation14 + $0x100] ss:$8 sps:$4 sm:$0xff]  }
 0x657   :  { %5359 = vmatprep.subr.bf16.mxu0 %v7870_v47  ;;  %5441 = vmatprep.subr.bf16.mxu1 %v7873_v49  ;;  %v7927_v47 = vld [vmem:[#allocation14 + $0x114] ss:$8 sps:$4 sm:$0xff]   ;;  %v7925_v49 = vld [vmem:[#allocation14 + $0x110] ss:$8 sps:$4 sm:$0xff]  }
 0x65a   :  { %5360 = vmatpush1.bf16.msra.mxu0 %v7868_v23  ;;  %5442 = vmatpush1.bf16.msra.mxu1 %v7871_v50  ;;  %v7930_v23 = vld [vmem:[#allocation14 + $0x124] ss:$8 sps:$4 sm:$0xff]   ;;  %v7928_v50 = vld [vmem:[#allocation14 + $0x120] ss:$8 sps:$4 sm:$0xff]  }
 0x65b   :  { %5856 = vmatprep.subr.bf16.mxu0 %v7876_v26  ;;  %v7931_v26 = vld [vmem:[#allocation14 + $0x130] ss:$8 sps:$4 sm:$0xff]  }
 0x65d   :  { %5362 = vmatmul.mubr.bf16.vlgmr.msra.gmra.mrb[16].mxu0 %v4625_v54  ;;  %5444 = vmatmul.mubr.bf16.vlgmr.msra.gmra.mrb[24].mxu1 %v4625_v54  ;;  %v7934_v54 = vld [vmem:[#allocation14 + $0x140] ss:$8 sps:$4 sm:$0xff]  }
 0x65e   :  { %5857 = vmatpush1.bf16.msra.mxu0 %v7874_v53  ;;  %v7936_v53 = vld [vmem:[#allocation14 + $0x144] ss:$8 sps:$4 sm:$0xff]  }
 0x65f   :  { %5858 = vmatprep.subr.bf16.mxu0 %v7879_v55  ;;  %v7939_v55 = vld [vmem:[#allocation14 + $0x154] ss:$8 sps:$4 sm:$0xff]  }
 0x662   :  { %5859 = vmatpush1.bf16.msra.mxu0 %v7877_v30  ;;  %v7937_v30 = vld [vmem:[#allocation14 + $0x150] ss:$8 sps:$4 sm:$0xff]  }
 0x663   :  { %5860 = vmatprep.subr.bf16.mxu0 %v7882_v57  ;;  %v7942_v57 = vld [vmem:[#allocation14 + $0x164] ss:$8 sps:$4 sm:$0xff]  }
 0x666   :  { %5861 = vmatpush1.bf16.msra.mxu0 %v7880_v58  ;;  %v7940_v58 = vld [vmem:[#allocation14 + $0x160] ss:$8 sps:$4 sm:$0xff]  }
 0x667   :  { %5862 = vmatprep.subr.bf16.mxu0 %v7885_v59  ;;  %v7945_v59 = vld [vmem:[#allocation14 + $0x174] ss:$8 sps:$4 sm:$0xff]  }
 0x66a   :  { %5863 = vmatpush1.bf16.msra.mxu0 %v7883_v60  ;;  %v7943_v60 = vld [vmem:[#allocation14 + $0x170] ss:$8 sps:$4 sm:$0xff]  }
 0x66b   :  { %5864 = vmatprep.subr.bf16.mxu0 %v7888_v61  ;;  %v7948_v61 = vld [vmem:[#allocation14 + $0x184] ss:$8 sps:$4 sm:$0xff]  }
 0x66e   :  { %5865 = vmatpush1.bf16.msra.mxu0 %v7886_v62  ;;  %v7946_v62 = vld [vmem:[#allocation14 + $0x180] ss:$8 sps:$4 sm:$0xff]  }
 0x66f   :  { %5866 = vmatprep.subr.bf16.mxu0 %v7891_v63  ;;  %v7951_v63 = vld [vmem:[#allocation14 + $0x194] ss:$8 sps:$4 sm:$0xff]  }
 0x672   :  { %5867 = vmatpush1.bf16.msra.mxu0 %v7889_v0  ;;  %v7949_v0 = vld [vmem:[#allocation14 + $0x190] ss:$8 sps:$4 sm:$0xff]  }
 0x673   :  { %5868 = vmatprep.subr.bf16.mxu0 %v7894_v1  ;;  %v7954_v1 = vld [vmem:[#allocation14 + $0x1a4] ss:$8 sps:$4 sm:$0xff]  }
 0x676   :  { %5869 = vmatpush1.bf16.msra.mxu0 %v7892_v2  ;;  %v7952_v2 = vld [vmem:[#allocation14 + $0x1a0] ss:$8 sps:$4 sm:$0xff]  }
 0x677   :  { %5870 = vmatprep.subr.bf16.mxu0 %v7897_v3  ;;  %v7957_v3 = vld [vmem:[#allocation14 + $0x1b4] ss:$8 sps:$4 sm:$0xff]  }
 0x67a   :  { %5871 = vmatpush1.bf16.msra.mxu0 %v7895_v4  ;;  %v7955_v4 = vld [vmem:[#allocation14 + $0x1b0] ss:$8 sps:$4 sm:$0xff]  }
 0x67b   :  { %5872 = vmatprep.subr.bf16.mxu0 %v7900_v5  ;;  %v7960_v5 = vld [vmem:[#allocation14 + $0x1c4] ss:$8 sps:$4 sm:$0xff]  }
 0x67e   :  { %5873 = vmatpush1.bf16.msra.mxu0 %v7898_v6  ;;  %v7958_v6 = vld [vmem:[#allocation14 + $0x1c0] ss:$8 sps:$4 sm:$0xff]  }
 0x67f   :  { %5874 = vmatprep.subr.bf16.mxu0 %v7903_v43  ;;  %v7963_v43 = vld [vmem:[#allocation14 + $0x1d4] ss:$8 sps:$4 sm:$0xff]  }
 0x682   :  { %5875 = vmatpush1.bf16.msra.mxu0 %v7901_v11  ;;  %v7961_v11 = vld [vmem:[#allocation14 + $0x1d0] ss:$8 sps:$4 sm:$0xff]  }
 0x683   :  { %5876 = vmatprep.subr.bf16.mxu0 %v7906_v12  ;;  %v4639_v12 = vrot.slane %v8465_v27, %v8389_v17 }
 0x686   :  { %5877 = vmatpush1.bf16.msra.mxu0 %v7904_v13  ;;  %v7966_v13 = vld [vmem:[#allocation14 + $0x1e4] ss:$8 sps:$4 sm:$0xff]  }
 0x687   :  { %5878 = vmatprep.subr.bf16.mxu0 %v7909_v14  ;;  %v7964_v14 = vld [vmem:[#allocation14 + $0x1e0] ss:$8 sps:$4 sm:$0xff]  }
 0x68a   :  { %5879 = vmatpush1.bf16.msra.mxu0 %v7907_v48 }
 0x68b   :  { %5880 = vmatprep.subr.bf16.mxu0 %v7912_v15  ;;  %v7969_v15 = vld [vmem:[#allocation14 + $0x1f4] ss:$8 sps:$4 sm:$0xff]  }
 0x68e   :  { %5881 = vmatpush1.bf16.msra.mxu0 %v7910_v18  ;;  %v7967_v18 = vld [vmem:[#allocation14 + $0x1f0] ss:$8 sps:$4 sm:$0xff]  }
 0x68f   :  { %5882 = vmatprep.subr.bf16.mxu0 %v7915_v51 }
 0x692   :  { %5883 = vmatpush1.bf16.msra.mxu0 %v7913_v19 }
 0x693   :  { %5884 = vmatprep.subr.bf16.mxu0 %v7918_v21  ;;  %v5520_v21 = vld [vmem:[%s8503_s8 + $0x18] sm:$0x3] }
 0x694   :  { %v5529_v17 = vrot.slane %v5520_v21, %v8374_v8 }
 0x696   :  { %5885 = vmatpush1.bf16.msra.mxu0 %v7916_v22  ;;  %v5533_v22 = vrot.slane %v5520_v21, %v8382_v10 }
 0x697   :  { %5886 = vmatprep.subr.bf16.mxu0 %v7921_v24 }
 0x69a   :  { %5887 = vmatpush1.bf16.msra.mxu0 %v7919_v56 }
 0x69b   :  { %5897 = vmatprep.subr.bf16.mxu0 %v7924_v25 }
 0x730   :  { %v5363_v31 = vpop.f32.mrb[16].mxu0  ;;  %v8473_v32 = vpop.f32.mrb[24].mxu1 }
 0x731   :  { %v6755_v33 = vadd.f32 %v5363_v31, %v4631_v28  ;;  %v5365_v34 = vpop.f32.mrb[17].mxu0  ;;  %v5447_v35 = vpop.f32.mrb[25].mxu1  ;;  %v6757_v48 = vadd.f32 %v8473_v32, %v4639_v12 }
 0x732   :  { %v6756_v36 = vadd.f32 %v5365_v34, %v4635_v7  ;;  %v6758_v9 = vadd.f32 %v5447_v35, %v4643_v29  ;;  %v5367_v37 = vpop.f32.mrb[18].mxu0  ;;  %v5449_v38 = vpop.f32.mrb[26].mxu1 }
 0x733   :  { %v5452_v39 = vmax.f32 %v6755_v33, 0.0  ;;  %v5368_v40 = vpop.f32.mrb[19].mxu0  ;;  %v5450_v41 = vpop.f32.mrb[27].mxu1  ;;  %v5454_v51 = vmax.f32 %v6757_v48, 0.0 }
 0x734   :  { %v5453_v42 = vmax.f32 %v6756_v36, 0.0  ;;  %v5455_v44 = vmax.f32 %v6758_v9, 0.0 }
 0x735   :  { %v5521_v46 = vpack.c.bf16 %v5452_v39, %v5452_v39  ;;  %v5523_v19 = vpack.c.bf16 %v5454_v51, %v5454_v51 }
 0x736   :  { %v5522_v16 = vpack.c.bf16 %v5453_v42, %v5453_v42  ;;  %v5524_v20 = vpack.c.bf16 %v5455_v44, %v5455_v44 }
 0x738   :  { %5888 = vmatprep.mubr.bf16.mxu0 %v5522_v16 }
 0x739   :  { %5889 = vmatmul.mubr.bf16.vlgmr.msra.gmra.mrb[20].mxu0 %v5521_v46 }
 0x73a   :  { %5898 = vmatpush1.bf16.msra.mxu0 %v7922_v45  ;;  %5929 = vmatprep.mubr.bf16.mxu0 %v5524_v20 }
 0x73b   :  { %5899 = vmatprep.subr.bf16.mxu0 %v7927_v47 }
 0x73e   :  { %5900 = vmatpush1.bf16.msra.mxu0 %v7925_v49 }
 0x73f   :  { %5901 = vmatprep.subr.bf16.mxu0 %v7930_v23 }
 0x742   :  { %5902 = vmatpush1.bf16.msra.mxu0 %v7928_v50 }
 0x743   :  { %5903 = vmatprep.subr.bf16.mxu0 %v7933_v52 }
 0x746   :  { %5904 = vmatpush1.bf16.msra.mxu0 %v7931_v26 }
 0x747   :  { %5905 = vmatprep.subr.bf16.mxu0 %v7936_v53 }
 0x74a   :  { %5906 = vmatpush1.bf16.msra.mxu0 %v7934_v54 }
 0x74b   :  { %5907 = vmatprep.subr.bf16.mxu0 %v7939_v55 }
 0x74e   :  { %5908 = vmatpush1.bf16.msra.mxu0 %v7937_v30 }
 0x74f   :  { %5909 = vmatprep.subr.bf16.mxu0 %v7942_v57 }
 0x752   :  { %5910 = vmatpush1.bf16.msra.mxu0 %v7940_v58 }
 0x753   :  { %5911 = vmatprep.subr.bf16.mxu0 %v7945_v59 }
 0x756   :  { %5912 = vmatpush1.bf16.msra.mxu0 %v7943_v60 }
 0x757   :  { %5913 = vmatprep.subr.bf16.mxu0 %v7948_v61 }
 0x75a   :  { %5914 = vmatpush1.bf16.msra.mxu0 %v7946_v62 }
 0x75b   :  { %5915 = vmatprep.subr.bf16.mxu0 %v7951_v63 }
 0x75e   :  { %5916 = vmatpush1.bf16.msra.mxu0 %v7949_v0 }
 0x75f   :  { %5917 = vmatprep.subr.bf16.mxu0 %v7954_v1 }
 0x762   :  { %5918 = vmatpush1.bf16.msra.mxu0 %v7952_v2 }
 0x763   :  { %5919 = vmatprep.subr.bf16.mxu0 %v7957_v3 }
 0x766   :  { %5920 = vmatpush1.bf16.msra.mxu0 %v7955_v4 }
 0x767   :  { %5921 = vmatprep.subr.bf16.mxu0 %v7960_v5 }
 0x76a   :  { %5922 = vmatpush1.bf16.msra.mxu0 %v7958_v6 }
 0x76b   :  { %5923 = vmatprep.subr.bf16.mxu0 %v7963_v43 }
 0x76e   :  { %5924 = vmatpush1.bf16.msra.mxu0 %v7961_v11 }
 0x76f   :  { %5925 = vmatprep.subr.bf16.mxu0 %v7966_v13 }
 0x772   :  { %5926 = vmatpush1.bf16.msra.mxu0 %v7964_v14 }
 0x773   :  { %5927 = vmatprep.subr.bf16.mxu0 %v7969_v15 }
 0x776   :  { %5928 = vmatpush1.bf16.msra.mxu0 %v7967_v18 }
 0x779   :  { %5930 = vmatmul.mubr.bf16.vlgmr.msra.gmra.mrb[20].mxu0 %v5523_v19 }
 0x84c   :  { %v5931_v24 = vpop.f32.mrb[20].mxu0 }
 0x84d   :  { %v6759_v56 = vadd.f32 %v5931_v24, %v5529_v17  ;;  %v5933_v25 = vpop.f32.mrb[21].mxu0 }
 0x84e   :  { %v6760_v27 = vadd.f32 %v5933_v25, %v5533_v22  ;;  %v5935_v28 = vpop.f32.mrb[22].mxu0 }
 0x84f   :  { %v5936_v7 = vpop.f32.mrb[23].mxu0 }
 0x850   :  { %v5940_v29 = vcombine.low %v6759_v56, %v6760_v27 }
 0x852   :  { %6738 = vst.sshfl [vmem:[#allocation16] sm:$0x33 pattern:$0x76325410] %v5940_v29 }
 0x853   :  { %8157 = shalt.err (!%p8154_p12)
}
 0x854   :  { %s8158_s11 = scalar_lea.hbm %s8504_s9, 64 }
 0x855   :  { %p8159_p13 = scmp.ne.s32.totalorder %s8504_s9, %s8158_s11  ;;  %p8162_p0 = scmp.lt.u32.totalorder %s8158_s11, %s8504_s9 }
 0x857   :  { %p8164_p1 = pnand %p8162_p0, %p8159_p13 }
 0x859   :  { %8167 = shalt.err (!%p8164_p1)
}
 0x85a   :  { %5959 = dma.vmem_to_hbm [thread:$0]  %s5957_s27, 64, %s8504_s9, [#allocation4]  }
 0x85b   :  { %8178 = dma.done.wait [#allocation4], 64  }
 0x85c   :  { %8179 = vsyncadd [#allocation4], 4294967232 }
 0x85d   :  { %5963 = vsyncpa [#allocation3], 1 }
 0x85e   :  { %5964 = vsyncpa [#allocation6], 1 }
 0x85f   :  { %5965 = vsyncpa [#allocation9], 1 }
 0x860   :  { %5966 = vsyncpa [#allocation12], 1 }
 0x861   :  { %5967 = vsyncpa [#allocation15], 1 }
 0x862   :  { %5968 = vsyncpa [#allocation4], 1 }

// kernel: tpu_custom_call.1
= control target key start
LH: loop header
LB: loop body
LE: loop exit
PB: predicated region body
PF: predicated region fallthrough
CT: control target
= control target key end

     0   :  { %14 = vsyncpa [#allocation3], 0  ;;  %s8495_s0 = inlined_call_operand.hbm [shape: f32[2,256], index: 0, kind: input, shape index: {}]   ;;  %s8496_s1 = inlined_call_operand.hbm [shape: bf16[256,512], index: 1, kind: input, shape index: {}]   ;;  %s8497_s2 = inlined_call_operand.hbm [shape: bf16[512,512], index: 2, kind: input, shape index: {}]   ;;  %s8498_s3 = inlined_call_operand.hbm [shape: bf16[512,512], index: 3, kind: input, shape index: {}]   ;;  %s8499_s4 = inlined_call_operand.hbm [shape: bf16[512,512], index: 4, kind: input, shape index: {}]   ;;  %s8500_s5 = inlined_call_operand.hbm [shape: bf16[512,512], index: 5, kind: input, shape index: {}]   ;;  %s8501_s6 = inlined_call_operand.hbm [shape: bf16[512,512], index: 6, kind: input, shape index: {}]   ;;  %s8502_s7 = inlined_call_operand.hbm [shape: bf16[512,256], index: 7, kind: input, shape index: {}]   ;;  %s8503_s8 = inlined_call_operand.vmem [shape: f32[1,3328], index: 8, kind: input, shape index: {}]   ;;  %s8504_s9 = inlined_call_operand.hbm [shape: f32[2,256], index: 9, kind: output, shape index: {}]  }
   0x1   :  { %15 = vsyncpa [#allocation6], 0 }
   0x2   :  { %16 = vsyncpa [#allocation9], 0 }
   0x3   :  { %17 = vsyncpa [#allocation12], 0 }
   0x4   :  { %18 = vsyncpa [#allocation15], 0 }
   0x5   :  { %19 = vsyncpa [#allocation4], 0  ;;  %s8180_s30 = smov [#allocation5]   ;;  %s7970_s13 = scalar_lea.hbm %s8496_s1, 8192 }
   0x6   :  { %s35_s10 = sshll.u32 %s8180_s30, 4  ;;  %p7971_p0 = scmp.ne.s32.totalorder %s8496_s1, %s7970_s13  ;;  %s36_s10 = int_to_ptr.vmem [resolvable:$true] %s35_s10 }
   0x7   :  { %p7974_p1 = scmp.lt.u32.totalorder %s7970_s13, %s8496_s1 }
   0x9   :  { %p7976_p2 = pnand %p7974_p1, %p7971_p0 }
   0xb   :  { %7979 = shalt.err (!%p7976_p2)
}
   0xc   :  { %s7980_s18 = scalar_lea.vmem %s36_s10, 8192  ;;  %p7985_p4 = scmp.lt.s32.totalorder %s36_s10, %s36_s10 }
   0xd   :  { %p7981_p3 = scmp.ne.s32.totalorder %s36_s10, %s7980_s18  ;;  %p7986_p5 = scmp.lt.s32.totalorder %s7980_s18, %s7980_s18 }
   0xf   :  { %p7987_p6 = por %p7986_p5, %p7985_p4 }
  0x11   :  { %p7988_p7 = pnand %p7987_p6, %p7981_p3 }
  0x13   :  { %7991 = shalt.err (!%p7988_p7)
}
  0x14   :  { %s8181_s19 = smov 256   ;;  %s8182_s20 = smov 16  }
  0x15   :  { %41 = dma.hbm_to_vmem [thread:$0]  %s8496_s1, 8192, %s36_s10, [#allocation6], %s8181_s19, %s8181_s19, %s8182_s20  }
  0x16   :  { %s8183_s23 = smov [#allocation8]   ;;  %s8184_s25 = smov [#allocation11]  }
  0x17   :  { %s59_s24 = sshll.u32 %s8183_s23, 4  ;;  %s83_s26 = sshll.u32 %s8184_s25, 4  ;;  %s60_s24 = int_to_ptr.vmem [resolvable:$true] %s59_s24  ;;  %s84_s26 = int_to_ptr.vmem [resolvable:$true] %s83_s26 }
  0x18   :  { %s7992_s29 = scalar_lea.hbm %s8498_s3, 16384 }
  0x19   :  { %p7993_p8 = scmp.ne.s32.totalorder %s8498_s3, %s7992_s29  ;;  %p7996_p9 = scmp.lt.u32.totalorder %s7992_s29, %s8498_s3 }
  0x1b   :  { %p7998_p10 = pnand %p7996_p9, %p7993_p8 }
  0x1d   :  { %8001 = shalt.err (!%p7998_p10)
}
  0x1e   :  { %s8002_s1 = scalar_lea.vmem %s60_s24, 16384  ;;  %p8007_p12 = scmp.lt.s32.totalorder %s60_s24, %s60_s24 }
  0x1f   :  { %p8003_p11 = scmp.ne.s32.totalorder %s60_s24, %s8002_s1  ;;  %p8008_p13 = scmp.lt.s32.totalorder %s8002_s1, %s8002_s1 }
  0x21   :  { %p8009_p0 = por %p8008_p13, %p8007_p12 }
  0x23   :  { %p8010_p1 = pnand %p8009_p0, %p8003_p11 }
  0x25   :  { %8013 = shalt.err (!%p8010_p1)
}
  0x26   :  { %65 = dma.hbm_to_vmem [thread:$0]  %s8498_s3, 16384, %s60_s24, [#allocation9], %s8181_s19, %s8181_s19, %s8182_s20  }
  0x27   :  { %s8014_s17 = scalar_lea.hbm %s8500_s5, 16384 }
  0x28   :  { %p8015_p2 = scmp.ne.s32.totalorder %s8500_s5, %s8014_s17  ;;  %p8018_p3 = scmp.lt.u32.totalorder %s8014_s17, %s8500_s5 }
  0x2a   :  { %p8020_p4 = pnand %p8018_p3, %p8015_p2 }
  0x2c   :  { %8023 = shalt.err (!%p8020_p4)
}
  0x2d   :  { %s8024_s25 = scalar_lea.vmem %s84_s26, 16384  ;;  %p8029_p6 = scmp.lt.s32.totalorder %s84_s26, %s84_s26 }
  0x2e   :  { %p8025_p5 = scmp.ne.s32.totalorder %s84_s26, %s8024_s25  ;;  %p8030_p7 = scmp.lt.s32.totalorder %s8024_s25, %s8024_s25 }
  0x30   :  { %p8031_p8 = por %p8030_p7, %p8029_p6 }
  0x32   :  { %p8032_p9 = pnand %p8031_p8, %p8025_p5 }
  0x34   :  { %8035 = shalt.err (!%p8032_p9)
}
  0x35   :  { %89 = dma.hbm_to_vmem [thread:$0]  %s8500_s5, 16384, %s84_s26, [#allocation12], %s8181_s19, %s8181_s19, %s8182_s20  }
  0x36   :  { %s8185_s27 = smov [#allocation2]   ;;  %s8186_s29 = smov [#allocation7]  }
  0x37   :  { %s26_s28 = sshll.u32 %s8185_s27, 4  ;;  %s47_s30 = sshll.u32 %s8186_s29, 4  ;;  %s27_s28 = int_to_ptr.vmem [resolvable:$true] %s26_s28  ;;  %s48_s30 = int_to_ptr.vmem [resolvable:$true] %s47_s30 }
  0x38   :  { %s8036_s13 = scalar_lea.hbm %s8495_s0, 64 }
  0x39   :  { %p8037_p10 = scmp.ne.s32.totalorder %s8495_s0, %s8036_s13  ;;  %p8040_p11 = scmp.lt.u32.totalorder %s8036_s13, %s8495_s0 }
  0x3b   :  { %p8042_p12 = pnand %p8040_p11, %p8037_p10 }
  0x3d   :  { %8045 = shalt.err (!%p8042_p12)
}
  0x3e   :  { %s8046_s5 = scalar_lea.vmem %s27_s28, 64  ;;  %p8051_p0 = scmp.lt.s32.totalorder %s27_s28, %s27_s28 }
  0x3f   :  { %p8047_p13 = scmp.ne.s32.totalorder %s27_s28, %s8046_s5  ;;  %p8052_p1 = scmp.lt.s32.totalorder %s8046_s5, %s8046_s5 }
  0x41   :  { %p8053_p2 = por %p8052_p1, %p8051_p0 }
  0x43   :  { %p8054_p3 = pnand %p8053_p2, %p8047_p13 }
  0x45   :  { %8057 = shalt.err (!%p8054_p3)
}
  0x46   :  { %29 = dma.hbm_to_vmem [thread:$0]  %s8495_s0, 64, %s27_s28, [#allocation3]  }
  0x47   :  { %s8058_s21 = scalar_lea.hbm %s8497_s2, 16384 }
  0x48   :  { %p8059_p4 = scmp.ne.s32.totalorder %s8497_s2, %s8058_s21  ;;  %p8062_p5 = scmp.lt.u32.totalorder %s8058_s21, %s8497_s2 }
  0x4a   :  { %p8064_p6 = pnand %p8062_p5, %p8059_p4 }
  0x4c   :  { %8067 = shalt.err (!%p8064_p6)
}
  0x4d   :  { %s8068_s24 = scalar_lea.vmem %s48_s30, 16384  ;;  %p8073_p8 = scmp.lt.s32.totalorder %s48_s30, %s48_s30 }
  0x4e   :  { %p8069_p7 = scmp.ne.s32.totalorder %s48_s30, %s8068_s24  ;;  %p8074_p9 = scmp.lt.s32.totalorder %s8068_s24, %s8068_s24 }
  0x50   :  { %p8075_p10 = por %p8074_p9, %p8073_p8 }
  0x52   :  { %p8076_p11 = pnand %p8075_p10, %p8069_p7 }
  0x54   :  { %8079 = shalt.err (!%p8076_p11)
}
  0x55   :  { %53 = dma.hbm_to_vmem [thread:$0]  %s8497_s2, 16384, %s48_s30, [#allocation6], %s8181_s19, %s8181_s19, %s8182_s20  }
  0x56   :  { %s8187_s28 = smov [#allocation10]   ;;  %s8188_s11 = smov [#allocation13]  }
  0x57   :  { %s71_s29 = sshll.u32 %s8187_s28, 4  ;;  %s95_s12 = sshll.u32 %s8188_s11, 4  ;;  %s72_s29 = int_to_ptr.vmem [resolvable:$true] %s71_s29  ;;  %s96_s12 = int_to_ptr.vmem [resolvable:$true] %s95_s12 }
  0x58   :  { %s8080_s10 = scalar_lea.hbm %s8499_s4, 16384 }
  0x59   :  { %p8081_p12 = scmp.ne.s32.totalorder %s8499_s4, %s8080_s10  ;;  %p8084_p13 = scmp.lt.u32.totalorder %s8080_s10, %s8499_s4 }
  0x5b   :  { %p8086_p0 = pnand %p8084_p13, %p8081_p12 }
  0x5d   :  { %8089 = shalt.err (!%p8086_p0)
}
  0x5e   :  { %s8090_s2 = scalar_lea.vmem %s72_s29, 16384  ;;  %p8095_p2 = scmp.lt.s32.totalorder %s72_s29, %s72_s29 }
  0x5f   :  { %p8091_p1 = scmp.ne.s32.totalorder %s72_s29, %s8090_s2  ;;  %p8096_p3 = scmp.lt.s32.totalorder %s8090_s2, %s8090_s2 }
  0x61   :  { %p8097_p4 = por %p8096_p3, %p8095_p2 }
  0x63   :  { %p8098_p5 = pnand %p8097_p4, %p8091_p1 }
  0x65   :  { %8101 = shalt.err (!%p8098_p5)
}
  0x66   :  { %77 = dma.hbm_to_vmem [thread:$0]  %s8499_s4, 16384, %s72_s29, [#allocation9], %s8181_s19, %s8181_s19, %s8182_s20  }
  0x67   :  { %s8102_s21 = scalar_lea.hbm %s8501_s6, 16384 }
  0x68   :  { %p8103_p6 = scmp.ne.s32.totalorder %s8501_s6, %s8102_s21  ;;  %p8106_p7 = scmp.lt.u32.totalorder %s8102_s21, %s8501_s6 }
  0x6a   :  { %p8108_p8 = pnand %p8106_p7, %p8103_p6 }
  0x6c   :  { %8111 = shalt.err (!%p8108_p8)
}
  0x6d   :  { %s8112_s24 = scalar_lea.vmem %s96_s12, 16384  ;;  %p8117_p10 = scmp.lt.s32.totalorder %s96_s12, %s96_s12 }
  0x6e   :  { %p8113_p9 = scmp.ne.s32.totalorder %s96_s12, %s8112_s24  ;;  %p8118_p11 = scmp.lt.s32.totalorder %s8112_s24, %s8112_s24 }
  0x70   :  { %p8119_p12 = por %p8118_p11, %p8117_p10 }
  0x72   :  { %p8120_p13 = pnand %p8119_p12, %p8113_p9 }
  0x74   :  { %8123 = shalt.err (!%p8120_p13)
}
  0x75   :  { %101 = dma.hbm_to_vmem [thread:$0]  %s8501_s6, 16384, %s96_s12, [#allocation12], %s8181_s19, %s8181_s19, %s8182_s20  }
  0x76   :  { %s8189_s27 = smov [#allocation14]   ;;  %s8124_s13 = scalar_lea.hbm %s8502_s7, 8192 }
  0x77   :  { %s107_s28 = sshll.u32 %s8189_s27, 4  ;;  %p8125_p0 = scmp.ne.s32.totalorder %s8502_s7, %s8124_s13  ;;  %s108_s28 = int_to_ptr.vmem [resolvable:$true] %s107_s28 }
  0x78   :  { %p8128_p1 = scmp.lt.u32.totalorder %s8124_s13, %s8502_s7 }
  0x7a   :  { %p8130_p2 = pnand %p8128_p1, %p8125_p0 }
  0x7c   :  { %8133 = shalt.err (!%p8130_p2)
}
  0x7d   :  { %s8134_s5 = scalar_lea.vmem %s108_s28, 8192  ;;  %p8139_p4 = scmp.lt.s32.totalorder %s108_s28, %s108_s28 }
  0x7e   :  { %p8135_p3 = scmp.ne.s32.totalorder %s108_s28, %s8134_s5  ;;  %p8140_p5 = scmp.lt.s32.totalorder %s8134_s5, %s8134_s5 }
  0x80   :  { %p8141_p6 = por %p8140_p5, %p8139_p4 }
  0x82   :  { %p8142_p7 = pnand %p8141_p6, %p8135_p3 }
  0x84   :  { %8145 = shalt.err (!%p8142_p7)
}
  0x85   :  { %s8190_s6 = smov 128   ;;  %s8191_s19 = smov 8  }
  0x86   :  { %113 = dma.hbm_to_vmem [thread:$0]  %s8502_s7, 8192, %s108_s28, [#allocation15], %s8190_s6, %s8190_s6, %s8191_s19  }
  0x87   :  { %8168 = dma.done.wait [#allocation3], 64  }
  0x88   :  { %8169 = vsyncadd [#allocation3], 4294967232 }
  0x89   :  { %8170 = dma.done.wait [#allocation6], 24576  }
  0x8a   :  { %8171 = vsyncadd [#allocation6], 4294942720 }
  0x8b   :  { %8172 = dma.done.wait [#allocation9], 32768  }
  0x8c   :  { %8173 = vsyncadd [#allocation9], 4294934528 }
  0x8d   :  { %8174 = dma.done.wait [#allocation12], 32768  }
  0x8e   :  { %8175 = vsyncadd [#allocation12], 4294934528 }
  0x8f   :  { %8176 = dma.done.wait [#allocation15], 8192  }
  0x90   :  { %8177 = vsyncadd [#allocation15], 4294959104  ;;  %v6818_v0 = vld [vmem:[#allocation5 + $0x4] ss:$16 sps:$4 sm:$0xff]   ;;  %v6820_v1 = vld [vmem:[#allocation5] ss:$16 sps:$4 sm:$0xff]  }
  0x91   :  { %560 = vmatprep.subr.bf16.mxu1 %v6818_v0  ;;  %v6821_v2 = vld [vmem:[#allocation5 + $0x24] ss:$16 sps:$4 sm:$0xff]   ;;  %v6823_v3 = vld [vmem:[#allocation5 + $0x20] ss:$16 sps:$4 sm:$0xff]   ;;  %v6868_v44 = vld [vmem:[#allocation5 + $0xc] ss:$16 sps:$4 sm:$0xff]  }
  0x92   :  { %561 = vmatpush1.bf16.msra.mxu1 %v6820_v1  ;;  %v6824_v4 = vld [vmem:[#allocation5 + $0x44] ss:$16 sps:$4 sm:$0xff]   ;;  %v6826_v5 = vld [vmem:[#allocation5 + $0x40] ss:$16 sps:$4 sm:$0xff]   ;;  %v6866_v48 = vld [vmem:[#allocation5 + $0x8] ss:$16 sps:$4 sm:$0xff]  }
  0x93   :  { %562 = vmatprep.subr.bf16.mxu1 %v6821_v2  ;;  %v6827_v6 = vld [vmem:[#allocation5 + $0x64] ss:$16 sps:$4 sm:$0xff]   ;;  %v6829_v7 = vld [vmem:[#allocation5 + $0x60] ss:$16 sps:$4 sm:$0xff]   ;;  %v6871_v49 = vld [vmem:[#allocation5 + $0x2c] ss:$16 sps:$4 sm:$0xff]  }
  0x94   :  { %v6830_v8 = vld [vmem:[#allocation5 + $0x84] ss:$16 sps:$4 sm:$0xff]   ;;  %v6832_v9 = vld [vmem:[#allocation5 + $0x80] ss:$16 sps:$4 sm:$0xff]   ;;  %v6869_v52 = vld [vmem:[#allocation5 + $0x28] ss:$16 sps:$4 sm:$0xff]  }
  0x95   :  { %v6833_v10 = vld [vmem:[#allocation5 + $0xa4] ss:$16 sps:$4 sm:$0xff]   ;;  %v6835_v11 = vld [vmem:[#allocation5 + $0xa0] ss:$16 sps:$4 sm:$0xff]   ;;  %v6874_v53 = vld [vmem:[#allocation5 + $0x4c] ss:$16 sps:$4 sm:$0xff]  }
  0x96   :  { %563 = vmatpush1.bf16.msra.mxu1 %v6823_v3  ;;  %v6836_v12 = vld [vmem:[#allocation5 + $0xc4] ss:$16 sps:$4 sm:$0xff]   ;;  %v8357_v13 = vld.sshfl [vmem:[#allocation2] sm:$0x33 pattern:$0x76325410] }
  0x97   :  { %564 = vmatprep.subr.bf16.mxu1 %v6824_v4  ;;  %v214_v14 = vcombine.high %v8357_v13, %v8357_v13  ;;  %v6838_v15 = vld [vmem:[#allocation5 + $0xc0] ss:$16 sps:$4 sm:$0xff]   ;;  %v6839_v16 = vld [vmem:[#allocation5 + $0xe4] ss:$16 sps:$4 sm:$0xff]   ;;  %v8366_v47 = vpack.c.bf16 %v8357_v13, %v8357_v13  ;;  %v6872_v56 = vld [vmem:[#allocation5 + $0x48] ss:$16 sps:$4 sm:$0xff]  }
  0x98   :  { %v6841_v18 = vld [vmem:[#allocation5 + $0xe0] ss:$16 sps:$4 sm:$0xff]   ;;  %v6842_v19 = vld [vmem:[#allocation5 + $0x104] ss:$16 sps:$4 sm:$0xff]   ;;  %v6877_v57 = vld [vmem:[#allocation5 + $0x6c] ss:$16 sps:$4 sm:$0xff]  }
  0x99   :  { %v8361_v17 = vpack.c.bf16 %v214_v14, %v214_v14  ;;  %v6844_v20 = vld [vmem:[#allocation5 + $0x100] ss:$16 sps:$4 sm:$0xff]   ;;  %v6845_v21 = vld [vmem:[#allocation5 + $0x124] ss:$16 sps:$4 sm:$0xff]   ;;  %v6875_v60 = vld [vmem:[#allocation5 + $0x68] ss:$16 sps:$4 sm:$0xff]  }
  0x9a   :  { %565 = vmatpush1.bf16.msra.mxu1 %v6826_v5  ;;  %v6847_v22 = vld [vmem:[#allocation5 + $0x120] ss:$16 sps:$4 sm:$0xff]   ;;  %v6848_v23 = vld [vmem:[#allocation5 + $0x144] ss:$16 sps:$4 sm:$0xff]   ;;  %v6880_v61 = vld [vmem:[#allocation5 + $0x8c] ss:$16 sps:$4 sm:$0xff]  }
  0x9b   :  { %566 = vmatprep.subr.bf16.mxu1 %v6827_v6  ;;  %592 = vmatprep.mubr.bf16.mxu1 %v8361_v17  ;;  %v6850_v24 = vld [vmem:[#allocation5 + $0x140] ss:$16 sps:$4 sm:$0xff]   ;;  %v6851_v25 = vld [vmem:[#allocation5 + $0x164] ss:$16 sps:$4 sm:$0xff]   ;;  %v6878_v0 = vld [vmem:[#allocation5 + $0x88] ss:$16 sps:$4 sm:$0xff]  }
  0x9c   :  { %v6853_v26 = vld [vmem:[#allocation5 + $0x160] ss:$16 sps:$4 sm:$0xff]   ;;  %v6854_v27 = vld [vmem:[#allocation5 + $0x184] ss:$16 sps:$4 sm:$0xff]   ;;  %v6883_v1 = vld [vmem:[#allocation5 + $0xac] ss:$16 sps:$4 sm:$0xff]  }
  0x9d   :  { %v6914_v28 = vld [vmem:[#allocation7 + $0x4] ss:$16 sps:$4 sm:$0xff]   ;;  %v6919_v29 = vld [vmem:[#allocation7] ss:$16 sps:$4 sm:$0xff]   ;;  %v6881_v4 = vld [vmem:[#allocation5 + $0xa8] ss:$16 sps:$4 sm:$0xff]  }
  0x9e   :  { %567 = vmatpush1.bf16.msra.mxu1 %v6829_v7  ;;  %1440 = vmatprep.subr.bf16.mxu0 %v6914_v28  ;;  %v6920_v30 = vld [vmem:[#allocation7 + $0x24] ss:$16 sps:$4 sm:$0xff]   ;;  %v6856_v31 = vld [vmem:[#allocation5 + $0x180] ss:$16 sps:$4 sm:$0xff]   ;;  %v6886_v5 = vld [vmem:[#allocation5 + $0xcc] ss:$16 sps:$4 sm:$0xff]  }
  0x9f   :  { %568 = vmatprep.subr.bf16.mxu1 %v6830_v8  ;;  %1441 = vmatpush1.bf16.msra.mxu0 %v6919_v29  ;;  %v6857_v32 = vld [vmem:[#allocation5 + $0x1a4] ss:$16 sps:$4 sm:$0xff]   ;;  %v6925_v33 = vld [vmem:[#allocation7 + $0x20] ss:$16 sps:$4 sm:$0xff]   ;;  %v6884_v8 = vld [vmem:[#allocation5 + $0xc8] ss:$16 sps:$4 sm:$0xff]  }
  0xa0   :  { %1442 = vmatprep.subr.bf16.mxu0 %v6920_v30  ;;  %v6926_v34 = vld [vmem:[#allocation7 + $0x44] ss:$16 sps:$4 sm:$0xff]   ;;  %v6859_v35 = vld [vmem:[#allocation5 + $0x1a0] ss:$16 sps:$4 sm:$0xff]   ;;  %v6892_v13 = vld [vmem:[#allocation5 + $0x10c] ss:$16 sps:$4 sm:$0xff]  }
  0xa1   :  { %v6860_v36 = vld [vmem:[#allocation5 + $0x1c4] ss:$16 sps:$4 sm:$0xff]   ;;  %v6931_v37 = vld [vmem:[#allocation7 + $0x40] ss:$16 sps:$4 sm:$0xff]   ;;  %v6910_v28 = vld [vmem:[#allocation5 + $0x1cc] ss:$16 sps:$4 sm:$0xff]  }
  0xa2   :  { %569 = vmatpush1.bf16.msra.mxu1 %v6832_v9  ;;  %v6932_v38 = vld [vmem:[#allocation7 + $0x64] ss:$16 sps:$4 sm:$0xff]   ;;  %v6862_v39 = vld [vmem:[#allocation5 + $0x1c0] ss:$16 sps:$4 sm:$0xff]   ;;  %v6889_v9 = vld [vmem:[#allocation5 + $0xec] ss:$16 sps:$4 sm:$0xff]  }
  0xa3   :  { %570 = vmatprep.subr.bf16.mxu1 %v6833_v10  ;;  %1443 = vmatpush1.bf16.msra.mxu0 %v6925_v33  ;;  %v6937_v40 = vld [vmem:[#allocation7 + $0x60] ss:$16 sps:$4 sm:$0xff]   ;;  %v6863_v41 = vld [vmem:[#allocation5 + $0x1e4] ss:$16 sps:$4 sm:$0xff]   ;;  %v6908_v29 = vld [vmem:[#allocation5 + $0x1c8] ss:$16 sps:$4 sm:$0xff]  }
  0xa4   :  { %1444 = vmatprep.subr.bf16.mxu0 %v6926_v34  ;;  %v6938_v42 = vld [vmem:[#allocation7 + $0x84] ss:$16 sps:$4 sm:$0xff]   ;;  %v6865_v43 = vld [vmem:[#allocation5 + $0x1e0] ss:$16 sps:$4 sm:$0xff]   ;;  %v6913_v30 = vld [vmem:[#allocation5 + $0x1ec] ss:$16 sps:$4 sm:$0xff]  }
  0xa5   :  { %v6943_v45 = vld [vmem:[#allocation7 + $0x80] ss:$16 sps:$4 sm:$0xff]   ;;  %v6944_v46 = vld [vmem:[#allocation7 + $0xa4] ss:$16 sps:$4 sm:$0xff]   ;;  %v6916_v33 = vld [vmem:[#allocation7 + $0x8] ss:$16 sps:$4 sm:$0xff]  }
  0xa6   :  { %571 = vmatpush1.bf16.msra.mxu1 %v6835_v11  ;;  %v6949_v50 = vld [vmem:[#allocation7 + $0xa0] ss:$16 sps:$4 sm:$0xff]   ;;  %v6950_v51 = vld [vmem:[#allocation7 + $0xc4] ss:$16 sps:$4 sm:$0xff]   ;;  %v6924_v34 = vld [vmem:[#allocation7 + $0x2c] ss:$16 sps:$4 sm:$0xff]  }
  0xa7   :  { %572 = vmatprep.subr.bf16.mxu1 %v6836_v12  ;;  %1445 = vmatpush1.bf16.msra.mxu0 %v6931_v37  ;;  %v6955_v54 = vld [vmem:[#allocation7 + $0xc0] ss:$16 sps:$4 sm:$0xff]   ;;  %v6956_v55 = vld [vmem:[#allocation7 + $0xe4] ss:$16 sps:$4 sm:$0xff]   ;;  %v6887_v12 = vld [vmem:[#allocation5 + $0xe8] ss:$16 sps:$4 sm:$0xff]  }
  0xa8   :  { %1446 = vmatprep.subr.bf16.mxu0 %v6932_v38  ;;  %v6961_v58 = vld [vmem:[#allocation7 + $0xe0] ss:$16 sps:$4 sm:$0xff]   ;;  %v6962_v59 = vld [vmem:[#allocation7 + $0x104] ss:$16 sps:$4 sm:$0xff]   ;;  %v6928_v37 = vld [vmem:[#allocation7 + $0x48] ss:$16 sps:$4 sm:$0xff]  }
  0xa9   :  { %v6967_v62 = vld [vmem:[#allocation7 + $0x100] ss:$16 sps:$4 sm:$0xff]   ;;  %v6968_v63 = vld [vmem:[#allocation7 + $0x124] ss:$16 sps:$4 sm:$0xff]   ;;  %v6936_v38 = vld [vmem:[#allocation7 + $0x6c] ss:$16 sps:$4 sm:$0xff]  }
  0xaa   :  { %573 = vmatpush1.bf16.msra.mxu1 %v6838_v15  ;;  %v6973_v2 = vld [vmem:[#allocation7 + $0x120] ss:$16 sps:$4 sm:$0xff]   ;;  %v6974_v3 = vld [vmem:[#allocation7 + $0x144] ss:$16 sps:$4 sm:$0xff]   ;;  %s8192_s0 = smov [#allocation16]  }
  0xab   :  { %574 = vmatprep.subr.bf16.mxu1 %v6839_v16  ;;  %1447 = vmatpush1.bf16.msra.mxu0 %v6937_v40  ;;  %v6979_v6 = vld [vmem:[#allocation7 + $0x140] ss:$16 sps:$4 sm:$0xff]   ;;  %v6980_v7 = vld [vmem:[#allocation7 + $0x164] ss:$16 sps:$4 sm:$0xff]   ;;  %v6890_v16 = vld [vmem:[#allocation5 + $0x108] ss:$16 sps:$4 sm:$0xff]  }
  0xac   :  { %1448 = vmatprep.subr.bf16.mxu0 %v6938_v42  ;;  %v6985_v10 = vld [vmem:[#allocation7 + $0x160] ss:$16 sps:$4 sm:$0xff]   ;;  %v6986_v11 = vld [vmem:[#allocation7 + $0x184] ss:$16 sps:$4 sm:$0xff]   ;;  %v6942_v40 = vld [vmem:[#allocation7 + $0x8c] ss:$16 sps:$4 sm:$0xff]  }
  0xad   :  { %v6991_v14 = vld [vmem:[#allocation7 + $0x180] ss:$16 sps:$4 sm:$0xff]   ;;  %v6992_v15 = vld [vmem:[#allocation7 + $0x1a4] ss:$16 sps:$4 sm:$0xff]   ;;  %v6948_v42 = vld [vmem:[#allocation7 + $0xac] ss:$16 sps:$4 sm:$0xff]  }
  0xae   :  { %575 = vmatpush1.bf16.msra.mxu1 %v6841_v18  ;;  %v6997_v18 = vld [vmem:[#allocation7 + $0x1a0] ss:$16 sps:$4 sm:$0xff]   ;;  %s5956_s27 = sshll.u32 %s8192_s0, 4  ;;  %s5957_s27 = int_to_ptr.vmem [resolvable:$true] %s5956_s27 }
  0xaf   :  { %576 = vmatprep.subr.bf16.mxu1 %v6842_v19  ;;  %1449 = vmatpush1.bf16.msra.mxu0 %v6943_v45  ;;  %v6893_v19 = vld [vmem:[#allocation5 + $0x128] ss:$16 sps:$4 sm:$0xff]   ;;  %v6998_v45 = vld [vmem:[#allocation7 + $0x1c4] ss:$16 sps:$4 sm:$0xff]   ;;  %s8146_s28 = scalar_lea.vmem %s5957_s27, 64  ;;  %p8151_p9 = scmp.lt.s32.totalorder %s5957_s27, %s5957_s27 }
  0xb0   :  { %1450 = vmatprep.subr.bf16.mxu0 %v6944_v46  ;;  %v6952_v46 = vld [vmem:[#allocation7 + $0xc8] ss:$16 sps:$4 sm:$0xff]   ;;  %p8147_p8 = scmp.ne.s32.totalorder %s5957_s27, %s8146_s28  ;;  %p8152_p10 = scmp.lt.s32.totalorder %s8146_s28, %s8146_s28 }
  0xb2   :  { %577 = vmatpush1.bf16.msra.mxu1 %v6844_v20  ;;  %v6898_v20 = vld [vmem:[#allocation5 + $0x14c] ss:$16 sps:$4 sm:$0xff]   ;;  %p8153_p11 = por %p8152_p10, %p8151_p9 }
  0xb3   :  { %578 = vmatprep.subr.bf16.mxu1 %v6845_v21  ;;  %1451 = vmatpush1.bf16.msra.mxu0 %v6949_v50  ;;  %v6896_v21 = vld [vmem:[#allocation5 + $0x148] ss:$16 sps:$4 sm:$0xff]  }
  0xb4   :  { %1452 = vmatprep.subr.bf16.mxu0 %v6950_v51  ;;  %v6958_v50 = vld [vmem:[#allocation7 + $0xe8] ss:$16 sps:$4 sm:$0xff]   ;;  %v7009_v51 = vld [vmem:[#allocation7 + $0x1e0] ss:$16 sps:$4 sm:$0xff]   ;;  %p8154_p12 = pnand %p8153_p11, %p8147_p8 }
  0xb6   :  { %579 = vmatpush1.bf16.msra.mxu1 %v6847_v22  ;;  %v6901_v22 = vld [vmem:[#allocation5 + $0x16c] ss:$16 sps:$4 sm:$0xff]  }
  0xb7   :  { %580 = vmatprep.subr.bf16.mxu1 %v6848_v23  ;;  %1453 = vmatpush1.bf16.msra.mxu0 %v6955_v54  ;;  %v6899_v23 = vld [vmem:[#allocation5 + $0x168] ss:$16 sps:$4 sm:$0xff]  }
  0xb8   :  { %1454 = vmatprep.subr.bf16.mxu0 %v6956_v55  ;;  %v6964_v54 = vld [vmem:[#allocation7 + $0x108] ss:$16 sps:$4 sm:$0xff]   ;;  %v6972_v55 = vld [vmem:[#allocation7 + $0x12c] ss:$16 sps:$4 sm:$0xff]  }
  0xba   :  { %581 = vmatpush1.bf16.msra.mxu1 %v6850_v24  ;;  %v6904_v24 = vld [vmem:[#allocation5 + $0x18c] ss:$16 sps:$4 sm:$0xff]  }
  0xbb   :  { %582 = vmatprep.subr.bf16.mxu1 %v6851_v25  ;;  %1455 = vmatpush1.bf16.msra.mxu0 %v6961_v58  ;;  %v6902_v25 = vld [vmem:[#allocation5 + $0x188] ss:$16 sps:$4 sm:$0xff]  }
  0xbc   :  { %1456 = vmatprep.subr.bf16.mxu0 %v6962_v59  ;;  %v6976_v58 = vld [vmem:[#allocation7 + $0x148] ss:$16 sps:$4 sm:$0xff]   ;;  %v6984_v59 = vld [vmem:[#allocation7 + $0x16c] ss:$16 sps:$4 sm:$0xff]  }
  0xbe   :  { %583 = vmatpush1.bf16.msra.mxu1 %v6853_v26  ;;  %v6907_v26 = vld [vmem:[#allocation5 + $0x1ac] ss:$16 sps:$4 sm:$0xff]  }
  0xbf   :  { %584 = vmatprep.subr.bf16.mxu1 %v6854_v27  ;;  %1457 = vmatpush1.bf16.msra.mxu0 %v6967_v62  ;;  %v6905_v27 = vld [vmem:[#allocation5 + $0x1a8] ss:$16 sps:$4 sm:$0xff]  }
  0xc0   :  { %1458 = vmatprep.subr.bf16.mxu0 %v6968_v63  ;;  %v6988_v62 = vld [vmem:[#allocation7 + $0x188] ss:$16 sps:$4 sm:$0xff]   ;;  %v6996_v63 = vld [vmem:[#allocation7 + $0x1ac] ss:$16 sps:$4 sm:$0xff]  }
  0xc2   :  { %585 = vmatpush1.bf16.msra.mxu1 %v6856_v31  ;;  %v6911_v31 = vld [vmem:[#allocation5 + $0x1e8] ss:$16 sps:$4 sm:$0xff]  }
  0xc3   :  { %586 = vmatprep.subr.bf16.mxu1 %v6857_v32  ;;  %1459 = vmatpush1.bf16.msra.mxu0 %v6973_v2  ;;  %v6918_v32 = vld [vmem:[#allocation7 + $0xc] ss:$16 sps:$4 sm:$0xff]   ;;  %v7000_v2 = vld [vmem:[#allocation7 + $0x1c8] ss:$16 sps:$4 sm:$0xff]  }
  0xc4   :  { %1460 = vmatprep.subr.bf16.mxu0 %v6974_v3  ;;  %v7008_v3 = vld [vmem:[#allocation7 + $0x1ec] ss:$16 sps:$4 sm:$0xff]  }
  0xc6   :  { %587 = vmatpush1.bf16.msra.mxu1 %v6859_v35  ;;  %v6922_v35 = vld [vmem:[#allocation7 + $0x28] ss:$16 sps:$4 sm:$0xff]  }
  0xc7   :  { %588 = vmatprep.subr.bf16.mxu1 %v6860_v36  ;;  %1461 = vmatpush1.bf16.msra.mxu0 %v6979_v6  ;;  %v6930_v36 = vld [vmem:[#allocation7 + $0x4c] ss:$16 sps:$4 sm:$0xff]   ;;  %v220_v6 = vlaneseq }
  0xc8   :  { %1462 = vmatprep.subr.bf16.mxu0 %v6980_v7 }
  0xc9   :  { %v8371_v7 = vshrl.u32 %v220_v6, 7  ;;  %v7087_v6 = vld [vmem:[#allocation7 + $0x38c] ss:$16 sps:$4 sm:$0xff]  }
  0xca   :  { %589 = vmatpush1.bf16.msra.mxu1 %v6862_v39  ;;  %v6934_v39 = vld [vmem:[#allocation7 + $0x68] ss:$16 sps:$4 sm:$0xff]  }
  0xcb   :  { %590 = vmatprep.subr.bf16.mxu1 %v6863_v41  ;;  %1463 = vmatpush1.bf16.msra.mxu0 %v6985_v10  ;;  %v6940_v41 = vld [vmem:[#allocation7 + $0x88] ss:$16 sps:$4 sm:$0xff]   ;;  %v8382_v10 = vsub.s32 1, %v8371_v7 }
  0xcc   :  { %1464 = vmatprep.subr.bf16.mxu0 %v6986_v11 }
  0xce   :  { %591 = vmatpush1.bf16.msra.mxu1 %v6865_v43  ;;  %v6946_v43 = vld [vmem:[#allocation7 + $0xa8] ss:$16 sps:$4 sm:$0xff]  }
  0xcf   :  { %601 = vmatprep.subr.bf16.mxu1 %v6868_v44  ;;  %1465 = vmatpush1.bf16.msra.mxu0 %v6991_v14  ;;  %v6954_v44 = vld [vmem:[#allocation7 + $0xcc] ss:$16 sps:$4 sm:$0xff]  }
  0xd0   :  { %1466 = vmatprep.subr.bf16.mxu0 %v6992_v15 }
  0xd1   :  { %593 = vmatmul.mubr.bf16.vlgmr.msra.gmra.mrb[0].mxu1 %v8366_v47 }
  0xd2   :  { %602 = vmatpush1.bf16.msra.mxu1 %v6866_v48  ;;  %633 = vmatprep.mubr.bf16.mxu1 %v8361_v17  ;;  %v6895_v17 = vld [vmem:[#allocation5 + $0x12c] ss:$16 sps:$4 sm:$0xff]  }
  0xd3   :  { %603 = vmatprep.subr.bf16.mxu1 %v6871_v49  ;;  %1467 = vmatpush1.bf16.msra.mxu0 %v6997_v18  ;;  %v6960_v48 = vld [vmem:[#allocation7 + $0xec] ss:$16 sps:$4 sm:$0xff]   ;;  %v7004_v49 = vld [vmem:[#allocation7 + $0x1e4] ss:$16 sps:$4 sm:$0xff]  }
  0xd4   :  { %1468 = vmatprep.subr.bf16.mxu0 %v6998_v45  ;;  %v7048_v45 = vld [vmem:[#allocation7 + $0x2c4] ss:$16 sps:$4 sm:$0xff]  }
  0xd6   :  { %604 = vmatpush1.bf16.msra.mxu1 %v6869_v52  ;;  %v6966_v52 = vld [vmem:[#allocation7 + $0x10c] ss:$16 sps:$4 sm:$0xff]  }
  0xd7   :  { %605 = vmatprep.subr.bf16.mxu1 %v6874_v53  ;;  %v7012_v53 = vld [vmem:[#allocation7 + $0x204] ss:$16 sps:$4 sm:$0xff]  }
  0xda   :  { %606 = vmatpush1.bf16.msra.mxu1 %v6872_v56  ;;  %v6970_v56 = vld [vmem:[#allocation7 + $0x128] ss:$16 sps:$4 sm:$0xff]  }
  0xdb   :  { %607 = vmatprep.subr.bf16.mxu1 %v6877_v57  ;;  %v6978_v57 = vld [vmem:[#allocation7 + $0x14c] ss:$16 sps:$4 sm:$0xff]  }
  0xde   :  { %608 = vmatpush1.bf16.msra.mxu1 %v6875_v60  ;;  %v6982_v60 = vld [vmem:[#allocation7 + $0x168] ss:$16 sps:$4 sm:$0xff]  }
  0xdf   :  { %609 = vmatprep.subr.bf16.mxu1 %v6880_v61  ;;  %v6990_v61 = vld [vmem:[#allocation7 + $0x18c] ss:$16 sps:$4 sm:$0xff]  }
  0xe2   :  { %610 = vmatpush1.bf16.msra.mxu1 %v6878_v0  ;;  %v6994_v0 = vld [vmem:[#allocation7 + $0x1a8] ss:$16 sps:$4 sm:$0xff]  }
  0xe3   :  { %611 = vmatprep.subr.bf16.mxu1 %v6883_v1  ;;  %v7002_v1 = vld [vmem:[#allocation7 + $0x1cc] ss:$16 sps:$4 sm:$0xff]  }
  0xe6   :  { %612 = vmatpush1.bf16.msra.mxu1 %v6881_v4  ;;  %v7006_v4 = vld [vmem:[#allocation7 + $0x1e8] ss:$16 sps:$4 sm:$0xff]  }
  0xe7   :  { %613 = vmatprep.subr.bf16.mxu1 %v6886_v5  ;;  %v7015_v5 = vld [vmem:[#allocation7 + $0x20c] ss:$16 sps:$4 sm:$0xff]  }
  0xea   :  { %614 = vmatpush1.bf16.msra.mxu1 %v6884_v8  ;;  %v8374_v8 = vsub.s32 0, %v8371_v7 }
  0xeb   :  { %615 = vmatprep.subr.bf16.mxu1 %v6889_v9  ;;  %v8379_v9 = vld [vmem:[%s8503_s8] sm:$0xf] }
  0xec   :  { %v223_v11 = vrot.slane %v8379_v9, %v8374_v8 }
  0xee   :  { %616 = vmatpush1.bf16.msra.mxu1 %v6887_v12  ;;  %v227_v12 = vrot.slane %v8379_v9, %v8382_v10 }
  0xef   :  { %617 = vmatprep.subr.bf16.mxu1 %v6892_v13 }
  0xf2   :  { %618 = vmatpush1.bf16.msra.mxu1 %v6890_v16 }
  0xf3   :  { %619 = vmatprep.subr.bf16.mxu1 %v6895_v17 }
  0xf6   :  { %620 = vmatpush1.bf16.msra.mxu1 %v6893_v19 }
  0xf7   :  { %621 = vmatprep.subr.bf16.mxu1 %v6898_v20 }
  0xfa   :  { %622 = vmatpush1.bf16.msra.mxu1 %v6896_v21  ;;  %v7010_v21 = vld [vmem:[#allocation7 + $0x200] ss:$16 sps:$4 sm:$0xff]  }
  0xfb   :  { %623 = vmatprep.subr.bf16.mxu1 %v6901_v22  ;;  %v7013_v22 = vld [vmem:[#allocation7 + $0x208] ss:$16 sps:$4 sm:$0xff]  }
  0xfe   :  { %624 = vmatpush1.bf16.msra.mxu1 %v6899_v23 }
  0xff   :  { %625 = vmatprep.subr.bf16.mxu1 %v6904_v24  ;;  %v7018_v24 = vld [vmem:[#allocation7 + $0x224] ss:$16 sps:$4 sm:$0xff]  }
 0x102   :  { %626 = vmatpush1.bf16.msra.mxu1 %v6902_v25  ;;  %v7021_v25 = vld [vmem:[#allocation7 + $0x22c] ss:$16 sps:$4 sm:$0xff]  }
 0x103   :  { %627 = vmatprep.subr.bf16.mxu1 %v6907_v26 }
 0x106   :  { %628 = vmatpush1.bf16.msra.mxu1 %v6905_v27  ;;  %v7016_v27 = vld [vmem:[#allocation7 + $0x220] ss:$16 sps:$4 sm:$0xff]  }
 0x107   :  { %629 = vmatprep.subr.bf16.mxu1 %v6910_v28  ;;  %v7019_v28 = vld [vmem:[#allocation7 + $0x228] ss:$16 sps:$4 sm:$0xff]  }
 0x10a   :  { %630 = vmatpush1.bf16.msra.mxu1 %v6908_v29  ;;  %v7024_v29 = vld [vmem:[#allocation7 + $0x244] ss:$16 sps:$4 sm:$0xff]  }
 0x10b   :  { %631 = vmatprep.subr.bf16.mxu1 %v6913_v30  ;;  %v7027_v30 = vld [vmem:[#allocation7 + $0x24c] ss:$16 sps:$4 sm:$0xff]  }
 0x10e   :  { %632 = vmatpush1.bf16.msra.mxu1 %v6911_v31  ;;  %v7022_v31 = vld [vmem:[#allocation7 + $0x240] ss:$16 sps:$4 sm:$0xff]  }
 0x10f   :  { %1522 = vmatprep.subr.bf16.mxu1 %v6918_v32  ;;  %v7025_v32 = vld [vmem:[#allocation7 + $0x248] ss:$16 sps:$4 sm:$0xff]  }
 0x111   :  { %634 = vmatmul.mubr.bf16.vlgmr.msra.gmra.mrb[4].mxu1 %v8366_v47  ;;  %v7003_v47 = vld [vmem:[#allocation7 + $0x1c0] ss:$16 sps:$4 sm:$0xff]  }
 0x112   :  { %1523 = vmatpush1.bf16.msra.mxu1 %v6916_v33  ;;  %1469 = vmatpush1.bf16.msra.mxu0 %v7003_v47  ;;  %v7030_v33 = vld [vmem:[#allocation7 + $0x264] ss:$16 sps:$4 sm:$0xff]   ;;  %v7046_v47 = vld [vmem:[#allocation7 + $0x2c0] ss:$16 sps:$4 sm:$0xff]  }
 0x113   :  { %1524 = vmatprep.subr.bf16.mxu1 %v6924_v34  ;;  %1470 = vmatprep.subr.bf16.mxu0 %v7004_v49  ;;  %v7033_v34 = vld [vmem:[#allocation7 + $0x26c] ss:$16 sps:$4 sm:$0xff]   ;;  %v7054_v49 = vld [vmem:[#allocation7 + $0x2e4] ss:$16 sps:$4 sm:$0xff]  }
 0x116   :  { %1525 = vmatpush1.bf16.msra.mxu1 %v6922_v35  ;;  %1471 = vmatpush1.bf16.msra.mxu0 %v7009_v51  ;;  %v7028_v35 = vld [vmem:[#allocation7 + $0x260] ss:$16 sps:$4 sm:$0xff]  }
 0x117   :  { %1526 = vmatprep.subr.bf16.mxu1 %v6930_v36  ;;  %1481 = vmatprep.subr.bf16.mxu0 %v7012_v53  ;;  %v7031_v36 = vld [vmem:[#allocation7 + $0x268] ss:$16 sps:$4 sm:$0xff]   ;;  %v7052_v51 = vld [vmem:[#allocation7 + $0x2e0] ss:$16 sps:$4 sm:$0xff]   ;;  %v7060_v53 = vld [vmem:[#allocation7 + $0x304] ss:$16 sps:$4 sm:$0xff]  }
 0x11a   :  { %1527 = vmatpush1.bf16.msra.mxu1 %v6928_v37  ;;  %v7036_v37 = vld [vmem:[#allocation7 + $0x284] ss:$16 sps:$4 sm:$0xff]  }
 0x11b   :  { %1528 = vmatprep.subr.bf16.mxu1 %v6936_v38  ;;  %v7039_v38 = vld [vmem:[#allocation7 + $0x28c] ss:$16 sps:$4 sm:$0xff]  }
 0x11e   :  { %1529 = vmatpush1.bf16.msra.mxu1 %v6934_v39  ;;  %v7034_v39 = vld [vmem:[#allocation7 + $0x280] ss:$16 sps:$4 sm:$0xff]  }
 0x11f   :  { %1530 = vmatprep.subr.bf16.mxu1 %v6942_v40  ;;  %v7037_v40 = vld [vmem:[#allocation7 + $0x288] ss:$16 sps:$4 sm:$0xff]  }
 0x122   :  { %1531 = vmatpush1.bf16.msra.mxu1 %v6940_v41  ;;  %v7042_v41 = vld [vmem:[#allocation7 + $0x2a4] ss:$16 sps:$4 sm:$0xff]  }
 0x123   :  { %1532 = vmatprep.subr.bf16.mxu1 %v6948_v42  ;;  %v7045_v42 = vld [vmem:[#allocation7 + $0x2ac] ss:$16 sps:$4 sm:$0xff]  }
 0x126   :  { %1533 = vmatpush1.bf16.msra.mxu1 %v6946_v43  ;;  %v7040_v43 = vld [vmem:[#allocation7 + $0x2a0] ss:$16 sps:$4 sm:$0xff]  }
 0x127   :  { %1534 = vmatprep.subr.bf16.mxu1 %v6954_v44  ;;  %v7043_v44 = vld [vmem:[#allocation7 + $0x2a8] ss:$16 sps:$4 sm:$0xff]  }
 0x12a   :  { %1535 = vmatpush1.bf16.msra.mxu1 %v6952_v46  ;;  %v7051_v46 = vld [vmem:[#allocation7 + $0x2cc] ss:$16 sps:$4 sm:$0xff]  }
 0x12b   :  { %1536 = vmatprep.subr.bf16.mxu1 %v6960_v48  ;;  %v7049_v48 = vld [vmem:[#allocation7 + $0x2c8] ss:$16 sps:$4 sm:$0xff]  }
 0x12e   :  { %1537 = vmatpush1.bf16.msra.mxu1 %v6958_v50  ;;  %v7057_v50 = vld [vmem:[#allocation7 + $0x2ec] ss:$16 sps:$4 sm:$0xff]  }
 0x12f   :  { %1538 = vmatprep.subr.bf16.mxu1 %v6966_v52  ;;  %v7055_v52 = vld [vmem:[#allocation7 + $0x2e8] ss:$16 sps:$4 sm:$0xff]  }
 0x132   :  { %1539 = vmatpush1.bf16.msra.mxu1 %v6964_v54  ;;  %v7063_v54 = vld [vmem:[#allocation7 + $0x30c] ss:$16 sps:$4 sm:$0xff]  }
 0x133   :  { %1540 = vmatprep.subr.bf16.mxu1 %v6972_v55  ;;  %v7058_v55 = vld [vmem:[#allocation7 + $0x300] ss:$16 sps:$4 sm:$0xff]  }
 0x136   :  { %1541 = vmatpush1.bf16.msra.mxu1 %v6970_v56  ;;  %v7061_v56 = vld [vmem:[#allocation7 + $0x308] ss:$16 sps:$4 sm:$0xff]  }
 0x137   :  { %1542 = vmatprep.subr.bf16.mxu1 %v6978_v57  ;;  %v7066_v57 = vld [vmem:[#allocation7 + $0x324] ss:$16 sps:$4 sm:$0xff]  }
 0x13a   :  { %1543 = vmatpush1.bf16.msra.mxu1 %v6976_v58  ;;  %v7069_v58 = vld [vmem:[#allocation7 + $0x32c] ss:$16 sps:$4 sm:$0xff]  }
 0x13b   :  { %1544 = vmatprep.subr.bf16.mxu1 %v6984_v59  ;;  %v7064_v59 = vld [vmem:[#allocation7 + $0x320] ss:$16 sps:$4 sm:$0xff]  }
 0x13e   :  { %1545 = vmatpush1.bf16.msra.mxu1 %v6982_v60  ;;  %v7067_v60 = vld [vmem:[#allocation7 + $0x328] ss:$16 sps:$4 sm:$0xff]  }
 0x13f   :  { %1546 = vmatprep.subr.bf16.mxu1 %v6990_v61  ;;  %v7072_v61 = vld [vmem:[#allocation7 + $0x344] ss:$16 sps:$4 sm:$0xff]  }
 0x142   :  { %1547 = vmatpush1.bf16.msra.mxu1 %v6988_v62  ;;  %v7075_v62 = vld [vmem:[#allocation7 + $0x34c] ss:$16 sps:$4 sm:$0xff]  }
 0x143   :  { %1548 = vmatprep.subr.bf16.mxu1 %v6996_v63  ;;  %v7070_v63 = vld [vmem:[#allocation7 + $0x340] ss:$16 sps:$4 sm:$0xff]  }
 0x146   :  { %1549 = vmatpush1.bf16.msra.mxu1 %v6994_v0  ;;  %v7073_v0 = vld [vmem:[#allocation7 + $0x348] ss:$16 sps:$4 sm:$0xff]  }
 0x147   :  { %1550 = vmatprep.subr.bf16.mxu1 %v7002_v1  ;;  %v7078_v1 = vld [vmem:[#allocation7 + $0x364] ss:$16 sps:$4 sm:$0xff]  }
 0x14a   :  { %1551 = vmatpush1.bf16.msra.mxu1 %v7000_v2  ;;  %v7081_v2 = vld [vmem:[#allocation7 + $0x36c] ss:$16 sps:$4 sm:$0xff]  }
 0x14b   :  { %1552 = vmatprep.subr.bf16.mxu1 %v7008_v3  ;;  %v7076_v3 = vld [vmem:[#allocation7 + $0x360] ss:$16 sps:$4 sm:$0xff]  }
 0x14e   :  { %1553 = vmatpush1.bf16.msra.mxu1 %v7006_v4  ;;  %v7079_v4 = vld [vmem:[#allocation7 + $0x368] ss:$16 sps:$4 sm:$0xff]  }
 0x14f   :  { %1563 = vmatprep.subr.bf16.mxu1 %v7015_v5  ;;  %v7084_v5 = vld [vmem:[#allocation7 + $0x384] ss:$16 sps:$4 sm:$0xff]  }
 0x1a4   :  { %v594_v13 = vpop.f32.mrb[0].mxu1 }
 0x1a5   :  { %v595_v14 = vadd.f32 %v594_v13, %v223_v11  ;;  %v596_v15 = vpop.f32.mrb[1].mxu1  ;;  %v7082_v11 = vld [vmem:[#allocation7 + $0x380] ss:$16 sps:$4 sm:$0xff]   ;;  %v7090_v13 = vld [vmem:[#allocation7 + $0x3a4] ss:$16 sps:$4 sm:$0xff]  }
 0x1a6   :  { %v597_v16 = vadd.f32 %v596_v15, %v227_v12  ;;  %v598_v17 = vpop.f32.mrb[2].mxu1  ;;  %v7085_v12 = vld [vmem:[#allocation7 + $0x388] ss:$16 sps:$4 sm:$0xff]   ;;  %v7088_v15 = vld [vmem:[#allocation7 + $0x3a0] ss:$16 sps:$4 sm:$0xff]  }
 0x1a7   :  { %v642_v18 = vmax.f32 %v595_v14, 0.0  ;;  %v599_v19 = vpop.f32.mrb[3].mxu1  ;;  %v7093_v14 = vld [vmem:[#allocation7 + $0x3ac] ss:$16 sps:$4 sm:$0xff]   ;;  %v8389_v17 = vsub.s32 2, %v8371_v7 }
 0x1a8   :  { %v643_v20 = vmax.f32 %v597_v16, 0.0  ;;  %v7091_v16 = vld [vmem:[#allocation7 + $0x3a8] ss:$16 sps:$4 sm:$0xff]   ;;  %v7099_v19 = vld [vmem:[#allocation7 + $0x3cc] ss:$16 sps:$4 sm:$0xff]  }
 0x1a9   :  { %v775_v23 = vpack.c.bf16 %v642_v18, %v642_v18  ;;  %v7096_v18 = vld [vmem:[#allocation7 + $0x3c4] ss:$16 sps:$4 sm:$0xff]  }
 0x1aa   :  { %v776_v26 = vpack.c.bf16 %v643_v20, %v643_v20  ;;  %v8392_v20 = vsub.s32 3, %v8371_v7 }
 0x1ac   :  { %1472 = vmatprep.mubr.bf16.mxu0 %v776_v26  ;;  %1554 = vmatprep.mubr.bf16.mxu1 %v776_v26  ;;  %v7105_v26 = vld [vmem:[#allocation7 + $0x3ec] ss:$16 sps:$4 sm:$0xff]  }
 0x1ad   :  { %1473 = vmatmul.mubr.bf16.vlgmr.msra.gmra.mrb[0].mxu0 %v775_v23  ;;  %1555 = vmatmul.mubr.bf16.vlgmr.msra.gmra.mrb[8].mxu1 %v775_v23  ;;  %v231_v23 = vrot.slane %v8379_v9, %v8389_v17 }
 0x1ae   :  { %1482 = vmatpush1.bf16.msra.mxu0 %v7010_v21  ;;  %1564 = vmatpush1.bf16.msra.mxu1 %v7013_v22  ;;  %v7094_v21 = vld [vmem:[#allocation7 + $0x3c0] ss:$16 sps:$4 sm:$0xff]   ;;  %v7097_v22 = vld [vmem:[#allocation7 + $0x3c8] ss:$16 sps:$4 sm:$0xff]  }
 0x1af   :  { %1483 = vmatprep.subr.bf16.mxu0 %v7018_v24  ;;  %1565 = vmatprep.subr.bf16.mxu1 %v7021_v25  ;;  %v235_v24 = vrot.slane %v8379_v9, %v8392_v20  ;;  %v7102_v25 = vld [vmem:[#allocation7 + $0x3e4] ss:$16 sps:$4 sm:$0xff]  }
 0x1b2   :  { %1484 = vmatpush1.bf16.msra.mxu0 %v7016_v27  ;;  %1566 = vmatpush1.bf16.msra.mxu1 %v7019_v28 }
 0x1b3   :  { %1485 = vmatprep.subr.bf16.mxu0 %v7024_v29  ;;  %1567 = vmatprep.subr.bf16.mxu1 %v7027_v30 }
 0x1b6   :  { %1486 = vmatpush1.bf16.msra.mxu0 %v7022_v31  ;;  %1568 = vmatpush1.bf16.msra.mxu1 %v7025_v32  ;;  %v7100_v31 = vld [vmem:[#allocation7 + $0x3e0] ss:$16 sps:$4 sm:$0xff]   ;;  %v7103_v32 = vld [vmem:[#allocation7 + $0x3e8] ss:$16 sps:$4 sm:$0xff]  }
 0x1b7   :  { %1487 = vmatprep.subr.bf16.mxu0 %v7030_v33  ;;  %1569 = vmatprep.subr.bf16.mxu1 %v7033_v34 }
 0x1ba   :  { %1488 = vmatpush1.bf16.msra.mxu0 %v7028_v35  ;;  %1570 = vmatpush1.bf16.msra.mxu1 %v7031_v36  ;;  %v7108_v35 = vld [vmem:[#allocation8 + $0x4] ss:$16 sps:$4 sm:$0xff]   ;;  %v7111_v36 = vld [vmem:[#allocation8 + $0xc] ss:$16 sps:$4 sm:$0xff]  }
 0x1bb   :  { %1489 = vmatprep.subr.bf16.mxu0 %v7036_v37  ;;  %1571 = vmatprep.subr.bf16.mxu1 %v7039_v38  ;;  %v7106_v38 = vld [vmem:[#allocation8] ss:$16 sps:$4 sm:$0xff]  }
 0x1be   :  { %1490 = vmatpush1.bf16.msra.mxu0 %v7034_v39  ;;  %1572 = vmatpush1.bf16.msra.mxu1 %v7037_v40  ;;  %v7109_v39 = vld [vmem:[#allocation8 + $0x8] ss:$16 sps:$4 sm:$0xff]  }
 0x1bf   :  { %1491 = vmatprep.subr.bf16.mxu0 %v7042_v41  ;;  %1573 = vmatprep.subr.bf16.mxu1 %v7045_v42  ;;  %v7114_v41 = vld [vmem:[#allocation8 + $0x24] ss:$16 sps:$4 sm:$0xff]   ;;  %v7117_v42 = vld [vmem:[#allocation8 + $0x2c] ss:$16 sps:$4 sm:$0xff]  }
 0x1c2   :  { %1492 = vmatpush1.bf16.msra.mxu0 %v7040_v43  ;;  %1574 = vmatpush1.bf16.msra.mxu1 %v7043_v44  ;;  %v7112_v43 = vld [vmem:[#allocation8 + $0x20] ss:$16 sps:$4 sm:$0xff]   ;;  %v7115_v44 = vld [vmem:[#allocation8 + $0x28] ss:$16 sps:$4 sm:$0xff]  }
 0x1c3   :  { %1493 = vmatprep.subr.bf16.mxu0 %v7048_v45  ;;  %1575 = vmatprep.subr.bf16.mxu1 %v7051_v46  ;;  %v7120_v45 = vld [vmem:[#allocation8 + $0x44] ss:$16 sps:$4 sm:$0xff]   ;;  %v7123_v46 = vld [vmem:[#allocation8 + $0x4c] ss:$16 sps:$4 sm:$0xff]  }
 0x1c6   :  { %1494 = vmatpush1.bf16.msra.mxu0 %v7046_v47  ;;  %1576 = vmatpush1.bf16.msra.mxu1 %v7049_v48  ;;  %v7118_v47 = vld [vmem:[#allocation8 + $0x40] ss:$16 sps:$4 sm:$0xff]   ;;  %v7121_v48 = vld [vmem:[#allocation8 + $0x48] ss:$16 sps:$4 sm:$0xff]  }
 0x1c7   :  { %1495 = vmatprep.subr.bf16.mxu0 %v7054_v49  ;;  %1577 = vmatprep.subr.bf16.mxu1 %v7057_v50  ;;  %v7126_v49 = vld [vmem:[#allocation8 + $0x64] ss:$16 sps:$4 sm:$0xff]   ;;  %v7129_v50 = vld [vmem:[#allocation8 + $0x6c] ss:$16 sps:$4 sm:$0xff]  }
 0x1ca   :  { %1496 = vmatpush1.bf16.msra.mxu0 %v7052_v51  ;;  %1578 = vmatpush1.bf16.msra.mxu1 %v7055_v52  ;;  %v7124_v51 = vld [vmem:[#allocation8 + $0x60] ss:$16 sps:$4 sm:$0xff]   ;;  %v7127_v52 = vld [vmem:[#allocation8 + $0x68] ss:$16 sps:$4 sm:$0xff]  }
 0x1cb   :  { %1497 = vmatprep.subr.bf16.mxu0 %v7060_v53  ;;  %1579 = vmatprep.subr.bf16.mxu1 %v7063_v54  ;;  %v7132_v53 = vld [vmem:[#allocation8 + $0x84] ss:$16 sps:$4 sm:$0xff]   ;;  %v7135_v54 = vld [vmem:[#allocation8 + $0x8c] ss:$16 sps:$4 sm:$0xff]  }
 0x1ce   :  { %1498 = vmatpush1.bf16.msra.mxu0 %v7058_v55  ;;  %1580 = vmatpush1.bf16.msra.mxu1 %v7061_v56  ;;  %v7130_v55 = vld [vmem:[#allocation8 + $0x80] ss:$16 sps:$4 sm:$0xff]   ;;  %v7133_v56 = vld [vmem:[#allocation8 + $0x88] ss:$16 sps:$4 sm:$0xff]  }
 0x1cf   :  { %1499 = vmatprep.subr.bf16.mxu0 %v7066_v57  ;;  %1581 = vmatprep.subr.bf16.mxu1 %v7069_v58  ;;  %v7138_v57 = vld [vmem:[#allocation8 + $0xa4] ss:$16 sps:$4 sm:$0xff]   ;;  %v7141_v58 = vld [vmem:[#allocation8 + $0xac] ss:$16 sps:$4 sm:$0xff]  }
 0x1d2   :  { %1500 = vmatpush1.bf16.msra.mxu0 %v7064_v59  ;;  %1582 = vmatpush1.bf16.msra.mxu1 %v7067_v60  ;;  %v7136_v59 = vld [vmem:[#allocation8 + $0xa0] ss:$16 sps:$4 sm:$0xff]   ;;  %v7139_v60 = vld [vmem:[#allocation8 + $0xa8] ss:$16 sps:$4 sm:$0xff]  }
 0x1d3   :  { %1501 = vmatprep.subr.bf16.mxu0 %v7072_v61  ;;  %1583 = vmatprep.subr.bf16.mxu1 %v7075_v62  ;;  %v7144_v61 = vld [vmem:[#allocation8 + $0xc4] ss:$16 sps:$4 sm:$0xff]   ;;  %v7147_v62 = vld [vmem:[#allocation8 + $0xcc] ss:$16 sps:$4 sm:$0xff]  }
 0x1d6   :  { %1502 = vmatpush1.bf16.msra.mxu0 %v7070_v63  ;;  %1584 = vmatpush1.bf16.msra.mxu1 %v7073_v0  ;;  %v7142_v63 = vld [vmem:[#allocation8 + $0xc0] ss:$16 sps:$4 sm:$0xff]   ;;  %v7145_v0 = vld [vmem:[#allocation8 + $0xc8] ss:$16 sps:$4 sm:$0xff]  }
 0x1d7   :  { %1503 = vmatprep.subr.bf16.mxu0 %v7078_v1  ;;  %1585 = vmatprep.subr.bf16.mxu1 %v7081_v2  ;;  %v7150_v1 = vld [vmem:[#allocation8 + $0xe4] ss:$16 sps:$4 sm:$0xff]   ;;  %v7153_v2 = vld [vmem:[#allocation8 + $0xec] ss:$16 sps:$4 sm:$0xff]  }
 0x1da   :  { %1504 = vmatpush1.bf16.msra.mxu0 %v7076_v3  ;;  %1586 = vmatpush1.bf16.msra.mxu1 %v7079_v4  ;;  %v7148_v3 = vld [vmem:[#allocation8 + $0xe0] ss:$16 sps:$4 sm:$0xff]   ;;  %v7151_v4 = vld [vmem:[#allocation8 + $0xe8] ss:$16 sps:$4 sm:$0xff]  }
 0x1db   :  { %1505 = vmatprep.subr.bf16.mxu0 %v7084_v5  ;;  %1587 = vmatprep.subr.bf16.mxu1 %v7087_v6  ;;  %v7156_v5 = vld [vmem:[#allocation8 + $0x104] ss:$16 sps:$4 sm:$0xff]   ;;  %v7159_v6 = vld [vmem:[#allocation8 + $0x10c] ss:$16 sps:$4 sm:$0xff]  }
 0x1de   :  { %1506 = vmatpush1.bf16.msra.mxu0 %v7082_v11  ;;  %1588 = vmatpush1.bf16.msra.mxu1 %v7085_v12  ;;  %v7154_v11 = vld [vmem:[#allocation8 + $0x100] ss:$16 sps:$4 sm:$0xff]   ;;  %v7157_v12 = vld [vmem:[#allocation8 + $0x108] ss:$16 sps:$4 sm:$0xff]  }
 0x1df   :  { %1507 = vmatprep.subr.bf16.mxu0 %v7090_v13  ;;  %1589 = vmatprep.subr.bf16.mxu1 %v7093_v14  ;;  %v7162_v13 = vld [vmem:[#allocation8 + $0x124] ss:$16 sps:$4 sm:$0xff]   ;;  %v7165_v14 = vld [vmem:[#allocation8 + $0x12c] ss:$16 sps:$4 sm:$0xff]  }
 0x1e2   :  { %1508 = vmatpush1.bf16.msra.mxu0 %v7088_v15  ;;  %1590 = vmatpush1.bf16.msra.mxu1 %v7091_v16  ;;  %v7160_v15 = vld [vmem:[#allocation8 + $0x120] ss:$16 sps:$4 sm:$0xff]   ;;  %v7163_v16 = vld [vmem:[#allocation8 + $0x128] ss:$16 sps:$4 sm:$0xff]  }
 0x1e3   :  { %1509 = vmatprep.subr.bf16.mxu0 %v7096_v18  ;;  %1591 = vmatprep.subr.bf16.mxu1 %v7099_v19  ;;  %v7168_v18 = vld [vmem:[#allocation8 + $0x144] ss:$16 sps:$4 sm:$0xff]   ;;  %v7171_v19 = vld [vmem:[#allocation8 + $0x14c] ss:$16 sps:$4 sm:$0xff]  }
 0x1e4   :  { %v635_v27 = vpop.f32.mrb[4].mxu1 }
 0x1e5   :  { %v636_v28 = vadd.f32 %v635_v27, %v231_v23  ;;  %v637_v7 = vpop.f32.mrb[5].mxu1  ;;  %v7174_v23 = vld [vmem:[#allocation8 + $0x164] ss:$16 sps:$4 sm:$0xff]  }
 0x1e6   :  { %v638_v29 = vadd.f32 %v637_v7, %v235_v24  ;;  %v639_v30 = vpop.f32.mrb[6].mxu1  ;;  %1510 = vmatpush1.bf16.msra.mxu0 %v7094_v21  ;;  %1592 = vmatpush1.bf16.msra.mxu1 %v7097_v22  ;;  %v7166_v21 = vld [vmem:[#allocation8 + $0x140] ss:$16 sps:$4 sm:$0xff]   ;;  %v7169_v22 = vld [vmem:[#allocation8 + $0x148] ss:$16 sps:$4 sm:$0xff]  }
 0x1e7   :  { %v644_v33 = vmax.f32 %v636_v28, 0.0  ;;  %v640_v34 = vpop.f32.mrb[7].mxu1  ;;  %1511 = vmatprep.subr.bf16.mxu0 %v7102_v25  ;;  %1593 = vmatprep.subr.bf16.mxu1 %v7105_v26  ;;  %v7177_v24 = vld [vmem:[#allocation8 + $0x16c] ss:$16 sps:$4 sm:$0xff]   ;;  %v7172_v25 = vld [vmem:[#allocation8 + $0x160] ss:$16 sps:$4 sm:$0xff]  }
 0x1e8   :  { %v645_v9 = vmax.f32 %v638_v29, 0.0  ;;  %v7175_v26 = vld [vmem:[#allocation8 + $0x168] ss:$16 sps:$4 sm:$0xff]   ;;  %v7180_v27 = vld [vmem:[#allocation8 + $0x184] ss:$16 sps:$4 sm:$0xff]  }
 0x1e9   :  { %v777_v40 = vpack.c.bf16 %v644_v33, %v644_v33  ;;  %v7183_v28 = vld [vmem:[#allocation8 + $0x18c] ss:$16 sps:$4 sm:$0xff]   ;;  %v7178_v7 = vld [vmem:[#allocation8 + $0x180] ss:$16 sps:$4 sm:$0xff]   ;;  %v7181_v29 = vld [vmem:[#allocation8 + $0x188] ss:$16 sps:$4 sm:$0xff]  }
 0x1ea   :  { %v778_v37 = vpack.c.bf16 %v645_v9, %v645_v9  ;;  %1512 = vmatpush1.bf16.msra.mxu0 %v7100_v31  ;;  %1594 = vmatpush1.bf16.msra.mxu1 %v7103_v32  ;;  %v7186_v30 = vld [vmem:[#allocation8 + $0x1a4] ss:$16 sps:$4 sm:$0xff]   ;;  %v7189_v31 = vld [vmem:[#allocation8 + $0x1ac] ss:$16 sps:$4 sm:$0xff]   ;;  %v7184_v32 = vld [vmem:[#allocation8 + $0x1a0] ss:$16 sps:$4 sm:$0xff]  }
 0x1eb   :  { %2402 = vmatprep.subr.bf16.mxu0 %v7108_v35  ;;  %2484 = vmatprep.subr.bf16.mxu1 %v7111_v36  ;;  %v7187_v33 = vld [vmem:[#allocation8 + $0x1a8] ss:$16 sps:$4 sm:$0xff]   ;;  %v7192_v34 = vld [vmem:[#allocation8 + $0x1c4] ss:$16 sps:$4 sm:$0xff]   ;;  %v7195_v35 = vld [vmem:[#allocation8 + $0x1cc] ss:$16 sps:$4 sm:$0xff]  }
 0x1ec   :  { %1513 = vmatprep.mubr.bf16.mxu0 %v778_v37  ;;  %1595 = vmatprep.mubr.bf16.mxu1 %v778_v37  ;;  %v7190_v36 = vld [vmem:[#allocation8 + $0x1c0] ss:$16 sps:$4 sm:$0xff]   ;;  %v7193_v9 = vld [vmem:[#allocation8 + $0x1c8] ss:$16 sps:$4 sm:$0xff]   ;;  %v7198_v37 = vld [vmem:[#allocation8 + $0x1e4] ss:$16 sps:$4 sm:$0xff]  }
 0x1ed   :  { %1514 = vmatmul.mubr.bf16.vlgmr.msra.gmra.mrb[0].mxu0 %v777_v40  ;;  %1596 = vmatmul.mubr.bf16.vlgmr.msra.gmra.mrb[8].mxu1 %v777_v40  ;;  %v7199_v40 = vld [vmem:[#allocation8 + $0x1e8] ss:$16 sps:$4 sm:$0xff]  }
 0x1ee   :  { %2403 = vmatpush1.bf16.msra.mxu0 %v7106_v38  ;;  %2485 = vmatpush1.bf16.msra.mxu1 %v7109_v39  ;;  %v7201_v38 = vld [vmem:[#allocation8 + $0x1ec] ss:$16 sps:$4 sm:$0xff]   ;;  %v7196_v39 = vld [vmem:[#allocation8 + $0x1e0] ss:$16 sps:$4 sm:$0xff]  }
 0x1ef   :  { %2404 = vmatprep.subr.bf16.mxu0 %v7114_v41  ;;  %2486 = vmatprep.subr.bf16.mxu1 %v7117_v42  ;;  %v7204_v41 = vld [vmem:[#allocation8 + $0x204] ss:$16 sps:$4 sm:$0xff]   ;;  %v7207_v42 = vld [vmem:[#allocation8 + $0x20c] ss:$16 sps:$4 sm:$0xff]  }
 0x1f2   :  { %2405 = vmatpush1.bf16.msra.mxu0 %v7112_v43  ;;  %2487 = vmatpush1.bf16.msra.mxu1 %v7115_v44  ;;  %v8401_v43 = vld [vmem:[%s8503_s8 + $0x4] sm:$0xf] }
 0x1f3   :  { %2406 = vmatprep.subr.bf16.mxu0 %v7120_v45  ;;  %2488 = vmatprep.subr.bf16.mxu1 %v7123_v46  ;;  %v783_v44 = vrot.slane %v8401_v43, %v8374_v8  ;;  %v787_v45 = vrot.slane %v8401_v43, %v8382_v10  ;;  %v795_v46 = vrot.slane %v8401_v43, %v8392_v20 }
 0x1f6   :  { %2407 = vmatpush1.bf16.msra.mxu0 %v7118_v47  ;;  %2489 = vmatpush1.bf16.msra.mxu1 %v7121_v48 }
 0x1f7   :  { %2408 = vmatprep.subr.bf16.mxu0 %v7126_v49  ;;  %2490 = vmatprep.subr.bf16.mxu1 %v7129_v50 }
 0x1fa   :  { %2409 = vmatpush1.bf16.msra.mxu0 %v7124_v51  ;;  %2491 = vmatpush1.bf16.msra.mxu1 %v7127_v52 }
 0x1fb   :  { %2410 = vmatprep.subr.bf16.mxu0 %v7132_v53  ;;  %2492 = vmatprep.subr.bf16.mxu1 %v7135_v54 }
 0x1fe   :  { %2411 = vmatpush1.bf16.msra.mxu0 %v7130_v55  ;;  %2493 = vmatpush1.bf16.msra.mxu1 %v7133_v56 }
 0x1ff   :  { %2412 = vmatprep.subr.bf16.mxu0 %v7138_v57  ;;  %2494 = vmatprep.subr.bf16.mxu1 %v7141_v58 }
 0x202   :  { %2413 = vmatpush1.bf16.msra.mxu0 %v7136_v59  ;;  %2495 = vmatpush1.bf16.msra.mxu1 %v7139_v60 }
 0x203   :  { %2414 = vmatprep.subr.bf16.mxu0 %v7144_v61  ;;  %2496 = vmatprep.subr.bf16.mxu1 %v7147_v62  ;;  %v7202_v62 = vld [vmem:[#allocation8 + $0x200] ss:$16 sps:$4 sm:$0xff]  }
 0x206   :  { %2415 = vmatpush1.bf16.msra.mxu0 %v7142_v63  ;;  %2497 = vmatpush1.bf16.msra.mxu1 %v7145_v0  ;;  %v7205_v63 = vld [vmem:[#allocation8 + $0x208] ss:$16 sps:$4 sm:$0xff]  }
 0x207   :  { %2416 = vmatprep.subr.bf16.mxu0 %v7150_v1  ;;  %2498 = vmatprep.subr.bf16.mxu1 %v7153_v2  ;;  %v7210_v1 = vld [vmem:[#allocation8 + $0x224] ss:$16 sps:$4 sm:$0xff]   ;;  %v7213_v2 = vld [vmem:[#allocation8 + $0x22c] ss:$16 sps:$4 sm:$0xff]  }
 0x20a   :  { %2417 = vmatpush1.bf16.msra.mxu0 %v7148_v3  ;;  %2499 = vmatpush1.bf16.msra.mxu1 %v7151_v4  ;;  %v7208_v4 = vld [vmem:[#allocation8 + $0x220] ss:$16 sps:$4 sm:$0xff]  }
 0x20b   :  { %2418 = vmatprep.subr.bf16.mxu0 %v7156_v5  ;;  %2500 = vmatprep.subr.bf16.mxu1 %v7159_v6  ;;  %v7211_v5 = vld [vmem:[#allocation8 + $0x228] ss:$16 sps:$4 sm:$0xff]   ;;  %v7216_v6 = vld [vmem:[#allocation8 + $0x244] ss:$16 sps:$4 sm:$0xff]  }
 0x20e   :  { %2419 = vmatpush1.bf16.msra.mxu0 %v7154_v11  ;;  %2501 = vmatpush1.bf16.msra.mxu1 %v7157_v12  ;;  %v7219_v11 = vld [vmem:[#allocation8 + $0x24c] ss:$16 sps:$4 sm:$0xff]   ;;  %v7214_v12 = vld [vmem:[#allocation8 + $0x240] ss:$16 sps:$4 sm:$0xff]  }
 0x20f   :  { %2420 = vmatprep.subr.bf16.mxu0 %v7162_v13  ;;  %2502 = vmatprep.subr.bf16.mxu1 %v7165_v14  ;;  %v7217_v13 = vld [vmem:[#allocation8 + $0x248] ss:$16 sps:$4 sm:$0xff]   ;;  %v7222_v14 = vld [vmem:[#allocation8 + $0x264] ss:$16 sps:$4 sm:$0xff]  }
 0x212   :  { %2421 = vmatpush1.bf16.msra.mxu0 %v7160_v15  ;;  %2503 = vmatpush1.bf16.msra.mxu1 %v7163_v16  ;;  %v7225_v15 = vld [vmem:[#allocation8 + $0x26c] ss:$16 sps:$4 sm:$0xff]   ;;  %v7220_v16 = vld [vmem:[#allocation8 + $0x260] ss:$16 sps:$4 sm:$0xff]  }
 0x213   :  { %2422 = vmatprep.subr.bf16.mxu0 %v7168_v18  ;;  %2504 = vmatprep.subr.bf16.mxu1 %v7171_v19  ;;  %v7223_v18 = vld [vmem:[#allocation8 + $0x268] ss:$16 sps:$4 sm:$0xff]   ;;  %v7228_v19 = vld [vmem:[#allocation8 + $0x284] ss:$16 sps:$4 sm:$0xff]  }
 0x216   :  { %2423 = vmatpush1.bf16.msra.mxu0 %v7166_v21  ;;  %2505 = vmatpush1.bf16.msra.mxu1 %v7169_v22  ;;  %v7231_v21 = vld [vmem:[#allocation8 + $0x28c] ss:$16 sps:$4 sm:$0xff]   ;;  %v7226_v22 = vld [vmem:[#allocation8 + $0x280] ss:$16 sps:$4 sm:$0xff]  }
 0x217   :  { %2424 = vmatprep.subr.bf16.mxu0 %v7174_v23  ;;  %2506 = vmatprep.subr.bf16.mxu1 %v7177_v24  ;;  %v7229_v23 = vld [vmem:[#allocation8 + $0x288] ss:$16 sps:$4 sm:$0xff]   ;;  %v7234_v24 = vld [vmem:[#allocation8 + $0x2a4] ss:$16 sps:$4 sm:$0xff]  }
 0x21a   :  { %2425 = vmatpush1.bf16.msra.mxu0 %v7172_v25  ;;  %2507 = vmatpush1.bf16.msra.mxu1 %v7175_v26  ;;  %v7237_v25 = vld [vmem:[#allocation8 + $0x2ac] ss:$16 sps:$4 sm:$0xff]   ;;  %v7232_v26 = vld [vmem:[#allocation8 + $0x2a0] ss:$16 sps:$4 sm:$0xff]  }
 0x21b   :  { %2426 = vmatprep.subr.bf16.mxu0 %v7180_v27  ;;  %2508 = vmatprep.subr.bf16.mxu1 %v7183_v28  ;;  %v7235_v27 = vld [vmem:[#allocation8 + $0x2a8] ss:$16 sps:$4 sm:$0xff]   ;;  %v7240_v28 = vld [vmem:[#allocation8 + $0x2c4] ss:$16 sps:$4 sm:$0xff]  }
 0x21e   :  { %2427 = vmatpush1.bf16.msra.mxu0 %v7178_v7  ;;  %2509 = vmatpush1.bf16.msra.mxu1 %v7181_v29  ;;  %v7243_v7 = vld [vmem:[#allocation8 + $0x2cc] ss:$16 sps:$4 sm:$0xff]   ;;  %v7238_v29 = vld [vmem:[#allocation8 + $0x2c0] ss:$16 sps:$4 sm:$0xff]  }
 0x21f   :  { %2428 = vmatprep.subr.bf16.mxu0 %v7186_v30  ;;  %2510 = vmatprep.subr.bf16.mxu1 %v7189_v31  ;;  %v7241_v30 = vld [vmem:[#allocation8 + $0x2c8] ss:$16 sps:$4 sm:$0xff]   ;;  %v7246_v31 = vld [vmem:[#allocation8 + $0x2e4] ss:$16 sps:$4 sm:$0xff]  }
 0x222   :  { %2429 = vmatpush1.bf16.msra.mxu0 %v7184_v32  ;;  %2511 = vmatpush1.bf16.msra.mxu1 %v7187_v33  ;;  %v7249_v32 = vld [vmem:[#allocation8 + $0x2ec] ss:$16 sps:$4 sm:$0xff]   ;;  %v7244_v33 = vld [vmem:[#allocation8 + $0x2e0] ss:$16 sps:$4 sm:$0xff]  }
 0x223   :  { %2430 = vmatprep.subr.bf16.mxu0 %v7192_v34  ;;  %2512 = vmatprep.subr.bf16.mxu1 %v7195_v35  ;;  %v7247_v34 = vld [vmem:[#allocation8 + $0x2e8] ss:$16 sps:$4 sm:$0xff]   ;;  %v7252_v35 = vld [vmem:[#allocation8 + $0x304] ss:$16 sps:$4 sm:$0xff]  }
 0x226   :  { %2431 = vmatpush1.bf16.msra.mxu0 %v7190_v36  ;;  %2513 = vmatpush1.bf16.msra.mxu1 %v7193_v9  ;;  %v7255_v36 = vld [vmem:[#allocation8 + $0x30c] ss:$16 sps:$4 sm:$0xff]   ;;  %v7250_v9 = vld [vmem:[#allocation8 + $0x300] ss:$16 sps:$4 sm:$0xff]  }
 0x227   :  { %2432 = vmatprep.subr.bf16.mxu0 %v7198_v37  ;;  %2514 = vmatprep.subr.bf16.mxu1 %v7201_v38  ;;  %v7253_v37 = vld [vmem:[#allocation8 + $0x308] ss:$16 sps:$4 sm:$0xff]   ;;  %v7258_v38 = vld [vmem:[#allocation8 + $0x324] ss:$16 sps:$4 sm:$0xff]  }
 0x22a   :  { %2433 = vmatpush1.bf16.msra.mxu0 %v7196_v39  ;;  %2515 = vmatpush1.bf16.msra.mxu1 %v7199_v40  ;;  %v7261_v39 = vld [vmem:[#allocation8 + $0x32c] ss:$16 sps:$4 sm:$0xff]   ;;  %v7256_v40 = vld [vmem:[#allocation8 + $0x320] ss:$16 sps:$4 sm:$0xff]  }
 0x22b   :  { %2443 = vmatprep.subr.bf16.mxu0 %v7204_v41  ;;  %2525 = vmatprep.subr.bf16.mxu1 %v7207_v42  ;;  %v7259_v41 = vld [vmem:[#allocation8 + $0x328] ss:$16 sps:$4 sm:$0xff]   ;;  %v7264_v42 = vld [vmem:[#allocation8 + $0x344] ss:$16 sps:$4 sm:$0xff]  }
 0x2c0   :  { %v1515_v47 = vpop.f32.mrb[0].mxu0  ;;  %v8409_v48 = vpop.f32.mrb[8].mxu1 }
 0x2c1   :  { %v6739_v49 = vadd.f32 %v1515_v47, %v783_v44  ;;  %v1517_v50 = vpop.f32.mrb[1].mxu0  ;;  %v1599_v51 = vpop.f32.mrb[9].mxu1  ;;  %v7267_v44 = vld [vmem:[#allocation8 + $0x34c] ss:$16 sps:$4 sm:$0xff]   ;;  %v7270_v47 = vld [vmem:[#allocation8 + $0x364] ss:$16 sps:$4 sm:$0xff]  }
 0x2c2   :  { %v6740_v52 = vadd.f32 %v1517_v50, %v787_v45  ;;  %v6742_v53 = vadd.f32 %v1599_v51, %v795_v46  ;;  %v1519_v54 = vpop.f32.mrb[2].mxu0  ;;  %v1601_v55 = vpop.f32.mrb[10].mxu1  ;;  %v7262_v45 = vld [vmem:[#allocation8 + $0x340] ss:$16 sps:$4 sm:$0xff]   ;;  %v7265_v46 = vld [vmem:[#allocation8 + $0x348] ss:$16 sps:$4 sm:$0xff]  }
 0x2c3   :  { %v1604_v56 = vmax.f32 %v6739_v49, 0.0  ;;  %v1520_v57 = vpop.f32.mrb[3].mxu0  ;;  %v1602_v58 = vpop.f32.mrb[11].mxu1  ;;  %v7273_v49 = vld [vmem:[#allocation8 + $0x36c] ss:$16 sps:$4 sm:$0xff]  }
 0x2c4   :  { %v1605_v59 = vmax.f32 %v6740_v52, 0.0  ;;  %v1607_v60 = vmax.f32 %v6742_v53, 0.0  ;;  %v7268_v50 = vld [vmem:[#allocation8 + $0x360] ss:$16 sps:$4 sm:$0xff]   ;;  %v7271_v51 = vld [vmem:[#allocation8 + $0x368] ss:$16 sps:$4 sm:$0xff]  }
 0x2c5   :  { %v1737_v0 = vpack.c.bf16 %v1604_v56, %v1604_v56  ;;  %v7276_v52 = vld [vmem:[#allocation8 + $0x384] ss:$16 sps:$4 sm:$0xff]   ;;  %v7279_v53 = vld [vmem:[#allocation8 + $0x38c] ss:$16 sps:$4 sm:$0xff]   ;;  %v7274_v54 = vld [vmem:[#allocation8 + $0x380] ss:$16 sps:$4 sm:$0xff]  }
 0x2c6   :  { %v1738_v61 = vpack.c.bf16 %v1605_v59, %v1605_v59  ;;  %v1740_v3 = vpack.c.bf16 %v1607_v60, %v1607_v60  ;;  %v7277_v55 = vld [vmem:[#allocation8 + $0x388] ss:$16 sps:$4 sm:$0xff]   ;;  %v7282_v56 = vld [vmem:[#allocation8 + $0x3a4] ss:$16 sps:$4 sm:$0xff]   ;;  %v7285_v57 = vld [vmem:[#allocation8 + $0x3ac] ss:$16 sps:$4 sm:$0xff]   ;;  %v791_v60 = vrot.slane %v8401_v43, %v8389_v17 }
 0x2c7   :  { %v7280_v58 = vld [vmem:[#allocation8 + $0x3a0] ss:$16 sps:$4 sm:$0xff]   ;;  %v7283_v59 = vld [vmem:[#allocation8 + $0x3a8] ss:$16 sps:$4 sm:$0xff]   ;;  %v7300_v43 = vld [vmem:[#allocation10 + $0x4] ss:$16 sps:$4 sm:$0xff]  }
 0x2c8   :  { %2434 = vmatprep.mubr.bf16.mxu0 %v1738_v61  ;;  %2516 = vmatprep.mubr.bf16.mxu1 %v1738_v61  ;;  %v7288_v61 = vld [vmem:[#allocation8 + $0x3c4] ss:$16 sps:$4 sm:$0xff]  }
 0x2c9   :  { %2435 = vmatmul.mubr.bf16.vlgmr.msra.gmra.mrb[4].mxu0 %v1737_v0  ;;  %2517 = vmatmul.mubr.bf16.vlgmr.msra.gmra.mrb[12].mxu1 %v1737_v0  ;;  %v7289_v0 = vld [vmem:[#allocation8 + $0x3c8] ss:$16 sps:$4 sm:$0xff]  }
 0x2ca   :  { %2444 = vmatpush1.bf16.msra.mxu0 %v7202_v62  ;;  %2526 = vmatpush1.bf16.msra.mxu1 %v7205_v63  ;;  %v7291_v62 = vld [vmem:[#allocation8 + $0x3cc] ss:$16 sps:$4 sm:$0xff]   ;;  %v7286_v63 = vld [vmem:[#allocation8 + $0x3c0] ss:$16 sps:$4 sm:$0xff]  }
 0x2cb   :  { %2475 = vmatprep.mubr.bf16.mxu0 %v1740_v3  ;;  %2557 = vmatprep.mubr.bf16.mxu1 %v1740_v3  ;;  %v7297_v3 = vld [vmem:[#allocation8 + $0x3ec] ss:$16 sps:$4 sm:$0xff]  }
 0x2cc   :  { %2445 = vmatprep.subr.bf16.mxu0 %v7210_v1  ;;  %2527 = vmatprep.subr.bf16.mxu1 %v7213_v2  ;;  %v6741_v1 = vadd.f32 %v8409_v48, %v791_v60  ;;  %v7294_v2 = vld [vmem:[#allocation8 + $0x3e4] ss:$16 sps:$4 sm:$0xff]  }
 0x2cd   :  { %v7306_v48 = vld [vmem:[#allocation10 + $0x24] ss:$16 sps:$4 sm:$0xff]  }
 0x2ce   :  { %2446 = vmatpush1.bf16.msra.mxu0 %v7208_v4  ;;  %2528 = vmatpush1.bf16.msra.mxu1 %v7211_v5  ;;  %v7292_v4 = vld [vmem:[#allocation8 + $0x3e0] ss:$16 sps:$4 sm:$0xff]   ;;  %v7295_v5 = vld [vmem:[#allocation8 + $0x3e8] ss:$16 sps:$4 sm:$0xff]   ;;  %v7372_v60 = vld [vmem:[#allocation10 + $0x184] ss:$16 sps:$4 sm:$0xff]  }
 0x2cf   :  { %2447 = vmatprep.subr.bf16.mxu0 %v7216_v6  ;;  %2529 = vmatprep.subr.bf16.mxu1 %v7219_v11  ;;  %v1606_v6 = vmax.f32 %v6741_v1, 0.0  ;;  %v7303_v11 = vld [vmem:[#allocation10 + $0xc] ss:$16 sps:$4 sm:$0xff]  }
 0x2d0   :  { %v7381_v1 = vld [vmem:[#allocation10 + $0x1ac] ss:$16 sps:$4 sm:$0xff]  }
 0x2d2   :  { %2448 = vmatpush1.bf16.msra.mxu0 %v7214_v12  ;;  %2530 = vmatpush1.bf16.msra.mxu1 %v7217_v13  ;;  %v7298_v12 = vld [vmem:[#allocation10] ss:$16 sps:$4 sm:$0xff]   ;;  %v7301_v13 = vld [vmem:[#allocation10 + $0x8] ss:$16 sps:$4 sm:$0xff]  }
 0x2d3   :  { %2449 = vmatprep.subr.bf16.mxu0 %v7222_v14  ;;  %2531 = vmatprep.subr.bf16.mxu1 %v7225_v15  ;;  %v1739_v14 = vpack.c.bf16 %v1606_v6, %v1606_v6  ;;  %v7309_v15 = vld [vmem:[#allocation10 + $0x2c] ss:$16 sps:$4 sm:$0xff]   ;;  %v7382_v6 = vld [vmem:[#allocation10 + $0x1c0] ss:$16 sps:$4 sm:$0xff]  }
 0x2d6   :  { %2450 = vmatpush1.bf16.msra.mxu0 %v7220_v16  ;;  %2532 = vmatpush1.bf16.msra.mxu1 %v7223_v18  ;;  %v7304_v16 = vld [vmem:[#allocation10 + $0x20] ss:$16 sps:$4 sm:$0xff]   ;;  %v7307_v18 = vld [vmem:[#allocation10 + $0x28] ss:$16 sps:$4 sm:$0xff]  }
 0x2d7   :  { %2451 = vmatprep.subr.bf16.mxu0 %v7228_v19  ;;  %2533 = vmatprep.subr.bf16.mxu1 %v7231_v21  ;;  %v7312_v19 = vld [vmem:[#allocation10 + $0x44] ss:$16 sps:$4 sm:$0xff]   ;;  %v7315_v21 = vld [vmem:[#allocation10 + $0x4c] ss:$16 sps:$4 sm:$0xff]  }
 0x2da   :  { %2452 = vmatpush1.bf16.msra.mxu0 %v7226_v22  ;;  %2534 = vmatpush1.bf16.msra.mxu1 %v7229_v23  ;;  %v7310_v22 = vld [vmem:[#allocation10 + $0x40] ss:$16 sps:$4 sm:$0xff]   ;;  %v7313_v23 = vld [vmem:[#allocation10 + $0x48] ss:$16 sps:$4 sm:$0xff]  }
 0x2db   :  { %2453 = vmatprep.subr.bf16.mxu0 %v7234_v24  ;;  %2535 = vmatprep.subr.bf16.mxu1 %v7237_v25  ;;  %v7318_v24 = vld [vmem:[#allocation10 + $0x64] ss:$16 sps:$4 sm:$0xff]   ;;  %v7321_v25 = vld [vmem:[#allocation10 + $0x6c] ss:$16 sps:$4 sm:$0xff]  }
 0x2de   :  { %2454 = vmatpush1.bf16.msra.mxu0 %v7232_v26  ;;  %2536 = vmatpush1.bf16.msra.mxu1 %v7235_v27  ;;  %v7316_v26 = vld [vmem:[#allocation10 + $0x60] ss:$16 sps:$4 sm:$0xff]   ;;  %v7319_v27 = vld [vmem:[#allocation10 + $0x68] ss:$16 sps:$4 sm:$0xff]  }
 0x2df   :  { %2455 = vmatprep.subr.bf16.mxu0 %v7240_v28  ;;  %2537 = vmatprep.subr.bf16.mxu1 %v7243_v7  ;;  %v7324_v28 = vld [vmem:[#allocation10 + $0x84] ss:$16 sps:$4 sm:$0xff]   ;;  %v7327_v7 = vld [vmem:[#allocation10 + $0x8c] ss:$16 sps:$4 sm:$0xff]  }
 0x2e2   :  { %2456 = vmatpush1.bf16.msra.mxu0 %v7238_v29  ;;  %2538 = vmatpush1.bf16.msra.mxu1 %v7241_v30  ;;  %v7322_v29 = vld [vmem:[#allocation10 + $0x80] ss:$16 sps:$4 sm:$0xff]   ;;  %v7325_v30 = vld [vmem:[#allocation10 + $0x88] ss:$16 sps:$4 sm:$0xff]  }
 0x2e3   :  { %2457 = vmatprep.subr.bf16.mxu0 %v7246_v31  ;;  %2539 = vmatprep.subr.bf16.mxu1 %v7249_v32  ;;  %v7330_v31 = vld [vmem:[#allocation10 + $0xa4] ss:$16 sps:$4 sm:$0xff]   ;;  %v7333_v32 = vld [vmem:[#allocation10 + $0xac] ss:$16 sps:$4 sm:$0xff]  }
 0x2e6   :  { %2458 = vmatpush1.bf16.msra.mxu0 %v7244_v33  ;;  %2540 = vmatpush1.bf16.msra.mxu1 %v7247_v34  ;;  %v7328_v33 = vld [vmem:[#allocation10 + $0xa0] ss:$16 sps:$4 sm:$0xff]   ;;  %v7331_v34 = vld [vmem:[#allocation10 + $0xa8] ss:$16 sps:$4 sm:$0xff]  }
 0x2e7   :  { %2459 = vmatprep.subr.bf16.mxu0 %v7252_v35  ;;  %2541 = vmatprep.subr.bf16.mxu1 %v7255_v36  ;;  %v7336_v35 = vld [vmem:[#allocation10 + $0xc4] ss:$16 sps:$4 sm:$0xff]   ;;  %v7339_v36 = vld [vmem:[#allocation10 + $0xcc] ss:$16 sps:$4 sm:$0xff]  }
 0x2ea   :  { %2460 = vmatpush1.bf16.msra.mxu0 %v7250_v9  ;;  %2542 = vmatpush1.bf16.msra.mxu1 %v7253_v37  ;;  %v7334_v9 = vld [vmem:[#allocation10 + $0xc0] ss:$16 sps:$4 sm:$0xff]   ;;  %v7337_v37 = vld [vmem:[#allocation10 + $0xc8] ss:$16 sps:$4 sm:$0xff]  }
 0x2eb   :  { %2461 = vmatprep.subr.bf16.mxu0 %v7258_v38  ;;  %2543 = vmatprep.subr.bf16.mxu1 %v7261_v39  ;;  %v7342_v38 = vld [vmem:[#allocation10 + $0xe4] ss:$16 sps:$4 sm:$0xff]   ;;  %v7345_v39 = vld [vmem:[#allocation10 + $0xec] ss:$16 sps:$4 sm:$0xff]  }
 0x2ee   :  { %2462 = vmatpush1.bf16.msra.mxu0 %v7256_v40  ;;  %2544 = vmatpush1.bf16.msra.mxu1 %v7259_v41  ;;  %v7340_v40 = vld [vmem:[#allocation10 + $0xe0] ss:$16 sps:$4 sm:$0xff]   ;;  %v7343_v41 = vld [vmem:[#allocation10 + $0xe8] ss:$16 sps:$4 sm:$0xff]  }
 0x2ef   :  { %2463 = vmatprep.subr.bf16.mxu0 %v7264_v42  ;;  %2545 = vmatprep.subr.bf16.mxu1 %v7267_v44  ;;  %v7348_v42 = vld [vmem:[#allocation10 + $0x104] ss:$16 sps:$4 sm:$0xff]   ;;  %v7351_v44 = vld [vmem:[#allocation10 + $0x10c] ss:$16 sps:$4 sm:$0xff]  }
 0x2f2   :  { %2464 = vmatpush1.bf16.msra.mxu0 %v7262_v45  ;;  %2546 = vmatpush1.bf16.msra.mxu1 %v7265_v46  ;;  %v7346_v45 = vld [vmem:[#allocation10 + $0x100] ss:$16 sps:$4 sm:$0xff]   ;;  %v7349_v46 = vld [vmem:[#allocation10 + $0x108] ss:$16 sps:$4 sm:$0xff]  }
 0x2f3   :  { %2465 = vmatprep.subr.bf16.mxu0 %v7270_v47  ;;  %2547 = vmatprep.subr.bf16.mxu1 %v7273_v49  ;;  %v7354_v47 = vld [vmem:[#allocation10 + $0x124] ss:$16 sps:$4 sm:$0xff]   ;;  %v7357_v49 = vld [vmem:[#allocation10 + $0x12c] ss:$16 sps:$4 sm:$0xff]  }
 0x2f6   :  { %2466 = vmatpush1.bf16.msra.mxu0 %v7268_v50  ;;  %2548 = vmatpush1.bf16.msra.mxu1 %v7271_v51  ;;  %v7352_v50 = vld [vmem:[#allocation10 + $0x120] ss:$16 sps:$4 sm:$0xff]   ;;  %v7355_v51 = vld [vmem:[#allocation10 + $0x128] ss:$16 sps:$4 sm:$0xff]  }
 0x2f7   :  { %2467 = vmatprep.subr.bf16.mxu0 %v7276_v52  ;;  %2549 = vmatprep.subr.bf16.mxu1 %v7279_v53  ;;  %v7360_v52 = vld [vmem:[#allocation10 + $0x144] ss:$16 sps:$4 sm:$0xff]   ;;  %v7363_v53 = vld [vmem:[#allocation10 + $0x14c] ss:$16 sps:$4 sm:$0xff]  }
 0x2fa   :  { %2468 = vmatpush1.bf16.msra.mxu0 %v7274_v54  ;;  %2550 = vmatpush1.bf16.msra.mxu1 %v7277_v55  ;;  %v7358_v54 = vld [vmem:[#allocation10 + $0x140] ss:$16 sps:$4 sm:$0xff]   ;;  %v7361_v55 = vld [vmem:[#allocation10 + $0x148] ss:$16 sps:$4 sm:$0xff]  }
 0x2fb   :  { %2469 = vmatprep.subr.bf16.mxu0 %v7282_v56  ;;  %2551 = vmatprep.subr.bf16.mxu1 %v7285_v57  ;;  %v7366_v56 = vld [vmem:[#allocation10 + $0x164] ss:$16 sps:$4 sm:$0xff]   ;;  %v7369_v57 = vld [vmem:[#allocation10 + $0x16c] ss:$16 sps:$4 sm:$0xff]  }
 0x2fe   :  { %2470 = vmatpush1.bf16.msra.mxu0 %v7280_v58  ;;  %2552 = vmatpush1.bf16.msra.mxu1 %v7283_v59  ;;  %v7364_v58 = vld [vmem:[#allocation10 + $0x160] ss:$16 sps:$4 sm:$0xff]   ;;  %v7367_v59 = vld [vmem:[#allocation10 + $0x168] ss:$16 sps:$4 sm:$0xff]  }
 0x2ff   :  { %2471 = vmatprep.subr.bf16.mxu0 %v7288_v61  ;;  %2553 = vmatprep.subr.bf16.mxu1 %v7291_v62  ;;  %v7375_v61 = vld [vmem:[#allocation10 + $0x18c] ss:$16 sps:$4 sm:$0xff]   ;;  %v7370_v62 = vld [vmem:[#allocation10 + $0x180] ss:$16 sps:$4 sm:$0xff]  }
 0x302   :  { %2472 = vmatpush1.bf16.msra.mxu0 %v7286_v63  ;;  %2554 = vmatpush1.bf16.msra.mxu1 %v7289_v0  ;;  %v7373_v63 = vld [vmem:[#allocation10 + $0x188] ss:$16 sps:$4 sm:$0xff]   ;;  %v7378_v0 = vld [vmem:[#allocation10 + $0x1a4] ss:$16 sps:$4 sm:$0xff]  }
 0x303   :  { %2473 = vmatprep.subr.bf16.mxu0 %v7294_v2  ;;  %2555 = vmatprep.subr.bf16.mxu1 %v7297_v3  ;;  %v7376_v2 = vld [vmem:[#allocation10 + $0x1a0] ss:$16 sps:$4 sm:$0xff]   ;;  %v7379_v3 = vld [vmem:[#allocation10 + $0x1a8] ss:$16 sps:$4 sm:$0xff]  }
 0x306   :  { %2474 = vmatpush1.bf16.msra.mxu0 %v7292_v4  ;;  %2556 = vmatpush1.bf16.msra.mxu1 %v7295_v5  ;;  %v7384_v4 = vld [vmem:[#allocation10 + $0x1c4] ss:$16 sps:$4 sm:$0xff]   ;;  %v7387_v5 = vld [vmem:[#allocation10 + $0x1cc] ss:$16 sps:$4 sm:$0xff]  }
 0x307   :  { %3364 = vmatprep.subr.bf16.mxu0 %v7300_v43  ;;  %3446 = vmatprep.subr.bf16.mxu1 %v7303_v11  ;;  %v7385_v43 = vld [vmem:[#allocation10 + $0x1c8] ss:$16 sps:$4 sm:$0xff]   ;;  %v7390_v11 = vld [vmem:[#allocation10 + $0x1e4] ss:$16 sps:$4 sm:$0xff]  }
 0x309   :  { %2476 = vmatmul.mubr.bf16.vlgmr.msra.gmra.mrb[4].mxu0 %v1739_v14  ;;  %2558 = vmatmul.mubr.bf16.vlgmr.msra.gmra.mrb[12].mxu1 %v1739_v14  ;;  %v7391_v14 = vld [vmem:[#allocation10 + $0x1e8] ss:$16 sps:$4 sm:$0xff]  }
 0x30a   :  { %3365 = vmatpush1.bf16.msra.mxu0 %v7298_v12  ;;  %3447 = vmatpush1.bf16.msra.mxu1 %v7301_v13  ;;  %v7393_v12 = vld [vmem:[#allocation10 + $0x1ec] ss:$16 sps:$4 sm:$0xff]   ;;  %v7388_v13 = vld [vmem:[#allocation10 + $0x1e0] ss:$16 sps:$4 sm:$0xff]  }
 0x30b   :  { %3366 = vmatprep.subr.bf16.mxu0 %v7306_v48  ;;  %3448 = vmatprep.subr.bf16.mxu1 %v7309_v15  ;;  %v7396_v48 = vld [vmem:[#allocation10 + $0x204] ss:$16 sps:$4 sm:$0xff]   ;;  %v7399_v15 = vld [vmem:[#allocation10 + $0x20c] ss:$16 sps:$4 sm:$0xff]  }
 0x30e   :  { %3367 = vmatpush1.bf16.msra.mxu0 %v7304_v16  ;;  %3449 = vmatpush1.bf16.msra.mxu1 %v7307_v18  ;;  %v8417_v16 = vld [vmem:[%s8503_s8 + $0x8] sm:$0xf] }
 0x30f   :  { %3368 = vmatprep.subr.bf16.mxu0 %v7312_v19  ;;  %3450 = vmatprep.subr.bf16.mxu1 %v7315_v21  ;;  %v1745_v18 = vrot.slane %v8417_v16, %v8374_v8  ;;  %v1749_v19 = vrot.slane %v8417_v16, %v8382_v10  ;;  %v1757_v21 = vrot.slane %v8417_v16, %v8392_v20 }
 0x312   :  { %3369 = vmatpush1.bf16.msra.mxu0 %v7310_v22  ;;  %3451 = vmatpush1.bf16.msra.mxu1 %v7313_v23 }
 0x313   :  { %3370 = vmatprep.subr.bf16.mxu0 %v7318_v24  ;;  %3452 = vmatprep.subr.bf16.mxu1 %v7321_v25 }
 0x316   :  { %3371 = vmatpush1.bf16.msra.mxu0 %v7316_v26  ;;  %3453 = vmatpush1.bf16.msra.mxu1 %v7319_v27 }
 0x317   :  { %3372 = vmatprep.subr.bf16.mxu0 %v7324_v28  ;;  %3454 = vmatprep.subr.bf16.mxu1 %v7327_v7 }
 0x31a   :  { %3373 = vmatpush1.bf16.msra.mxu0 %v7322_v29  ;;  %3455 = vmatpush1.bf16.msra.mxu1 %v7325_v30 }
 0x31b   :  { %3374 = vmatprep.subr.bf16.mxu0 %v7330_v31  ;;  %3456 = vmatprep.subr.bf16.mxu1 %v7333_v32 }
 0x31e   :  { %3375 = vmatpush1.bf16.msra.mxu0 %v7328_v33  ;;  %3457 = vmatpush1.bf16.msra.mxu1 %v7331_v34 }
 0x31f   :  { %3376 = vmatprep.subr.bf16.mxu0 %v7336_v35  ;;  %3458 = vmatprep.subr.bf16.mxu1 %v7339_v36  ;;  %v7394_v36 = vld [vmem:[#allocation10 + $0x200] ss:$16 sps:$4 sm:$0xff]  }
 0x322   :  { %3377 = vmatpush1.bf16.msra.mxu0 %v7334_v9  ;;  %3459 = vmatpush1.bf16.msra.mxu1 %v7337_v37  ;;  %v7397_v9 = vld [vmem:[#allocation10 + $0x208] ss:$16 sps:$4 sm:$0xff]  }
 0x323   :  { %3378 = vmatprep.subr.bf16.mxu0 %v7342_v38  ;;  %3460 = vmatprep.subr.bf16.mxu1 %v7345_v39  ;;  %v7402_v38 = vld [vmem:[#allocation10 + $0x224] ss:$16 sps:$4 sm:$0xff]   ;;  %v7405_v39 = vld [vmem:[#allocation10 + $0x22c] ss:$16 sps:$4 sm:$0xff]  }
 0x326   :  { %3379 = vmatpush1.bf16.msra.mxu0 %v7340_v40  ;;  %3461 = vmatpush1.bf16.msra.mxu1 %v7343_v41  ;;  %v7400_v41 = vld [vmem:[#allocation10 + $0x220] ss:$16 sps:$4 sm:$0xff]  }
 0x327   :  { %3380 = vmatprep.subr.bf16.mxu0 %v7348_v42  ;;  %3462 = vmatprep.subr.bf16.mxu1 %v7351_v44  ;;  %v7403_v42 = vld [vmem:[#allocation10 + $0x228] ss:$16 sps:$4 sm:$0xff]   ;;  %v7408_v44 = vld [vmem:[#allocation10 + $0x244] ss:$16 sps:$4 sm:$0xff]  }
 0x32a   :  { %3381 = vmatpush1.bf16.msra.mxu0 %v7346_v45  ;;  %3463 = vmatpush1.bf16.msra.mxu1 %v7349_v46  ;;  %v7411_v45 = vld [vmem:[#allocation10 + $0x24c] ss:$16 sps:$4 sm:$0xff]   ;;  %v7406_v46 = vld [vmem:[#allocation10 + $0x240] ss:$16 sps:$4 sm:$0xff]  }
 0x32b   :  { %3382 = vmatprep.subr.bf16.mxu0 %v7354_v47  ;;  %3464 = vmatprep.subr.bf16.mxu1 %v7357_v49  ;;  %v7409_v47 = vld [vmem:[#allocation10 + $0x248] ss:$16 sps:$4 sm:$0xff]   ;;  %v7414_v49 = vld [vmem:[#allocation10 + $0x264] ss:$16 sps:$4 sm:$0xff]  }
 0x32e   :  { %3383 = vmatpush1.bf16.msra.mxu0 %v7352_v50  ;;  %3465 = vmatpush1.bf16.msra.mxu1 %v7355_v51  ;;  %v7417_v50 = vld [vmem:[#allocation10 + $0x26c] ss:$16 sps:$4 sm:$0xff]   ;;  %v7412_v51 = vld [vmem:[#allocation10 + $0x260] ss:$16 sps:$4 sm:$0xff]  }
 0x32f   :  { %3384 = vmatprep.subr.bf16.mxu0 %v7360_v52  ;;  %3466 = vmatprep.subr.bf16.mxu1 %v7363_v53  ;;  %v7415_v52 = vld [vmem:[#allocation10 + $0x268] ss:$16 sps:$4 sm:$0xff]   ;;  %v7420_v53 = vld [vmem:[#allocation10 + $0x284] ss:$16 sps:$4 sm:$0xff]  }
 0x332   :  { %3385 = vmatpush1.bf16.msra.mxu0 %v7358_v54  ;;  %3467 = vmatpush1.bf16.msra.mxu1 %v7361_v55  ;;  %v7423_v54 = vld [vmem:[#allocation10 + $0x28c] ss:$16 sps:$4 sm:$0xff]   ;;  %v7418_v55 = vld [vmem:[#allocation10 + $0x280] ss:$16 sps:$4 sm:$0xff]  }
 0x333   :  { %3386 = vmatprep.subr.bf16.mxu0 %v7366_v56  ;;  %3468 = vmatprep.subr.bf16.mxu1 %v7369_v57  ;;  %v7421_v56 = vld [vmem:[#allocation10 + $0x288] ss:$16 sps:$4 sm:$0xff]   ;;  %v7426_v57 = vld [vmem:[#allocation10 + $0x2a4] ss:$16 sps:$4 sm:$0xff]  }
 0x336   :  { %3387 = vmatpush1.bf16.msra.mxu0 %v7364_v58  ;;  %3469 = vmatpush1.bf16.msra.mxu1 %v7367_v59  ;;  %v7429_v58 = vld [vmem:[#allocation10 + $0x2ac] ss:$16 sps:$4 sm:$0xff]   ;;  %v7424_v59 = vld [vmem:[#allocation10 + $0x2a0] ss:$16 sps:$4 sm:$0xff]  }
 0x337   :  { %3388 = vmatprep.subr.bf16.mxu0 %v7372_v60  ;;  %3470 = vmatprep.subr.bf16.mxu1 %v7375_v61  ;;  %v7427_v60 = vld [vmem:[#allocation10 + $0x2a8] ss:$16 sps:$4 sm:$0xff]   ;;  %v7432_v61 = vld [vmem:[#allocation10 + $0x2c4] ss:$16 sps:$4 sm:$0xff]  }
 0x33a   :  { %3389 = vmatpush1.bf16.msra.mxu0 %v7370_v62  ;;  %3471 = vmatpush1.bf16.msra.mxu1 %v7373_v63  ;;  %v7435_v62 = vld [vmem:[#allocation10 + $0x2cc] ss:$16 sps:$4 sm:$0xff]   ;;  %v7430_v63 = vld [vmem:[#allocation10 + $0x2c0] ss:$16 sps:$4 sm:$0xff]  }
 0x33b   :  { %3390 = vmatprep.subr.bf16.mxu0 %v7378_v0  ;;  %3472 = vmatprep.subr.bf16.mxu1 %v7381_v1  ;;  %v7433_v0 = vld [vmem:[#allocation10 + $0x2c8] ss:$16 sps:$4 sm:$0xff]   ;;  %v7438_v1 = vld [vmem:[#allocation10 + $0x2e4] ss:$16 sps:$4 sm:$0xff]  }
 0x33e   :  { %3391 = vmatpush1.bf16.msra.mxu0 %v7376_v2  ;;  %3473 = vmatpush1.bf16.msra.mxu1 %v7379_v3  ;;  %v7441_v2 = vld [vmem:[#allocation10 + $0x2ec] ss:$16 sps:$4 sm:$0xff]   ;;  %v7436_v3 = vld [vmem:[#allocation10 + $0x2e0] ss:$16 sps:$4 sm:$0xff]  }
 0x33f   :  { %3392 = vmatprep.subr.bf16.mxu0 %v7384_v4  ;;  %3474 = vmatprep.subr.bf16.mxu1 %v7387_v5  ;;  %v7439_v4 = vld [vmem:[#allocation10 + $0x2e8] ss:$16 sps:$4 sm:$0xff]   ;;  %v7444_v5 = vld [vmem:[#allocation10 + $0x304] ss:$16 sps:$4 sm:$0xff]  }
 0x342   :  { %3393 = vmatpush1.bf16.msra.mxu0 %v7382_v6  ;;  %3475 = vmatpush1.bf16.msra.mxu1 %v7385_v43  ;;  %v7447_v6 = vld [vmem:[#allocation10 + $0x30c] ss:$16 sps:$4 sm:$0xff]   ;;  %v7442_v43 = vld [vmem:[#allocation10 + $0x300] ss:$16 sps:$4 sm:$0xff]  }
 0x343   :  { %3394 = vmatprep.subr.bf16.mxu0 %v7390_v11  ;;  %3476 = vmatprep.subr.bf16.mxu1 %v7393_v12  ;;  %v7445_v11 = vld [vmem:[#allocation10 + $0x308] ss:$16 sps:$4 sm:$0xff]   ;;  %v7450_v12 = vld [vmem:[#allocation10 + $0x324] ss:$16 sps:$4 sm:$0xff]  }
 0x346   :  { %3395 = vmatpush1.bf16.msra.mxu0 %v7388_v13  ;;  %3477 = vmatpush1.bf16.msra.mxu1 %v7391_v14  ;;  %v7453_v13 = vld [vmem:[#allocation10 + $0x32c] ss:$16 sps:$4 sm:$0xff]   ;;  %v7448_v14 = vld [vmem:[#allocation10 + $0x320] ss:$16 sps:$4 sm:$0xff]  }
 0x347   :  { %3405 = vmatprep.subr.bf16.mxu0 %v7396_v48  ;;  %3487 = vmatprep.subr.bf16.mxu1 %v7399_v15  ;;  %v7451_v48 = vld [vmem:[#allocation10 + $0x328] ss:$16 sps:$4 sm:$0xff]   ;;  %v7456_v15 = vld [vmem:[#allocation10 + $0x344] ss:$16 sps:$4 sm:$0xff]  }
 0x3dc   :  { %v2477_v22 = vpop.f32.mrb[4].mxu0  ;;  %v8425_v23 = vpop.f32.mrb[12].mxu1 }
 0x3dd   :  { %v6743_v24 = vadd.f32 %v2477_v22, %v1745_v18  ;;  %v2479_v25 = vpop.f32.mrb[5].mxu0  ;;  %v2561_v26 = vpop.f32.mrb[13].mxu1  ;;  %v7459_v18 = vld [vmem:[#allocation10 + $0x34c] ss:$16 sps:$4 sm:$0xff]   ;;  %v7462_v22 = vld [vmem:[#allocation10 + $0x364] ss:$16 sps:$4 sm:$0xff]  }
 0x3de   :  { %v6744_v27 = vadd.f32 %v2479_v25, %v1749_v19  ;;  %v6746_v28 = vadd.f32 %v2561_v26, %v1757_v21  ;;  %v2481_v7 = vpop.f32.mrb[6].mxu0  ;;  %v2563_v29 = vpop.f32.mrb[14].mxu1  ;;  %v7454_v19 = vld [vmem:[#allocation10 + $0x340] ss:$16 sps:$4 sm:$0xff]   ;;  %v7457_v21 = vld [vmem:[#allocation10 + $0x348] ss:$16 sps:$4 sm:$0xff]  }
 0x3df   :  { %v2566_v30 = vmax.f32 %v6743_v24, 0.0  ;;  %v2482_v31 = vpop.f32.mrb[7].mxu0  ;;  %v2564_v32 = vpop.f32.mrb[15].mxu1  ;;  %v7465_v24 = vld [vmem:[#allocation10 + $0x36c] ss:$16 sps:$4 sm:$0xff]  }
 0x3e0   :  { %v2567_v33 = vmax.f32 %v6744_v27, 0.0  ;;  %v2569_v34 = vmax.f32 %v6746_v28, 0.0  ;;  %v7460_v25 = vld [vmem:[#allocation10 + $0x360] ss:$16 sps:$4 sm:$0xff]   ;;  %v7463_v26 = vld [vmem:[#allocation10 + $0x368] ss:$16 sps:$4 sm:$0xff]  }
 0x3e1   :  { %v2699_v37 = vpack.c.bf16 %v2566_v30, %v2566_v30  ;;  %v7468_v27 = vld [vmem:[#allocation10 + $0x384] ss:$16 sps:$4 sm:$0xff]   ;;  %v7471_v28 = vld [vmem:[#allocation10 + $0x38c] ss:$16 sps:$4 sm:$0xff]   ;;  %v7466_v7 = vld [vmem:[#allocation10 + $0x380] ss:$16 sps:$4 sm:$0xff]  }
 0x3e2   :  { %v2700_v35 = vpack.c.bf16 %v2567_v33, %v2567_v33  ;;  %v2702_v40 = vpack.c.bf16 %v2569_v34, %v2569_v34  ;;  %v7469_v29 = vld [vmem:[#allocation10 + $0x388] ss:$16 sps:$4 sm:$0xff]   ;;  %v7474_v30 = vld [vmem:[#allocation10 + $0x3a4] ss:$16 sps:$4 sm:$0xff]   ;;  %v7477_v31 = vld [vmem:[#allocation10 + $0x3ac] ss:$16 sps:$4 sm:$0xff]   ;;  %v1753_v34 = vrot.slane %v8417_v16, %v8389_v17 }
 0x3e3   :  { %v7472_v32 = vld [vmem:[#allocation10 + $0x3a0] ss:$16 sps:$4 sm:$0xff]   ;;  %v7475_v33 = vld [vmem:[#allocation10 + $0x3a8] ss:$16 sps:$4 sm:$0xff]   ;;  %v7492_v16 = vld [vmem:[#allocation11 + $0x4] ss:$16 sps:$4 sm:$0xff]  }
 0x3e4   :  { %3396 = vmatprep.mubr.bf16.mxu0 %v2700_v35  ;;  %3478 = vmatprep.mubr.bf16.mxu1 %v2700_v35  ;;  %v7480_v35 = vld [vmem:[#allocation10 + $0x3c4] ss:$16 sps:$4 sm:$0xff]  }
 0x3e5   :  { %3397 = vmatmul.mubr.bf16.vlgmr.msra.gmra.mrb[8].mxu0 %v2699_v37  ;;  %3479 = vmatmul.mubr.bf16.vlgmr.msra.gmra.mrb[16].mxu1 %v2699_v37  ;;  %v7481_v37 = vld [vmem:[#allocation10 + $0x3c8] ss:$16 sps:$4 sm:$0xff]  }
 0x3e6   :  { %3406 = vmatpush1.bf16.msra.mxu0 %v7394_v36  ;;  %3488 = vmatpush1.bf16.msra.mxu1 %v7397_v9  ;;  %v7483_v36 = vld [vmem:[#allocation10 + $0x3cc] ss:$16 sps:$4 sm:$0xff]   ;;  %v7478_v9 = vld [vmem:[#allocation10 + $0x3c0] ss:$16 sps:$4 sm:$0xff]  }
 0x3e7   :  { %3437 = vmatprep.mubr.bf16.mxu0 %v2702_v40  ;;  %3519 = vmatprep.mubr.bf16.mxu1 %v2702_v40  ;;  %v7489_v40 = vld [vmem:[#allocation10 + $0x3ec] ss:$16 sps:$4 sm:$0xff]  }
 0x3e8   :  { %3407 = vmatprep.subr.bf16.mxu0 %v7402_v38  ;;  %3489 = vmatprep.subr.bf16.mxu1 %v7405_v39  ;;  %v6745_v38 = vadd.f32 %v8425_v23, %v1753_v34  ;;  %v7486_v39 = vld [vmem:[#allocation10 + $0x3e4] ss:$16 sps:$4 sm:$0xff]  }
 0x3e9   :  { %v7498_v23 = vld [vmem:[#allocation11 + $0x24] ss:$16 sps:$4 sm:$0xff]  }
 0x3ea   :  { %3408 = vmatpush1.bf16.msra.mxu0 %v7400_v41  ;;  %3490 = vmatpush1.bf16.msra.mxu1 %v7403_v42  ;;  %v7484_v41 = vld [vmem:[#allocation10 + $0x3e0] ss:$16 sps:$4 sm:$0xff]   ;;  %v7487_v42 = vld [vmem:[#allocation10 + $0x3e8] ss:$16 sps:$4 sm:$0xff]   ;;  %v7564_v34 = vld [vmem:[#allocation11 + $0x184] ss:$16 sps:$4 sm:$0xff]  }
 0x3eb   :  { %3409 = vmatprep.subr.bf16.mxu0 %v7408_v44  ;;  %3491 = vmatprep.subr.bf16.mxu1 %v7411_v45  ;;  %v2568_v44 = vmax.f32 %v6745_v38, 0.0  ;;  %v7495_v45 = vld [vmem:[#allocation11 + $0xc] ss:$16 sps:$4 sm:$0xff]  }
 0x3ec   :  { %v7573_v38 = vld [vmem:[#allocation11 + $0x1ac] ss:$16 sps:$4 sm:$0xff]  }
 0x3ee   :  { %3410 = vmatpush1.bf16.msra.mxu0 %v7406_v46  ;;  %3492 = vmatpush1.bf16.msra.mxu1 %v7409_v47  ;;  %v7490_v46 = vld [vmem:[#allocation11] ss:$16 sps:$4 sm:$0xff]   ;;  %v7493_v47 = vld [vmem:[#allocation11 + $0x8] ss:$16 sps:$4 sm:$0xff]  }
 0x3ef   :  { %3411 = vmatprep.subr.bf16.mxu0 %v7414_v49  ;;  %3493 = vmatprep.subr.bf16.mxu1 %v7417_v50  ;;  %v2701_v49 = vpack.c.bf16 %v2568_v44, %v2568_v44  ;;  %v7501_v50 = vld [vmem:[#allocation11 + $0x2c] ss:$16 sps:$4 sm:$0xff]   ;;  %v7574_v44 = vld [vmem:[#allocation11 + $0x1c0] ss:$16 sps:$4 sm:$0xff]  }
 0x3f2   :  { %3412 = vmatpush1.bf16.msra.mxu0 %v7412_v51  ;;  %3494 = vmatpush1.bf16.msra.mxu1 %v7415_v52  ;;  %v7496_v51 = vld [vmem:[#allocation11 + $0x20] ss:$16 sps:$4 sm:$0xff]   ;;  %v7499_v52 = vld [vmem:[#allocation11 + $0x28] ss:$16 sps:$4 sm:$0xff]  }
 0x3f3   :  { %3413 = vmatprep.subr.bf16.mxu0 %v7420_v53  ;;  %3495 = vmatprep.subr.bf16.mxu1 %v7423_v54  ;;  %v7504_v53 = vld [vmem:[#allocation11 + $0x44] ss:$16 sps:$4 sm:$0xff]   ;;  %v7507_v54 = vld [vmem:[#allocation11 + $0x4c] ss:$16 sps:$4 sm:$0xff]  }
 0x3f6   :  { %3414 = vmatpush1.bf16.msra.mxu0 %v7418_v55  ;;  %3496 = vmatpush1.bf16.msra.mxu1 %v7421_v56  ;;  %v7502_v55 = vld [vmem:[#allocation11 + $0x40] ss:$16 sps:$4 sm:$0xff]   ;;  %v7505_v56 = vld [vmem:[#allocation11 + $0x48] ss:$16 sps:$4 sm:$0xff]  }
 0x3f7   :  { %3415 = vmatprep.subr.bf16.mxu0 %v7426_v57  ;;  %3497 = vmatprep.subr.bf16.mxu1 %v7429_v58  ;;  %v7510_v57 = vld [vmem:[#allocation11 + $0x64] ss:$16 sps:$4 sm:$0xff]   ;;  %v7513_v58 = vld [vmem:[#allocation11 + $0x6c] ss:$16 sps:$4 sm:$0xff]  }
 0x3fa   :  { %3416 = vmatpush1.bf16.msra.mxu0 %v7424_v59  ;;  %3498 = vmatpush1.bf16.msra.mxu1 %v7427_v60  ;;  %v7508_v59 = vld [vmem:[#allocation11 + $0x60] ss:$16 sps:$4 sm:$0xff]   ;;  %v7511_v60 = vld [vmem:[#allocation11 + $0x68] ss:$16 sps:$4 sm:$0xff]  }
 0x3fb   :  { %3417 = vmatprep.subr.bf16.mxu0 %v7432_v61  ;;  %3499 = vmatprep.subr.bf16.mxu1 %v7435_v62  ;;  %v7516_v61 = vld [vmem:[#allocation11 + $0x84] ss:$16 sps:$4 sm:$0xff]   ;;  %v7519_v62 = vld [vmem:[#allocation11 + $0x8c] ss:$16 sps:$4 sm:$0xff]  }
 0x3fe   :  { %3418 = vmatpush1.bf16.msra.mxu0 %v7430_v63  ;;  %3500 = vmatpush1.bf16.msra.mxu1 %v7433_v0  ;;  %v7514_v63 = vld [vmem:[#allocation11 + $0x80] ss:$16 sps:$4 sm:$0xff]   ;;  %v7517_v0 = vld [vmem:[#allocation11 + $0x88] ss:$16 sps:$4 sm:$0xff]  }
 0x3ff   :  { %3419 = vmatprep.subr.bf16.mxu0 %v7438_v1  ;;  %3501 = vmatprep.subr.bf16.mxu1 %v7441_v2  ;;  %v7522_v1 = vld [vmem:[#allocation11 + $0xa4] ss:$16 sps:$4 sm:$0xff]   ;;  %v7525_v2 = vld [vmem:[#allocation11 + $0xac] ss:$16 sps:$4 sm:$0xff]  }
 0x402   :  { %3420 = vmatpush1.bf16.msra.mxu0 %v7436_v3  ;;  %3502 = vmatpush1.bf16.msra.mxu1 %v7439_v4  ;;  %v7520_v3 = vld [vmem:[#allocation11 + $0xa0] ss:$16 sps:$4 sm:$0xff]   ;;  %v7523_v4 = vld [vmem:[#allocation11 + $0xa8] ss:$16 sps:$4 sm:$0xff]  }
 0x403   :  { %3421 = vmatprep.subr.bf16.mxu0 %v7444_v5  ;;  %3503 = vmatprep.subr.bf16.mxu1 %v7447_v6  ;;  %v7528_v5 = vld [vmem:[#allocation11 + $0xc4] ss:$16 sps:$4 sm:$0xff]   ;;  %v7531_v6 = vld [vmem:[#allocation11 + $0xcc] ss:$16 sps:$4 sm:$0xff]  }
 0x406   :  { %3422 = vmatpush1.bf16.msra.mxu0 %v7442_v43  ;;  %3504 = vmatpush1.bf16.msra.mxu1 %v7445_v11  ;;  %v7526_v43 = vld [vmem:[#allocation11 + $0xc0] ss:$16 sps:$4 sm:$0xff]   ;;  %v7529_v11 = vld [vmem:[#allocation11 + $0xc8] ss:$16 sps:$4 sm:$0xff]  }
 0x407   :  { %3423 = vmatprep.subr.bf16.mxu0 %v7450_v12  ;;  %3505 = vmatprep.subr.bf16.mxu1 %v7453_v13  ;;  %v7534_v12 = vld [vmem:[#allocation11 + $0xe4] ss:$16 sps:$4 sm:$0xff]   ;;  %v7537_v13 = vld [vmem:[#allocation11 + $0xec] ss:$16 sps:$4 sm:$0xff]  }
 0x40a   :  { %3424 = vmatpush1.bf16.msra.mxu0 %v7448_v14  ;;  %3506 = vmatpush1.bf16.msra.mxu1 %v7451_v48  ;;  %v7532_v14 = vld [vmem:[#allocation11 + $0xe0] ss:$16 sps:$4 sm:$0xff]   ;;  %v7535_v48 = vld [vmem:[#allocation11 + $0xe8] ss:$16 sps:$4 sm:$0xff]  }
 0x40b   :  { %3425 = vmatprep.subr.bf16.mxu0 %v7456_v15  ;;  %3507 = vmatprep.subr.bf16.mxu1 %v7459_v18  ;;  %v7540_v15 = vld [vmem:[#allocation11 + $0x104] ss:$16 sps:$4 sm:$0xff]   ;;  %v7543_v18 = vld [vmem:[#allocation11 + $0x10c] ss:$16 sps:$4 sm:$0xff]  }
 0x40e   :  { %3426 = vmatpush1.bf16.msra.mxu0 %v7454_v19  ;;  %3508 = vmatpush1.bf16.msra.mxu1 %v7457_v21  ;;  %v7538_v19 = vld [vmem:[#allocation11 + $0x100] ss:$16 sps:$4 sm:$0xff]   ;;  %v7541_v21 = vld [vmem:[#allocation11 + $0x108] ss:$16 sps:$4 sm:$0xff]  }
 0x40f   :  { %3427 = vmatprep.subr.bf16.mxu0 %v7462_v22  ;;  %3509 = vmatprep.subr.bf16.mxu1 %v7465_v24  ;;  %v7546_v22 = vld [vmem:[#allocation11 + $0x124] ss:$16 sps:$4 sm:$0xff]   ;;  %v7549_v24 = vld [vmem:[#allocation11 + $0x12c] ss:$16 sps:$4 sm:$0xff]  }
 0x412   :  { %3428 = vmatpush1.bf16.msra.mxu0 %v7460_v25  ;;  %3510 = vmatpush1.bf16.msra.mxu1 %v7463_v26  ;;  %v7544_v25 = vld [vmem:[#allocation11 + $0x120] ss:$16 sps:$4 sm:$0xff]   ;;  %v7547_v26 = vld [vmem:[#allocation11 + $0x128] ss:$16 sps:$4 sm:$0xff]  }
 0x413   :  { %3429 = vmatprep.subr.bf16.mxu0 %v7468_v27  ;;  %3511 = vmatprep.subr.bf16.mxu1 %v7471_v28  ;;  %v7552_v27 = vld [vmem:[#allocation11 + $0x144] ss:$16 sps:$4 sm:$0xff]   ;;  %v7555_v28 = vld [vmem:[#allocation11 + $0x14c] ss:$16 sps:$4 sm:$0xff]  }
 0x416   :  { %3430 = vmatpush1.bf16.msra.mxu0 %v7466_v7  ;;  %3512 = vmatpush1.bf16.msra.mxu1 %v7469_v29  ;;  %v7550_v7 = vld [vmem:[#allocation11 + $0x140] ss:$16 sps:$4 sm:$0xff]   ;;  %v7553_v29 = vld [vmem:[#allocation11 + $0x148] ss:$16 sps:$4 sm:$0xff]  }
 0x417   :  { %3431 = vmatprep.subr.bf16.mxu0 %v7474_v30  ;;  %3513 = vmatprep.subr.bf16.mxu1 %v7477_v31  ;;  %v7558_v30 = vld [vmem:[#allocation11 + $0x164] ss:$16 sps:$4 sm:$0xff]   ;;  %v7561_v31 = vld [vmem:[#allocation11 + $0x16c] ss:$16 sps:$4 sm:$0xff]  }
 0x41a   :  { %3432 = vmatpush1.bf16.msra.mxu0 %v7472_v32  ;;  %3514 = vmatpush1.bf16.msra.mxu1 %v7475_v33  ;;  %v7556_v32 = vld [vmem:[#allocation11 + $0x160] ss:$16 sps:$4 sm:$0xff]   ;;  %v7559_v33 = vld [vmem:[#allocation11 + $0x168] ss:$16 sps:$4 sm:$0xff]  }
 0x41b   :  { %3433 = vmatprep.subr.bf16.mxu0 %v7480_v35  ;;  %3515 = vmatprep.subr.bf16.mxu1 %v7483_v36  ;;  %v7567_v35 = vld [vmem:[#allocation11 + $0x18c] ss:$16 sps:$4 sm:$0xff]   ;;  %v7562_v36 = vld [vmem:[#allocation11 + $0x180] ss:$16 sps:$4 sm:$0xff]  }
 0x41e   :  { %3434 = vmatpush1.bf16.msra.mxu0 %v7478_v9  ;;  %3516 = vmatpush1.bf16.msra.mxu1 %v7481_v37  ;;  %v7565_v9 = vld [vmem:[#allocation11 + $0x188] ss:$16 sps:$4 sm:$0xff]   ;;  %v7570_v37 = vld [vmem:[#allocation11 + $0x1a4] ss:$16 sps:$4 sm:$0xff]  }
 0x41f   :  { %3435 = vmatprep.subr.bf16.mxu0 %v7486_v39  ;;  %3517 = vmatprep.subr.bf16.mxu1 %v7489_v40  ;;  %v7568_v39 = vld [vmem:[#allocation11 + $0x1a0] ss:$16 sps:$4 sm:$0xff]   ;;  %v7571_v40 = vld [vmem:[#allocation11 + $0x1a8] ss:$16 sps:$4 sm:$0xff]  }
 0x422   :  { %3436 = vmatpush1.bf16.msra.mxu0 %v7484_v41  ;;  %3518 = vmatpush1.bf16.msra.mxu1 %v7487_v42  ;;  %v7576_v41 = vld [vmem:[#allocation11 + $0x1c4] ss:$16 sps:$4 sm:$0xff]   ;;  %v7579_v42 = vld [vmem:[#allocation11 + $0x1cc] ss:$16 sps:$4 sm:$0xff]  }
 0x423   :  { %4326 = vmatprep.subr.bf16.mxu0 %v7492_v16  ;;  %4408 = vmatprep.subr.bf16.mxu1 %v7495_v45  ;;  %v7577_v16 = vld [vmem:[#allocation11 + $0x1c8] ss:$16 sps:$4 sm:$0xff]   ;;  %v7582_v45 = vld [vmem:[#allocation11 + $0x1e4] ss:$16 sps:$4 sm:$0xff]  }
 0x425   :  { %3438 = vmatmul.mubr.bf16.vlgmr.msra.gmra.mrb[8].mxu0 %v2701_v49  ;;  %3520 = vmatmul.mubr.bf16.vlgmr.msra.gmra.mrb[16].mxu1 %v2701_v49  ;;  %v7583_v49 = vld [vmem:[#allocation11 + $0x1e8] ss:$16 sps:$4 sm:$0xff]  }
 0x426   :  { %4327 = vmatpush1.bf16.msra.mxu0 %v7490_v46  ;;  %4409 = vmatpush1.bf16.msra.mxu1 %v7493_v47  ;;  %v7585_v46 = vld [vmem:[#allocation11 + $0x1ec] ss:$16 sps:$4 sm:$0xff]   ;;  %v7580_v47 = vld [vmem:[#allocation11 + $0x1e0] ss:$16 sps:$4 sm:$0xff]  }
 0x427   :  { %4328 = vmatprep.subr.bf16.mxu0 %v7498_v23  ;;  %4410 = vmatprep.subr.bf16.mxu1 %v7501_v50  ;;  %v7588_v23 = vld [vmem:[#allocation11 + $0x204] ss:$16 sps:$4 sm:$0xff]   ;;  %v7591_v50 = vld [vmem:[#allocation11 + $0x20c] ss:$16 sps:$4 sm:$0xff]  }
 0x42a   :  { %4329 = vmatpush1.bf16.msra.mxu0 %v7496_v51  ;;  %4411 = vmatpush1.bf16.msra.mxu1 %v7499_v52  ;;  %v8433_v51 = vld [vmem:[%s8503_s8 + $0xc] sm:$0xf] }
 0x42b   :  { %4330 = vmatprep.subr.bf16.mxu0 %v7504_v53  ;;  %4412 = vmatprep.subr.bf16.mxu1 %v7507_v54  ;;  %v2707_v52 = vrot.slane %v8433_v51, %v8374_v8  ;;  %v2711_v53 = vrot.slane %v8433_v51, %v8382_v10  ;;  %v2719_v54 = vrot.slane %v8433_v51, %v8392_v20 }
 0x42e   :  { %4331 = vmatpush1.bf16.msra.mxu0 %v7502_v55  ;;  %4413 = vmatpush1.bf16.msra.mxu1 %v7505_v56 }
 0x42f   :  { %4332 = vmatprep.subr.bf16.mxu0 %v7510_v57  ;;  %4414 = vmatprep.subr.bf16.mxu1 %v7513_v58 }
 0x432   :  { %4333 = vmatpush1.bf16.msra.mxu0 %v7508_v59  ;;  %4415 = vmatpush1.bf16.msra.mxu1 %v7511_v60 }
 0x433   :  { %4334 = vmatprep.subr.bf16.mxu0 %v7516_v61  ;;  %4416 = vmatprep.subr.bf16.mxu1 %v7519_v62 }
 0x436   :  { %4335 = vmatpush1.bf16.msra.mxu0 %v7514_v63  ;;  %4417 = vmatpush1.bf16.msra.mxu1 %v7517_v0 }
 0x437   :  { %4336 = vmatprep.subr.bf16.mxu0 %v7522_v1  ;;  %4418 = vmatprep.subr.bf16.mxu1 %v7525_v2 }
 0x43a   :  { %4337 = vmatpush1.bf16.msra.mxu0 %v7520_v3  ;;  %4419 = vmatpush1.bf16.msra.mxu1 %v7523_v4 }
 0x43b   :  { %4338 = vmatprep.subr.bf16.mxu0 %v7528_v5  ;;  %4420 = vmatprep.subr.bf16.mxu1 %v7531_v6  ;;  %v7586_v6 = vld [vmem:[#allocation11 + $0x200] ss:$16 sps:$4 sm:$0xff]  }
 0x43e   :  { %4339 = vmatpush1.bf16.msra.mxu0 %v7526_v43  ;;  %4421 = vmatpush1.bf16.msra.mxu1 %v7529_v11  ;;  %v7589_v43 = vld [vmem:[#allocation11 + $0x208] ss:$16 sps:$4 sm:$0xff]  }
 0x43f   :  { %4340 = vmatprep.subr.bf16.mxu0 %v7534_v12  ;;  %4422 = vmatprep.subr.bf16.mxu1 %v7537_v13  ;;  %v7594_v12 = vld [vmem:[#allocation11 + $0x224] ss:$16 sps:$4 sm:$0xff]   ;;  %v7597_v13 = vld [vmem:[#allocation11 + $0x22c] ss:$16 sps:$4 sm:$0xff]  }
 0x442   :  { %4341 = vmatpush1.bf16.msra.mxu0 %v7532_v14  ;;  %4423 = vmatpush1.bf16.msra.mxu1 %v7535_v48  ;;  %v7592_v48 = vld [vmem:[#allocation11 + $0x220] ss:$16 sps:$4 sm:$0xff]  }
 0x443   :  { %4342 = vmatprep.subr.bf16.mxu0 %v7540_v15  ;;  %4424 = vmatprep.subr.bf16.mxu1 %v7543_v18  ;;  %v7595_v15 = vld [vmem:[#allocation11 + $0x228] ss:$16 sps:$4 sm:$0xff]   ;;  %v7600_v18 = vld [vmem:[#allocation11 + $0x244] ss:$16 sps:$4 sm:$0xff]  }
 0x446   :  { %4343 = vmatpush1.bf16.msra.mxu0 %v7538_v19  ;;  %4425 = vmatpush1.bf16.msra.mxu1 %v7541_v21  ;;  %v7603_v19 = vld [vmem:[#allocation11 + $0x24c] ss:$16 sps:$4 sm:$0xff]   ;;  %v7598_v21 = vld [vmem:[#allocation11 + $0x240] ss:$16 sps:$4 sm:$0xff]  }
 0x447   :  { %4344 = vmatprep.subr.bf16.mxu0 %v7546_v22  ;;  %4426 = vmatprep.subr.bf16.mxu1 %v7549_v24  ;;  %v7601_v22 = vld [vmem:[#allocation11 + $0x248] ss:$16 sps:$4 sm:$0xff]   ;;  %v7606_v24 = vld [vmem:[#allocation11 + $0x264] ss:$16 sps:$4 sm:$0xff]  }
 0x44a   :  { %4345 = vmatpush1.bf16.msra.mxu0 %v7544_v25  ;;  %4427 = vmatpush1.bf16.msra.mxu1 %v7547_v26  ;;  %v7609_v25 = vld [vmem:[#allocation11 + $0x26c] ss:$16 sps:$4 sm:$0xff]   ;;  %v7604_v26 = vld [vmem:[#allocation11 + $0x260] ss:$16 sps:$4 sm:$0xff]  }
 0x44b   :  { %4346 = vmatprep.subr.bf16.mxu0 %v7552_v27  ;;  %4428 = vmatprep.subr.bf16.mxu1 %v7555_v28  ;;  %v7607_v27 = vld [vmem:[#allocation11 + $0x268] ss:$16 sps:$4 sm:$0xff]   ;;  %v7612_v28 = vld [vmem:[#allocation11 + $0x284] ss:$16 sps:$4 sm:$0xff]  }
 0x44e   :  { %4347 = vmatpush1.bf16.msra.mxu0 %v7550_v7  ;;  %4429 = vmatpush1.bf16.msra.mxu1 %v7553_v29  ;;  %v7615_v7 = vld [vmem:[#allocation11 + $0x28c] ss:$16 sps:$4 sm:$0xff]   ;;  %v7610_v29 = vld [vmem:[#allocation11 + $0x280] ss:$16 sps:$4 sm:$0xff]  }
 0x44f   :  { %4348 = vmatprep.subr.bf16.mxu0 %v7558_v30  ;;  %4430 = vmatprep.subr.bf16.mxu1 %v7561_v31  ;;  %v7613_v30 = vld [vmem:[#allocation11 + $0x288] ss:$16 sps:$4 sm:$0xff]   ;;  %v7618_v31 = vld [vmem:[#allocation11 + $0x2a4] ss:$16 sps:$4 sm:$0xff]  }
 0x452   :  { %4349 = vmatpush1.bf16.msra.mxu0 %v7556_v32  ;;  %4431 = vmatpush1.bf16.msra.mxu1 %v7559_v33  ;;  %v7621_v32 = vld [vmem:[#allocation11 + $0x2ac] ss:$16 sps:$4 sm:$0xff]   ;;  %v7616_v33 = vld [vmem:[#allocation11 + $0x2a0] ss:$16 sps:$4 sm:$0xff]  }
 0x453   :  { %4350 = vmatprep.subr.bf16.mxu0 %v7564_v34  ;;  %4432 = vmatprep.subr.bf16.mxu1 %v7567_v35  ;;  %v7619_v34 = vld [vmem:[#allocation11 + $0x2a8] ss:$16 sps:$4 sm:$0xff]   ;;  %v7624_v35 = vld [vmem:[#allocation11 + $0x2c4] ss:$16 sps:$4 sm:$0xff]  }
 0x456   :  { %4351 = vmatpush1.bf16.msra.mxu0 %v7562_v36  ;;  %4433 = vmatpush1.bf16.msra.mxu1 %v7565_v9  ;;  %v7627_v36 = vld [vmem:[#allocation11 + $0x2cc] ss:$16 sps:$4 sm:$0xff]   ;;  %v7622_v9 = vld [vmem:[#allocation11 + $0x2c0] ss:$16 sps:$4 sm:$0xff]  }
 0x457   :  { %4352 = vmatprep.subr.bf16.mxu0 %v7570_v37  ;;  %4434 = vmatprep.subr.bf16.mxu1 %v7573_v38  ;;  %v7625_v37 = vld [vmem:[#allocation11 + $0x2c8] ss:$16 sps:$4 sm:$0xff]   ;;  %v7630_v38 = vld [vmem:[#allocation11 + $0x2e4] ss:$16 sps:$4 sm:$0xff]  }
 0x45a   :  { %4353 = vmatpush1.bf16.msra.mxu0 %v7568_v39  ;;  %4435 = vmatpush1.bf16.msra.mxu1 %v7571_v40  ;;  %v7633_v39 = vld [vmem:[#allocation11 + $0x2ec] ss:$16 sps:$4 sm:$0xff]   ;;  %v7628_v40 = vld [vmem:[#allocation11 + $0x2e0] ss:$16 sps:$4 sm:$0xff]  }
 0x45b   :  { %4354 = vmatprep.subr.bf16.mxu0 %v7576_v41  ;;  %4436 = vmatprep.subr.bf16.mxu1 %v7579_v42  ;;  %v7631_v41 = vld [vmem:[#allocation11 + $0x2e8] ss:$16 sps:$4 sm:$0xff]   ;;  %v7636_v42 = vld [vmem:[#allocation11 + $0x304] ss:$16 sps:$4 sm:$0xff]  }
 0x45e   :  { %4355 = vmatpush1.bf16.msra.mxu0 %v7574_v44  ;;  %4437 = vmatpush1.bf16.msra.mxu1 %v7577_v16  ;;  %v7639_v44 = vld [vmem:[#allocation11 + $0x30c] ss:$16 sps:$4 sm:$0xff]   ;;  %v7634_v16 = vld [vmem:[#allocation11 + $0x300] ss:$16 sps:$4 sm:$0xff]  }
 0x45f   :  { %4356 = vmatprep.subr.bf16.mxu0 %v7582_v45  ;;  %4438 = vmatprep.subr.bf16.mxu1 %v7585_v46  ;;  %v7637_v45 = vld [vmem:[#allocation11 + $0x308] ss:$16 sps:$4 sm:$0xff]   ;;  %v7642_v46 = vld [vmem:[#allocation11 + $0x324] ss:$16 sps:$4 sm:$0xff]  }
 0x462   :  { %4357 = vmatpush1.bf16.msra.mxu0 %v7580_v47  ;;  %4439 = vmatpush1.bf16.msra.mxu1 %v7583_v49  ;;  %v7645_v47 = vld [vmem:[#allocation11 + $0x32c] ss:$16 sps:$4 sm:$0xff]   ;;  %v7640_v49 = vld [vmem:[#allocation11 + $0x320] ss:$16 sps:$4 sm:$0xff]  }
 0x463   :  { %4367 = vmatprep.subr.bf16.mxu0 %v7588_v23  ;;  %4449 = vmatprep.subr.bf16.mxu1 %v7591_v50  ;;  %v7643_v23 = vld [vmem:[#allocation11 + $0x328] ss:$16 sps:$4 sm:$0xff]   ;;  %v7648_v50 = vld [vmem:[#allocation11 + $0x344] ss:$16 sps:$4 sm:$0xff]  }
 0x4f8   :  { %v3439_v55 = vpop.f32.mrb[8].mxu0  ;;  %v8441_v56 = vpop.f32.mrb[16].mxu1 }
 0x4f9   :  { %v6747_v57 = vadd.f32 %v3439_v55, %v2707_v52  ;;  %v3441_v58 = vpop.f32.mrb[9].mxu0  ;;  %v3523_v59 = vpop.f32.mrb[17].mxu1  ;;  %v7651_v52 = vld [vmem:[#allocation11 + $0x34c] ss:$16 sps:$4 sm:$0xff]   ;;  %v7654_v55 = vld [vmem:[#allocation11 + $0x364] ss:$16 sps:$4 sm:$0xff]  }
 0x4fa   :  { %v6748_v60 = vadd.f32 %v3441_v58, %v2711_v53  ;;  %v6750_v61 = vadd.f32 %v3523_v59, %v2719_v54  ;;  %v3443_v62 = vpop.f32.mrb[10].mxu0  ;;  %v3525_v63 = vpop.f32.mrb[18].mxu1  ;;  %v7646_v53 = vld [vmem:[#allocation11 + $0x340] ss:$16 sps:$4 sm:$0xff]   ;;  %v7649_v54 = vld [vmem:[#allocation11 + $0x348] ss:$16 sps:$4 sm:$0xff]  }
 0x4fb   :  { %v3528_v0 = vmax.f32 %v6747_v57, 0.0  ;;  %v3444_v1 = vpop.f32.mrb[11].mxu0  ;;  %v3526_v2 = vpop.f32.mrb[19].mxu1  ;;  %v7657_v57 = vld [vmem:[#allocation11 + $0x36c] ss:$16 sps:$4 sm:$0xff]  }
 0x4fc   :  { %v3529_v3 = vmax.f32 %v6748_v60, 0.0  ;;  %v3531_v4 = vmax.f32 %v6750_v61, 0.0  ;;  %v7652_v58 = vld [vmem:[#allocation11 + $0x360] ss:$16 sps:$4 sm:$0xff]   ;;  %v7655_v59 = vld [vmem:[#allocation11 + $0x368] ss:$16 sps:$4 sm:$0xff]  }
 0x4fd   :  { %v3661_v11 = vpack.c.bf16 %v3528_v0, %v3528_v0  ;;  %v7660_v60 = vld [vmem:[#allocation11 + $0x384] ss:$16 sps:$4 sm:$0xff]   ;;  %v7663_v61 = vld [vmem:[#allocation11 + $0x38c] ss:$16 sps:$4 sm:$0xff]   ;;  %v7658_v62 = vld [vmem:[#allocation11 + $0x380] ss:$16 sps:$4 sm:$0xff]  }
 0x4fe   :  { %v3662_v5 = vpack.c.bf16 %v3529_v3, %v3529_v3  ;;  %v3664_v14 = vpack.c.bf16 %v3531_v4, %v3531_v4  ;;  %v7661_v63 = vld [vmem:[#allocation11 + $0x388] ss:$16 sps:$4 sm:$0xff]   ;;  %v7666_v0 = vld [vmem:[#allocation11 + $0x3a4] ss:$16 sps:$4 sm:$0xff]   ;;  %v7669_v1 = vld [vmem:[#allocation11 + $0x3ac] ss:$16 sps:$4 sm:$0xff]   ;;  %v2715_v4 = vrot.slane %v8433_v51, %v8389_v17 }
 0x4ff   :  { %v7664_v2 = vld [vmem:[#allocation11 + $0x3a0] ss:$16 sps:$4 sm:$0xff]   ;;  %v7667_v3 = vld [vmem:[#allocation11 + $0x3a8] ss:$16 sps:$4 sm:$0xff]   ;;  %v7684_v51 = vld [vmem:[#allocation13 + $0x4] ss:$16 sps:$4 sm:$0xff]  }
 0x500   :  { %4358 = vmatprep.mubr.bf16.mxu0 %v3662_v5  ;;  %4440 = vmatprep.mubr.bf16.mxu1 %v3662_v5  ;;  %v7672_v5 = vld [vmem:[#allocation11 + $0x3c4] ss:$16 sps:$4 sm:$0xff]  }
 0x501   :  { %4359 = vmatmul.mubr.bf16.vlgmr.msra.gmra.mrb[12].mxu0 %v3661_v11  ;;  %4441 = vmatmul.mubr.bf16.vlgmr.msra.gmra.mrb[20].mxu1 %v3661_v11  ;;  %v7673_v11 = vld [vmem:[#allocation11 + $0x3c8] ss:$16 sps:$4 sm:$0xff]  }
 0x502   :  { %4368 = vmatpush1.bf16.msra.mxu0 %v7586_v6  ;;  %4450 = vmatpush1.bf16.msra.mxu1 %v7589_v43  ;;  %v7675_v6 = vld [vmem:[#allocation11 + $0x3cc] ss:$16 sps:$4 sm:$0xff]   ;;  %v7670_v43 = vld [vmem:[#allocation11 + $0x3c0] ss:$16 sps:$4 sm:$0xff]  }
 0x503   :  { %4399 = vmatprep.mubr.bf16.mxu0 %v3664_v14  ;;  %4481 = vmatprep.mubr.bf16.mxu1 %v3664_v14  ;;  %v7681_v14 = vld [vmem:[#allocation11 + $0x3ec] ss:$16 sps:$4 sm:$0xff]  }
 0x504   :  { %4369 = vmatprep.subr.bf16.mxu0 %v7594_v12  ;;  %4451 = vmatprep.subr.bf16.mxu1 %v7597_v13  ;;  %v6749_v12 = vadd.f32 %v8441_v56, %v2715_v4  ;;  %v7678_v13 = vld [vmem:[#allocation11 + $0x3e4] ss:$16 sps:$4 sm:$0xff]  }
 0x505   :  { %v7690_v56 = vld [vmem:[#allocation13 + $0x24] ss:$16 sps:$4 sm:$0xff]  }
 0x506   :  { %4370 = vmatpush1.bf16.msra.mxu0 %v7592_v48  ;;  %4452 = vmatpush1.bf16.msra.mxu1 %v7595_v15  ;;  %v7676_v48 = vld [vmem:[#allocation11 + $0x3e0] ss:$16 sps:$4 sm:$0xff]   ;;  %v7679_v15 = vld [vmem:[#allocation11 + $0x3e8] ss:$16 sps:$4 sm:$0xff]   ;;  %v7756_v4 = vld [vmem:[#allocation13 + $0x184] ss:$16 sps:$4 sm:$0xff]  }
 0x507   :  { %4371 = vmatprep.subr.bf16.mxu0 %v7600_v18  ;;  %4453 = vmatprep.subr.bf16.mxu1 %v7603_v19  ;;  %v3530_v18 = vmax.f32 %v6749_v12, 0.0  ;;  %v7687_v19 = vld [vmem:[#allocation13 + $0xc] ss:$16 sps:$4 sm:$0xff]  }
 0x508   :  { %v7765_v12 = vld [vmem:[#allocation13 + $0x1ac] ss:$16 sps:$4 sm:$0xff]  }
 0x50a   :  { %4372 = vmatpush1.bf16.msra.mxu0 %v7598_v21  ;;  %4454 = vmatpush1.bf16.msra.mxu1 %v7601_v22  ;;  %v7682_v21 = vld [vmem:[#allocation13] ss:$16 sps:$4 sm:$0xff]   ;;  %v7685_v22 = vld [vmem:[#allocation13 + $0x8] ss:$16 sps:$4 sm:$0xff]  }
 0x50b   :  { %4373 = vmatprep.subr.bf16.mxu0 %v7606_v24  ;;  %4455 = vmatprep.subr.bf16.mxu1 %v7609_v25  ;;  %v3663_v24 = vpack.c.bf16 %v3530_v18, %v3530_v18  ;;  %v7693_v25 = vld [vmem:[#allocation13 + $0x2c] ss:$16 sps:$4 sm:$0xff]   ;;  %v7766_v18 = vld [vmem:[#allocation13 + $0x1c0] ss:$16 sps:$4 sm:$0xff]  }
 0x50e   :  { %4374 = vmatpush1.bf16.msra.mxu0 %v7604_v26  ;;  %4456 = vmatpush1.bf16.msra.mxu1 %v7607_v27  ;;  %v7688_v26 = vld [vmem:[#allocation13 + $0x20] ss:$16 sps:$4 sm:$0xff]   ;;  %v7691_v27 = vld [vmem:[#allocation13 + $0x28] ss:$16 sps:$4 sm:$0xff]  }
 0x50f   :  { %4375 = vmatprep.subr.bf16.mxu0 %v7612_v28  ;;  %4457 = vmatprep.subr.bf16.mxu1 %v7615_v7  ;;  %v7696_v28 = vld [vmem:[#allocation13 + $0x44] ss:$16 sps:$4 sm:$0xff]   ;;  %v7699_v7 = vld [vmem:[#allocation13 + $0x4c] ss:$16 sps:$4 sm:$0xff]  }
 0x512   :  { %4376 = vmatpush1.bf16.msra.mxu0 %v7610_v29  ;;  %4458 = vmatpush1.bf16.msra.mxu1 %v7613_v30  ;;  %v7694_v29 = vld [vmem:[#allocation13 + $0x40] ss:$16 sps:$4 sm:$0xff]   ;;  %v7697_v30 = vld [vmem:[#allocation13 + $0x48] ss:$16 sps:$4 sm:$0xff]  }
 0x513   :  { %4377 = vmatprep.subr.bf16.mxu0 %v7618_v31  ;;  %4459 = vmatprep.subr.bf16.mxu1 %v7621_v32  ;;  %v7702_v31 = vld [vmem:[#allocation13 + $0x64] ss:$16 sps:$4 sm:$0xff]   ;;  %v7705_v32 = vld [vmem:[#allocation13 + $0x6c] ss:$16 sps:$4 sm:$0xff]  }
 0x516   :  { %4378 = vmatpush1.bf16.msra.mxu0 %v7616_v33  ;;  %4460 = vmatpush1.bf16.msra.mxu1 %v7619_v34  ;;  %v7700_v33 = vld [vmem:[#allocation13 + $0x60] ss:$16 sps:$4 sm:$0xff]   ;;  %v7703_v34 = vld [vmem:[#allocation13 + $0x68] ss:$16 sps:$4 sm:$0xff]  }
 0x517   :  { %4379 = vmatprep.subr.bf16.mxu0 %v7624_v35  ;;  %4461 = vmatprep.subr.bf16.mxu1 %v7627_v36  ;;  %v7708_v35 = vld [vmem:[#allocation13 + $0x84] ss:$16 sps:$4 sm:$0xff]   ;;  %v7711_v36 = vld [vmem:[#allocation13 + $0x8c] ss:$16 sps:$4 sm:$0xff]  }
 0x51a   :  { %4380 = vmatpush1.bf16.msra.mxu0 %v7622_v9  ;;  %4462 = vmatpush1.bf16.msra.mxu1 %v7625_v37  ;;  %v7706_v9 = vld [vmem:[#allocation13 + $0x80] ss:$16 sps:$4 sm:$0xff]   ;;  %v7709_v37 = vld [vmem:[#allocation13 + $0x88] ss:$16 sps:$4 sm:$0xff]  }
 0x51b   :  { %4381 = vmatprep.subr.bf16.mxu0 %v7630_v38  ;;  %4463 = vmatprep.subr.bf16.mxu1 %v7633_v39  ;;  %v7714_v38 = vld [vmem:[#allocation13 + $0xa4] ss:$16 sps:$4 sm:$0xff]   ;;  %v7717_v39 = vld [vmem:[#allocation13 + $0xac] ss:$16 sps:$4 sm:$0xff]  }
 0x51e   :  { %4382 = vmatpush1.bf16.msra.mxu0 %v7628_v40  ;;  %4464 = vmatpush1.bf16.msra.mxu1 %v7631_v41  ;;  %v7712_v40 = vld [vmem:[#allocation13 + $0xa0] ss:$16 sps:$4 sm:$0xff]   ;;  %v7715_v41 = vld [vmem:[#allocation13 + $0xa8] ss:$16 sps:$4 sm:$0xff]  }
 0x51f   :  { %4383 = vmatprep.subr.bf16.mxu0 %v7636_v42  ;;  %4465 = vmatprep.subr.bf16.mxu1 %v7639_v44  ;;  %v7720_v42 = vld [vmem:[#allocation13 + $0xc4] ss:$16 sps:$4 sm:$0xff]   ;;  %v7723_v44 = vld [vmem:[#allocation13 + $0xcc] ss:$16 sps:$4 sm:$0xff]  }
 0x522   :  { %4384 = vmatpush1.bf16.msra.mxu0 %v7634_v16  ;;  %4466 = vmatpush1.bf16.msra.mxu1 %v7637_v45  ;;  %v7718_v16 = vld [vmem:[#allocation13 + $0xc0] ss:$16 sps:$4 sm:$0xff]   ;;  %v7721_v45 = vld [vmem:[#allocation13 + $0xc8] ss:$16 sps:$4 sm:$0xff]  }
 0x523   :  { %4385 = vmatprep.subr.bf16.mxu0 %v7642_v46  ;;  %4467 = vmatprep.subr.bf16.mxu1 %v7645_v47  ;;  %v7726_v46 = vld [vmem:[#allocation13 + $0xe4] ss:$16 sps:$4 sm:$0xff]   ;;  %v7729_v47 = vld [vmem:[#allocation13 + $0xec] ss:$16 sps:$4 sm:$0xff]  }
 0x526   :  { %4386 = vmatpush1.bf16.msra.mxu0 %v7640_v49  ;;  %4468 = vmatpush1.bf16.msra.mxu1 %v7643_v23  ;;  %v7724_v49 = vld [vmem:[#allocation13 + $0xe0] ss:$16 sps:$4 sm:$0xff]   ;;  %v7727_v23 = vld [vmem:[#allocation13 + $0xe8] ss:$16 sps:$4 sm:$0xff]  }
 0x527   :  { %4387 = vmatprep.subr.bf16.mxu0 %v7648_v50  ;;  %4469 = vmatprep.subr.bf16.mxu1 %v7651_v52  ;;  %v7732_v50 = vld [vmem:[#allocation13 + $0x104] ss:$16 sps:$4 sm:$0xff]   ;;  %v7735_v52 = vld [vmem:[#allocation13 + $0x10c] ss:$16 sps:$4 sm:$0xff]  }
 0x52a   :  { %4388 = vmatpush1.bf16.msra.mxu0 %v7646_v53  ;;  %4470 = vmatpush1.bf16.msra.mxu1 %v7649_v54  ;;  %v7730_v53 = vld [vmem:[#allocation13 + $0x100] ss:$16 sps:$4 sm:$0xff]   ;;  %v7733_v54 = vld [vmem:[#allocation13 + $0x108] ss:$16 sps:$4 sm:$0xff]  }
 0x52b   :  { %4389 = vmatprep.subr.bf16.mxu0 %v7654_v55  ;;  %4471 = vmatprep.subr.bf16.mxu1 %v7657_v57  ;;  %v7738_v55 = vld [vmem:[#allocation13 + $0x124] ss:$16 sps:$4 sm:$0xff]   ;;  %v7741_v57 = vld [vmem:[#allocation13 + $0x12c] ss:$16 sps:$4 sm:$0xff]  }
 0x52e   :  { %4390 = vmatpush1.bf16.msra.mxu0 %v7652_v58  ;;  %4472 = vmatpush1.bf16.msra.mxu1 %v7655_v59  ;;  %v7736_v58 = vld [vmem:[#allocation13 + $0x120] ss:$16 sps:$4 sm:$0xff]   ;;  %v7739_v59 = vld [vmem:[#allocation13 + $0x128] ss:$16 sps:$4 sm:$0xff]  }
 0x52f   :  { %4391 = vmatprep.subr.bf16.mxu0 %v7660_v60  ;;  %4473 = vmatprep.subr.bf16.mxu1 %v7663_v61  ;;  %v7744_v60 = vld [vmem:[#allocation13 + $0x144] ss:$16 sps:$4 sm:$0xff]   ;;  %v7747_v61 = vld [vmem:[#allocation13 + $0x14c] ss:$16 sps:$4 sm:$0xff]  }
 0x532   :  { %4392 = vmatpush1.bf16.msra.mxu0 %v7658_v62  ;;  %4474 = vmatpush1.bf16.msra.mxu1 %v7661_v63  ;;  %v7742_v62 = vld [vmem:[#allocation13 + $0x140] ss:$16 sps:$4 sm:$0xff]   ;;  %v7745_v63 = vld [vmem:[#allocation13 + $0x148] ss:$16 sps:$4 sm:$0xff]  }
 0x533   :  { %4393 = vmatprep.subr.bf16.mxu0 %v7666_v0  ;;  %4475 = vmatprep.subr.bf16.mxu1 %v7669_v1  ;;  %v7750_v0 = vld [vmem:[#allocation13 + $0x164] ss:$16 sps:$4 sm:$0xff]   ;;  %v7753_v1 = vld [vmem:[#allocation13 + $0x16c] ss:$16 sps:$4 sm:$0xff]  }
 0x536   :  { %4394 = vmatpush1.bf16.msra.mxu0 %v7664_v2  ;;  %4476 = vmatpush1.bf16.msra.mxu1 %v7667_v3  ;;  %v7748_v2 = vld [vmem:[#allocation13 + $0x160] ss:$16 sps:$4 sm:$0xff]   ;;  %v7751_v3 = vld [vmem:[#allocation13 + $0x168] ss:$16 sps:$4 sm:$0xff]  }
 0x537   :  { %4395 = vmatprep.subr.bf16.mxu0 %v7672_v5  ;;  %4477 = vmatprep.subr.bf16.mxu1 %v7675_v6  ;;  %v7759_v5 = vld [vmem:[#allocation13 + $0x18c] ss:$16 sps:$4 sm:$0xff]   ;;  %v7754_v6 = vld [vmem:[#allocation13 + $0x180] ss:$16 sps:$4 sm:$0xff]  }
 0x53a   :  { %4396 = vmatpush1.bf16.msra.mxu0 %v7670_v43  ;;  %4478 = vmatpush1.bf16.msra.mxu1 %v7673_v11  ;;  %v7757_v43 = vld [vmem:[#allocation13 + $0x188] ss:$16 sps:$4 sm:$0xff]   ;;  %v7762_v11 = vld [vmem:[#allocation13 + $0x1a4] ss:$16 sps:$4 sm:$0xff]  }
 0x53b   :  { %4397 = vmatprep.subr.bf16.mxu0 %v7678_v13  ;;  %4479 = vmatprep.subr.bf16.mxu1 %v7681_v14  ;;  %v7760_v13 = vld [vmem:[#allocation13 + $0x1a0] ss:$16 sps:$4 sm:$0xff]   ;;  %v7763_v14 = vld [vmem:[#allocation13 + $0x1a8] ss:$16 sps:$4 sm:$0xff]  }
 0x53e   :  { %4398 = vmatpush1.bf16.msra.mxu0 %v7676_v48  ;;  %4480 = vmatpush1.bf16.msra.mxu1 %v7679_v15  ;;  %v7768_v48 = vld [vmem:[#allocation13 + $0x1c4] ss:$16 sps:$4 sm:$0xff]   ;;  %v7771_v15 = vld [vmem:[#allocation13 + $0x1cc] ss:$16 sps:$4 sm:$0xff]  }
 0x53f   :  { %5288 = vmatprep.subr.bf16.mxu0 %v7684_v51  ;;  %5370 = vmatprep.subr.bf16.mxu1 %v7687_v19  ;;  %v7769_v51 = vld [vmem:[#allocation13 + $0x1c8] ss:$16 sps:$4 sm:$0xff]   ;;  %v7774_v19 = vld [vmem:[#allocation13 + $0x1e4] ss:$16 sps:$4 sm:$0xff]  }
 0x541   :  { %4400 = vmatmul.mubr.bf16.vlgmr.msra.gmra.mrb[12].mxu0 %v3663_v24  ;;  %4482 = vmatmul.mubr.bf16.vlgmr.msra.gmra.mrb[20].mxu1 %v3663_v24  ;;  %v7775_v24 = vld [vmem:[#allocation13 + $0x1e8] ss:$16 sps:$4 sm:$0xff]  }
 0x542   :  { %5289 = vmatpush1.bf16.msra.mxu0 %v7682_v21  ;;  %5371 = vmatpush1.bf16.msra.mxu1 %v7685_v22  ;;  %v7777_v21 = vld [vmem:[#allocation13 + $0x1ec] ss:$16 sps:$4 sm:$0xff]   ;;  %v7772_v22 = vld [vmem:[#allocation13 + $0x1e0] ss:$16 sps:$4 sm:$0xff]  }
 0x543   :  { %5290 = vmatprep.subr.bf16.mxu0 %v7690_v56  ;;  %5372 = vmatprep.subr.bf16.mxu1 %v7693_v25  ;;  %v7780_v56 = vld [vmem:[#allocation13 + $0x204] ss:$16 sps:$4 sm:$0xff]   ;;  %v7783_v25 = vld [vmem:[#allocation13 + $0x20c] ss:$16 sps:$4 sm:$0xff]  }
 0x546   :  { %5291 = vmatpush1.bf16.msra.mxu0 %v7688_v26  ;;  %5373 = vmatpush1.bf16.msra.mxu1 %v7691_v27  ;;  %v8449_v26 = vld [vmem:[%s8503_s8 + $0x10] sm:$0xf] }
 0x547   :  { %5292 = vmatprep.subr.bf16.mxu0 %v7696_v28  ;;  %5374 = vmatprep.subr.bf16.mxu1 %v7699_v7  ;;  %v3669_v27 = vrot.slane %v8449_v26, %v8374_v8  ;;  %v3673_v28 = vrot.slane %v8449_v26, %v8382_v10  ;;  %v3681_v7 = vrot.slane %v8449_v26, %v8392_v20 }
 0x54a   :  { %5293 = vmatpush1.bf16.msra.mxu0 %v7694_v29  ;;  %5375 = vmatpush1.bf16.msra.mxu1 %v7697_v30 }
 0x54b   :  { %5294 = vmatprep.subr.bf16.mxu0 %v7702_v31  ;;  %5376 = vmatprep.subr.bf16.mxu1 %v7705_v32 }
 0x54e   :  { %5295 = vmatpush1.bf16.msra.mxu0 %v7700_v33  ;;  %5377 = vmatpush1.bf16.msra.mxu1 %v7703_v34 }
 0x54f   :  { %5296 = vmatprep.subr.bf16.mxu0 %v7708_v35  ;;  %5378 = vmatprep.subr.bf16.mxu1 %v7711_v36 }
 0x552   :  { %5297 = vmatpush1.bf16.msra.mxu0 %v7706_v9  ;;  %5379 = vmatpush1.bf16.msra.mxu1 %v7709_v37 }
 0x553   :  { %5298 = vmatprep.subr.bf16.mxu0 %v7714_v38  ;;  %5380 = vmatprep.subr.bf16.mxu1 %v7717_v39 }
 0x556   :  { %5299 = vmatpush1.bf16.msra.mxu0 %v7712_v40  ;;  %5381 = vmatpush1.bf16.msra.mxu1 %v7715_v41 }
 0x557   :  { %5300 = vmatprep.subr.bf16.mxu0 %v7720_v42  ;;  %5382 = vmatprep.subr.bf16.mxu1 %v7723_v44  ;;  %v7778_v44 = vld [vmem:[#allocation13 + $0x200] ss:$16 sps:$4 sm:$0xff]  }
 0x55a   :  { %5301 = vmatpush1.bf16.msra.mxu0 %v7718_v16  ;;  %5383 = vmatpush1.bf16.msra.mxu1 %v7721_v45  ;;  %v7781_v16 = vld [vmem:[#allocation13 + $0x208] ss:$16 sps:$4 sm:$0xff]  }
 0x55b   :  { %5302 = vmatprep.subr.bf16.mxu0 %v7726_v46  ;;  %5384 = vmatprep.subr.bf16.mxu1 %v7729_v47  ;;  %v7786_v46 = vld [vmem:[#allocation13 + $0x224] ss:$16 sps:$4 sm:$0xff]   ;;  %v7789_v47 = vld [vmem:[#allocation13 + $0x22c] ss:$16 sps:$4 sm:$0xff]  }
 0x55e   :  { %5303 = vmatpush1.bf16.msra.mxu0 %v7724_v49  ;;  %5385 = vmatpush1.bf16.msra.mxu1 %v7727_v23  ;;  %v7784_v23 = vld [vmem:[#allocation13 + $0x220] ss:$16 sps:$4 sm:$0xff]  }
 0x55f   :  { %5304 = vmatprep.subr.bf16.mxu0 %v7732_v50  ;;  %5386 = vmatprep.subr.bf16.mxu1 %v7735_v52  ;;  %v7787_v50 = vld [vmem:[#allocation13 + $0x228] ss:$16 sps:$4 sm:$0xff]   ;;  %v7792_v52 = vld [vmem:[#allocation13 + $0x244] ss:$16 sps:$4 sm:$0xff]  }
 0x562   :  { %5305 = vmatpush1.bf16.msra.mxu0 %v7730_v53  ;;  %5387 = vmatpush1.bf16.msra.mxu1 %v7733_v54  ;;  %v7795_v53 = vld [vmem:[#allocation13 + $0x24c] ss:$16 sps:$4 sm:$0xff]   ;;  %v7790_v54 = vld [vmem:[#allocation13 + $0x240] ss:$16 sps:$4 sm:$0xff]  }
 0x563   :  { %5306 = vmatprep.subr.bf16.mxu0 %v7738_v55  ;;  %5388 = vmatprep.subr.bf16.mxu1 %v7741_v57  ;;  %v7793_v55 = vld [vmem:[#allocation13 + $0x248] ss:$16 sps:$4 sm:$0xff]   ;;  %v7798_v57 = vld [vmem:[#allocation13 + $0x264] ss:$16 sps:$4 sm:$0xff]  }
 0x566   :  { %5307 = vmatpush1.bf16.msra.mxu0 %v7736_v58  ;;  %5389 = vmatpush1.bf16.msra.mxu1 %v7739_v59  ;;  %v7801_v58 = vld [vmem:[#allocation13 + $0x26c] ss:$16 sps:$4 sm:$0xff]   ;;  %v7796_v59 = vld [vmem:[#allocation13 + $0x260] ss:$16 sps:$4 sm:$0xff]  }
 0x567   :  { %5308 = vmatprep.subr.bf16.mxu0 %v7744_v60  ;;  %5390 = vmatprep.subr.bf16.mxu1 %v7747_v61  ;;  %v7799_v60 = vld [vmem:[#allocation13 + $0x268] ss:$16 sps:$4 sm:$0xff]   ;;  %v7804_v61 = vld [vmem:[#allocation13 + $0x284] ss:$16 sps:$4 sm:$0xff]  }
 0x56a   :  { %5309 = vmatpush1.bf16.msra.mxu0 %v7742_v62  ;;  %5391 = vmatpush1.bf16.msra.mxu1 %v7745_v63  ;;  %v7807_v62 = vld [vmem:[#allocation13 + $0x28c] ss:$16 sps:$4 sm:$0xff]   ;;  %v7802_v63 = vld [vmem:[#allocation13 + $0x280] ss:$16 sps:$4 sm:$0xff]  }
 0x56b   :  { %5310 = vmatprep.subr.bf16.mxu0 %v7750_v0  ;;  %5392 = vmatprep.subr.bf16.mxu1 %v7753_v1  ;;  %v7805_v0 = vld [vmem:[#allocation13 + $0x288] ss:$16 sps:$4 sm:$0xff]   ;;  %v7810_v1 = vld [vmem:[#allocation13 + $0x2a4] ss:$16 sps:$4 sm:$0xff]  }
 0x56e   :  { %5311 = vmatpush1.bf16.msra.mxu0 %v7748_v2  ;;  %5393 = vmatpush1.bf16.msra.mxu1 %v7751_v3  ;;  %v7813_v2 = vld [vmem:[#allocation13 + $0x2ac] ss:$16 sps:$4 sm:$0xff]   ;;  %v7808_v3 = vld [vmem:[#allocation13 + $0x2a0] ss:$16 sps:$4 sm:$0xff]  }
 0x56f   :  { %5312 = vmatprep.subr.bf16.mxu0 %v7756_v4  ;;  %5394 = vmatprep.subr.bf16.mxu1 %v7759_v5  ;;  %v7811_v4 = vld [vmem:[#allocation13 + $0x2a8] ss:$16 sps:$4 sm:$0xff]   ;;  %v7816_v5 = vld [vmem:[#allocation13 + $0x2c4] ss:$16 sps:$4 sm:$0xff]  }
 0x572   :  { %5313 = vmatpush1.bf16.msra.mxu0 %v7754_v6  ;;  %5395 = vmatpush1.bf16.msra.mxu1 %v7757_v43  ;;  %v7819_v6 = vld [vmem:[#allocation13 + $0x2cc] ss:$16 sps:$4 sm:$0xff]   ;;  %v7814_v43 = vld [vmem:[#allocation13 + $0x2c0] ss:$16 sps:$4 sm:$0xff]  }
 0x573   :  { %5314 = vmatprep.subr.bf16.mxu0 %v7762_v11  ;;  %5396 = vmatprep.subr.bf16.mxu1 %v7765_v12  ;;  %v7817_v11 = vld [vmem:[#allocation13 + $0x2c8] ss:$16 sps:$4 sm:$0xff]   ;;  %v7822_v12 = vld [vmem:[#allocation13 + $0x2e4] ss:$16 sps:$4 sm:$0xff]  }
 0x576   :  { %5315 = vmatpush1.bf16.msra.mxu0 %v7760_v13  ;;  %5397 = vmatpush1.bf16.msra.mxu1 %v7763_v14  ;;  %v7825_v13 = vld [vmem:[#allocation13 + $0x2ec] ss:$16 sps:$4 sm:$0xff]   ;;  %v7820_v14 = vld [vmem:[#allocation13 + $0x2e0] ss:$16 sps:$4 sm:$0xff]  }
 0x577   :  { %5316 = vmatprep.subr.bf16.mxu0 %v7768_v48  ;;  %5398 = vmatprep.subr.bf16.mxu1 %v7771_v15  ;;  %v7823_v48 = vld [vmem:[#allocation13 + $0x2e8] ss:$16 sps:$4 sm:$0xff]   ;;  %v7828_v15 = vld [vmem:[#allocation13 + $0x304] ss:$16 sps:$4 sm:$0xff]  }
 0x57a   :  { %5317 = vmatpush1.bf16.msra.mxu0 %v7766_v18  ;;  %5399 = vmatpush1.bf16.msra.mxu1 %v7769_v51  ;;  %v7831_v18 = vld [vmem:[#allocation13 + $0x30c] ss:$16 sps:$4 sm:$0xff]   ;;  %v7826_v51 = vld [vmem:[#allocation13 + $0x300] ss:$16 sps:$4 sm:$0xff]  }
 0x57b   :  { %5318 = vmatprep.subr.bf16.mxu0 %v7774_v19  ;;  %5400 = vmatprep.subr.bf16.mxu1 %v7777_v21  ;;  %v7829_v19 = vld [vmem:[#allocation13 + $0x308] ss:$16 sps:$4 sm:$0xff]   ;;  %v7834_v21 = vld [vmem:[#allocation13 + $0x324] ss:$16 sps:$4 sm:$0xff]  }
 0x57e   :  { %5319 = vmatpush1.bf16.msra.mxu0 %v7772_v22  ;;  %5401 = vmatpush1.bf16.msra.mxu1 %v7775_v24  ;;  %v7837_v22 = vld [vmem:[#allocation13 + $0x32c] ss:$16 sps:$4 sm:$0xff]   ;;  %v7832_v24 = vld [vmem:[#allocation13 + $0x320] ss:$16 sps:$4 sm:$0xff]  }
 0x57f   :  { %5329 = vmatprep.subr.bf16.mxu0 %v7780_v56  ;;  %5411 = vmatprep.subr.bf16.mxu1 %v7783_v25  ;;  %v7835_v56 = vld [vmem:[#allocation13 + $0x328] ss:$16 sps:$4 sm:$0xff]   ;;  %v7840_v25 = vld [vmem:[#allocation13 + $0x344] ss:$16 sps:$4 sm:$0xff]  }
 0x614   :  { %v4401_v29 = vpop.f32.mrb[12].mxu0  ;;  %v8457_v30 = vpop.f32.mrb[20].mxu1 }
 0x615   :  { %v6751_v31 = vadd.f32 %v4401_v29, %v3669_v27  ;;  %v4403_v32 = vpop.f32.mrb[13].mxu0  ;;  %v4485_v33 = vpop.f32.mrb[21].mxu1  ;;  %v7843_v27 = vld [vmem:[#allocation13 + $0x34c] ss:$16 sps:$4 sm:$0xff]   ;;  %v7846_v29 = vld [vmem:[#allocation13 + $0x364] ss:$16 sps:$4 sm:$0xff]  }
 0x616   :  { %v6752_v34 = vadd.f32 %v4403_v32, %v3673_v28  ;;  %v6754_v35 = vadd.f32 %v4485_v33, %v3681_v7  ;;  %v4405_v36 = vpop.f32.mrb[14].mxu0  ;;  %v4487_v9 = vpop.f32.mrb[22].mxu1  ;;  %v7838_v28 = vld [vmem:[#allocation13 + $0x340] ss:$16 sps:$4 sm:$0xff]   ;;  %v7841_v7 = vld [vmem:[#allocation13 + $0x348] ss:$16 sps:$4 sm:$0xff]  }
 0x617   :  { %v4490_v37 = vmax.f32 %v6751_v31, 0.0  ;;  %v4406_v38 = vpop.f32.mrb[15].mxu0  ;;  %v4488_v39 = vpop.f32.mrb[23].mxu1  ;;  %v7849_v31 = vld [vmem:[#allocation13 + $0x36c] ss:$16 sps:$4 sm:$0xff]  }
 0x618   :  { %v4491_v40 = vmax.f32 %v6752_v34, 0.0  ;;  %v4493_v41 = vmax.f32 %v6754_v35, 0.0  ;;  %v7844_v32 = vld [vmem:[#allocation13 + $0x360] ss:$16 sps:$4 sm:$0xff]   ;;  %v7847_v33 = vld [vmem:[#allocation13 + $0x368] ss:$16 sps:$4 sm:$0xff]  }
 0x619   :  { %v4623_v45 = vpack.c.bf16 %v4490_v37, %v4490_v37  ;;  %v7852_v34 = vld [vmem:[#allocation13 + $0x384] ss:$16 sps:$4 sm:$0xff]   ;;  %v7855_v35 = vld [vmem:[#allocation13 + $0x38c] ss:$16 sps:$4 sm:$0xff]   ;;  %v7850_v36 = vld [vmem:[#allocation13 + $0x380] ss:$16 sps:$4 sm:$0xff]  }
 0x61a   :  { %v4624_v42 = vpack.c.bf16 %v4491_v40, %v4491_v40  ;;  %v4626_v49 = vpack.c.bf16 %v4493_v41, %v4493_v41  ;;  %v7853_v9 = vld [vmem:[#allocation13 + $0x388] ss:$16 sps:$4 sm:$0xff]   ;;  %v7858_v37 = vld [vmem:[#allocation13 + $0x3a4] ss:$16 sps:$4 sm:$0xff]   ;;  %v7861_v38 = vld [vmem:[#allocation13 + $0x3ac] ss:$16 sps:$4 sm:$0xff]   ;;  %v3677_v41 = vrot.slane %v8449_v26, %v8389_v17 }
 0x61b   :  { %v7856_v39 = vld [vmem:[#allocation13 + $0x3a0] ss:$16 sps:$4 sm:$0xff]   ;;  %v7859_v40 = vld [vmem:[#allocation13 + $0x3a8] ss:$16 sps:$4 sm:$0xff]   ;;  %v7876_v26 = vld [vmem:[#allocation14 + $0x4] ss:$8 sps:$4 sm:$0xff]  }
 0x61c   :  { %5320 = vmatprep.mubr.bf16.mxu0 %v4624_v42  ;;  %5402 = vmatprep.mubr.bf16.mxu1 %v4624_v42  ;;  %v7864_v42 = vld [vmem:[#allocation13 + $0x3c4] ss:$16 sps:$4 sm:$0xff]  }
 0x61d   :  { %5321 = vmatmul.mubr.bf16.vlgmr.msra.gmra.mrb[16].mxu0 %v4623_v45  ;;  %5403 = vmatmul.mubr.bf16.vlgmr.msra.gmra.mrb[24].mxu1 %v4623_v45  ;;  %v7865_v45 = vld [vmem:[#allocation13 + $0x3c8] ss:$16 sps:$4 sm:$0xff]  }
 0x61e   :  { %5330 = vmatpush1.bf16.msra.mxu0 %v7778_v44  ;;  %5412 = vmatpush1.bf16.msra.mxu1 %v7781_v16  ;;  %v7867_v44 = vld [vmem:[#allocation13 + $0x3cc] ss:$16 sps:$4 sm:$0xff]   ;;  %v7862_v16 = vld [vmem:[#allocation13 + $0x3c0] ss:$16 sps:$4 sm:$0xff]  }
 0x61f   :  { %5361 = vmatprep.mubr.bf16.mxu0 %v4626_v49  ;;  %5443 = vmatprep.mubr.bf16.mxu1 %v4626_v49  ;;  %v7873_v49 = vld [vmem:[#allocation13 + $0x3ec] ss:$16 sps:$4 sm:$0xff]  }
 0x620   :  { %5331 = vmatprep.subr.bf16.mxu0 %v7786_v46  ;;  %5413 = vmatprep.subr.bf16.mxu1 %v7789_v47  ;;  %v6753_v46 = vadd.f32 %v8457_v30, %v3677_v41  ;;  %v7870_v47 = vld [vmem:[#allocation13 + $0x3e4] ss:$16 sps:$4 sm:$0xff]   ;;  %v7877_v30 = vld [vmem:[#allocation14 + $0x10] ss:$8 sps:$4 sm:$0xff]  }
 0x622   :  { %5332 = vmatpush1.bf16.msra.mxu0 %v7784_v23  ;;  %5414 = vmatpush1.bf16.msra.mxu1 %v7787_v50  ;;  %v7868_v23 = vld [vmem:[#allocation13 + $0x3e0] ss:$16 sps:$4 sm:$0xff]   ;;  %v7871_v50 = vld [vmem:[#allocation13 + $0x3e8] ss:$16 sps:$4 sm:$0xff]  }
 0x623   :  { %5333 = vmatprep.subr.bf16.mxu0 %v7792_v52  ;;  %5415 = vmatprep.subr.bf16.mxu1 %v7795_v53  ;;  %v4492_v52 = vmax.f32 %v6753_v46, 0.0  ;;  %v7874_v53 = vld [vmem:[#allocation14] ss:$8 sps:$4 sm:$0xff]  }
 0x626   :  { %5334 = vmatpush1.bf16.msra.mxu0 %v7790_v54  ;;  %5416 = vmatpush1.bf16.msra.mxu1 %v7793_v55  ;;  %v4625_v54 = vpack.c.bf16 %v4492_v52, %v4492_v52  ;;  %v7879_v55 = vld [vmem:[#allocation14 + $0x14] ss:$8 sps:$4 sm:$0xff]  }
 0x627   :  { %5335 = vmatprep.subr.bf16.mxu0 %v7798_v57  ;;  %5417 = vmatprep.subr.bf16.mxu1 %v7801_v58  ;;  %v7882_v57 = vld [vmem:[#allocation14 + $0x24] ss:$8 sps:$4 sm:$0xff]   ;;  %v7880_v58 = vld [vmem:[#allocation14 + $0x20] ss:$8 sps:$4 sm:$0xff]   ;;  %v7933_v52 = vld [vmem:[#allocation14 + $0x134] ss:$8 sps:$4 sm:$0xff]  }
 0x62a   :  { %5336 = vmatpush1.bf16.msra.mxu0 %v7796_v59  ;;  %5418 = vmatpush1.bf16.msra.mxu1 %v7799_v60  ;;  %v7885_v59 = vld [vmem:[#allocation14 + $0x34] ss:$8 sps:$4 sm:$0xff]   ;;  %v7883_v60 = vld [vmem:[#allocation14 + $0x30] ss:$8 sps:$4 sm:$0xff]  }
 0x62b   :  { %5337 = vmatprep.subr.bf16.mxu0 %v7804_v61  ;;  %5419 = vmatprep.subr.bf16.mxu1 %v7807_v62  ;;  %v7888_v61 = vld [vmem:[#allocation14 + $0x44] ss:$8 sps:$4 sm:$0xff]   ;;  %v7886_v62 = vld [vmem:[#allocation14 + $0x40] ss:$8 sps:$4 sm:$0xff]  }
 0x62e   :  { %5338 = vmatpush1.bf16.msra.mxu0 %v7802_v63  ;;  %5420 = vmatpush1.bf16.msra.mxu1 %v7805_v0  ;;  %v7891_v63 = vld [vmem:[#allocation14 + $0x54] ss:$8 sps:$4 sm:$0xff]   ;;  %v7889_v0 = vld [vmem:[#allocation14 + $0x50] ss:$8 sps:$4 sm:$0xff]  }
 0x62f   :  { %5339 = vmatprep.subr.bf16.mxu0 %v7810_v1  ;;  %5421 = vmatprep.subr.bf16.mxu1 %v7813_v2  ;;  %v7894_v1 = vld [vmem:[#allocation14 + $0x64] ss:$8 sps:$4 sm:$0xff]   ;;  %v7892_v2 = vld [vmem:[#allocation14 + $0x60] ss:$8 sps:$4 sm:$0xff]  }
 0x632   :  { %5340 = vmatpush1.bf16.msra.mxu0 %v7808_v3  ;;  %5422 = vmatpush1.bf16.msra.mxu1 %v7811_v4  ;;  %v7897_v3 = vld [vmem:[#allocation14 + $0x74] ss:$8 sps:$4 sm:$0xff]   ;;  %v7895_v4 = vld [vmem:[#allocation14 + $0x70] ss:$8 sps:$4 sm:$0xff]  }
 0x633   :  { %5341 = vmatprep.subr.bf16.mxu0 %v7816_v5  ;;  %5423 = vmatprep.subr.bf16.mxu1 %v7819_v6  ;;  %v7900_v5 = vld [vmem:[#allocation14 + $0x84] ss:$8 sps:$4 sm:$0xff]   ;;  %v7898_v6 = vld [vmem:[#allocation14 + $0x80] ss:$8 sps:$4 sm:$0xff]  }
 0x636   :  { %5342 = vmatpush1.bf16.msra.mxu0 %v7814_v43  ;;  %5424 = vmatpush1.bf16.msra.mxu1 %v7817_v11  ;;  %v7903_v43 = vld [vmem:[#allocation14 + $0x94] ss:$8 sps:$4 sm:$0xff]   ;;  %v7901_v11 = vld [vmem:[#allocation14 + $0x90] ss:$8 sps:$4 sm:$0xff]  }
 0x637   :  { %5343 = vmatprep.subr.bf16.mxu0 %v7822_v12  ;;  %5425 = vmatprep.subr.bf16.mxu1 %v7825_v13  ;;  %v7906_v12 = vld [vmem:[#allocation14 + $0xa4] ss:$8 sps:$4 sm:$0xff]   ;;  %v7904_v13 = vld [vmem:[#allocation14 + $0xa0] ss:$8 sps:$4 sm:$0xff]  }
 0x63a   :  { %5344 = vmatpush1.bf16.msra.mxu0 %v7820_v14  ;;  %5426 = vmatpush1.bf16.msra.mxu1 %v7823_v48  ;;  %v7909_v14 = vld [vmem:[#allocation14 + $0xb4] ss:$8 sps:$4 sm:$0xff]   ;;  %v7907_v48 = vld [vmem:[#allocation14 + $0xb0] ss:$8 sps:$4 sm:$0xff]  }
 0x63b   :  { %5345 = vmatprep.subr.bf16.mxu0 %v7828_v15  ;;  %5427 = vmatprep.subr.bf16.mxu1 %v7831_v18  ;;  %v7912_v15 = vld [vmem:[#allocation14 + $0xc4] ss:$8 sps:$4 sm:$0xff]   ;;  %v7910_v18 = vld [vmem:[#allocation14 + $0xc0] ss:$8 sps:$4 sm:$0xff]  }
 0x63e   :  { %5346 = vmatpush1.bf16.msra.mxu0 %v7826_v51  ;;  %5428 = vmatpush1.bf16.msra.mxu1 %v7829_v19  ;;  %v7915_v51 = vld [vmem:[#allocation14 + $0xd4] ss:$8 sps:$4 sm:$0xff]   ;;  %v7913_v19 = vld [vmem:[#allocation14 + $0xd0] ss:$8 sps:$4 sm:$0xff]  }
 0x63f   :  { %5347 = vmatprep.subr.bf16.mxu0 %v7834_v21  ;;  %5429 = vmatprep.subr.bf16.mxu1 %v7837_v22  ;;  %v7918_v21 = vld [vmem:[#allocation14 + $0xe4] ss:$8 sps:$4 sm:$0xff]   ;;  %v7916_v22 = vld [vmem:[#allocation14 + $0xe0] ss:$8 sps:$4 sm:$0xff]  }
 0x642   :  { %5348 = vmatpush1.bf16.msra.mxu0 %v7832_v24  ;;  %5430 = vmatpush1.bf16.msra.mxu1 %v7835_v56  ;;  %v7921_v24 = vld [vmem:[#allocation14 + $0xf4] ss:$8 sps:$4 sm:$0xff]   ;;  %v7919_v56 = vld [vmem:[#allocation14 + $0xf0] ss:$8 sps:$4 sm:$0xff]  }
 0x643   :  { %5349 = vmatprep.subr.bf16.mxu0 %v7840_v25  ;;  %5431 = vmatprep.subr.bf16.mxu1 %v7843_v27  ;;  %v7924_v25 = vld [vmem:[#allocation14 + $0x104] ss:$8 sps:$4 sm:$0xff]   ;;  %v8465_v27 = vld [vmem:[%s8503_s8 + $0x14] sm:$0xf] }
 0x646   :  { %5350 = vmatpush1.bf16.msra.mxu0 %v7838_v28  ;;  %5432 = vmatpush1.bf16.msra.mxu1 %v7841_v7  ;;  %v4631_v28 = vrot.slane %v8465_v27, %v8374_v8  ;;  %v4635_v7 = vrot.slane %v8465_v27, %v8382_v10 }
 0x647   :  { %5351 = vmatprep.subr.bf16.mxu0 %v7846_v29  ;;  %5433 = vmatprep.subr.bf16.mxu1 %v7849_v31  ;;  %v4643_v29 = vrot.slane %v8465_v27, %v8392_v20 }
 0x64a   :  { %5352 = vmatpush1.bf16.msra.mxu0 %v7844_v32  ;;  %5434 = vmatpush1.bf16.msra.mxu1 %v7847_v33 }
 0x64b   :  { %5353 = vmatprep.subr.bf16.mxu0 %v7852_v34  ;;  %5435 = vmatprep.subr.bf16.mxu1 %v7855_v35 }
 0x64e   :  { %5354 = vmatpush1.bf16.msra.mxu0 %v7850_v36  ;;  %5436 = vmatpush1.bf16.msra.mxu1 %v7853_v9 }
 0x64f   :  { %5355 = vmatprep.subr.bf16.mxu0 %v7858_v37  ;;  %5437 = vmatprep.subr.bf16.mxu1 %v7861_v38 }
 0x652   :  { %5356 = vmatpush1.bf16.msra.mxu0 %v7856_v39  ;;  %5438 = vmatpush1.bf16.msra.mxu1 %v7859_v40 }
 0x653   :  { %5357 = vmatprep.subr.bf16.mxu0 %v7864_v42  ;;  %5439 = vmatprep.subr.bf16.mxu1 %v7867_v44 }
 0x656   :  { %5358 = vmatpush1.bf16.msra.mxu0 %v7862_v16  ;;  %5440 = vmatpush1.bf16.msra.mxu1 %v7865_v45  ;;  %v7922_v45 = vld [vmem:[#allocation14 + $0x100] ss:$8 sps:$4 sm:$0xff]  }
 0x657   :  { %5359 = vmatprep.subr.bf16.mxu0 %v7870_v47  ;;  %5441 = vmatprep.subr.bf16.mxu1 %v7873_v49  ;;  %v7927_v47 = vld [vmem:[#allocation14 + $0x114] ss:$8 sps:$4 sm:$0xff]   ;;  %v7925_v49 = vld [vmem:[#allocation14 + $0x110] ss:$8 sps:$4 sm:$0xff]  }
 0x65a   :  { %5360 = vmatpush1.bf16.msra.mxu0 %v7868_v23  ;;  %5442 = vmatpush1.bf16.msra.mxu1 %v7871_v50  ;;  %v7930_v23 = vld [vmem:[#allocation14 + $0x124] ss:$8 sps:$4 sm:$0xff]   ;;  %v7928_v50 = vld [vmem:[#allocation14 + $0x120] ss:$8 sps:$4 sm:$0xff]  }
 0x65b   :  { %5856 = vmatprep.subr.bf16.mxu0 %v7876_v26  ;;  %v7931_v26 = vld [vmem:[#allocation14 + $0x130] ss:$8 sps:$4 sm:$0xff]  }
 0x65d   :  { %5362 = vmatmul.mubr.bf16.vlgmr.msra.gmra.mrb[16].mxu0 %v4625_v54  ;;  %5444 = vmatmul.mubr.bf16.vlgmr.msra.gmra.mrb[24].mxu1 %v4625_v54  ;;  %v7934_v54 = vld [vmem:[#allocation14 + $0x140] ss:$8 sps:$4 sm:$0xff]  }
 0x65e   :  { %5857 = vmatpush1.bf16.msra.mxu0 %v7874_v53  ;;  %v7936_v53 = vld [vmem:[#allocation14 + $0x144] ss:$8 sps:$4 sm:$0xff]  }
 0x65f   :  { %5858 = vmatprep.subr.bf16.mxu0 %v7879_v55  ;;  %v7939_v55 = vld [vmem:[#allocation14 + $0x154] ss:$8 sps:$4 sm:$0xff]  }
 0x662   :  { %5859 = vmatpush1.bf16.msra.mxu0 %v7877_v30  ;;  %v7937_v30 = vld [vmem:[#allocation14 + $0x150] ss:$8 sps:$4 sm:$0xff]  }
 0x663   :  { %5860 = vmatprep.subr.bf16.mxu0 %v7882_v57  ;;  %v7942_v57 = vld [vmem:[#allocation14 + $0x164] ss:$8 sps:$4 sm:$0xff]  }
 0x666   :  { %5861 = vmatpush1.bf16.msra.mxu0 %v7880_v58  ;;  %v7940_v58 = vld [vmem:[#allocation14 + $0x160] ss:$8 sps:$4 sm:$0xff]  }
 0x667   :  { %5862 = vmatprep.subr.bf16.mxu0 %v7885_v59  ;;  %v7945_v59 = vld [vmem:[#allocation14 + $0x174] ss:$8 sps:$4 sm:$0xff]  }
 0x66a   :  { %5863 = vmatpush1.bf16.msra.mxu0 %v7883_v60  ;;  %v7943_v60 = vld [vmem:[#allocation14 + $0x170] ss:$8 sps:$4 sm:$0xff]  }
 0x66b   :  { %5864 = vmatprep.subr.bf16.mxu0 %v7888_v61  ;;  %v7948_v61 = vld [vmem:[#allocation14 + $0x184] ss:$8 sps:$4 sm:$0xff]  }
 0x66e   :  { %5865 = vmatpush1.bf16.msra.mxu0 %v7886_v62  ;;  %v7946_v62 = vld [vmem:[#allocation14 + $0x180] ss:$8 sps:$4 sm:$0xff]  }
 0x66f   :  { %5866 = vmatprep.subr.bf16.mxu0 %v7891_v63  ;;  %v7951_v63 = vld [vmem:[#allocation14 + $0x194] ss:$8 sps:$4 sm:$0xff]  }
 0x672   :  { %5867 = vmatpush1.bf16.msra.mxu0 %v7889_v0  ;;  %v7949_v0 = vld [vmem:[#allocation14 + $0x190] ss:$8 sps:$4 sm:$0xff]  }
 0x673   :  { %5868 = vmatprep.subr.bf16.mxu0 %v7894_v1  ;;  %v7954_v1 = vld [vmem:[#allocation14 + $0x1a4] ss:$8 sps:$4 sm:$0xff]  }
 0x676   :  { %5869 = vmatpush1.bf16.msra.mxu0 %v7892_v2  ;;  %v7952_v2 = vld [vmem:[#allocation14 + $0x1a0] ss:$8 sps:$4 sm:$0xff]  }
 0x677   :  { %5870 = vmatprep.subr.bf16.mxu0 %v7897_v3  ;;  %v7957_v3 = vld [vmem:[#allocation14 + $0x1b4] ss:$8 sps:$4 sm:$0xff]  }
 0x67a   :  { %5871 = vmatpush1.bf16.msra.mxu0 %v7895_v4  ;;  %v7955_v4 = vld [vmem:[#allocation14 + $0x1b0] ss:$8 sps:$4 sm:$0xff]  }
 0x67b   :  { %5872 = vmatprep.subr.bf16.mxu0 %v7900_v5  ;;  %v7960_v5 = vld [vmem:[#allocation14 + $0x1c4] ss:$8 sps:$4 sm:$0xff]  }
 0x67e   :  { %5873 = vmatpush1.bf16.msra.mxu0 %v7898_v6  ;;  %v7958_v6 = vld [vmem:[#allocation14 + $0x1c0] ss:$8 sps:$4 sm:$0xff]  }
 0x67f   :  { %5874 = vmatprep.subr.bf16.mxu0 %v7903_v43  ;;  %v7963_v43 = vld [vmem:[#allocation14 + $0x1d4] ss:$8 sps:$4 sm:$0xff]  }
 0x682   :  { %5875 = vmatpush1.bf16.msra.mxu0 %v7901_v11  ;;  %v7961_v11 = vld [vmem:[#allocation14 + $0x1d0] ss:$8 sps:$4 sm:$0xff]  }
 0x683   :  { %5876 = vmatprep.subr.bf16.mxu0 %v7906_v12  ;;  %v4639_v12 = vrot.slane %v8465_v27, %v8389_v17 }
 0x686   :  { %5877 = vmatpush1.bf16.msra.mxu0 %v7904_v13  ;;  %v7966_v13 = vld [vmem:[#allocation14 + $0x1e4] ss:$8 sps:$4 sm:$0xff]  }
 0x687   :  { %5878 = vmatprep.subr.bf16.mxu0 %v7909_v14  ;;  %v7964_v14 = vld [vmem:[#allocation14 + $0x1e0] ss:$8 sps:$4 sm:$0xff]  }
 0x68a   :  { %5879 = vmatpush1.bf16.msra.mxu0 %v7907_v48 }
 0x68b   :  { %5880 = vmatprep.subr.bf16.mxu0 %v7912_v15  ;;  %v7969_v15 = vld [vmem:[#allocation14 + $0x1f4] ss:$8 sps:$4 sm:$0xff]  }
 0x68e   :  { %5881 = vmatpush1.bf16.msra.mxu0 %v7910_v18  ;;  %v7967_v18 = vld [vmem:[#allocation14 + $0x1f0] ss:$8 sps:$4 sm:$0xff]  }
 0x68f   :  { %5882 = vmatprep.subr.bf16.mxu0 %v7915_v51 }
 0x692   :  { %5883 = vmatpush1.bf16.msra.mxu0 %v7913_v19 }
 0x693   :  { %5884 = vmatprep.subr.bf16.mxu0 %v7918_v21  ;;  %v5520_v21 = vld [vmem:[%s8503_s8 + $0x18] sm:$0x3] }
 0x694   :  { %v5529_v17 = vrot.slane %v5520_v21, %v8374_v8 }
 0x696   :  { %5885 = vmatpush1.bf16.msra.mxu0 %v7916_v22  ;;  %v5533_v22 = vrot.slane %v5520_v21, %v8382_v10 }
 0x697   :  { %5886 = vmatprep.subr.bf16.mxu0 %v7921_v24 }
 0x69a   :  { %5887 = vmatpush1.bf16.msra.mxu0 %v7919_v56 }
 0x69b   :  { %5897 = vmatprep.subr.bf16.mxu0 %v7924_v25 }
 0x730   :  { %v5363_v31 = vpop.f32.mrb[16].mxu0  ;;  %v8473_v32 = vpop.f32.mrb[24].mxu1 }
 0x731   :  { %v6755_v33 = vadd.f32 %v5363_v31, %v4631_v28  ;;  %v5365_v34 = vpop.f32.mrb[17].mxu0  ;;  %v5447_v35 = vpop.f32.mrb[25].mxu1  ;;  %v6757_v48 = vadd.f32 %v8473_v32, %v4639_v12 }
 0x732   :  { %v6756_v36 = vadd.f32 %v5365_v34, %v4635_v7  ;;  %v6758_v9 = vadd.f32 %v5447_v35, %v4643_v29  ;;  %v5367_v37 = vpop.f32.mrb[18].mxu0  ;;  %v5449_v38 = vpop.f32.mrb[26].mxu1 }
 0x733   :  { %v5452_v39 = vmax.f32 %v6755_v33, 0.0  ;;  %v5368_v40 = vpop.f32.mrb[19].mxu0  ;;  %v5450_v41 = vpop.f32.mrb[27].mxu1  ;;  %v5454_v51 = vmax.f32 %v6757_v48, 0.0 }
 0x734   :  { %v5453_v42 = vmax.f32 %v6756_v36, 0.0  ;;  %v5455_v44 = vmax.f32 %v6758_v9, 0.0 }
 0x735   :  { %v5521_v46 = vpack.c.bf16 %v5452_v39, %v5452_v39  ;;  %v5523_v19 = vpack.c.bf16 %v5454_v51, %v5454_v51 }
 0x736   :  { %v5522_v16 = vpack.c.bf16 %v5453_v42, %v5453_v42  ;;  %v5524_v20 = vpack.c.bf16 %v5455_v44, %v5455_v44 }
 0x738   :  { %5888 = vmatprep.mubr.bf16.mxu0 %v5522_v16 }
 0x739   :  { %5889 = vmatmul.mubr.bf16.vlgmr.msra.gmra.mrb[20].mxu0 %v5521_v46 }
 0x73a   :  { %5898 = vmatpush1.bf16.msra.mxu0 %v7922_v45  ;;  %5929 = vmatprep.mubr.bf16.mxu0 %v5524_v20 }
 0x73b   :  { %5899 = vmatprep.subr.bf16.mxu0 %v7927_v47 }
 0x73e   :  { %5900 = vmatpush1.bf16.msra.mxu0 %v7925_v49 }
 0x73f   :  { %5901 = vmatprep.subr.bf16.mxu0 %v7930_v23 }
 0x742   :  { %5902 = vmatpush1.bf16.msra.mxu0 %v7928_v50 }
 0x743   :  { %5903 = vmatprep.subr.bf16.mxu0 %v7933_v52 }
 0x746   :  { %5904 = vmatpush1.bf16.msra.mxu0 %v7931_v26 }
 0x747   :  { %5905 = vmatprep.subr.bf16.mxu0 %v7936_v53 }
 0x74a   :  { %5906 = vmatpush1.bf16.msra.mxu0 %v7934_v54 }
 0x74b   :  { %5907 = vmatprep.subr.bf16.mxu0 %v7939_v55 }
 0x74e   :  { %5908 = vmatpush1.bf16.msra.mxu0 %v7937_v30 }
 0x74f   :  { %5909 = vmatprep.subr.bf16.mxu0 %v7942_v57 }
 0x752   :  { %5910 = vmatpush1.bf16.msra.mxu0 %v7940_v58 }
 0x753   :  { %5911 = vmatprep.subr.bf16.mxu0 %v7945_v59 }
 0x756   :  { %5912 = vmatpush1.bf16.msra.mxu0 %v7943_v60 }
 0x757   :  { %5913 = vmatprep.subr.bf16.mxu0 %v7948_v61 }
 0x75a   :  { %5914 = vmatpush1.bf16.msra.mxu0 %v7946_v62 }
 0x75b   :  { %5915 = vmatprep.subr.bf16.mxu0 %v7951_v63 }
 0x75e   :  { %5916 = vmatpush1.bf16.msra.mxu0 %v7949_v0 }
 0x75f   :  { %5917 = vmatprep.subr.bf16.mxu0 %v7954_v1 }
 0x762   :  { %5918 = vmatpush1.bf16.msra.mxu0 %v7952_v2 }
 0x763   :  { %5919 = vmatprep.subr.bf16.mxu0 %v7957_v3 }
 0x766   :  { %5920 = vmatpush1.bf16.msra.mxu0 %v7955_v4 }
 0x767   :  { %5921 = vmatprep.subr.bf16.mxu0 %v7960_v5 }
 0x76a   :  { %5922 = vmatpush1.bf16.msra.mxu0 %v7958_v6 }
 0x76b   :  { %5923 = vmatprep.subr.bf16.mxu0 %v7963_v43 }
 0x76e   :  { %5924 = vmatpush1.bf16.msra.mxu0 %v7961_v11 }
 0x76f   :  { %5925 = vmatprep.subr.bf16.mxu0 %v7966_v13 }
 0x772   :  { %5926 = vmatpush1.bf16.msra.mxu0 %v7964_v14 }
 0x773   :  { %5927 = vmatprep.subr.bf16.mxu0 %v7969_v15 }
 0x776   :  { %5928 = vmatpush1.bf16.msra.mxu0 %v7967_v18 }
 0x779   :  { %5930 = vmatmul.mubr.bf16.vlgmr.msra.gmra.mrb[20].mxu0 %v5523_v19 }
 0x84c   :  { %v5931_v24 = vpop.f32.mrb[20].mxu0 }
 0x84d   :  { %v6759_v56 = vadd.f32 %v5931_v24, %v5529_v17  ;;  %v5933_v25 = vpop.f32.mrb[21].mxu0 }
 0x84e   :  { %v6760_v27 = vadd.f32 %v5933_v25, %v5533_v22  ;;  %v5935_v28 = vpop.f32.mrb[22].mxu0 }
 0x84f   :  { %v5936_v7 = vpop.f32.mrb[23].mxu0 }
 0x850   :  { %v5940_v29 = vcombine.low %v6759_v56, %v6760_v27 }
 0x852   :  { %6738 = vst.sshfl [vmem:[#allocation16] sm:$0x33 pattern:$0x76325410] %v5940_v29 }
 0x853   :  { %8157 = shalt.err (!%p8154_p12)
}
 0x854   :  { %s8158_s11 = scalar_lea.hbm %s8504_s9, 64 }
 0x855   :  { %p8159_p13 = scmp.ne.s32.totalorder %s8504_s9, %s8158_s11  ;;  %p8162_p0 = scmp.lt.u32.totalorder %s8158_s11, %s8504_s9 }
 0x857   :  { %p8164_p1 = pnand %p8162_p0, %p8159_p13 }
 0x859   :  { %8167 = shalt.err (!%p8164_p1)
}
 0x85a   :  { %5959 = dma.vmem_to_hbm [thread:$0]  %s5957_s27, 64, %s8504_s9, [#allocation4]  }
 0x85b   :  { %8178 = dma.done.wait [#allocation4], 64  }
 0x85c   :  { %8179 = vsyncadd [#allocation4], 4294967232 }
 0x85d   :  { %5963 = vsyncpa [#allocation3], 1 }
 0x85e   :  { %5964 = vsyncpa [#allocation6], 1 }
 0x85f   :  { %5965 = vsyncpa [#allocation9], 1 }
 0x860   :  { %5966 = vsyncpa [#allocation12], 1 }
 0x861   :  { %5967 = vsyncpa [#allocation15], 1 }
 0x862   :  { %5968 = vsyncpa [#allocation4], 1 }

</bundles_post_ra>
